<compile_context>
chip_gen: v5e
topology: v5e:2x2
jax: 0.10.0
libtpu: 0.0.40
codegen_flags: <defaults>
</compile_context>

<pallas_src>
import functools

import numpy as np
import jax
import jax.numpy as jnp
from jax.experimental import pallas as pl
from jax.experimental.pallas import tpu as pltpu


PRIMITIVES = [
    "none",
    "max_pool_3x3",
    "avg_pool_3x3",
    "skip_connect",
    "sep_conv_3x3",
    "sep_conv_5x5",
    "dil_conv_3x3",
    "dil_conv_5x5",
]
_IDX = {name: i for i, name in enumerate(PRIMITIVES)}

_BN_EPS = 1e-5
_VMEM_LIMIT = 32 * 1024 * 1024   # safe scoped-VMEM on v5e/v6e/v7x (64 MiB physical on v7x)
_MAX_KK = 25                     # largest window (5x5): im2col scratch rows = _MAX_KK * C


# ----------------------------------------------------------------------------
# Host-side, loop-invariant constants (numpy -> baked-in, zero runtime cost)
# ----------------------------------------------------------------------------
def _tap_masks(N, H, W, K, pad, dil):
    """(K*K, N*H*W) f32 0/1 validity masks for a KxK window (stride 1).

    mask[k, l] == 1 iff tap (ky,kx) of flat position l reads inside its image
    (not zero padding).  Because the flat axis is image-major, these masks also
    kill cross-image bleed from the in-kernel lane rotations.
    """
    pos = np.arange(N * H * W) % (H * W)
    row, col = pos // W, pos % W
    m = np.zeros((K * K, N * H * W), np.float32)
    for ky in range(K):
        dy = ky * dil - pad
        r_ok = (row + dy >= 0) & (row + dy < H)
        for kx in range(K):
            dx = kx * dil - pad
            c_ok = (col + dx >= 0) & (col + dx < W)
            m[ky * K + kx] = (r_ok & c_ok).astype(np.float32)
    return m


def _fold_dw_pw(dw, pw):
    """Fold depthwise taps into the 1x1 conv: W2[co, k*C + c] = pw[co, c] * dw[c, k].

    Lets ReLU->dwKxK->pw1x1 run as ONE wide MXU matmul over the im2col stack.
    Returned in bf16 (MXU-native on v6e/v7x, also fine on v5e); accumulation is f32.
    """
    C, K, _ = dw.shape
    dwf = dw.reshape(C, K * K)                                   # dwf[c, k]
    w2 = pw[:, None, :] * jnp.transpose(dwf)[None, :, :]        # (C, KK, C)
    return w2.reshape(C, K * K * C).astype(jnp.bfloat16)


# ----------------------------------------------------------------------------
# The fused kernel
# ----------------------------------------------------------------------------
def _mixed_op_kernel(w_ref, x_ref,
                     s3a_ref, s3b_ref, s5a_ref, s5b_ref, d3_ref, d5_ref,
                     m31_ref, m51_ref, m32_ref, m54_ref,
                     mxadd_ref, invcnt_ref,
                     o_ref, x2_ref, *, H, W):
    C, L = x_ref.shape
    inv_l = 1.0 / L

    def conv_block(h, w2_ref, m_ref, K, pad, dil):
        """ReLU'd input -> depthwise KxK (folded) -> 1x1 conv -> BN (batch stats)."""
        KK = K * K
        # im2col: one lane rotation (XLU) + one precomputed-mask multiply (VPU)
        # per tap, staged into the shared VMEM scratch (MXU contraction operand).
        for ky in range(K):
            dy = ky * dil - pad
            for kx in range(K):
                dx = kx * dil - pad
                d = dy * W + dx
                sh = h if d == 0 else pltpu.roll(h, (-d) % L, axis=1)
                k = ky * K + kx
                x2_ref[k * C:(k + 1) * C, :] = sh * m_ref[k:k + 1, :]
        x2 = x2_ref[0:KK * C, :].astype(jnp.bfloat16)            # bf16 MXU operand
        y = jnp.dot(w2_ref[...], x2, preferred_element_type=jnp.float32)   # (C, L)
        # BatchNorm (affine=False, training batch statistics over the whole block),
        # two-pass to avoid E[x^2]-E[x]^2 cancellation.
        mean = jnp.sum(y, axis=1, keepdims=True) * inv_l
        yc = y - mean
        var = jnp.sum(yc * yc, axis=1, keepdims=True) * inv_l
        return yc * jax.lax.rsqrt(var + _BN_EPS)

    x = x_ref[...]
    relu_x = jnp.maximum(x, 0.0)          # shared by all four conv candidates

    # sep_conv_3x3 / sep_conv_5x5: two fused (relu->dw->pw->BN) layers each.
    c33 = conv_block(relu_x, s3a_ref, m31_ref, 3, 1, 1)
    c33 = conv_block(jnp.maximum(c33, 0.0), s3b_ref, m31_ref, 3, 1, 1)
    c55 = conv_block(relu_x, s5a_ref, m51_ref, 5, 2, 1)
    c55 = conv_block(jnp.maximum(c55, 0.0), s5b_ref, m51_ref, 5, 2, 1)
    # dil_conv_3x3 / dil_conv_5x5: one fused dilated layer each.
    d33 = conv_block(relu_x, d3_ref, m32_ref, 3, 2, 2)
    d55 = conv_block(relu_x, d5_ref, m54_ref, 5, 4, 2)

    # max_pool_3x3 + avg_pool_3x3 (count_include_pad=False) with precomputed masks.
    # Safe to seed with -inf: the block is the full array (no padded lanes) and
    # the center tap is always valid.
    mx = jnp.full((C, L), -jnp.inf, dtype=jnp.float32)
    sm = jnp.zeros((C, L), dtype=jnp.float32)
    k = 0
    for dy in (-1, 0, 1):
        for dx in (-1, 0, 1):
            d = dy * W + dx
            sh = x if d == 0 else pltpu.roll(x, (-d) % L, axis=1)
            mx = jnp.maximum(mx, sh + mxadd_ref[k:k + 1, :])
            sm = sm + sh * m31_ref[k:k + 1, :]
            k += 1
    avg = sm * invcnt_ref[...]

    # Weighted mix; 'none' (Zero op) contributes w*0 and is dropped; skip = identity.
    acc = w_ref[_IDX["skip_connect"]] * x
    acc = acc + w_ref[_IDX["max_pool_3x3"]] * mx
    acc = acc + w_ref[_IDX["avg_pool_3x3"]] * avg
    acc = acc + w_ref[_IDX["sep_conv_3x3"]] * c33
    acc = acc + w_ref[_IDX["sep_conv_5x5"]] * c55
    acc = acc + w_ref[_IDX["dil_conv_3x3"]] * d33
    acc = acc + w_ref[_IDX["dil_conv_5x5"]] * d55
    o_ref[...] = acc                      # single store of the output tile


# ----------------------------------------------------------------------------
# Wrapper
# ----------------------------------------------------------------------------
def mixed_op_forward(x, weights, params):
    """MixedOp.forward (stride=1): sum_i weights[i] * op_i(x), fused in ONE kernel."""
    N, C, H, W = x.shape
    L = N * H * W
    # TODO(synk): at production sizes keep the surrounding network channel-major
    # (or fold this relayout into entry/exit BlockSpecs) to drop these two
    # transpose HBM round trips.
    xcm = jnp.transpose(x, (1, 0, 2, 3)).reshape(C, L)

    # Loop-invariant masks (depend only on N,H,W) as host constants.
    m31 = _tap_masks(N, H, W, 3, 1, 1)            # sep_conv_3x3 (both layers) + 3x3 pools
    m51 = _tap_masks(N, H, W, 5, 2, 1)            # sep_conv_5x5 (both layers)
    m32 = _tap_masks(N, H, W, 3, 2, 2)            # dil_conv_3x3
    m54 = _tap_masks(N, H, W, 5, 4, 2)            # dil_conv_5x5
    mxadd = np.where(m31 > 0.0, 0.0, -np.inf).astype(np.float32)        # max-pool add-mask
    invcnt = (1.0 / m31.sum(axis=0, keepdims=True)).astype(np.float32)  # avg, no-pad count

    s3, s5 = params["sep_conv_3x3"], params["sep_conv_5x5"]
    d3, d5 = params["dil_conv_3x3"], params["dil_conv_5x5"]
    args = (weights, xcm,
            _fold_dw_pw(s3["dw1"], s3["pw1"]), _fold_dw_pw(s3["dw2"], s3["pw2"]),
            _fold_dw_pw(s5["dw1"], s5["pw1"]), _fold_dw_pw(s5["dw2"], s5["pw2"]),
            _fold_dw_pw(d3["dw"], d3["pw"]), _fold_dw_pw(d5["dw"], d5["pw"]),
            jnp.asarray(m31), jnp.asarray(m51), jnp.asarray(m32), jnp.asarray(m54),
            jnp.asarray(mxadd), jnp.asarray(invcnt))

    kks = (9, 9, 25, 25, 9, 25)                   # taps per fused conv layer
    mask_rows = 9 + 25 + 9 + 25 + 9 + 1
    w2_elems = sum(kk * C * C for kk in kks)
    cost = pl.CostEstimate(
        flops=int(L * C * (sum(kk * (1 + 2 * C) for kk in kks) + 6 * 6 + 27 + 15)),
        transcendentals=int(6 * C),
        bytes_accessed=int(4 * (2 * C * L + mask_rows * L + 8) + 2 * w2_elems),
    )

    # TODO(synk): v7x has 2 TensorCores — at production sizes give this call a
    # "parallel" grid axis (candidate-op split or batch tiles + a two-phase BN
    # reduction) and re-derive VMEM budgets against v7x's 64 MiB.
    ocm = pl.pallas_call(
        functools.partial(_mixed_op_kernel, H=H, W=W),
        out_shape=jax.ShapeDtypeStruct((C, L), jnp.float32),
        in_specs=[pl.BlockSpec(memory_space=pltpu.MemorySpace.SMEM)]      # arch weights
                 + [pl.BlockSpec(memory_space=pltpu.MemorySpace.VMEM)] * (len(args) - 1),
        out_specs=pl.BlockSpec(memory_space=pltpu.MemorySpace.VMEM),
        scratch_shapes=[pltpu.VMEM((_MAX_KK * C, L), jnp.float32)],       # shared im2col
        compiler_params=pltpu.CompilerParams(vmem_limit_bytes=_VMEM_LIMIT),
        cost_estimate=cost,
    )(*args)
    return jnp.transpose(ocm.reshape(C, N, H, W), (1, 0, 2, 3))


# ----------------------------------------------------------------------------
# Deterministic parameter init (shapes follow SepConv / DilConv in DARTS OPS)
# ----------------------------------------------------------------------------
def init_params(key, C):
    keys = iter(jax.random.split(key, 16))
    params = {}
    for name, K in (("sep_conv_3x3", 3), ("sep_conv_5x5", 5)):
        params[name] = {
            "dw1": 0.1 * jax.random.normal(next(keys), (C, K, K), jnp.float32),
            "pw1": 0.1 * jax.random.normal(next(keys), (C, C), jnp.float32),
            "dw2": 0.1 * jax.random.normal(next(keys), (C, K, K), jnp.float32),
            "pw2": 0.1 * jax.random.normal(next(keys), (C, C), jnp.float32),
        }
    for name, K in (("dil_conv_3x3", 3), ("dil_conv_5x5", 5)):
        params[name] = {
            "dw": 0.1 * jax.random.normal(next(keys), (C, K, K), jnp.float32),
            "pw": 0.1 * jax.random.normal(next(keys), (C, C), jnp.float32),
        }
    return params


# ----------------------------------------------------------------------------
# Pure-JAX reference (training-mode BN batch stats, same as DARTS search time)
# ----------------------------------------------------------------------------
def _ref_bn(v):
    mean = jnp.mean(v, axis=(0, 2, 3), keepdims=True)
    var = jnp.mean(jnp.square(v - mean), axis=(0, 2, 3), keepdims=True)
    return (v - mean) * jax.lax.rsqrt(var + _BN_EPS)


def _ref_dw(v, w, pad, dil):
    C = v.shape[1]
    K = w.shape[-1]
    return jax.lax.conv_general_dilated(
        v, w.reshape(C, 1, K, K), window_strides=(1, 1),
        padding=[(pad, pad), (pad, pad)], rhs_dilation=(dil, dil),
        dimension_numbers=("NCHW", "OIHW", "NCHW"),
        feature_group_count=C, precision=jax.lax.Precision.HIGHEST)


def _ref_pw(v, w):
    return jax.lax.conv_general_dilated(
        v, w[:, :, None, None], (1, 1), "VALID",
        dimension_numbers=("NCHW", "OIHW", "NCHW"),
        precision=jax.lax.Precision.HIGHEST)


def _ref_sep(v, p, pad):
    h = _ref_bn(_ref_pw(_ref_dw(jnp.maximum(v, 0.0), p["dw1"], pad, 1), p["pw1"]))
    return _ref_bn(_ref_pw(_ref_dw(jnp.maximum(h, 0.0), p["dw2"], pad, 1), p["pw2"]))


def _ref_dil(v, p, pad, dil):
    return _ref_bn(_ref_pw(_ref_dw(jnp.maximum(v, 0.0), p["dw"], pad, dil), p["pw"]))


def _ref_maxpool(v):
    return jax.lax.reduce_window(v, -jnp.inf, jax.lax.max, (1, 1, 3, 3), (1, 1, 1, 1),
                                 [(0, 0), (0, 0), (1, 1), (1, 1)])


def _ref_avgpool(v):
    s = jax.lax.reduce_window(v, 0.0, jax.lax.add, (1, 1, 3, 3), (1, 1, 1, 1),
                              [(0, 0), (0, 0), (1, 1), (1, 1)])
    c = jax.lax.reduce_window(jnp.ones_like(v), 0.0, jax.lax.add, (1, 1, 3, 3),
                              (1, 1, 1, 1), [(0, 0), (0, 0), (1, 1), (1, 1)])
    return s / c


def _reference_mixed_op(x, weights, params):
    outs = [
        jnp.zeros_like(x),                                   # none
        _ref_maxpool(x),                                     # max_pool_3x3
        _ref_avgpool(x),                                     # avg_pool_3x3
        x,                                                   # skip_connect
        _ref_sep(x, params["sep_conv_3x3"], 1),
        _ref_sep(x, params["sep_conv_5x5"], 2),
        _ref_dil(x, params["dil_conv_3x3"], 2, 2),
        _ref_dil(x, params["dil_conv_5x5"], 4, 2),
    ]
    acc = jnp.zeros_like(x)
    for i, o in enumerate(outs):
        acc = acc + weights[i] * o
    return acc


if __name__ == "__main__":
    key = jax.random.PRNGKey(0)
    k_x, k_w, k_p = jax.random.split(key, 3)

    N, C, H, W = 2, 4, 16, 16
    x = jax.random.normal(k_x, (N, C, H, W), jnp.float32)
    # architecture weights (softmax over alphas), one per primitive
    weights = jax.nn.softmax(jax.random.normal(k_w, (len(PRIMITIVES),), jnp.float32))
    params = init_params(k_p, C)

    out = jax.block_until_ready(jax.jit(mixed_op_forward)(x, weights, params))

    assert out.shape == (N, C, H, W)
    assert out.dtype == jnp.float32
    assert bool(jnp.all(jnp.isfinite(out)))

    # Numerical check against a pure-JAX (f32, HIGHEST precision) reference.
    # Tolerance allows for the bf16 MXU operands (f32 accumulation, BN renormalizes).
    ref = jax.block_until_ready(_reference_mixed_op(x, weights, params))
    max_err = float(jnp.max(jnp.abs(out - ref)))
    assert max_err < 3e-2, f"max abs error vs reference: {max_err}"

    print("KERNEL_OK")
</pallas_src>

<mosaic_0001>
module attributes {stable_mosaic.version = 11 : i64} {
  func.func @_mixed_op_kernel(%arg0: memref<8xf32, #tpu.memory_space<smem>>, %arg1: memref<4x512xf32, #tpu.memory_space<vmem>>, %arg2: memref<4x36xbf16, #tpu.memory_space<vmem>>, %arg3: memref<4x36xbf16, #tpu.memory_space<vmem>>, %arg4: memref<4x100xbf16, #tpu.memory_space<vmem>>, %arg5: memref<4x100xbf16, #tpu.memory_space<vmem>>, %arg6: memref<4x36xbf16, #tpu.memory_space<vmem>>, %arg7: memref<4x100xbf16, #tpu.memory_space<vmem>>, %arg8: memref<9x512xf32, #tpu.memory_space<vmem>>, %arg9: memref<25x512xf32, #tpu.memory_space<vmem>>, %arg10: memref<9x512xf32, #tpu.memory_space<vmem>>, %arg11: memref<25x512xf32, #tpu.memory_space<vmem>>, %arg12: memref<9x512xf32, #tpu.memory_space<vmem>>, %arg13: memref<1x512xf32, #tpu.memory_space<vmem>>, %arg14: memref<4x512xf32, #tpu.memory_space<vmem>>, %arg15: memref<100x512xf32, #tpu.memory_space<vmem>>) attributes {dimension_semantics = [], scalar_prefetch = 0 : i64, scratch_operands = 1 : i64, tpu.core_type = #tpu.core_type<tc>} {
    %c0 = arith.constant 0 : index
    %c0_0 = arith.constant 0 : index
    %0 = vector.load %arg1[%c0, %c0_0] : memref<4x512xf32, #tpu.memory_space<vmem>>, vector<4x512xf32>
    %cst = arith.constant 0.000000e+00 : f32
    %1 = vector.broadcast %cst : f32 to vector<4x512xf32>
    %2 = arith.maximumf %0, %1 : vector<4x512xf32>
    %c17_i32 = arith.constant 17 : i32
    %3 = tpu.dynamic_rotate %2 by %c17_i32 dim 1 : vector<4x512xf32>, i32 -> vector<4x512xf32>
    %c0_1 = arith.constant 0 : index
    %c0_2 = arith.constant 0 : index
    %4 = vector.load %arg8[%c0_1, %c0_2] : memref<9x512xf32, #tpu.memory_space<vmem>>, vector<1x512xf32>
    %5 = vector.broadcast %4 : vector<1x512xf32> to vector<4x512xf32>
    %6 = arith.mulf %3, %5 : vector<4x512xf32>
    %c0_3 = arith.constant 0 : index
    %c0_4 = arith.constant 0 : index
    %7 = vector.load %arg15[%c0_3, %c0_4] : memref<100x512xf32, #tpu.memory_space<vmem>>, vector<4x512xf32>
    tpu.vector_store %arg15[%c0_3, %c0_4], %6 {strides = array<i32>} : memref<100x512xf32, #tpu.memory_space<vmem>>, vector<4x512xf32>,
    %c16_i32 = arith.constant 16 : i32
    %8 = tpu.dynamic_rotate %2 by %c16_i32 dim 1 : vector<4x512xf32>, i32 -> vector<4x512xf32>
    %c1 = arith.constant 1 : index
    %c0_5 = arith.constant 0 : index
    %9 = vector.load %arg8[%c1, %c0_5] : memref<9x512xf32, #tpu.memory_space<vmem>>, vector<1x512xf32>
    %10 = vector.broadcast %9 : vector<1x512xf32> to vector<4x512xf32>
    %11 = arith.mulf %8, %10 : vector<4x512xf32>
    %c4 = arith.constant 4 : index
    %c0_6 = arith.constant 0 : index
    %12 = vector.load %arg15[%c4, %c0_6] : memref<100x512xf32, #tpu.memory_space<vmem>>, vector<4x512xf32>
    tpu.vector_store %arg15[%c4, %c0_6], %11 {strides = array<i32>} : memref<100x512xf32, #tpu.memory_space<vmem>>, vector<4x512xf32>,
    %c15_i32 = arith.constant 15 : i32
    %13 = tpu.dynamic_rotate %2 by %c15_i32 dim 1 : vector<4x512xf32>, i32 -> vector<4x512xf32>
    %c2 = arith.constant 2 : index
    %c0_7 = arith.constant 0 : index
    %14 = vector.load %arg8[%c2, %c0_7] : memref<9x512xf32, #tpu.memory_space<vmem>>, vector<1x512xf32>
    %15 = vector.broadcast %14 : vector<1x512xf32> to vector<4x512xf32>
    %16 = arith.mulf %13, %15 : vector<4x512xf32>
    %c8 = arith.constant 8 : index
    %c0_8 = arith.constant 0 : index
    %17 = vector.load %arg15[%c8, %c0_8] : memref<100x512xf32, #tpu.memory_space<vmem>>, vector<4x512xf32>
    tpu.vector_store %arg15[%c8, %c0_8], %16 {strides = array<i32>} : memref<100x512xf32, #tpu.memory_space<vmem>>, vector<4x512xf32>,
    %c1_i32 = arith.constant 1 : i32
    %18 = tpu.dynamic_rotate %2 by %c1_i32 dim 1 : vector<4x512xf32>, i32 -> vector<4x512xf32>
    %c3 = arith.constant 3 : index
    %c0_9 = arith.constant 0 : index
    %19 = vector.load %arg8[%c3, %c0_9] : memref<9x512xf32, #tpu.memory_space<vmem>>, vector<1x512xf32>
    %20 = vector.broadcast %19 : vector<1x512xf32> to vector<4x512xf32>
    %21 = arith.mulf %18, %20 : vector<4x512xf32>
    %c12 = arith.constant 12 : index
    %c0_10 = arith.constant 0 : index
    %22 = vector.load %arg15[%c12, %c0_10] : memref<100x512xf32, #tpu.memory_space<vmem>>, vector<4x512xf32>
    tpu.vector_store %arg15[%c12, %c0_10], %21 {strides = array<i32>} : memref<100x512xf32, #tpu.memory_space<vmem>>, vector<4x512xf32>,
    %c4_11 = arith.constant 4 : index
    %c0_12 = arith.constant 0 : index
    %23 = vector.load %arg8[%c4_11, %c0_12] : memref<9x512xf32, #tpu.memory_space<vmem>>, vector<1x512xf32>
    %24 = vector.broadcast %23 : vector<1x512xf32> to vector<4x512xf32>
    %25 = arith.mulf %2, %24 : vector<4x512xf32>
    %c16 = arith.constant 16 : index
    %c0_13 = arith.constant 0 : index
    %26 = vector.load %arg15[%c16, %c0_13] : memref<100x512xf32, #tpu.memory_space<vmem>>, vector<4x512xf32>
    tpu.vector_store %arg15[%c16, %c0_13], %25 {strides = array<i32>} : memref<100x512xf32, #tpu.memory_space<vmem>>, vector<4x512xf32>,
    %c511_i32 = arith.constant 511 : i32
    %27 = tpu.dynamic_rotate %2 by %c511_i32 dim 1 : vector<4x512xf32>, i32 -> vector<4x512xf32>
    %c5 = arith.constant 5 : index
    %c0_14 = arith.constant 0 : index
    %28 = vector.load %arg8[%c5, %c0_14] : memref<9x512xf32, #tpu.memory_space<vmem>>, vector<1x512xf32>
    %29 = vector.broadcast %28 : vector<1x512xf32> to vector<4x512xf32>
    %30 = arith.mulf %27, %29 : vector<4x512xf32>
    %c20 = arith.constant 20 : index
    %c0_15 = arith.constant 0 : index
    %31 = vector.load %arg15[%c20, %c0_15] : memref<100x512xf32, #tpu.memory_space<vmem>>, vector<4x512xf32>
    tpu.vector_store %arg15[%c20, %c0_15], %30 {strides = array<i32>} : memref<100x512xf32, #tpu.memory_space<vmem>>, vector<4x512xf32>,
    %c497_i32 = arith.constant 497 : i32
    %32 = tpu.dynamic_rotate %2 by %c497_i32 dim 1 : vector<4x512xf32>, i32 -> vector<4x512xf32>
    %c6 = arith.constant 6 : index
    %c0_16 = arith.constant 0 : index
    %33 = vector.load %arg8[%c6, %c0_16] : memref<9x512xf32, #tpu.memory_space<vmem>>, vector<1x512xf32>
    %34 = vector.broadcast %33 : vector<1x512xf32> to vector<4x512xf32>
    %35 = arith.mulf %32, %34 : vector<4x512xf32>
    %c24 = arith.constant 24 : index
    %c0_17 = arith.constant 0 : index
    %36 = vector.load %arg15[%c24, %c0_17] : memref<100x512xf32, #tpu.memory_space<vmem>>, vector<4x512xf32>
    tpu.vector_store %arg15[%c24, %c0_17], %35 {strides = array<i32>} : memref<100x512xf32, #tpu.memory_space<vmem>>, vector<4x512xf32>,
    %c496_i32 = arith.constant 496 : i32
    %37 = tpu.dynamic_rotate %2 by %c496_i32 dim 1 : vector<4x512xf32>, i32 -> vector<4x512xf32>
    %c7 = arith.constant 7 : index
    %c0_18 = arith.constant 0 : index
    %38 = vector.load %arg8[%c7, %c0_18] : memref<9x512xf32, #tpu.memory_space<vmem>>, vector<1x512xf32>
    %39 = vector.broadcast %38 : vector<1x512xf32> to vector<4x512xf32>
    %40 = arith.mulf %37, %39 : vector<4x512xf32>
    %c28 = arith.constant 28 : index
    %c0_19 = arith.constant 0 : index
    %41 = vector.load %arg15[%c28, %c0_19] : memref<100x512xf32, #tpu.memory_space<vmem>>, vector<4x512xf32>
    tpu.vector_store %arg15[%c28, %c0_19], %40 {strides = array<i32>} : memref<100x512xf32, #tpu.memory_space<vmem>>, vector<4x512xf32>,
    %c495_i32 = arith.constant 495 : i32
    %42 = tpu.dynamic_rotate %2 by %c495_i32 dim 1 : vector<4x512xf32>, i32 -> vector<4x512xf32>
    %c8_20 = arith.constant 8 : index
    %c0_21 = arith.constant 0 : index
    %43 = vector.load %arg8[%c8_20, %c0_21] : memref<9x512xf32, #tpu.memory_space<vmem>>, vector<1x512xf32>
    %44 = vector.broadcast %43 : vector<1x512xf32> to vector<4x512xf32>
    %45 = arith.mulf %42, %44 : vector<4x512xf32>
    %c32 = arith.constant 32 : index
    %c0_22 = arith.constant 0 : index
    %46 = vector.load %arg15[%c32, %c0_22] : memref<100x512xf32, #tpu.memory_space<vmem>>, vector<4x512xf32>
    tpu.vector_store %arg15[%c32, %c0_22], %45 {strides = array<i32>} : memref<100x512xf32, #tpu.memory_space<vmem>>, vector<4x512xf32>,
    %c0_23 = arith.constant 0 : index
    %c0_24 = arith.constant 0 : index
    %47 = vector.load %arg15[%c0_23, %c0_24] : memref<100x512xf32, #tpu.memory_space<vmem>>, vector<36x512xf32>
    %48 = arith.truncf %47 : vector<36x512xf32> to vector<36x512xbf16>
    %c0_25 = arith.constant 0 : index
    %c0_26 = arith.constant 0 : index
    %49 = vector.load %arg2[%c0_25, %c0_26] : memref<4x36xbf16, #tpu.memory_space<vmem>>, vector<4x36xbf16>
    %cst_27 = arith.constant dense<0.000000e+00> : vector<4x512xf32>
    %50 = tpu.matmul %49, %48, %cst_27 {dimension_numbers = #tpu.dot_dimension_numbers<[1], [0], [0], [1], [0, 0, 1, 1], [], []>} : vector<4x36xbf16>, vector<36x512xbf16>, vector<4x512xf32> -> vector<4x512xf32>
    %cst_28 = arith.constant dense<0.000000e+00> : vector<4xf32>
    %51 = vector.multi_reduction <add>, %50, %cst_28 [1] : vector<4x512xf32> to vector<4xf32>
    %52 = vector.shape_cast %51 : vector<4xf32> to vector<4x1xf32>
    %cst_29 = arith.constant 0.001953125 : f32
    %53 = vector.broadcast %cst_29 : f32 to vector<4x1xf32>
    %54 = arith.mulf %52, %53 : vector<4x1xf32>
    %55 = vector.broadcast %54 : vector<4x1xf32> to vector<4x512xf32>
    %56 = arith.subf %50, %55 : vector<4x512xf32>
    %57 = arith.mulf %56, %56 : vector<4x512xf32>
    %cst_30 = arith.constant dense<0.000000e+00> : vector<4xf32>
    %58 = vector.multi_reduction <add>, %57, %cst_30 [1] : vector<4x512xf32> to vector<4xf32>
    %59 = vector.shape_cast %58 : vector<4xf32> to vector<4x1xf32>
    %cst_31 = arith.constant 0.001953125 : f32
    %60 = vector.broadcast %cst_31 : f32 to vector<4x1xf32>
    %61 = arith.mulf %59, %60 : vector<4x1xf32>
    %cst_32 = arith.constant 9.99999974E-6 : f32
    %62 = vector.broadcast %cst_32 : f32 to vector<4x1xf32>
    %63 = arith.addf %61, %62 : vector<4x1xf32>
    %64 = math.rsqrt %63 : vector<4x1xf32>
    %65 = vector.broadcast %64 : vector<4x1xf32> to vector<4x512xf32>
    %66 = arith.mulf %56, %65 : vector<4x512xf32>
    %cst_33 = arith.constant 0.000000e+00 : f32
    %67 = vector.broadcast %cst_33 : f32 to vector<4x512xf32>
    %68 = arith.maximumf %66, %67 : vector<4x512xf32>
    %c17_i32_34 = arith.constant 17 : i32
    %69 = tpu.dynamic_rotate %68 by %c17_i32_34 dim 1 : vector<4x512xf32>, i32 -> vector<4x512xf32>
    %c0_35 = arith.constant 0 : index
    %c0_36 = arith.constant 0 : index
    %70 = vector.load %arg8[%c0_35, %c0_36] : memref<9x512xf32, #tpu.memory_space<vmem>>, vector<1x512xf32>
    %71 = vector.broadcast %70 : vector<1x512xf32> to vector<4x512xf32>
    %72 = arith.mulf %69, %71 : vector<4x512xf32>
    %c0_37 = arith.constant 0 : index
    %c0_38 = arith.constant 0 : index
    %73 = vector.load %arg15[%c0_37, %c0_38] : memref<100x512xf32, #tpu.memory_space<vmem>>, vector<4x512xf32>
    tpu.vector_store %arg15[%c0_37, %c0_38], %72 {strides = array<i32>} : memref<100x512xf32, #tpu.memory_space<vmem>>, vector<4x512xf32>,
    %c16_i32_39 = arith.constant 16 : i32
    %74 = tpu.dynamic_rotate %68 by %c16_i32_39 dim 1 : vector<4x512xf32>, i32 -> vector<4x512xf32>
    %c1_40 = arith.constant 1 : index
    %c0_41 = arith.constant 0 : index
    %75 = vector.load %arg8[%c1_40, %c0_41] : memref<9x512xf32, #tpu.memory_space<vmem>>, vector<1x512xf32>
    %76 = vector.broadcast %75 : vector<1x512xf32> to vector<4x512xf32>
    %77 = arith.mulf %74, %76 : vector<4x512xf32>
    %c4_42 = arith.constant 4 : index
    %c0_43 = arith.constant 0 : index
    %78 = vector.load %arg15[%c4_42, %c0_43] : memref<100x512xf32, #tpu.memory_space<vmem>>, vector<4x512xf32>
    tpu.vector_store %arg15[%c4_42, %c0_43], %77 {strides = array<i32>} : memref<100x512xf32, #tpu.memory_space<vmem>>, vector<4x512xf32>,
    %c15_i32_44 = arith.constant 15 : i32
    %79 = tpu.dynamic_rotate %68 by %c15_i32_44 dim 1 : vector<4x512xf32>, i32 -> vector<4x512xf32>
    %c2_45 = arith.constant 2 : index
    %c0_46 = arith.constant 0 : index
    %80 = vector.load %arg8[%c2_45, %c0_46] : memref<9x512xf32, #tpu.memory_space<vmem>>, vector<1x512xf32>
    %81 = vector.broadcast %80 : vector<1x512xf32> to vector<4x512xf32>
    %82 = arith.mulf %79, %81 : vector<4x512xf32>
    %c8_47 = arith.constant 8 : index
    %c0_48 = arith.constant 0 : index
    %83 = vector.load %arg15[%c8_47, %c0_48] : memref<100x512xf32, #tpu.memory_space<vmem>>, vector<4x512xf32>
    tpu.vector_store %arg15[%c8_47, %c0_48], %82 {strides = array<i32>} : memref<100x512xf32, #tpu.memory_space<vmem>>, vector<4x512xf32>,
    %c1_i32_49 = arith.constant 1 : i32
    %84 = tpu.dynamic_rotate %68 by %c1_i32_49 dim 1 : vector<4x512xf32>, i32 -> vector<4x512xf32>
    %c3_50 = arith.constant 3 : index
    %c0_51 = arith.constant 0 : index
    %85 = vector.load %arg8[%c3_50, %c0_51] : memref<9x512xf32, #tpu.memory_space<vmem>>, vector<1x512xf32>
    %86 = vector.broadcast %85 : vector<1x512xf32> to vector<4x512xf32>
    %87 = arith.mulf %84, %86 : vector<4x512xf32>
    %c12_52 = arith.constant 12 : index
    %c0_53 = arith.constant 0 : index
    %88 = vector.load %arg15[%c12_52, %c0_53] : memref<100x512xf32, #tpu.memory_space<vmem>>, vector<4x512xf32>
    tpu.vector_store %arg15[%c12_52, %c0_53], %87 {strides = array<i32>} : memref<100x512xf32, #tpu.memory_space<vmem>>, vector<4x512xf32>,
    %c4_54 = arith.constant 4 : index
    %c0_55 = arith.constant 0 : index
    %89 = vector.load %arg8[%c4_54, %c0_55] : memref<9x512xf32, #tpu.memory_space<vmem>>, vector<1x512xf32>
    %90 = vector.broadcast %89 : vector<1x512xf32> to vector<4x512xf32>
    %91 = arith.mulf %68, %90 : vector<4x512xf32>
    %c16_56 = arith.constant 16 : index
    %c0_57 = arith.constant 0 : index
    %92 = vector.load %arg15[%c16_56, %c0_57] : memref<100x512xf32, #tpu.memory_space<vmem>>, vector<4x512xf32>
    tpu.vector_store %arg15[%c16_56, %c0_57], %91 {strides = array<i32>} : memref<100x512xf32, #tpu.memory_space<vmem>>, vector<4x512xf32>,
    %c511_i32_58 = arith.constant 511 : i32
    %93 = tpu.dynamic_rotate %68 by %c511_i32_58 dim 1 : vector<4x512xf32>, i32 -> vector<4x512xf32>
    %c5_59 = arith.constant 5 : index
    %c0_60 = arith.constant 0 : index
    %94 = vector.load %arg8[%c5_59, %c0_60] : memref<9x512xf32, #tpu.memory_space<vmem>>, vector<1x512xf32>
    %95 = vector.broadcast %94 : vector<1x512xf32> to vector<4x512xf32>
    %96 = arith.mulf %93, %95 : vector<4x512xf32>
    %c20_61 = arith.constant 20 : index
    %c0_62 = arith.constant 0 : index
    %97 = vector.load %arg15[%c20_61, %c0_62] : memref<100x512xf32, #tpu.memory_space<vmem>>, vector<4x512xf32>
    tpu.vector_store %arg15[%c20_61, %c0_62], %96 {strides = array<i32>} : memref<100x512xf32, #tpu.memory_space<vmem>>, vector<4x512xf32>,
    %c497_i32_63 = arith.constant 497 : i32
    %98 = tpu.dynamic_rotate %68 by %c497_i32_63 dim 1 : vector<4x512xf32>, i32 -> vector<4x512xf32>
    %c6_64 = arith.constant 6 : index
    %c0_65 = arith.constant 0 : index
    %99 = vector.load %arg8[%c6_64, %c0_65] : memref<9x512xf32, #tpu.memory_space<vmem>>, vector<1x512xf32>
    %100 = vector.broadcast %99 : vector<1x512xf32> to vector<4x512xf32>
    %101 = arith.mulf %98, %100 : vector<4x512xf32>
    %c24_66 = arith.constant 24 : index
    %c0_67 = arith.constant 0 : index
    %102 = vector.load %arg15[%c24_66, %c0_67] : memref<100x512xf32, #tpu.memory_space<vmem>>, vector<4x512xf32>
    tpu.vector_store %arg15[%c24_66, %c0_67], %101 {strides = array<i32>} : memref<100x512xf32, #tpu.memory_space<vmem>>, vector<4x512xf32>,
    %c496_i32_68 = arith.constant 496 : i32
    %103 = tpu.dynamic_rotate %68 by %c496_i32_68 dim 1 : vector<4x512xf32>, i32 -> vector<4x512xf32>
    %c7_69 = arith.constant 7 : index
    %c0_70 = arith.constant 0 : index
    %104 = vector.load %arg8[%c7_69, %c0_70] : memref<9x512xf32, #tpu.memory_space<vmem>>, vector<1x512xf32>
    %105 = vector.broadcast %104 : vector<1x512xf32> to vector<4x512xf32>
    %106 = arith.mulf %103, %105 : vector<4x512xf32>
    %c28_71 = arith.constant 28 : index
    %c0_72 = arith.constant 0 : index
    %107 = vector.load %arg15[%c28_71, %c0_72] : memref<100x512xf32, #tpu.memory_space<vmem>>, vector<4x512xf32>
    tpu.vector_store %arg15[%c28_71, %c0_72], %106 {strides = array<i32>} : memref<100x512xf32, #tpu.memory_space<vmem>>, vector<4x512xf32>,
    %c495_i32_73 = arith.constant 495 : i32
    %108 = tpu.dynamic_rotate %68 by %c495_i32_73 dim 1 : vector<4x512xf32>, i32 -> vector<4x512xf32>
    %c8_74 = arith.constant 8 : index
    %c0_75 = arith.constant 0 : index
    %109 = vector.load %arg8[%c8_74, %c0_75] : memref<9x512xf32, #tpu.memory_space<vmem>>, vector<1x512xf32>
    %110 = vector.broadcast %109 : vector<1x512xf32> to vector<4x512xf32>
    %111 = arith.mulf %108, %110 : vector<4x512xf32>
    %c32_76 = arith.constant 32 : index
    %c0_77 = arith.constant 0 : index
    %112 = vector.load %arg15[%c32_76, %c0_77] : memref<100x512xf32, #tpu.memory_space<vmem>>, vector<4x512xf32>
    tpu.vector_store %arg15[%c32_76, %c0_77], %111 {strides = array<i32>} : memref<100x512xf32, #tpu.memory_space<vmem>>, vector<4x512xf32>,
    %c0_78 = arith.constant 0 : index
    %c0_79 = arith.constant 0 : index
    %113 = vector.load %arg15[%c0_78, %c0_79] : memref<100x512xf32, #tpu.memory_space<vmem>>, vector<36x512xf32>
    %114 = arith.truncf %113 : vector<36x512xf32> to vector<36x512xbf16>
    %c0_80 = arith.constant 0 : index
    %c0_81 = arith.constant 0 : index
    %115 = vector.load %arg3[%c0_80, %c0_81] : memref<4x36xbf16, #tpu.memory_space<vmem>>, vector<4x36xbf16>
    %cst_82 = arith.constant dense<0.000000e+00> : vector<4x512xf32>
    %116 = tpu.matmul %115, %114, %cst_82 {dimension_numbers = #tpu.dot_dimension_numbers<[1], [0], [0], [1], [0, 0, 1, 1], [], []>} : vector<4x36xbf16>, vector<36x512xbf16>, vector<4x512xf32> -> vector<4x512xf32>
    %cst_83 = arith.constant dense<0.000000e+00> : vector<4xf32>
    %117 = vector.multi_reduction <add>, %116, %cst_83 [1] : vector<4x512xf32> to vector<4xf32>
    %118 = vector.shape_cast %117 : vector<4xf32> to vector<4x1xf32>
    %cst_84 = arith.constant 0.001953125 : f32
    %119 = vector.broadcast %cst_84 : f32 to vector<4x1xf32>
    %120 = arith.mulf %118, %119 : vector<4x1xf32>
    %121 = vector.broadcast %120 : vector<4x1xf32> to vector<4x512xf32>
    %122 = arith.subf %116, %121 : vector<4x512xf32>
    %123 = arith.mulf %122, %122 : vector<4x512xf32>
    %cst_85 = arith.constant dense<0.000000e+00> : vector<4xf32>
    %124 = vector.multi_reduction <add>, %123, %cst_85 [1] : vector<4x512xf32> to vector<4xf32>
    %125 = vector.shape_cast %124 : vector<4xf32> to vector<4x1xf32>
    %cst_86 = arith.constant 0.001953125 : f32
    %126 = vector.broadcast %cst_86 : f32 to vector<4x1xf32>
    %127 = arith.mulf %125, %126 : vector<4x1xf32>
    %cst_87 = arith.constant 9.99999974E-6 : f32
    %128 = vector.broadcast %cst_87 : f32 to vector<4x1xf32>
    %129 = arith.addf %127, %128 : vector<4x1xf32>
    %130 = math.rsqrt %129 : vector<4x1xf32>
    %131 = vector.broadcast %130 : vector<4x1xf32> to vector<4x512xf32>
    %132 = arith.mulf %122, %131 : vector<4x512xf32>
    %c34_i32 = arith.constant 34 : i32
    %133 = tpu.dynamic_rotate %2 by %c34_i32 dim 1 : vector<4x512xf32>, i32 -> vector<4x512xf32>
    %c0_88 = arith.constant 0 : index
    %c0_89 = arith.constant 0 : index
    %134 = vector.load %arg9[%c0_88, %c0_89] : memref<25x512xf32, #tpu.memory_space<vmem>>, vector<1x512xf32>
    %135 = vector.broadcast %134 : vector<1x512xf32> to vector<4x512xf32>
    %136 = arith.mulf %133, %135 : vector<4x512xf32>
    %c0_90 = arith.constant 0 : index
    %c0_91 = arith.constant 0 : index
    %137 = vector.load %arg15[%c0_90, %c0_91] : memref<100x512xf32, #tpu.memory_space<vmem>>, vector<4x512xf32>
    tpu.vector_store %arg15[%c0_90, %c0_91], %136 {strides = array<i32>} : memref<100x512xf32, #tpu.memory_space<vmem>>, vector<4x512xf32>,
    %c33_i32 = arith.constant 33 : i32
    %138 = tpu.dynamic_rotate %2 by %c33_i32 dim 1 : vector<4x512xf32>, i32 -> vector<4x512xf32>
    %c1_92 = arith.constant 1 : index
    %c0_93 = arith.constant 0 : index
    %139 = vector.load %arg9[%c1_92, %c0_93] : memref<25x512xf32, #tpu.memory_space<vmem>>, vector<1x512xf32>
    %140 = vector.broadcast %139 : vector<1x512xf32> to vector<4x512xf32>
    %141 = arith.mulf %138, %140 : vector<4x512xf32>
    %c4_94 = arith.constant 4 : index
    %c0_95 = arith.constant 0 : index
    %142 = vector.load %arg15[%c4_94, %c0_95] : memref<100x512xf32, #tpu.memory_space<vmem>>, vector<4x512xf32>
    tpu.vector_store %arg15[%c4_94, %c0_95], %141 {strides = array<i32>} : memref<100x512xf32, #tpu.memory_space<vmem>>, vector<4x512xf32>,
    %c32_i32 = arith.constant 32 : i32
    %143 = tpu.dynamic_rotate %2 by %c32_i32 dim 1 : vector<4x512xf32>, i32 -> vector<4x512xf32>
    %c2_96 = arith.constant 2 : index
    %c0_97 = arith.constant 0 : index
    %144 = vector.load %arg9[%c2_96, %c0_97] : memref<25x512xf32, #tpu.memory_space<vmem>>, vector<1x512xf32>
    %145 = vector.broadcast %144 : vector<1x512xf32> to vector<4x512xf32>
    %146 = arith.mulf %143, %145 : vector<4x512xf32>
    %c8_98 = arith.constant 8 : index
    %c0_99 = arith.constant 0 : index
    %147 = vector.load %arg15[%c8_98, %c0_99] : memref<100x512xf32, #tpu.memory_space<vmem>>, vector<4x512xf32>
    tpu.vector_store %arg15[%c8_98, %c0_99], %146 {strides = array<i32>} : memref<100x512xf32, #tpu.memory_space<vmem>>, vector<4x512xf32>,
    %c31_i32 = arith.constant 31 : i32
    %148 = tpu.dynamic_rotate %2 by %c31_i32 dim 1 : vector<4x512xf32>, i32 -> vector<4x512xf32>
    %c3_100 = arith.constant 3 : index
    %c0_101 = arith.constant 0 : index
    %149 = vector.load %arg9[%c3_100, %c0_101] : memref<25x512xf32, #tpu.memory_space<vmem>>, vector<1x512xf32>
    %150 = vector.broadcast %149 : vector<1x512xf32> to vector<4x512xf32>
    %151 = arith.mulf %148, %150 : vector<4x512xf32>
    %c12_102 = arith.constant 12 : index
    %c0_103 = arith.constant 0 : index
    %152 = vector.load %arg15[%c12_102, %c0_103] : memref<100x512xf32, #tpu.memory_space<vmem>>, vector<4x512xf32>
    tpu.vector_store %arg15[%c12_102, %c0_103], %151 {strides = array<i32>} : memref<100x512xf32, #tpu.memory_space<vmem>>, vector<4x512xf32>,
    %c30_i32 = arith.constant 30 : i32
    %153 = tpu.dynamic_rotate %2 by %c30_i32 dim 1 : vector<4x512xf32>, i32 -> vector<4x512xf32>
    %c4_104 = arith.constant 4 : index
    %c0_105 = arith.constant 0 : index
    %154 = vector.load %arg9[%c4_104, %c0_105] : memref<25x512xf32, #tpu.memory_space<vmem>>, vector<1x512xf32>
    %155 = vector.broadcast %154 : vector<1x512xf32> to vector<4x512xf32>
    %156 = arith.mulf %153, %155 : vector<4x512xf32>
    %c16_106 = arith.constant 16 : index
    %c0_107 = arith.constant 0 : index
    %157 = vector.load %arg15[%c16_106, %c0_107] : memref<100x512xf32, #tpu.memory_space<vmem>>, vector<4x512xf32>
    tpu.vector_store %arg15[%c16_106, %c0_107], %156 {strides = array<i32>} : memref<100x512xf32, #tpu.memory_space<vmem>>, vector<4x512xf32>,
    %c18_i32 = arith.constant 18 : i32
    %158 = tpu.dynamic_rotate %2 by %c18_i32 dim 1 : vector<4x512xf32>, i32 -> vector<4x512xf32>
    %c5_108 = arith.constant 5 : index
    %c0_109 = arith.constant 0 : index
    %159 = vector.load %arg9[%c5_108, %c0_109] : memref<25x512xf32, #tpu.memory_space<vmem>>, vector<1x512xf32>
    %160 = vector.broadcast %159 : vector<1x512xf32> to vector<4x512xf32>
    %161 = arith.mulf %158, %160 : vector<4x512xf32>
    %c20_110 = arith.constant 20 : index
    %c0_111 = arith.constant 0 : index
    %162 = vector.load %arg15[%c20_110, %c0_111] : memref<100x512xf32, #tpu.memory_space<vmem>>, vector<4x512xf32>
    tpu.vector_store %arg15[%c20_110, %c0_111], %161 {strides = array<i32>} : memref<100x512xf32, #tpu.memory_space<vmem>>, vector<4x512xf32>,
    %c17_i32_112 = arith.constant 17 : i32
    %163 = tpu.dynamic_rotate %2 by %c17_i32_112 dim 1 : vector<4x512xf32>, i32 -> vector<4x512xf32>
    %c6_113 = arith.constant 6 : index
    %c0_114 = arith.constant 0 : index
    %164 = vector.load %arg9[%c6_113, %c0_114] : memref<25x512xf32, #tpu.memory_space<vmem>>, vector<1x512xf32>
    %165 = vector.broadcast %164 : vector<1x512xf32> to vector<4x512xf32>
    %166 = arith.mulf %163, %165 : vector<4x512xf32>
    %c24_115 = arith.constant 24 : index
    %c0_116 = arith.constant 0 : index
    %167 = vector.load %arg15[%c24_115, %c0_116] : memref<100x512xf32, #tpu.memory_space<vmem>>, vector<4x512xf32>
    tpu.vector_store %arg15[%c24_115, %c0_116], %166 {strides = array<i32>} : memref<100x512xf32, #tpu.memory_space<vmem>>, vector<4x512xf32>,
    %c16_i32_117 = arith.constant 16 : i32
    %168 = tpu.dynamic_rotate %2 by %c16_i32_117 dim 1 : vector<4x512xf32>, i32 -> vector<4x512xf32>
    %c7_118 = arith.constant 7 : index
    %c0_119 = arith.constant 0 : index
    %169 = vector.load %arg9[%c7_118, %c0_119] : memref<25x512xf32, #tpu.memory_space<vmem>>, vector<1x512xf32>
    %170 = vector.broadcast %169 : vector<1x512xf32> to vector<4x512xf32>
    %171 = arith.mulf %168, %170 : vector<4x512xf32>
    %c28_120 = arith.constant 28 : index
    %c0_121 = arith.constant 0 : index
    %172 = vector.load %arg15[%c28_120, %c0_121] : memref<100x512xf32, #tpu.memory_space<vmem>>, vector<4x512xf32>
    tpu.vector_store %arg15[%c28_120, %c0_121], %171 {strides = array<i32>} : memref<100x512xf32, #tpu.memory_space<vmem>>, vector<4x512xf32>,
    %c15_i32_122 = arith.constant 15 : i32
    %173 = tpu.dynamic_rotate %2 by %c15_i32_122 dim 1 : vector<4x512xf32>, i32 -> vector<4x512xf32>
    %c8_123 = arith.constant 8 : index
    %c0_124 = arith.constant 0 : index
    %174 = vector.load %arg9[%c8_123, %c0_124] : memref<25x512xf32, #tpu.memory_space<vmem>>, vector<1x512xf32>
    %175 = vector.broadcast %174 : vector<1x512xf32> to vector<4x512xf32>
    %176 = arith.mulf %173, %175 : vector<4x512xf32>
    %c32_125 = arith.constant 32 : index
    %c0_126 = arith.constant 0 : index
    %177 = vector.load %arg15[%c32_125, %c0_126] : memref<100x512xf32, #tpu.memory_space<vmem>>, vector<4x512xf32>
    tpu.vector_store %arg15[%c32_125, %c0_126], %176 {strides = array<i32>} : memref<100x512xf32, #tpu.memory_space<vmem>>, vector<4x512xf32>,
    %c14_i32 = arith.constant 14 : i32
    %178 = tpu.dynamic_rotate %2 by %c14_i32 dim 1 : vector<4x512xf32>, i32 -> vector<4x512xf32>
    %c9 = arith.constant 9 : index
    %c0_127 = arith.constant 0 : index
    %179 = vector.load %arg9[%c9, %c0_127] : memref<25x512xf32, #tpu.memory_space<vmem>>, vector<1x512xf32>
    %180 = vector.broadcast %179 : vector<1x512xf32> to vector<4x512xf32>
    %181 = arith.mulf %178, %180 : vector<4x512xf32>
    %c36 = arith.constant 36 : index
    %c0_128 = arith.constant 0 : index
    %182 = vector.load %arg15[%c36, %c0_128] : memref<100x512xf32, #tpu.memory_space<vmem>>, vector<4x512xf32>
    tpu.vector_store %arg15[%c36, %c0_128], %181 {strides = array<i32>} : memref<100x512xf32, #tpu.memory_space<vmem>>, vector<4x512xf32>,
    %c2_i32 = arith.constant 2 : i32
    %183 = tpu.dynamic_rotate %2 by %c2_i32 dim 1 : vector<4x512xf32>, i32 -> vector<4x512xf32>
    %c10 = arith.constant 10 : index
    %c0_129 = arith.constant 0 : index
    %184 = vector.load %arg9[%c10, %c0_129] : memref<25x512xf32, #tpu.memory_space<vmem>>, vector<1x512xf32>
    %185 = vector.broadcast %184 : vector<1x512xf32> to vector<4x512xf32>
    %186 = arith.mulf %183, %185 : vector<4x512xf32>
    %c40 = arith.constant 40 : index
    %c0_130 = arith.constant 0 : index
    %187 = vector.load %arg15[%c40, %c0_130] : memref<100x512xf32, #tpu.memory_space<vmem>>, vector<4x512xf32>
    tpu.vector_store %arg15[%c40, %c0_130], %186 {strides = array<i32>} : memref<100x512xf32, #tpu.memory_space<vmem>>, vector<4x512xf32>,
    %c1_i32_131 = arith.constant 1 : i32
    %188 = tpu.dynamic_rotate %2 by %c1_i32_131 dim 1 : vector<4x512xf32>, i32 -> vector<4x512xf32>
    %c11 = arith.constant 11 : index
    %c0_132 = arith.constant 0 : index
    %189 = vector.load %arg9[%c11, %c0_132] : memref<25x512xf32, #tpu.memory_space<vmem>>, vector<1x512xf32>
    %190 = vector.broadcast %189 : vector<1x512xf32> to vector<4x512xf32>
    %191 = arith.mulf %188, %190 : vector<4x512xf32>
    %c44 = arith.constant 44 : index
    %c0_133 = arith.constant 0 : index
    %192 = vector.load %arg15[%c44, %c0_133] : memref<100x512xf32, #tpu.memory_space<vmem>>, vector<4x512xf32>
    tpu.vector_store %arg15[%c44, %c0_133], %191 {strides = array<i32>} : memref<100x512xf32, #tpu.memory_space<vmem>>, vector<4x512xf32>,
    %c12_134 = arith.constant 12 : index
    %c0_135 = arith.constant 0 : index
    %193 = vector.load %arg9[%c12_134, %c0_135] : memref<25x512xf32, #tpu.memory_space<vmem>>, vector<1x512xf32>
    %194 = vector.broadcast %193 : vector<1x512xf32> to vector<4x512xf32>
    %195 = arith.mulf %2, %194 : vector<4x512xf32>
    %c48 = arith.constant 48 : index
    %c0_136 = arith.constant 0 : index
    %196 = vector.load %arg15[%c48, %c0_136] : memref<100x512xf32, #tpu.memory_space<vmem>>, vector<4x512xf32>
    tpu.vector_store %arg15[%c48, %c0_136], %195 {strides = array<i32>} : memref<100x512xf32, #tpu.memory_space<vmem>>, vector<4x512xf32>,
    %c511_i32_137 = arith.constant 511 : i32
    %197 = tpu.dynamic_rotate %2 by %c511_i32_137 dim 1 : vector<4x512xf32>, i32 -> vector<4x512xf32>
    %c13 = arith.constant 13 : index
    %c0_138 = arith.constant 0 : index
    %198 = vector.load %arg9[%c13, %c0_138] : memref<25x512xf32, #tpu.memory_space<vmem>>, vector<1x512xf32>
    %199 = vector.broadcast %198 : vector<1x512xf32> to vector<4x512xf32>
    %200 = arith.mulf %197, %199 : vector<4x512xf32>
    %c52 = arith.constant 52 : index
    %c0_139 = arith.constant 0 : index
    %201 = vector.load %arg15[%c52, %c0_139] : memref<100x512xf32, #tpu.memory_space<vmem>>, vector<4x512xf32>
    tpu.vector_store %arg15[%c52, %c0_139], %200 {strides = array<i32>} : memref<100x512xf32, #tpu.memory_space<vmem>>, vector<4x512xf32>,
    %c510_i32 = arith.constant 510 : i32
    %202 = tpu.dynamic_rotate %2 by %c510_i32 dim 1 : vector<4x512xf32>, i32 -> vector<4x512xf32>
    %c14 = arith.constant 14 : index
    %c0_140 = arith.constant 0 : index
    %203 = vector.load %arg9[%c14, %c0_140] : memref<25x512xf32, #tpu.memory_space<vmem>>, vector<1x512xf32>
    %204 = vector.broadcast %203 : vector<1x512xf32> to vector<4x512xf32>
    %205 = arith.mulf %202, %204 : vector<4x512xf32>
    %c56 = arith.constant 56 : index
    %c0_141 = arith.constant 0 : index
    %206 = vector.load %arg15[%c56, %c0_141] : memref<100x512xf32, #tpu.memory_space<vmem>>, vector<4x512xf32>
    tpu.vector_store %arg15[%c56, %c0_141], %205 {strides = array<i32>} : memref<100x512xf32, #tpu.memory_space<vmem>>, vector<4x512xf32>,
    %c498_i32 = arith.constant 498 : i32
    %207 = tpu.dynamic_rotate %2 by %c498_i32 dim 1 : vector<4x512xf32>, i32 -> vector<4x512xf32>
    %c15 = arith.constant 15 : index
    %c0_142 = arith.constant 0 : index
    %208 = vector.load %arg9[%c15, %c0_142] : memref<25x512xf32, #tpu.memory_space<vmem>>, vector<1x512xf32>
    %209 = vector.broadcast %208 : vector<1x512xf32> to vector<4x512xf32>
    %210 = arith.mulf %207, %209 : vector<4x512xf32>
    %c60 = arith.constant 60 : index
    %c0_143 = arith.constant 0 : index
    %211 = vector.load %arg15[%c60, %c0_143] : memref<100x512xf32, #tpu.memory_space<vmem>>, vector<4x512xf32>
    tpu.vector_store %arg15[%c60, %c0_143], %210 {strides = array<i32>} : memref<100x512xf32, #tpu.memory_space<vmem>>, vector<4x512xf32>,
    %c497_i32_144 = arith.constant 497 : i32
    %212 = tpu.dynamic_rotate %2 by %c497_i32_144 dim 1 : vector<4x512xf32>, i32 -> vector<4x512xf32>
    %c16_145 = arith.constant 16 : index
    %c0_146 = arith.constant 0 : index
    %213 = vector.load %arg9[%c16_145, %c0_146] : memref<25x512xf32, #tpu.memory_space<vmem>>, vector<1x512xf32>
    %214 = vector.broadcast %213 : vector<1x512xf32> to vector<4x512xf32>
    %215 = arith.mulf %212, %214 : vector<4x512xf32>
    %c64 = arith.constant 64 : index
    %c0_147 = arith.constant 0 : index
    %216 = vector.load %arg15[%c64, %c0_147] : memref<100x512xf32, #tpu.memory_space<vmem>>, vector<4x512xf32>
    tpu.vector_store %arg15[%c64, %c0_147], %215 {strides = array<i32>} : memref<100x512xf32, #tpu.memory_space<vmem>>, vector<4x512xf32>,
    %c496_i32_148 = arith.constant 496 : i32
    %217 = tpu.dynamic_rotate %2 by %c496_i32_148 dim 1 : vector<4x512xf32>, i32 -> vector<4x512xf32>
    %c17 = arith.constant 17 : index
    %c0_149 = arith.constant 0 : index
    %218 = vector.load %arg9[%c17, %c0_149] : memref<25x512xf32, #tpu.memory_space<vmem>>, vector<1x512xf32>
    %219 = vector.broadcast %218 : vector<1x512xf32> to vector<4x512xf32>
    %220 = arith.mulf %217, %219 : vector<4x512xf32>
    %c68 = arith.constant 68 : index
    %c0_150 = arith.constant 0 : index
    %221 = vector.load %arg15[%c68, %c0_150] : memref<100x512xf32, #tpu.memory_space<vmem>>, vector<4x512xf32>
    tpu.vector_store %arg15[%c68, %c0_150], %220 {strides = array<i32>} : memref<100x512xf32, #tpu.memory_space<vmem>>, vector<4x512xf32>,
    %c495_i32_151 = arith.constant 495 : i32
    %222 = tpu.dynamic_rotate %2 by %c495_i32_151 dim 1 : vector<4x512xf32>, i32 -> vector<4x512xf32>
    %c18 = arith.constant 18 : index
    %c0_152 = arith.constant 0 : index
    %223 = vector.load %arg9[%c18, %c0_152] : memref<25x512xf32, #tpu.memory_space<vmem>>, vector<1x512xf32>
    %224 = vector.broadcast %223 : vector<1x512xf32> to vector<4x512xf32>
    %225 = arith.mulf %222, %224 : vector<4x512xf32>
    %c72 = arith.constant 72 : index
    %c0_153 = arith.constant 0 : index
    %226 = vector.load %arg15[%c72, %c0_153] : memref<100x512xf32, #tpu.memory_space<vmem>>, vector<4x512xf32>
    tpu.vector_store %arg15[%c72, %c0_153], %225 {strides = array<i32>} : memref<100x512xf32, #tpu.memory_space<vmem>>, vector<4x512xf32>,
    %c494_i32 = arith.constant 494 : i32
    %227 = tpu.dynamic_rotate %2 by %c494_i32 dim 1 : vector<4x512xf32>, i32 -> vector<4x512xf32>
    %c19 = arith.constant 19 : index
    %c0_154 = arith.constant 0 : index
    %228 = vector.load %arg9[%c19, %c0_154] : memref<25x512xf32, #tpu.memory_space<vmem>>, vector<1x512xf32>
    %229 = vector.broadcast %228 : vector<1x512xf32> to vector<4x512xf32>
    %230 = arith.mulf %227, %229 : vector<4x512xf32>
    %c76 = arith.constant 76 : index
    %c0_155 = arith.constant 0 : index
    %231 = vector.load %arg15[%c76, %c0_155] : memref<100x512xf32, #tpu.memory_space<vmem>>, vector<4x512xf32>
    tpu.vector_store %arg15[%c76, %c0_155], %230 {strides = array<i32>} : memref<100x512xf32, #tpu.memory_space<vmem>>, vector<4x512xf32>,
    %c482_i32 = arith.constant 482 : i32
    %232 = tpu.dynamic_rotate %2 by %c482_i32 dim 1 : vector<4x512xf32>, i32 -> vector<4x512xf32>
    %c20_156 = arith.constant 20 : index
    %c0_157 = arith.constant 0 : index
    %233 = vector.load %arg9[%c20_156, %c0_157] : memref<25x512xf32, #tpu.memory_space<vmem>>, vector<1x512xf32>
    %234 = vector.broadcast %233 : vector<1x512xf32> to vector<4x512xf32>
    %235 = arith.mulf %232, %234 : vector<4x512xf32>
    %c80 = arith.constant 80 : index
    %c0_158 = arith.constant 0 : index
    %236 = vector.load %arg15[%c80, %c0_158] : memref<100x512xf32, #tpu.memory_space<vmem>>, vector<4x512xf32>
    tpu.vector_store %arg15[%c80, %c0_158], %235 {strides = array<i32>} : memref<100x512xf32, #tpu.memory_space<vmem>>, vector<4x512xf32>,
    %c481_i32 = arith.constant 481 : i32
    %237 = tpu.dynamic_rotate %2 by %c481_i32 dim 1 : vector<4x512xf32>, i32 -> vector<4x512xf32>
    %c21 = arith.constant 21 : index
    %c0_159 = arith.constant 0 : index
    %238 = vector.load %arg9[%c21, %c0_159] : memref<25x512xf32, #tpu.memory_space<vmem>>, vector<1x512xf32>
    %239 = vector.broadcast %238 : vector<1x512xf32> to vector<4x512xf32>
    %240 = arith.mulf %237, %239 : vector<4x512xf32>
    %c84 = arith.constant 84 : index
    %c0_160 = arith.constant 0 : index
    %241 = vector.load %arg15[%c84, %c0_160] : memref<100x512xf32, #tpu.memory_space<vmem>>, vector<4x512xf32>
    tpu.vector_store %arg15[%c84, %c0_160], %240 {strides = array<i32>} : memref<100x512xf32, #tpu.memory_space<vmem>>, vector<4x512xf32>,
    %c480_i32 = arith.constant 480 : i32
    %242 = tpu.dynamic_rotate %2 by %c480_i32 dim 1 : vector<4x512xf32>, i32 -> vector<4x512xf32>
    %c22 = arith.constant 22 : index
    %c0_161 = arith.constant 0 : index
    %243 = vector.load %arg9[%c22, %c0_161] : memref<25x512xf32, #tpu.memory_space<vmem>>, vector<1x512xf32>
    %244 = vector.broadcast %243 : vector<1x512xf32> to vector<4x512xf32>
    %245 = arith.mulf %242, %244 : vector<4x512xf32>
    %c88 = arith.constant 88 : index
    %c0_162 = arith.constant 0 : index
    %246 = vector.load %arg15[%c88, %c0_162] : memref<100x512xf32, #tpu.memory_space<vmem>>, vector<4x512xf32>
    tpu.vector_store %arg15[%c88, %c0_162], %245 {strides = array<i32>} : memref<100x512xf32, #tpu.memory_space<vmem>>, vector<4x512xf32>,
    %c479_i32 = arith.constant 479 : i32
    %247 = tpu.dynamic_rotate %2 by %c479_i32 dim 1 : vector<4x512xf32>, i32 -> vector<4x512xf32>
    %c23 = arith.constant 23 : index
    %c0_163 = arith.constant 0 : index
    %248 = vector.load %arg9[%c23, %c0_163] : memref<25x512xf32, #tpu.memory_space<vmem>>, vector<1x512xf32>
    %249 = vector.broadcast %248 : vector<1x512xf32> to vector<4x512xf32>
    %250 = arith.mulf %247, %249 : vector<4x512xf32>
    %c92 = arith.constant 92 : index
    %c0_164 = arith.constant 0 : index
    %251 = vector.load %arg15[%c92, %c0_164] : memref<100x512xf32, #tpu.memory_space<vmem>>, vector<4x512xf32>
    tpu.vector_store %arg15[%c92, %c0_164], %250 {strides = array<i32>} : memref<100x512xf32, #tpu.memory_space<vmem>>, vector<4x512xf32>,
    %c478_i32 = arith.constant 478 : i32
    %252 = tpu.dynamic_rotate %2 by %c478_i32 dim 1 : vector<4x512xf32>, i32 -> vector<4x512xf32>
    %c24_165 = arith.constant 24 : index
    %c0_166 = arith.constant 0 : index
    %253 = vector.load %arg9[%c24_165, %c0_166] : memref<25x512xf32, #tpu.memory_space<vmem>>, vector<1x512xf32>
    %254 = vector.broadcast %253 : vector<1x512xf32> to vector<4x512xf32>
    %255 = arith.mulf %252, %254 : vector<4x512xf32>
    %c96 = arith.constant 96 : index
    %c0_167 = arith.constant 0 : index
    %256 = vector.load %arg15[%c96, %c0_167] : memref<100x512xf32, #tpu.memory_space<vmem>>, vector<4x512xf32>
    tpu.vector_store %arg15[%c96, %c0_167], %255 {strides = array<i32>} : memref<100x512xf32, #tpu.memory_space<vmem>>, vector<4x512xf32>,
    %c0_168 = arith.constant 0 : index
    %c0_169 = arith.constant 0 : index
    %257 = vector.load %arg15[%c0_168, %c0_169] : memref<100x512xf32, #tpu.memory_space<vmem>>, vector<100x512xf32>
    %258 = arith.truncf %257 : vector<100x512xf32> to vector<100x512xbf16>
    %c0_170 = arith.constant 0 : index
    %c0_171 = arith.constant 0 : index
    %259 = vector.load %arg4[%c0_170, %c0_171] : memref<4x100xbf16, #tpu.memory_space<vmem>>, vector<4x100xbf16>
    %cst_172 = arith.constant dense<0.000000e+00> : vector<4x512xf32>
    %260 = tpu.matmul %259, %258, %cst_172 {dimension_numbers = #tpu.dot_dimension_numbers<[1], [0], [0], [1], [0, 0, 1, 1], [], []>} : vector<4x100xbf16>, vector<100x512xbf16>, vector<4x512xf32> -> vector<4x512xf32>
    %cst_173 = arith.constant dense<0.000000e+00> : vector<4xf32>
    %261 = vector.multi_reduction <add>, %260, %cst_173 [1] : vector<4x512xf32> to vector<4xf32>
    %262 = vector.shape_cast %261 : vector<4xf32> to vector<4x1xf32>
    %cst_174 = arith.constant 0.001953125 : f32
    %263 = vector.broadcast %cst_174 : f32 to vector<4x1xf32>
    %264 = arith.mulf %262, %263 : vector<4x1xf32>
    %265 = vector.broadcast %264 : vector<4x1xf32> to vector<4x512xf32>
    %266 = arith.subf %260, %265 : vector<4x512xf32>
    %267 = arith.mulf %266, %266 : vector<4x512xf32>
    %cst_175 = arith.constant dense<0.000000e+00> : vector<4xf32>
    %268 = vector.multi_reduction <add>, %267, %cst_175 [1] : vector<4x512xf32> to vector<4xf32>
    %269 = vector.shape_cast %268 : vector<4xf32> to vector<4x1xf32>
    %cst_176 = arith.constant 0.001953125 : f32
    %270 = vector.broadcast %cst_176 : f32 to vector<4x1xf32>
    %271 = arith.mulf %269, %270 : vector<4x1xf32>
    %cst_177 = arith.constant 9.99999974E-6 : f32
    %272 = vector.broadcast %cst_177 : f32 to vector<4x1xf32>
    %273 = arith.addf %271, %272 : vector<4x1xf32>
    %274 = math.rsqrt %273 : vector<4x1xf32>
    %275 = vector.broadcast %274 : vector<4x1xf32> to vector<4x512xf32>
    %276 = arith.mulf %266, %275 : vector<4x512xf32>
    %cst_178 = arith.constant 0.000000e+00 : f32
    %277 = vector.broadcast %cst_178 : f32 to vector<4x512xf32>
    %278 = arith.maximumf %276, %277 : vector<4x512xf32>
    %c34_i32_179 = arith.constant 34 : i32
    %279 = tpu.dynamic_rotate %278 by %c34_i32_179 dim 1 : vector<4x512xf32>, i32 -> vector<4x512xf32>
    %c0_180 = arith.constant 0 : index
    %c0_181 = arith.constant 0 : index
    %280 = vector.load %arg9[%c0_180, %c0_181] : memref<25x512xf32, #tpu.memory_space<vmem>>, vector<1x512xf32>
    %281 = vector.broadcast %280 : vector<1x512xf32> to vector<4x512xf32>
    %282 = arith.mulf %279, %281 : vector<4x512xf32>
    %c0_182 = arith.constant 0 : index
    %c0_183 = arith.constant 0 : index
    %283 = vector.load %arg15[%c0_182, %c0_183] : memref<100x512xf32, #tpu.memory_space<vmem>>, vector<4x512xf32>
    tpu.vector_store %arg15[%c0_182, %c0_183], %282 {strides = array<i32>} : memref<100x512xf32, #tpu.memory_space<vmem>>, vector<4x512xf32>,
    %c33_i32_184 = arith.constant 33 : i32
    %284 = tpu.dynamic_rotate %278 by %c33_i32_184 dim 1 : vector<4x512xf32>, i32 -> vector<4x512xf32>
    %c1_185 = arith.constant 1 : index
    %c0_186 = arith.constant 0 : index
    %285 = vector.load %arg9[%c1_185, %c0_186] : memref<25x512xf32, #tpu.memory_space<vmem>>, vector<1x512xf32>
    %286 = vector.broadcast %285 : vector<1x512xf32> to vector<4x512xf32>
    %287 = arith.mulf %284, %286 : vector<4x512xf32>
    %c4_187 = arith.constant 4 : index
    %c0_188 = arith.constant 0 : index
    %288 = vector.load %arg15[%c4_187, %c0_188] : memref<100x512xf32, #tpu.memory_space<vmem>>, vector<4x512xf32>
    tpu.vector_store %arg15[%c4_187, %c0_188], %287 {strides = array<i32>} : memref<100x512xf32, #tpu.memory_space<vmem>>, vector<4x512xf32>,
    %c32_i32_189 = arith.constant 32 : i32
    %289 = tpu.dynamic_rotate %278 by %c32_i32_189 dim 1 : vector<4x512xf32>, i32 -> vector<4x512xf32>
    %c2_190 = arith.constant 2 : index
    %c0_191 = arith.constant 0 : index
    %290 = vector.load %arg9[%c2_190, %c0_191] : memref<25x512xf32, #tpu.memory_space<vmem>>, vector<1x512xf32>
    %291 = vector.broadcast %290 : vector<1x512xf32> to vector<4x512xf32>
    %292 = arith.mulf %289, %291 : vector<4x512xf32>
    %c8_192 = arith.constant 8 : index
    %c0_193 = arith.constant 0 : index
    %293 = vector.load %arg15[%c8_192, %c0_193] : memref<100x512xf32, #tpu.memory_space<vmem>>, vector<4x512xf32>
    tpu.vector_store %arg15[%c8_192, %c0_193], %292 {strides = array<i32>} : memref<100x512xf32, #tpu.memory_space<vmem>>, vector<4x512xf32>,
    %c31_i32_194 = arith.constant 31 : i32
    %294 = tpu.dynamic_rotate %278 by %c31_i32_194 dim 1 : vector<4x512xf32>, i32 -> vector<4x512xf32>
    %c3_195 = arith.constant 3 : index
    %c0_196 = arith.constant 0 : index
    %295 = vector.load %arg9[%c3_195, %c0_196] : memref<25x512xf32, #tpu.memory_space<vmem>>, vector<1x512xf32>
    %296 = vector.broadcast %295 : vector<1x512xf32> to vector<4x512xf32>
    %297 = arith.mulf %294, %296 : vector<4x512xf32>
    %c12_197 = arith.constant 12 : index
    %c0_198 = arith.constant 0 : index
    %298 = vector.load %arg15[%c12_197, %c0_198] : memref<100x512xf32, #tpu.memory_space<vmem>>, vector<4x512xf32>
    tpu.vector_store %arg15[%c12_197, %c0_198], %297 {strides = array<i32>} : memref<100x512xf32, #tpu.memory_space<vmem>>, vector<4x512xf32>,
    %c30_i32_199 = arith.constant 30 : i32
    %299 = tpu.dynamic_rotate %278 by %c30_i32_199 dim 1 : vector<4x512xf32>, i32 -> vector<4x512xf32>
    %c4_200 = arith.constant 4 : index
    %c0_201 = arith.constant 0 : index
    %300 = vector.load %arg9[%c4_200, %c0_201] : memref<25x512xf32, #tpu.memory_space<vmem>>, vector<1x512xf32>
    %301 = vector.broadcast %300 : vector<1x512xf32> to vector<4x512xf32>
    %302 = arith.mulf %299, %301 : vector<4x512xf32>
    %c16_202 = arith.constant 16 : index
    %c0_203 = arith.constant 0 : index
    %303 = vector.load %arg15[%c16_202, %c0_203] : memref<100x512xf32, #tpu.memory_space<vmem>>, vector<4x512xf32>
    tpu.vector_store %arg15[%c16_202, %c0_203], %302 {strides = array<i32>} : memref<100x512xf32, #tpu.memory_space<vmem>>, vector<4x512xf32>,
    %c18_i32_204 = arith.constant 18 : i32
    %304 = tpu.dynamic_rotate %278 by %c18_i32_204 dim 1 : vector<4x512xf32>, i32 -> vector<4x512xf32>
    %c5_205 = arith.constant 5 : index
    %c0_206 = arith.constant 0 : index
    %305 = vector.load %arg9[%c5_205, %c0_206] : memref<25x512xf32, #tpu.memory_space<vmem>>, vector<1x512xf32>
    %306 = vector.broadcast %305 : vector<1x512xf32> to vector<4x512xf32>
    %307 = arith.mulf %304, %306 : vector<4x512xf32>
    %c20_207 = arith.constant 20 : index
    %c0_208 = arith.constant 0 : index
    %308 = vector.load %arg15[%c20_207, %c0_208] : memref<100x512xf32, #tpu.memory_space<vmem>>, vector<4x512xf32>
    tpu.vector_store %arg15[%c20_207, %c0_208], %307 {strides = array<i32>} : memref<100x512xf32, #tpu.memory_space<vmem>>, vector<4x512xf32>,
    %c17_i32_209 = arith.constant 17 : i32
    %309 = tpu.dynamic_rotate %278 by %c17_i32_209 dim 1 : vector<4x512xf32>, i32 -> vector<4x512xf32>
    %c6_210 = arith.constant 6 : index
    %c0_211 = arith.constant 0 : index
    %310 = vector.load %arg9[%c6_210, %c0_211] : memref<25x512xf32, #tpu.memory_space<vmem>>, vector<1x512xf32>
    %311 = vector.broadcast %310 : vector<1x512xf32> to vector<4x512xf32>
    %312 = arith.mulf %309, %311 : vector<4x512xf32>
    %c24_212 = arith.constant 24 : index
    %c0_213 = arith.constant 0 : index
    %313 = vector.load %arg15[%c24_212, %c0_213] : memref<100x512xf32, #tpu.memory_space<vmem>>, vector<4x512xf32>
    tpu.vector_store %arg15[%c24_212, %c0_213], %312 {strides = array<i32>} : memref<100x512xf32, #tpu.memory_space<vmem>>, vector<4x512xf32>,
    %c16_i32_214 = arith.constant 16 : i32
    %314 = tpu.dynamic_rotate %278 by %c16_i32_214 dim 1 : vector<4x512xf32>, i32 -> vector<4x512xf32>
    %c7_215 = arith.constant 7 : index
    %c0_216 = arith.constant 0 : index
    %315 = vector.load %arg9[%c7_215, %c0_216] : memref<25x512xf32, #tpu.memory_space<vmem>>, vector<1x512xf32>
    %316 = vector.broadcast %315 : vector<1x512xf32> to vector<4x512xf32>
    %317 = arith.mulf %314, %316 : vector<4x512xf32>
    %c28_217 = arith.constant 28 : index
    %c0_218 = arith.constant 0 : index
    %318 = vector.load %arg15[%c28_217, %c0_218] : memref<100x512xf32, #tpu.memory_space<vmem>>, vector<4x512xf32>
    tpu.vector_store %arg15[%c28_217, %c0_218], %317 {strides = array<i32>} : memref<100x512xf32, #tpu.memory_space<vmem>>, vector<4x512xf32>,
    %c15_i32_219 = arith.constant 15 : i32
    %319 = tpu.dynamic_rotate %278 by %c15_i32_219 dim 1 : vector<4x512xf32>, i32 -> vector<4x512xf32>
    %c8_220 = arith.constant 8 : index
    %c0_221 = arith.constant 0 : index
    %320 = vector.load %arg9[%c8_220, %c0_221] : memref<25x512xf32, #tpu.memory_space<vmem>>, vector<1x512xf32>
    %321 = vector.broadcast %320 : vector<1x512xf32> to vector<4x512xf32>
    %322 = arith.mulf %319, %321 : vector<4x512xf32>
    %c32_222 = arith.constant 32 : index
    %c0_223 = arith.constant 0 : index
    %323 = vector.load %arg15[%c32_222, %c0_223] : memref<100x512xf32, #tpu.memory_space<vmem>>, vector<4x512xf32>
    tpu.vector_store %arg15[%c32_222, %c0_223], %322 {strides = array<i32>} : memref<100x512xf32, #tpu.memory_space<vmem>>, vector<4x512xf32>,
    %c14_i32_224 = arith.constant 14 : i32
    %324 = tpu.dynamic_rotate %278 by %c14_i32_224 dim 1 : vector<4x512xf32>, i32 -> vector<4x512xf32>
    %c9_225 = arith.constant 9 : index
    %c0_226 = arith.constant 0 : index
    %325 = vector.load %arg9[%c9_225, %c0_226] : memref<25x512xf32, #tpu.memory_space<vmem>>, vector<1x512xf32>
    %326 = vector.broadcast %325 : vector<1x512xf32> to vector<4x512xf32>
    %327 = arith.mulf %324, %326 : vector<4x512xf32>
    %c36_227 = arith.constant 36 : index
    %c0_228 = arith.constant 0 : index
    %328 = vector.load %arg15[%c36_227, %c0_228] : memref<100x512xf32, #tpu.memory_space<vmem>>, vector<4x512xf32>
    tpu.vector_store %arg15[%c36_227, %c0_228], %327 {strides = array<i32>} : memref<100x512xf32, #tpu.memory_space<vmem>>, vector<4x512xf32>,
    %c2_i32_229 = arith.constant 2 : i32
    %329 = tpu.dynamic_rotate %278 by %c2_i32_229 dim 1 : vector<4x512xf32>, i32 -> vector<4x512xf32>
    %c10_230 = arith.constant 10 : index
    %c0_231 = arith.constant 0 : index
    %330 = vector.load %arg9[%c10_230, %c0_231] : memref<25x512xf32, #tpu.memory_space<vmem>>, vector<1x512xf32>
    %331 = vector.broadcast %330 : vector<1x512xf32> to vector<4x512xf32>
    %332 = arith.mulf %329, %331 : vector<4x512xf32>
    %c40_232 = arith.constant 40 : index
    %c0_233 = arith.constant 0 : index
    %333 = vector.load %arg15[%c40_232, %c0_233] : memref<100x512xf32, #tpu.memory_space<vmem>>, vector<4x512xf32>
    tpu.vector_store %arg15[%c40_232, %c0_233], %332 {strides = array<i32>} : memref<100x512xf32, #tpu.memory_space<vmem>>, vector<4x512xf32>,
    %c1_i32_234 = arith.constant 1 : i32
    %334 = tpu.dynamic_rotate %278 by %c1_i32_234 dim 1 : vector<4x512xf32>, i32 -> vector<4x512xf32>
    %c11_235 = arith.constant 11 : index
    %c0_236 = arith.constant 0 : index
    %335 = vector.load %arg9[%c11_235, %c0_236] : memref<25x512xf32, #tpu.memory_space<vmem>>, vector<1x512xf32>
    %336 = vector.broadcast %335 : vector<1x512xf32> to vector<4x512xf32>
    %337 = arith.mulf %334, %336 : vector<4x512xf32>
    %c44_237 = arith.constant 44 : index
    %c0_238 = arith.constant 0 : index
    %338 = vector.load %arg15[%c44_237, %c0_238] : memref<100x512xf32, #tpu.memory_space<vmem>>, vector<4x512xf32>
    tpu.vector_store %arg15[%c44_237, %c0_238], %337 {strides = array<i32>} : memref<100x512xf32, #tpu.memory_space<vmem>>, vector<4x512xf32>,
    %c12_239 = arith.constant 12 : index
    %c0_240 = arith.constant 0 : index
    %339 = vector.load %arg9[%c12_239, %c0_240] : memref<25x512xf32, #tpu.memory_space<vmem>>, vector<1x512xf32>
    %340 = vector.broadcast %339 : vector<1x512xf32> to vector<4x512xf32>
    %341 = arith.mulf %278, %340 : vector<4x512xf32>
    %c48_241 = arith.constant 48 : index
    %c0_242 = arith.constant 0 : index
    %342 = vector.load %arg15[%c48_241, %c0_242] : memref<100x512xf32, #tpu.memory_space<vmem>>, vector<4x512xf32>
    tpu.vector_store %arg15[%c48_241, %c0_242], %341 {strides = array<i32>} : memref<100x512xf32, #tpu.memory_space<vmem>>, vector<4x512xf32>,
    %c511_i32_243 = arith.constant 511 : i32
    %343 = tpu.dynamic_rotate %278 by %c511_i32_243 dim 1 : vector<4x512xf32>, i32 -> vector<4x512xf32>
    %c13_244 = arith.constant 13 : index
    %c0_245 = arith.constant 0 : index
    %344 = vector.load %arg9[%c13_244, %c0_245] : memref<25x512xf32, #tpu.memory_space<vmem>>, vector<1x512xf32>
    %345 = vector.broadcast %344 : vector<1x512xf32> to vector<4x512xf32>
    %346 = arith.mulf %343, %345 : vector<4x512xf32>
    %c52_246 = arith.constant 52 : index
    %c0_247 = arith.constant 0 : index
    %347 = vector.load %arg15[%c52_246, %c0_247] : memref<100x512xf32, #tpu.memory_space<vmem>>, vector<4x512xf32>
    tpu.vector_store %arg15[%c52_246, %c0_247], %346 {strides = array<i32>} : memref<100x512xf32, #tpu.memory_space<vmem>>, vector<4x512xf32>,
    %c510_i32_248 = arith.constant 510 : i32
    %348 = tpu.dynamic_rotate %278 by %c510_i32_248 dim 1 : vector<4x512xf32>, i32 -> vector<4x512xf32>
    %c14_249 = arith.constant 14 : index
    %c0_250 = arith.constant 0 : index
    %349 = vector.load %arg9[%c14_249, %c0_250] : memref<25x512xf32, #tpu.memory_space<vmem>>, vector<1x512xf32>
    %350 = vector.broadcast %349 : vector<1x512xf32> to vector<4x512xf32>
    %351 = arith.mulf %348, %350 : vector<4x512xf32>
    %c56_251 = arith.constant 56 : index
    %c0_252 = arith.constant 0 : index
    %352 = vector.load %arg15[%c56_251, %c0_252] : memref<100x512xf32, #tpu.memory_space<vmem>>, vector<4x512xf32>
    tpu.vector_store %arg15[%c56_251, %c0_252], %351 {strides = array<i32>} : memref<100x512xf32, #tpu.memory_space<vmem>>, vector<4x512xf32>,
    %c498_i32_253 = arith.constant 498 : i32
    %353 = tpu.dynamic_rotate %278 by %c498_i32_253 dim 1 : vector<4x512xf32>, i32 -> vector<4x512xf32>
    %c15_254 = arith.constant 15 : index
    %c0_255 = arith.constant 0 : index
    %354 = vector.load %arg9[%c15_254, %c0_255] : memref<25x512xf32, #tpu.memory_space<vmem>>, vector<1x512xf32>
    %355 = vector.broadcast %354 : vector<1x512xf32> to vector<4x512xf32>
    %356 = arith.mulf %353, %355 : vector<4x512xf32>
    %c60_256 = arith.constant 60 : index
    %c0_257 = arith.constant 0 : index
    %357 = vector.load %arg15[%c60_256, %c0_257] : memref<100x512xf32, #tpu.memory_space<vmem>>, vector<4x512xf32>
    tpu.vector_store %arg15[%c60_256, %c0_257], %356 {strides = array<i32>} : memref<100x512xf32, #tpu.memory_space<vmem>>, vector<4x512xf32>,
    %c497_i32_258 = arith.constant 497 : i32
    %358 = tpu.dynamic_rotate %278 by %c497_i32_258 dim 1 : vector<4x512xf32>, i32 -> vector<4x512xf32>
    %c16_259 = arith.constant 16 : index
    %c0_260 = arith.constant 0 : index
    %359 = vector.load %arg9[%c16_259, %c0_260] : memref<25x512xf32, #tpu.memory_space<vmem>>, vector<1x512xf32>
    %360 = vector.broadcast %359 : vector<1x512xf32> to vector<4x512xf32>
    %361 = arith.mulf %358, %360 : vector<4x512xf32>
    %c64_261 = arith.constant 64 : index
    %c0_262 = arith.constant 0 : index
    %362 = vector.load %arg15[%c64_261, %c0_262] : memref<100x512xf32, #tpu.memory_space<vmem>>, vector<4x512xf32>
    tpu.vector_store %arg15[%c64_261, %c0_262], %361 {strides = array<i32>} : memref<100x512xf32, #tpu.memory_space<vmem>>, vector<4x512xf32>,
    %c496_i32_263 = arith.constant 496 : i32
    %363 = tpu.dynamic_rotate %278 by %c496_i32_263 dim 1 : vector<4x512xf32>, i32 -> vector<4x512xf32>
    %c17_264 = arith.constant 17 : index
    %c0_265 = arith.constant 0 : index
    %364 = vector.load %arg9[%c17_264, %c0_265] : memref<25x512xf32, #tpu.memory_space<vmem>>, vector<1x512xf32>
    %365 = vector.broadcast %364 : vector<1x512xf32> to vector<4x512xf32>
    %366 = arith.mulf %363, %365 : vector<4x512xf32>
    %c68_266 = arith.constant 68 : index
    %c0_267 = arith.constant 0 : index
    %367 = vector.load %arg15[%c68_266, %c0_267] : memref<100x512xf32, #tpu.memory_space<vmem>>, vector<4x512xf32>
    tpu.vector_store %arg15[%c68_266, %c0_267], %366 {strides = array<i32>} : memref<100x512xf32, #tpu.memory_space<vmem>>, vector<4x512xf32>,
    %c495_i32_268 = arith.constant 495 : i32
    %368 = tpu.dynamic_rotate %278 by %c495_i32_268 dim 1 : vector<4x512xf32>, i32 -> vector<4x512xf32>
    %c18_269 = arith.constant 18 : index
    %c0_270 = arith.constant 0 : index
    %369 = vector.load %arg9[%c18_269, %c0_270] : memref<25x512xf32, #tpu.memory_space<vmem>>, vector<1x512xf32>
    %370 = vector.broadcast %369 : vector<1x512xf32> to vector<4x512xf32>
    %371 = arith.mulf %368, %370 : vector<4x512xf32>
    %c72_271 = arith.constant 72 : index
    %c0_272 = arith.constant 0 : index
    %372 = vector.load %arg15[%c72_271, %c0_272] : memref<100x512xf32, #tpu.memory_space<vmem>>, vector<4x512xf32>
    tpu.vector_store %arg15[%c72_271, %c0_272], %371 {strides = array<i32>} : memref<100x512xf32, #tpu.memory_space<vmem>>, vector<4x512xf32>,
    %c494_i32_273 = arith.constant 494 : i32
    %373 = tpu.dynamic_rotate %278 by %c494_i32_273 dim 1 : vector<4x512xf32>, i32 -> vector<4x512xf32>
    %c19_274 = arith.constant 19 : index
    %c0_275 = arith.constant 0 : index
    %374 = vector.load %arg9[%c19_274, %c0_275] : memref<25x512xf32, #tpu.memory_space<vmem>>, vector<1x512xf32>
    %375 = vector.broadcast %374 : vector<1x512xf32> to vector<4x512xf32>
    %376 = arith.mulf %373, %375 : vector<4x512xf32>
    %c76_276 = arith.constant 76 : index
    %c0_277 = arith.constant 0 : index
    %377 = vector.load %arg15[%c76_276, %c0_277] : memref<100x512xf32, #tpu.memory_space<vmem>>, vector<4x512xf32>
    tpu.vector_store %arg15[%c76_276, %c0_277], %376 {strides = array<i32>} : memref<100x512xf32, #tpu.memory_space<vmem>>, vector<4x512xf32>,
    %c482_i32_278 = arith.constant 482 : i32
    %378 = tpu.dynamic_rotate %278 by %c482_i32_278 dim 1 : vector<4x512xf32>, i32 -> vector<4x512xf32>
    %c20_279 = arith.constant 20 : index
    %c0_280 = arith.constant 0 : index
    %379 = vector.load %arg9[%c20_279, %c0_280] : memref<25x512xf32, #tpu.memory_space<vmem>>, vector<1x512xf32>
    %380 = vector.broadcast %379 : vector<1x512xf32> to vector<4x512xf32>
    %381 = arith.mulf %378, %380 : vector<4x512xf32>
    %c80_281 = arith.constant 80 : index
    %c0_282 = arith.constant 0 : index
    %382 = vector.load %arg15[%c80_281, %c0_282] : memref<100x512xf32, #tpu.memory_space<vmem>>, vector<4x512xf32>
    tpu.vector_store %arg15[%c80_281, %c0_282], %381 {strides = array<i32>} : memref<100x512xf32, #tpu.memory_space<vmem>>, vector<4x512xf32>,
    %c481_i32_283 = arith.constant 481 : i32
    %383 = tpu.dynamic_rotate %278 by %c481_i32_283 dim 1 : vector<4x512xf32>, i32 -> vector<4x512xf32>
    %c21_284 = arith.constant 21 : index
    %c0_285 = arith.constant 0 : index
    %384 = vector.load %arg9[%c21_284, %c0_285] : memref<25x512xf32, #tpu.memory_space<vmem>>, vector<1x512xf32>
    %385 = vector.broadcast %384 : vector<1x512xf32> to vector<4x512xf32>
    %386 = arith.mulf %383, %385 : vector<4x512xf32>
    %c84_286 = arith.constant 84 : index
    %c0_287 = arith.constant 0 : index
    %387 = vector.load %arg15[%c84_286, %c0_287] : memref<100x512xf32, #tpu.memory_space<vmem>>, vector<4x512xf32>
    tpu.vector_store %arg15[%c84_286, %c0_287], %386 {strides = array<i32>} : memref<100x512xf32, #tpu.memory_space<vmem>>, vector<4x512xf32>,
    %c480_i32_288 = arith.constant 480 : i32
    %388 = tpu.dynamic_rotate %278 by %c480_i32_288 dim 1 : vector<4x512xf32>, i32 -> vector<4x512xf32>
    %c22_289 = arith.constant 22 : index
    %c0_290 = arith.constant 0 : index
    %389 = vector.load %arg9[%c22_289, %c0_290] : memref<25x512xf32, #tpu.memory_space<vmem>>, vector<1x512xf32>
    %390 = vector.broadcast %389 : vector<1x512xf32> to vector<4x512xf32>
    %391 = arith.mulf %388, %390 : vector<4x512xf32>
    %c88_291 = arith.constant 88 : index
    %c0_292 = arith.constant 0 : index
    %392 = vector.load %arg15[%c88_291, %c0_292] : memref<100x512xf32, #tpu.memory_space<vmem>>, vector<4x512xf32>
    tpu.vector_store %arg15[%c88_291, %c0_292], %391 {strides = array<i32>} : memref<100x512xf32, #tpu.memory_space<vmem>>, vector<4x512xf32>,
    %c479_i32_293 = arith.constant 479 : i32
    %393 = tpu.dynamic_rotate %278 by %c479_i32_293 dim 1 : vector<4x512xf32>, i32 -> vector<4x512xf32>
    %c23_294 = arith.constant 23 : index
    %c0_295 = arith.constant 0 : index
    %394 = vector.load %arg9[%c23_294, %c0_295] : memref<25x512xf32, #tpu.memory_space<vmem>>, vector<1x512xf32>
    %395 = vector.broadcast %394 : vector<1x512xf32> to vector<4x512xf32>
    %396 = arith.mulf %393, %395 : vector<4x512xf32>
    %c92_296 = arith.constant 92 : index
    %c0_297 = arith.constant 0 : index
    %397 = vector.load %arg15[%c92_296, %c0_297] : memref<100x512xf32, #tpu.memory_space<vmem>>, vector<4x512xf32>
    tpu.vector_store %arg15[%c92_296, %c0_297], %396 {strides = array<i32>} : memref<100x512xf32, #tpu.memory_space<vmem>>, vector<4x512xf32>,
    %c478_i32_298 = arith.constant 478 : i32
    %398 = tpu.dynamic_rotate %278 by %c478_i32_298 dim 1 : vector<4x512xf32>, i32 -> vector<4x512xf32>
    %c24_299 = arith.constant 24 : index
    %c0_300 = arith.constant 0 : index
    %399 = vector.load %arg9[%c24_299, %c0_300] : memref<25x512xf32, #tpu.memory_space<vmem>>, vector<1x512xf32>
    %400 = vector.broadcast %399 : vector<1x512xf32> to vector<4x512xf32>
    %401 = arith.mulf %398, %400 : vector<4x512xf32>
    %c96_301 = arith.constant 96 : index
    %c0_302 = arith.constant 0 : index
    %402 = vector.load %arg15[%c96_301, %c0_302] : memref<100x512xf32, #tpu.memory_space<vmem>>, vector<4x512xf32>
    tpu.vector_store %arg15[%c96_301, %c0_302], %401 {strides = array<i32>} : memref<100x512xf32, #tpu.memory_space<vmem>>, vector<4x512xf32>,
    %c0_303 = arith.constant 0 : index
    %c0_304 = arith.constant 0 : index
    %403 = vector.load %arg15[%c0_303, %c0_304] : memref<100x512xf32, #tpu.memory_space<vmem>>, vector<100x512xf32>
    %404 = arith.truncf %403 : vector<100x512xf32> to vector<100x512xbf16>
    %c0_305 = arith.constant 0 : index
    %c0_306 = arith.constant 0 : index
    %405 = vector.load %arg5[%c0_305, %c0_306] : memref<4x100xbf16, #tpu.memory_space<vmem>>, vector<4x100xbf16>
    %cst_307 = arith.constant dense<0.000000e+00> : vector<4x512xf32>
    %406 = tpu.matmul %405, %404, %cst_307 {dimension_numbers = #tpu.dot_dimension_numbers<[1], [0], [0], [1], [0, 0, 1, 1], [], []>} : vector<4x100xbf16>, vector<100x512xbf16>, vector<4x512xf32> -> vector<4x512xf32>
    %cst_308 = arith.constant dense<0.000000e+00> : vector<4xf32>
    %407 = vector.multi_reduction <add>, %406, %cst_308 [1] : vector<4x512xf32> to vector<4xf32>
    %408 = vector.shape_cast %407 : vector<4xf32> to vector<4x1xf32>
    %cst_309 = arith.constant 0.001953125 : f32
    %409 = vector.broadcast %cst_309 : f32 to vector<4x1xf32>
    %410 = arith.mulf %408, %409 : vector<4x1xf32>
    %411 = vector.broadcast %410 : vector<4x1xf32> to vector<4x512xf32>
    %412 = arith.subf %406, %411 : vector<4x512xf32>
    %413 = arith.mulf %412, %412 : vector<4x512xf32>
    %cst_310 = arith.constant dense<0.000000e+00> : vector<4xf32>
    %414 = vector.multi_reduction <add>, %413, %cst_310 [1] : vector<4x512xf32> to vector<4xf32>
    %415 = vector.shape_cast %414 : vector<4xf32> to vector<4x1xf32>
    %cst_311 = arith.constant 0.001953125 : f32
    %416 = vector.broadcast %cst_311 : f32 to vector<4x1xf32>
    %417 = arith.mulf %415, %416 : vector<4x1xf32>
    %cst_312 = arith.constant 9.99999974E-6 : f32
    %418 = vector.broadcast %cst_312 : f32 to vector<4x1xf32>
    %419 = arith.addf %417, %418 : vector<4x1xf32>
    %420 = math.rsqrt %419 : vector<4x1xf32>
    %421 = vector.broadcast %420 : vector<4x1xf32> to vector<4x512xf32>
    %422 = arith.mulf %412, %421 : vector<4x512xf32>
    %c34_i32_313 = arith.constant 34 : i32
    %423 = tpu.dynamic_rotate %2 by %c34_i32_313 dim 1 : vector<4x512xf32>, i32 -> vector<4x512xf32>
    %c0_314 = arith.constant 0 : index
    %c0_315 = arith.constant 0 : index
    %424 = vector.load %arg10[%c0_314, %c0_315] : memref<9x512xf32, #tpu.memory_space<vmem>>, vector<1x512xf32>
    %425 = vector.broadcast %424 : vector<1x512xf32> to vector<4x512xf32>
    %426 = arith.mulf %423, %425 : vector<4x512xf32>
    %c0_316 = arith.constant 0 : index
    %c0_317 = arith.constant 0 : index
    %427 = vector.load %arg15[%c0_316, %c0_317] : memref<100x512xf32, #tpu.memory_space<vmem>>, vector<4x512xf32>
    tpu.vector_store %arg15[%c0_316, %c0_317], %426 {strides = array<i32>} : memref<100x512xf32, #tpu.memory_space<vmem>>, vector<4x512xf32>,
    %c32_i32_318 = arith.constant 32 : i32
    %428 = tpu.dynamic_rotate %2 by %c32_i32_318 dim 1 : vector<4x512xf32>, i32 -> vector<4x512xf32>
    %c1_319 = arith.constant 1 : index
    %c0_320 = arith.constant 0 : index
    %429 = vector.load %arg10[%c1_319, %c0_320] : memref<9x512xf32, #tpu.memory_space<vmem>>, vector<1x512xf32>
    %430 = vector.broadcast %429 : vector<1x512xf32> to vector<4x512xf32>
    %431 = arith.mulf %428, %430 : vector<4x512xf32>
    %c4_321 = arith.constant 4 : index
    %c0_322 = arith.constant 0 : index
    %432 = vector.load %arg15[%c4_321, %c0_322] : memref<100x512xf32, #tpu.memory_space<vmem>>, vector<4x512xf32>
    tpu.vector_store %arg15[%c4_321, %c0_322], %431 {strides = array<i32>} : memref<100x512xf32, #tpu.memory_space<vmem>>, vector<4x512xf32>,
    %c30_i32_323 = arith.constant 30 : i32
    %433 = tpu.dynamic_rotate %2 by %c30_i32_323 dim 1 : vector<4x512xf32>, i32 -> vector<4x512xf32>
    %c2_324 = arith.constant 2 : index
    %c0_325 = arith.constant 0 : index
    %434 = vector.load %arg10[%c2_324, %c0_325] : memref<9x512xf32, #tpu.memory_space<vmem>>, vector<1x512xf32>
    %435 = vector.broadcast %434 : vector<1x512xf32> to vector<4x512xf32>
    %436 = arith.mulf %433, %435 : vector<4x512xf32>
    %c8_326 = arith.constant 8 : index
    %c0_327 = arith.constant 0 : index
    %437 = vector.load %arg15[%c8_326, %c0_327] : memref<100x512xf32, #tpu.memory_space<vmem>>, vector<4x512xf32>
    tpu.vector_store %arg15[%c8_326, %c0_327], %436 {strides = array<i32>} : memref<100x512xf32, #tpu.memory_space<vmem>>, vector<4x512xf32>,
    %c2_i32_328 = arith.constant 2 : i32
    %438 = tpu.dynamic_rotate %2 by %c2_i32_328 dim 1 : vector<4x512xf32>, i32 -> vector<4x512xf32>
    %c3_329 = arith.constant 3 : index
    %c0_330 = arith.constant 0 : index
    %439 = vector.load %arg10[%c3_329, %c0_330] : memref<9x512xf32, #tpu.memory_space<vmem>>, vector<1x512xf32>
    %440 = vector.broadcast %439 : vector<1x512xf32> to vector<4x512xf32>
    %441 = arith.mulf %438, %440 : vector<4x512xf32>
    %c12_331 = arith.constant 12 : index
    %c0_332 = arith.constant 0 : index
    %442 = vector.load %arg15[%c12_331, %c0_332] : memref<100x512xf32, #tpu.memory_space<vmem>>, vector<4x512xf32>
    tpu.vector_store %arg15[%c12_331, %c0_332], %441 {strides = array<i32>} : memref<100x512xf32, #tpu.memory_space<vmem>>, vector<4x512xf32>,
    %c4_333 = arith.constant 4 : index
    %c0_334 = arith.constant 0 : index
    %443 = vector.load %arg10[%c4_333, %c0_334] : memref<9x512xf32, #tpu.memory_space<vmem>>, vector<1x512xf32>
    %444 = vector.broadcast %443 : vector<1x512xf32> to vector<4x512xf32>
    %445 = arith.mulf %2, %444 : vector<4x512xf32>
    %c16_335 = arith.constant 16 : index
    %c0_336 = arith.constant 0 : index
    %446 = vector.load %arg15[%c16_335, %c0_336] : memref<100x512xf32, #tpu.memory_space<vmem>>, vector<4x512xf32>
    tpu.vector_store %arg15[%c16_335, %c0_336], %445 {strides = array<i32>} : memref<100x512xf32, #tpu.memory_space<vmem>>, vector<4x512xf32>,
    %c510_i32_337 = arith.constant 510 : i32
    %447 = tpu.dynamic_rotate %2 by %c510_i32_337 dim 1 : vector<4x512xf32>, i32 -> vector<4x512xf32>
    %c5_338 = arith.constant 5 : index
    %c0_339 = arith.constant 0 : index
    %448 = vector.load %arg10[%c5_338, %c0_339] : memref<9x512xf32, #tpu.memory_space<vmem>>, vector<1x512xf32>
    %449 = vector.broadcast %448 : vector<1x512xf32> to vector<4x512xf32>
    %450 = arith.mulf %447, %449 : vector<4x512xf32>
    %c20_340 = arith.constant 20 : index
    %c0_341 = arith.constant 0 : index
    %451 = vector.load %arg15[%c20_340, %c0_341] : memref<100x512xf32, #tpu.memory_space<vmem>>, vector<4x512xf32>
    tpu.vector_store %arg15[%c20_340, %c0_341], %450 {strides = array<i32>} : memref<100x512xf32, #tpu.memory_space<vmem>>, vector<4x512xf32>,
    %c482_i32_342 = arith.constant 482 : i32
    %452 = tpu.dynamic_rotate %2 by %c482_i32_342 dim 1 : vector<4x512xf32>, i32 -> vector<4x512xf32>
    %c6_343 = arith.constant 6 : index
    %c0_344 = arith.constant 0 : index
    %453 = vector.load %arg10[%c6_343, %c0_344] : memref<9x512xf32, #tpu.memory_space<vmem>>, vector<1x512xf32>
    %454 = vector.broadcast %453 : vector<1x512xf32> to vector<4x512xf32>
    %455 = arith.mulf %452, %454 : vector<4x512xf32>
    %c24_345 = arith.constant 24 : index
    %c0_346 = arith.constant 0 : index
    %456 = vector.load %arg15[%c24_345, %c0_346] : memref<100x512xf32, #tpu.memory_space<vmem>>, vector<4x512xf32>
    tpu.vector_store %arg15[%c24_345, %c0_346], %455 {strides = array<i32>} : memref<100x512xf32, #tpu.memory_space<vmem>>, vector<4x512xf32>,
    %c480_i32_347 = arith.constant 480 : i32
    %457 = tpu.dynamic_rotate %2 by %c480_i32_347 dim 1 : vector<4x512xf32>, i32 -> vector<4x512xf32>
    %c7_348 = arith.constant 7 : index
    %c0_349 = arith.constant 0 : index
    %458 = vector.load %arg10[%c7_348, %c0_349] : memref<9x512xf32, #tpu.memory_space<vmem>>, vector<1x512xf32>
    %459 = vector.broadcast %458 : vector<1x512xf32> to vector<4x512xf32>
    %460 = arith.mulf %457, %459 : vector<4x512xf32>
    %c28_350 = arith.constant 28 : index
    %c0_351 = arith.constant 0 : index
    %461 = vector.load %arg15[%c28_350, %c0_351] : memref<100x512xf32, #tpu.memory_space<vmem>>, vector<4x512xf32>
    tpu.vector_store %arg15[%c28_350, %c0_351], %460 {strides = array<i32>} : memref<100x512xf32, #tpu.memory_space<vmem>>, vector<4x512xf32>,
    %c478_i32_352 = arith.constant 478 : i32
    %462 = tpu.dynamic_rotate %2 by %c478_i32_352 dim 1 : vector<4x512xf32>, i32 -> vector<4x512xf32>
    %c8_353 = arith.constant 8 : index
    %c0_354 = arith.constant 0 : index
    %463 = vector.load %arg10[%c8_353, %c0_354] : memref<9x512xf32, #tpu.memory_space<vmem>>, vector<1x512xf32>
    %464 = vector.broadcast %463 : vector<1x512xf32> to vector<4x512xf32>
    %465 = arith.mulf %462, %464 : vector<4x512xf32>
    %c32_355 = arith.constant 32 : index
    %c0_356 = arith.constant 0 : index
    %466 = vector.load %arg15[%c32_355, %c0_356] : memref<100x512xf32, #tpu.memory_space<vmem>>, vector<4x512xf32>
    tpu.vector_store %arg15[%c32_355, %c0_356], %465 {strides = array<i32>} : memref<100x512xf32, #tpu.memory_space<vmem>>, vector<4x512xf32>,
    %c0_357 = arith.constant 0 : index
    %c0_358 = arith.constant 0 : index
    %467 = vector.load %arg15[%c0_357, %c0_358] : memref<100x512xf32, #tpu.memory_space<vmem>>, vector<36x512xf32>
    %468 = arith.truncf %467 : vector<36x512xf32> to vector<36x512xbf16>
    %c0_359 = arith.constant 0 : index
    %c0_360 = arith.constant 0 : index
    %469 = vector.load %arg6[%c0_359, %c0_360] : memref<4x36xbf16, #tpu.memory_space<vmem>>, vector<4x36xbf16>
    %cst_361 = arith.constant dense<0.000000e+00> : vector<4x512xf32>
    %470 = tpu.matmul %469, %468, %cst_361 {dimension_numbers = #tpu.dot_dimension_numbers<[1], [0], [0], [1], [0, 0, 1, 1], [], []>} : vector<4x36xbf16>, vector<36x512xbf16>, vector<4x512xf32> -> vector<4x512xf32>
    %cst_362 = arith.constant dense<0.000000e+00> : vector<4xf32>
    %471 = vector.multi_reduction <add>, %470, %cst_362 [1] : vector<4x512xf32> to vector<4xf32>
    %472 = vector.shape_cast %471 : vector<4xf32> to vector<4x1xf32>
    %cst_363 = arith.constant 0.001953125 : f32
    %473 = vector.broadcast %cst_363 : f32 to vector<4x1xf32>
    %474 = arith.mulf %472, %473 : vector<4x1xf32>
    %475 = vector.broadcast %474 : vector<4x1xf32> to vector<4x512xf32>
    %476 = arith.subf %470, %475 : vector<4x512xf32>
    %477 = arith.mulf %476, %476 : vector<4x512xf32>
    %cst_364 = arith.constant dense<0.000000e+00> : vector<4xf32>
    %478 = vector.multi_reduction <add>, %477, %cst_364 [1] : vector<4x512xf32> to vector<4xf32>
    %479 = vector.shape_cast %478 : vector<4xf32> to vector<4x1xf32>
    %cst_365 = arith.constant 0.001953125 : f32
    %480 = vector.broadcast %cst_365 : f32 to vector<4x1xf32>
    %481 = arith.mulf %479, %480 : vector<4x1xf32>
    %cst_366 = arith.constant 9.99999974E-6 : f32
    %482 = vector.broadcast %cst_366 : f32 to vector<4x1xf32>
    %483 = arith.addf %481, %482 : vector<4x1xf32>
    %484 = math.rsqrt %483 : vector<4x1xf32>
    %485 = vector.broadcast %484 : vector<4x1xf32> to vector<4x512xf32>
    %486 = arith.mulf %476, %485 : vector<4x512xf32>
    %c68_i32 = arith.constant 68 : i32
    %487 = tpu.dynamic_rotate %2 by %c68_i32 dim 1 : vector<4x512xf32>, i32 -> vector<4x512xf32>
    %c0_367 = arith.constant 0 : index
    %c0_368 = arith.constant 0 : index
    %488 = vector.load %arg11[%c0_367, %c0_368] : memref<25x512xf32, #tpu.memory_space<vmem>>, vector<1x512xf32>
    %489 = vector.broadcast %488 : vector<1x512xf32> to vector<4x512xf32>
    %490 = arith.mulf %487, %489 : vector<4x512xf32>
    %c0_369 = arith.constant 0 : index
    %c0_370 = arith.constant 0 : index
    %491 = vector.load %arg15[%c0_369, %c0_370] : memref<100x512xf32, #tpu.memory_space<vmem>>, vector<4x512xf32>
    tpu.vector_store %arg15[%c0_369, %c0_370], %490 {strides = array<i32>} : memref<100x512xf32, #tpu.memory_space<vmem>>, vector<4x512xf32>,
    %c66_i32 = arith.constant 66 : i32
    %492 = tpu.dynamic_rotate %2 by %c66_i32 dim 1 : vector<4x512xf32>, i32 -> vector<4x512xf32>
    %c1_371 = arith.constant 1 : index
    %c0_372 = arith.constant 0 : index
    %493 = vector.load %arg11[%c1_371, %c0_372] : memref<25x512xf32, #tpu.memory_space<vmem>>, vector<1x512xf32>
    %494 = vector.broadcast %493 : vector<1x512xf32> to vector<4x512xf32>
    %495 = arith.mulf %492, %494 : vector<4x512xf32>
    %c4_373 = arith.constant 4 : index
    %c0_374 = arith.constant 0 : index
    %496 = vector.load %arg15[%c4_373, %c0_374] : memref<100x512xf32, #tpu.memory_space<vmem>>, vector<4x512xf32>
    tpu.vector_store %arg15[%c4_373, %c0_374], %495 {strides = array<i32>} : memref<100x512xf32, #tpu.memory_space<vmem>>, vector<4x512xf32>,
    %c64_i32 = arith.constant 64 : i32
    %497 = tpu.dynamic_rotate %2 by %c64_i32 dim 1 : vector<4x512xf32>, i32 -> vector<4x512xf32>
    %c2_375 = arith.constant 2 : index
    %c0_376 = arith.constant 0 : index
    %498 = vector.load %arg11[%c2_375, %c0_376] : memref<25x512xf32, #tpu.memory_space<vmem>>, vector<1x512xf32>
    %499 = vector.broadcast %498 : vector<1x512xf32> to vector<4x512xf32>
    %500 = arith.mulf %497, %499 : vector<4x512xf32>
    %c8_377 = arith.constant 8 : index
    %c0_378 = arith.constant 0 : index
    %501 = vector.load %arg15[%c8_377, %c0_378] : memref<100x512xf32, #tpu.memory_space<vmem>>, vector<4x512xf32>
    tpu.vector_store %arg15[%c8_377, %c0_378], %500 {strides = array<i32>} : memref<100x512xf32, #tpu.memory_space<vmem>>, vector<4x512xf32>,
    %c62_i32 = arith.constant 62 : i32
    %502 = tpu.dynamic_rotate %2 by %c62_i32 dim 1 : vector<4x512xf32>, i32 -> vector<4x512xf32>
    %c3_379 = arith.constant 3 : index
    %c0_380 = arith.constant 0 : index
    %503 = vector.load %arg11[%c3_379, %c0_380] : memref<25x512xf32, #tpu.memory_space<vmem>>, vector<1x512xf32>
    %504 = vector.broadcast %503 : vector<1x512xf32> to vector<4x512xf32>
    %505 = arith.mulf %502, %504 : vector<4x512xf32>
    %c12_381 = arith.constant 12 : index
    %c0_382 = arith.constant 0 : index
    %506 = vector.load %arg15[%c12_381, %c0_382] : memref<100x512xf32, #tpu.memory_space<vmem>>, vector<4x512xf32>
    tpu.vector_store %arg15[%c12_381, %c0_382], %505 {strides = array<i32>} : memref<100x512xf32, #tpu.memory_space<vmem>>, vector<4x512xf32>,
    %c60_i32 = arith.constant 60 : i32
    %507 = tpu.dynamic_rotate %2 by %c60_i32 dim 1 : vector<4x512xf32>, i32 -> vector<4x512xf32>
    %c4_383 = arith.constant 4 : index
    %c0_384 = arith.constant 0 : index
    %508 = vector.load %arg11[%c4_383, %c0_384] : memref<25x512xf32, #tpu.memory_space<vmem>>, vector<1x512xf32>
    %509 = vector.broadcast %508 : vector<1x512xf32> to vector<4x512xf32>
    %510 = arith.mulf %507, %509 : vector<4x512xf32>
    %c16_385 = arith.constant 16 : index
    %c0_386 = arith.constant 0 : index
    %511 = vector.load %arg15[%c16_385, %c0_386] : memref<100x512xf32, #tpu.memory_space<vmem>>, vector<4x512xf32>
    tpu.vector_store %arg15[%c16_385, %c0_386], %510 {strides = array<i32>} : memref<100x512xf32, #tpu.memory_space<vmem>>, vector<4x512xf32>,
    %c36_i32 = arith.constant 36 : i32
    %512 = tpu.dynamic_rotate %2 by %c36_i32 dim 1 : vector<4x512xf32>, i32 -> vector<4x512xf32>
    %c5_387 = arith.constant 5 : index
    %c0_388 = arith.constant 0 : index
    %513 = vector.load %arg11[%c5_387, %c0_388] : memref<25x512xf32, #tpu.memory_space<vmem>>, vector<1x512xf32>
    %514 = vector.broadcast %513 : vector<1x512xf32> to vector<4x512xf32>
    %515 = arith.mulf %512, %514 : vector<4x512xf32>
    %c20_389 = arith.constant 20 : index
    %c0_390 = arith.constant 0 : index
    %516 = vector.load %arg15[%c20_389, %c0_390] : memref<100x512xf32, #tpu.memory_space<vmem>>, vector<4x512xf32>
    tpu.vector_store %arg15[%c20_389, %c0_390], %515 {strides = array<i32>} : memref<100x512xf32, #tpu.memory_space<vmem>>, vector<4x512xf32>,
    %c34_i32_391 = arith.constant 34 : i32
    %517 = tpu.dynamic_rotate %2 by %c34_i32_391 dim 1 : vector<4x512xf32>, i32 -> vector<4x512xf32>
    %c6_392 = arith.constant 6 : index
    %c0_393 = arith.constant 0 : index
    %518 = vector.load %arg11[%c6_392, %c0_393] : memref<25x512xf32, #tpu.memory_space<vmem>>, vector<1x512xf32>
    %519 = vector.broadcast %518 : vector<1x512xf32> to vector<4x512xf32>
    %520 = arith.mulf %517, %519 : vector<4x512xf32>
    %c24_394 = arith.constant 24 : index
    %c0_395 = arith.constant 0 : index
    %521 = vector.load %arg15[%c24_394, %c0_395] : memref<100x512xf32, #tpu.memory_space<vmem>>, vector<4x512xf32>
    tpu.vector_store %arg15[%c24_394, %c0_395], %520 {strides = array<i32>} : memref<100x512xf32, #tpu.memory_space<vmem>>, vector<4x512xf32>,
    %c32_i32_396 = arith.constant 32 : i32
    %522 = tpu.dynamic_rotate %2 by %c32_i32_396 dim 1 : vector<4x512xf32>, i32 -> vector<4x512xf32>
    %c7_397 = arith.constant 7 : index
    %c0_398 = arith.constant 0 : index
    %523 = vector.load %arg11[%c7_397, %c0_398] : memref<25x512xf32, #tpu.memory_space<vmem>>, vector<1x512xf32>
    %524 = vector.broadcast %523 : vector<1x512xf32> to vector<4x512xf32>
    %525 = arith.mulf %522, %524 : vector<4x512xf32>
    %c28_399 = arith.constant 28 : index
    %c0_400 = arith.constant 0 : index
    %526 = vector.load %arg15[%c28_399, %c0_400] : memref<100x512xf32, #tpu.memory_space<vmem>>, vector<4x512xf32>
    tpu.vector_store %arg15[%c28_399, %c0_400], %525 {strides = array<i32>} : memref<100x512xf32, #tpu.memory_space<vmem>>, vector<4x512xf32>,
    %c30_i32_401 = arith.constant 30 : i32
    %527 = tpu.dynamic_rotate %2 by %c30_i32_401 dim 1 : vector<4x512xf32>, i32 -> vector<4x512xf32>
    %c8_402 = arith.constant 8 : index
    %c0_403 = arith.constant 0 : index
    %528 = vector.load %arg11[%c8_402, %c0_403] : memref<25x512xf32, #tpu.memory_space<vmem>>, vector<1x512xf32>
    %529 = vector.broadcast %528 : vector<1x512xf32> to vector<4x512xf32>
    %530 = arith.mulf %527, %529 : vector<4x512xf32>
    %c32_404 = arith.constant 32 : index
    %c0_405 = arith.constant 0 : index
    %531 = vector.load %arg15[%c32_404, %c0_405] : memref<100x512xf32, #tpu.memory_space<vmem>>, vector<4x512xf32>
    tpu.vector_store %arg15[%c32_404, %c0_405], %530 {strides = array<i32>} : memref<100x512xf32, #tpu.memory_space<vmem>>, vector<4x512xf32>,
    %c28_i32 = arith.constant 28 : i32
    %532 = tpu.dynamic_rotate %2 by %c28_i32 dim 1 : vector<4x512xf32>, i32 -> vector<4x512xf32>
    %c9_406 = arith.constant 9 : index
    %c0_407 = arith.constant 0 : index
    %533 = vector.load %arg11[%c9_406, %c0_407] : memref<25x512xf32, #tpu.memory_space<vmem>>, vector<1x512xf32>
    %534 = vector.broadcast %533 : vector<1x512xf32> to vector<4x512xf32>
    %535 = arith.mulf %532, %534 : vector<4x512xf32>
    %c36_408 = arith.constant 36 : index
    %c0_409 = arith.constant 0 : index
    %536 = vector.load %arg15[%c36_408, %c0_409] : memref<100x512xf32, #tpu.memory_space<vmem>>, vector<4x512xf32>
    tpu.vector_store %arg15[%c36_408, %c0_409], %535 {strides = array<i32>} : memref<100x512xf32, #tpu.memory_space<vmem>>, vector<4x512xf32>,
    %c4_i32 = arith.constant 4 : i32
    %537 = tpu.dynamic_rotate %2 by %c4_i32 dim 1 : vector<4x512xf32>, i32 -> vector<4x512xf32>
    %c10_410 = arith.constant 10 : index
    %c0_411 = arith.constant 0 : index
    %538 = vector.load %arg11[%c10_410, %c0_411] : memref<25x512xf32, #tpu.memory_space<vmem>>, vector<1x512xf32>
    %539 = vector.broadcast %538 : vector<1x512xf32> to vector<4x512xf32>
    %540 = arith.mulf %537, %539 : vector<4x512xf32>
    %c40_412 = arith.constant 40 : index
    %c0_413 = arith.constant 0 : index
    %541 = vector.load %arg15[%c40_412, %c0_413] : memref<100x512xf32, #tpu.memory_space<vmem>>, vector<4x512xf32>
    tpu.vector_store %arg15[%c40_412, %c0_413], %540 {strides = array<i32>} : memref<100x512xf32, #tpu.memory_space<vmem>>, vector<4x512xf32>,
    %c2_i32_414 = arith.constant 2 : i32
    %542 = tpu.dynamic_rotate %2 by %c2_i32_414 dim 1 : vector<4x512xf32>, i32 -> vector<4x512xf32>
    %c11_415 = arith.constant 11 : index
    %c0_416 = arith.constant 0 : index
    %543 = vector.load %arg11[%c11_415, %c0_416] : memref<25x512xf32, #tpu.memory_space<vmem>>, vector<1x512xf32>
    %544 = vector.broadcast %543 : vector<1x512xf32> to vector<4x512xf32>
    %545 = arith.mulf %542, %544 : vector<4x512xf32>
    %c44_417 = arith.constant 44 : index
    %c0_418 = arith.constant 0 : index
    %546 = vector.load %arg15[%c44_417, %c0_418] : memref<100x512xf32, #tpu.memory_space<vmem>>, vector<4x512xf32>
    tpu.vector_store %arg15[%c44_417, %c0_418], %545 {strides = array<i32>} : memref<100x512xf32, #tpu.memory_space<vmem>>, vector<4x512xf32>,
    %c12_419 = arith.constant 12 : index
    %c0_420 = arith.constant 0 : index
    %547 = vector.load %arg11[%c12_419, %c0_420] : memref<25x512xf32, #tpu.memory_space<vmem>>, vector<1x512xf32>
    %548 = vector.broadcast %547 : vector<1x512xf32> to vector<4x512xf32>
    %549 = arith.mulf %2, %548 : vector<4x512xf32>
    %c48_421 = arith.constant 48 : index
    %c0_422 = arith.constant 0 : index
    %550 = vector.load %arg15[%c48_421, %c0_422] : memref<100x512xf32, #tpu.memory_space<vmem>>, vector<4x512xf32>
    tpu.vector_store %arg15[%c48_421, %c0_422], %549 {strides = array<i32>} : memref<100x512xf32, #tpu.memory_space<vmem>>, vector<4x512xf32>,
    %c510_i32_423 = arith.constant 510 : i32
    %551 = tpu.dynamic_rotate %2 by %c510_i32_423 dim 1 : vector<4x512xf32>, i32 -> vector<4x512xf32>
    %c13_424 = arith.constant 13 : index
    %c0_425 = arith.constant 0 : index
    %552 = vector.load %arg11[%c13_424, %c0_425] : memref<25x512xf32, #tpu.memory_space<vmem>>, vector<1x512xf32>
    %553 = vector.broadcast %552 : vector<1x512xf32> to vector<4x512xf32>
    %554 = arith.mulf %551, %553 : vector<4x512xf32>
    %c52_426 = arith.constant 52 : index
    %c0_427 = arith.constant 0 : index
    %555 = vector.load %arg15[%c52_426, %c0_427] : memref<100x512xf32, #tpu.memory_space<vmem>>, vector<4x512xf32>
    tpu.vector_store %arg15[%c52_426, %c0_427], %554 {strides = array<i32>} : memref<100x512xf32, #tpu.memory_space<vmem>>, vector<4x512xf32>,
    %c508_i32 = arith.constant 508 : i32
    %556 = tpu.dynamic_rotate %2 by %c508_i32 dim 1 : vector<4x512xf32>, i32 -> vector<4x512xf32>
    %c14_428 = arith.constant 14 : index
    %c0_429 = arith.constant 0 : index
    %557 = vector.load %arg11[%c14_428, %c0_429] : memref<25x512xf32, #tpu.memory_space<vmem>>, vector<1x512xf32>
    %558 = vector.broadcast %557 : vector<1x512xf32> to vector<4x512xf32>
    %559 = arith.mulf %556, %558 : vector<4x512xf32>
    %c56_430 = arith.constant 56 : index
    %c0_431 = arith.constant 0 : index
    %560 = vector.load %arg15[%c56_430, %c0_431] : memref<100x512xf32, #tpu.memory_space<vmem>>, vector<4x512xf32>
    tpu.vector_store %arg15[%c56_430, %c0_431], %559 {strides = array<i32>} : memref<100x512xf32, #tpu.memory_space<vmem>>, vector<4x512xf32>,
    %c484_i32 = arith.constant 484 : i32
    %561 = tpu.dynamic_rotate %2 by %c484_i32 dim 1 : vector<4x512xf32>, i32 -> vector<4x512xf32>
    %c15_432 = arith.constant 15 : index
    %c0_433 = arith.constant 0 : index
    %562 = vector.load %arg11[%c15_432, %c0_433] : memref<25x512xf32, #tpu.memory_space<vmem>>, vector<1x512xf32>
    %563 = vector.broadcast %562 : vector<1x512xf32> to vector<4x512xf32>
    %564 = arith.mulf %561, %563 : vector<4x512xf32>
    %c60_434 = arith.constant 60 : index
    %c0_435 = arith.constant 0 : index
    %565 = vector.load %arg15[%c60_434, %c0_435] : memref<100x512xf32, #tpu.memory_space<vmem>>, vector<4x512xf32>
    tpu.vector_store %arg15[%c60_434, %c0_435], %564 {strides = array<i32>} : memref<100x512xf32, #tpu.memory_space<vmem>>, vector<4x512xf32>,
    %c482_i32_436 = arith.constant 482 : i32
    %566 = tpu.dynamic_rotate %2 by %c482_i32_436 dim 1 : vector<4x512xf32>, i32 -> vector<4x512xf32>
    %c16_437 = arith.constant 16 : index
    %c0_438 = arith.constant 0 : index
    %567 = vector.load %arg11[%c16_437, %c0_438] : memref<25x512xf32, #tpu.memory_space<vmem>>, vector<1x512xf32>
    %568 = vector.broadcast %567 : vector<1x512xf32> to vector<4x512xf32>
    %569 = arith.mulf %566, %568 : vector<4x512xf32>
    %c64_439 = arith.constant 64 : index
    %c0_440 = arith.constant 0 : index
    %570 = vector.load %arg15[%c64_439, %c0_440] : memref<100x512xf32, #tpu.memory_space<vmem>>, vector<4x512xf32>
    tpu.vector_store %arg15[%c64_439, %c0_440], %569 {strides = array<i32>} : memref<100x512xf32, #tpu.memory_space<vmem>>, vector<4x512xf32>,
    %c480_i32_441 = arith.constant 480 : i32
    %571 = tpu.dynamic_rotate %2 by %c480_i32_441 dim 1 : vector<4x512xf32>, i32 -> vector<4x512xf32>
    %c17_442 = arith.constant 17 : index
    %c0_443 = arith.constant 0 : index
    %572 = vector.load %arg11[%c17_442, %c0_443] : memref<25x512xf32, #tpu.memory_space<vmem>>, vector<1x512xf32>
    %573 = vector.broadcast %572 : vector<1x512xf32> to vector<4x512xf32>
    %574 = arith.mulf %571, %573 : vector<4x512xf32>
    %c68_444 = arith.constant 68 : index
    %c0_445 = arith.constant 0 : index
    %575 = vector.load %arg15[%c68_444, %c0_445] : memref<100x512xf32, #tpu.memory_space<vmem>>, vector<4x512xf32>
    tpu.vector_store %arg15[%c68_444, %c0_445], %574 {strides = array<i32>} : memref<100x512xf32, #tpu.memory_space<vmem>>, vector<4x512xf32>,
    %c478_i32_446 = arith.constant 478 : i32
    %576 = tpu.dynamic_rotate %2 by %c478_i32_446 dim 1 : vector<4x512xf32>, i32 -> vector<4x512xf32>
    %c18_447 = arith.constant 18 : index
    %c0_448 = arith.constant 0 : index
    %577 = vector.load %arg11[%c18_447, %c0_448] : memref<25x512xf32, #tpu.memory_space<vmem>>, vector<1x512xf32>
    %578 = vector.broadcast %577 : vector<1x512xf32> to vector<4x512xf32>
    %579 = arith.mulf %576, %578 : vector<4x512xf32>
    %c72_449 = arith.constant 72 : index
    %c0_450 = arith.constant 0 : index
    %580 = vector.load %arg15[%c72_449, %c0_450] : memref<100x512xf32, #tpu.memory_space<vmem>>, vector<4x512xf32>
    tpu.vector_store %arg15[%c72_449, %c0_450], %579 {strides = array<i32>} : memref<100x512xf32, #tpu.memory_space<vmem>>, vector<4x512xf32>,
    %c476_i32 = arith.constant 476 : i32
    %581 = tpu.dynamic_rotate %2 by %c476_i32 dim 1 : vector<4x512xf32>, i32 -> vector<4x512xf32>
    %c19_451 = arith.constant 19 : index
    %c0_452 = arith.constant 0 : index
    %582 = vector.load %arg11[%c19_451, %c0_452] : memref<25x512xf32, #tpu.memory_space<vmem>>, vector<1x512xf32>
    %583 = vector.broadcast %582 : vector<1x512xf32> to vector<4x512xf32>
    %584 = arith.mulf %581, %583 : vector<4x512xf32>
    %c76_453 = arith.constant 76 : index
    %c0_454 = arith.constant 0 : index
    %585 = vector.load %arg15[%c76_453, %c0_454] : memref<100x512xf32, #tpu.memory_space<vmem>>, vector<4x512xf32>
    tpu.vector_store %arg15[%c76_453, %c0_454], %584 {strides = array<i32>} : memref<100x512xf32, #tpu.memory_space<vmem>>, vector<4x512xf32>,
    %c452_i32 = arith.constant 452 : i32
    %586 = tpu.dynamic_rotate %2 by %c452_i32 dim 1 : vector<4x512xf32>, i32 -> vector<4x512xf32>
    %c20_455 = arith.constant 20 : index
    %c0_456 = arith.constant 0 : index
    %587 = vector.load %arg11[%c20_455, %c0_456] : memref<25x512xf32, #tpu.memory_space<vmem>>, vector<1x512xf32>
    %588 = vector.broadcast %587 : vector<1x512xf32> to vector<4x512xf32>
    %589 = arith.mulf %586, %588 : vector<4x512xf32>
    %c80_457 = arith.constant 80 : index
    %c0_458 = arith.constant 0 : index
    %590 = vector.load %arg15[%c80_457, %c0_458] : memref<100x512xf32, #tpu.memory_space<vmem>>, vector<4x512xf32>
    tpu.vector_store %arg15[%c80_457, %c0_458], %589 {strides = array<i32>} : memref<100x512xf32, #tpu.memory_space<vmem>>, vector<4x512xf32>,
    %c450_i32 = arith.constant 450 : i32
    %591 = tpu.dynamic_rotate %2 by %c450_i32 dim 1 : vector<4x512xf32>, i32 -> vector<4x512xf32>
    %c21_459 = arith.constant 21 : index
    %c0_460 = arith.constant 0 : index
    %592 = vector.load %arg11[%c21_459, %c0_460] : memref<25x512xf32, #tpu.memory_space<vmem>>, vector<1x512xf32>
    %593 = vector.broadcast %592 : vector<1x512xf32> to vector<4x512xf32>
    %594 = arith.mulf %591, %593 : vector<4x512xf32>
    %c84_461 = arith.constant 84 : index
    %c0_462 = arith.constant 0 : index
    %595 = vector.load %arg15[%c84_461, %c0_462] : memref<100x512xf32, #tpu.memory_space<vmem>>, vector<4x512xf32>
    tpu.vector_store %arg15[%c84_461, %c0_462], %594 {strides = array<i32>} : memref<100x512xf32, #tpu.memory_space<vmem>>, vector<4x512xf32>,
    %c448_i32 = arith.constant 448 : i32
    %596 = tpu.dynamic_rotate %2 by %c448_i32 dim 1 : vector<4x512xf32>, i32 -> vector<4x512xf32>
    %c22_463 = arith.constant 22 : index
    %c0_464 = arith.constant 0 : index
    %597 = vector.load %arg11[%c22_463, %c0_464] : memref<25x512xf32, #tpu.memory_space<vmem>>, vector<1x512xf32>
    %598 = vector.broadcast %597 : vector<1x512xf32> to vector<4x512xf32>
    %599 = arith.mulf %596, %598 : vector<4x512xf32>
    %c88_465 = arith.constant 88 : index
    %c0_466 = arith.constant 0 : index
    %600 = vector.load %arg15[%c88_465, %c0_466] : memref<100x512xf32, #tpu.memory_space<vmem>>, vector<4x512xf32>
    tpu.vector_store %arg15[%c88_465, %c0_466], %599 {strides = array<i32>} : memref<100x512xf32, #tpu.memory_space<vmem>>, vector<4x512xf32>,
    %c446_i32 = arith.constant 446 : i32
    %601 = tpu.dynamic_rotate %2 by %c446_i32 dim 1 : vector<4x512xf32>, i32 -> vector<4x512xf32>
    %c23_467 = arith.constant 23 : index
    %c0_468 = arith.constant 0 : index
    %602 = vector.load %arg11[%c23_467, %c0_468] : memref<25x512xf32, #tpu.memory_space<vmem>>, vector<1x512xf32>
    %603 = vector.broadcast %602 : vector<1x512xf32> to vector<4x512xf32>
    %604 = arith.mulf %601, %603 : vector<4x512xf32>
    %c92_469 = arith.constant 92 : index
    %c0_470 = arith.constant 0 : index
    %605 = vector.load %arg15[%c92_469, %c0_470] : memref<100x512xf32, #tpu.memory_space<vmem>>, vector<4x512xf32>
    tpu.vector_store %arg15[%c92_469, %c0_470], %604 {strides = array<i32>} : memref<100x512xf32, #tpu.memory_space<vmem>>, vector<4x512xf32>,
    %c444_i32 = arith.constant 444 : i32
    %606 = tpu.dynamic_rotate %2 by %c444_i32 dim 1 : vector<4x512xf32>, i32 -> vector<4x512xf32>
    %c24_471 = arith.constant 24 : index
    %c0_472 = arith.constant 0 : index
    %607 = vector.load %arg11[%c24_471, %c0_472] : memref<25x512xf32, #tpu.memory_space<vmem>>, vector<1x512xf32>
    %608 = vector.broadcast %607 : vector<1x512xf32> to vector<4x512xf32>
    %609 = arith.mulf %606, %608 : vector<4x512xf32>
    %c96_473 = arith.constant 96 : index
    %c0_474 = arith.constant 0 : index
    %610 = vector.load %arg15[%c96_473, %c0_474] : memref<100x512xf32, #tpu.memory_space<vmem>>, vector<4x512xf32>
    tpu.vector_store %arg15[%c96_473, %c0_474], %609 {strides = array<i32>} : memref<100x512xf32, #tpu.memory_space<vmem>>, vector<4x512xf32>,
    %c0_475 = arith.constant 0 : index
    %c0_476 = arith.constant 0 : index
    %611 = vector.load %arg15[%c0_475, %c0_476] : memref<100x512xf32, #tpu.memory_space<vmem>>, vector<100x512xf32>
    %612 = arith.truncf %611 : vector<100x512xf32> to vector<100x512xbf16>
    %c0_477 = arith.constant 0 : index
    %c0_478 = arith.constant 0 : index
    %613 = vector.load %arg7[%c0_477, %c0_478] : memref<4x100xbf16, #tpu.memory_space<vmem>>, vector<4x100xbf16>
    %cst_479 = arith.constant dense<0.000000e+00> : vector<4x512xf32>
    %614 = tpu.matmul %613, %612, %cst_479 {dimension_numbers = #tpu.dot_dimension_numbers<[1], [0], [0], [1], [0, 0, 1, 1], [], []>} : vector<4x100xbf16>, vector<100x512xbf16>, vector<4x512xf32> -> vector<4x512xf32>
    %cst_480 = arith.constant dense<0.000000e+00> : vector<4xf32>
    %615 = vector.multi_reduction <add>, %614, %cst_480 [1] : vector<4x512xf32> to vector<4xf32>
    %616 = vector.shape_cast %615 : vector<4xf32> to vector<4x1xf32>
    %cst_481 = arith.constant 0.001953125 : f32
    %617 = vector.broadcast %cst_481 : f32 to vector<4x1xf32>
    %618 = arith.mulf %616, %617 : vector<4x1xf32>
    %619 = vector.broadcast %618 : vector<4x1xf32> to vector<4x512xf32>
    %620 = arith.subf %614, %619 : vector<4x512xf32>
    %621 = arith.mulf %620, %620 : vector<4x512xf32>
    %cst_482 = arith.constant dense<0.000000e+00> : vector<4xf32>
    %622 = vector.multi_reduction <add>, %621, %cst_482 [1] : vector<4x512xf32> to vector<4xf32>
    %623 = vector.shape_cast %622 : vector<4xf32> to vector<4x1xf32>
    %cst_483 = arith.constant 0.001953125 : f32
    %624 = vector.broadcast %cst_483 : f32 to vector<4x1xf32>
    %625 = arith.mulf %623, %624 : vector<4x1xf32>
    %cst_484 = arith.constant 9.99999974E-6 : f32
    %626 = vector.broadcast %cst_484 : f32 to vector<4x1xf32>
    %627 = arith.addf %625, %626 : vector<4x1xf32>
    %628 = math.rsqrt %627 : vector<4x1xf32>
    %629 = vector.broadcast %628 : vector<4x1xf32> to vector<4x512xf32>
    %630 = arith.mulf %620, %629 : vector<4x512xf32>
    %cst_485 = arith.constant 0xFF800000 : f32
    %631 = vector.broadcast %cst_485 : f32 to vector<4x512xf32>
    %cst_486 = arith.constant 0.000000e+00 : f32
    %632 = vector.broadcast %cst_486 : f32 to vector<4x512xf32>
    %c17_i32_487 = arith.constant 17 : i32
    %633 = tpu.dynamic_rotate %0 by %c17_i32_487 dim 1 : vector<4x512xf32>, i32 -> vector<4x512xf32>
    %c0_488 = arith.constant 0 : index
    %c0_489 = arith.constant 0 : index
    %634 = vector.load %arg12[%c0_488, %c0_489] : memref<9x512xf32, #tpu.memory_space<vmem>>, vector<1x512xf32>
    %635 = vector.broadcast %634 : vector<1x512xf32> to vector<4x512xf32>
    %636 = arith.addf %633, %635 : vector<4x512xf32>
    %637 = arith.maximumf %631, %636 : vector<4x512xf32>
    %c0_490 = arith.constant 0 : index
    %c0_491 = arith.constant 0 : index
    %638 = vector.load %arg8[%c0_490, %c0_491] : memref<9x512xf32, #tpu.memory_space<vmem>>, vector<1x512xf32>
    %639 = vector.broadcast %638 : vector<1x512xf32> to vector<4x512xf32>
    %640 = arith.mulf %633, %639 : vector<4x512xf32>
    %641 = arith.addf %632, %640 : vector<4x512xf32>
    %c16_i32_492 = arith.constant 16 : i32
    %642 = tpu.dynamic_rotate %0 by %c16_i32_492 dim 1 : vector<4x512xf32>, i32 -> vector<4x512xf32>
    %c1_493 = arith.constant 1 : index
    %c0_494 = arith.constant 0 : index
    %643 = vector.load %arg12[%c1_493, %c0_494] : memref<9x512xf32, #tpu.memory_space<vmem>>, vector<1x512xf32>
    %644 = vector.broadcast %643 : vector<1x512xf32> to vector<4x512xf32>
    %645 = arith.addf %642, %644 : vector<4x512xf32>
    %646 = arith.maximumf %637, %645 : vector<4x512xf32>
    %c1_495 = arith.constant 1 : index
    %c0_496 = arith.constant 0 : index
    %647 = vector.load %arg8[%c1_495, %c0_496] : memref<9x512xf32, #tpu.memory_space<vmem>>, vector<1x512xf32>
    %648 = vector.broadcast %647 : vector<1x512xf32> to vector<4x512xf32>
    %649 = arith.mulf %642, %648 : vector<4x512xf32>
    %650 = arith.addf %641, %649 : vector<4x512xf32>
    %c15_i32_497 = arith.constant 15 : i32
    %651 = tpu.dynamic_rotate %0 by %c15_i32_497 dim 1 : vector<4x512xf32>, i32 -> vector<4x512xf32>
    %c2_498 = arith.constant 2 : index
    %c0_499 = arith.constant 0 : index
    %652 = vector.load %arg12[%c2_498, %c0_499] : memref<9x512xf32, #tpu.memory_space<vmem>>, vector<1x512xf32>
    %653 = vector.broadcast %652 : vector<1x512xf32> to vector<4x512xf32>
    %654 = arith.addf %651, %653 : vector<4x512xf32>
    %655 = arith.maximumf %646, %654 : vector<4x512xf32>
    %c2_500 = arith.constant 2 : index
    %c0_501 = arith.constant 0 : index
    %656 = vector.load %arg8[%c2_500, %c0_501] : memref<9x512xf32, #tpu.memory_space<vmem>>, vector<1x512xf32>
    %657 = vector.broadcast %656 : vector<1x512xf32> to vector<4x512xf32>
    %658 = arith.mulf %651, %657 : vector<4x512xf32>
    %659 = arith.addf %650, %658 : vector<4x512xf32>
    %c1_i32_502 = arith.constant 1 : i32
    %660 = tpu.dynamic_rotate %0 by %c1_i32_502 dim 1 : vector<4x512xf32>, i32 -> vector<4x512xf32>
    %c3_503 = arith.constant 3 : index
    %c0_504 = arith.constant 0 : index
    %661 = vector.load %arg12[%c3_503, %c0_504] : memref<9x512xf32, #tpu.memory_space<vmem>>, vector<1x512xf32>
    %662 = vector.broadcast %661 : vector<1x512xf32> to vector<4x512xf32>
    %663 = arith.addf %660, %662 : vector<4x512xf32>
    %664 = arith.maximumf %655, %663 : vector<4x512xf32>
    %c3_505 = arith.constant 3 : index
    %c0_506 = arith.constant 0 : index
    %665 = vector.load %arg8[%c3_505, %c0_506] : memref<9x512xf32, #tpu.memory_space<vmem>>, vector<1x512xf32>
    %666 = vector.broadcast %665 : vector<1x512xf32> to vector<4x512xf32>
    %667 = arith.mulf %660, %666 : vector<4x512xf32>
    %668 = arith.addf %659, %667 : vector<4x512xf32>
    %c4_507 = arith.constant 4 : index
    %c0_508 = arith.constant 0 : index
    %669 = vector.load %arg12[%c4_507, %c0_508] : memref<9x512xf32, #tpu.memory_space<vmem>>, vector<1x512xf32>
    %670 = vector.broadcast %669 : vector<1x512xf32> to vector<4x512xf32>
    %671 = arith.addf %0, %670 : vector<4x512xf32>
    %672 = arith.maximumf %664, %671 : vector<4x512xf32>
    %c4_509 = arith.constant 4 : index
    %c0_510 = arith.constant 0 : index
    %673 = vector.load %arg8[%c4_509, %c0_510] : memref<9x512xf32, #tpu.memory_space<vmem>>, vector<1x512xf32>
    %674 = vector.broadcast %673 : vector<1x512xf32> to vector<4x512xf32>
    %675 = arith.mulf %0, %674 : vector<4x512xf32>
    %676 = arith.addf %668, %675 : vector<4x512xf32>
    %c511_i32_511 = arith.constant 511 : i32
    %677 = tpu.dynamic_rotate %0 by %c511_i32_511 dim 1 : vector<4x512xf32>, i32 -> vector<4x512xf32>
    %c5_512 = arith.constant 5 : index
    %c0_513 = arith.constant 0 : index
    %678 = vector.load %arg12[%c5_512, %c0_513] : memref<9x512xf32, #tpu.memory_space<vmem>>, vector<1x512xf32>
    %679 = vector.broadcast %678 : vector<1x512xf32> to vector<4x512xf32>
    %680 = arith.addf %677, %679 : vector<4x512xf32>
    %681 = arith.maximumf %672, %680 : vector<4x512xf32>
    %c5_514 = arith.constant 5 : index
    %c0_515 = arith.constant 0 : index
    %682 = vector.load %arg8[%c5_514, %c0_515] : memref<9x512xf32, #tpu.memory_space<vmem>>, vector<1x512xf32>
    %683 = vector.broadcast %682 : vector<1x512xf32> to vector<4x512xf32>
    %684 = arith.mulf %677, %683 : vector<4x512xf32>
    %685 = arith.addf %676, %684 : vector<4x512xf32>
    %c497_i32_516 = arith.constant 497 : i32
    %686 = tpu.dynamic_rotate %0 by %c497_i32_516 dim 1 : vector<4x512xf32>, i32 -> vector<4x512xf32>
    %c6_517 = arith.constant 6 : index
    %c0_518 = arith.constant 0 : index
    %687 = vector.load %arg12[%c6_517, %c0_518] : memref<9x512xf32, #tpu.memory_space<vmem>>, vector<1x512xf32>
    %688 = vector.broadcast %687 : vector<1x512xf32> to vector<4x512xf32>
    %689 = arith.addf %686, %688 : vector<4x512xf32>
    %690 = arith.maximumf %681, %689 : vector<4x512xf32>
    %c6_519 = arith.constant 6 : index
    %c0_520 = arith.constant 0 : index
    %691 = vector.load %arg8[%c6_519, %c0_520] : memref<9x512xf32, #tpu.memory_space<vmem>>, vector<1x512xf32>
    %692 = vector.broadcast %691 : vector<1x512xf32> to vector<4x512xf32>
    %693 = arith.mulf %686, %692 : vector<4x512xf32>
    %694 = arith.addf %685, %693 : vector<4x512xf32>
    %c496_i32_521 = arith.constant 496 : i32
    %695 = tpu.dynamic_rotate %0 by %c496_i32_521 dim 1 : vector<4x512xf32>, i32 -> vector<4x512xf32>
    %c7_522 = arith.constant 7 : index
    %c0_523 = arith.constant 0 : index
    %696 = vector.load %arg12[%c7_522, %c0_523] : memref<9x512xf32, #tpu.memory_space<vmem>>, vector<1x512xf32>
    %697 = vector.broadcast %696 : vector<1x512xf32> to vector<4x512xf32>
    %698 = arith.addf %695, %697 : vector<4x512xf32>
    %699 = arith.maximumf %690, %698 : vector<4x512xf32>
    %c7_524 = arith.constant 7 : index
    %c0_525 = arith.constant 0 : index
    %700 = vector.load %arg8[%c7_524, %c0_525] : memref<9x512xf32, #tpu.memory_space<vmem>>, vector<1x512xf32>
    %701 = vector.broadcast %700 : vector<1x512xf32> to vector<4x512xf32>
    %702 = arith.mulf %695, %701 : vector<4x512xf32>
    %703 = arith.addf %694, %702 : vector<4x512xf32>
    %c495_i32_526 = arith.constant 495 : i32
    %704 = tpu.dynamic_rotate %0 by %c495_i32_526 dim 1 : vector<4x512xf32>, i32 -> vector<4x512xf32>
    %c8_527 = arith.constant 8 : index
    %c0_528 = arith.constant 0 : index
    %705 = vector.load %arg12[%c8_527, %c0_528] : memref<9x512xf32, #tpu.memory_space<vmem>>, vector<1x512xf32>
    %706 = vector.broadcast %705 : vector<1x512xf32> to vector<4x512xf32>
    %707 = arith.addf %704, %706 : vector<4x512xf32>
    %708 = arith.maximumf %699, %707 : vector<4x512xf32>
    %c8_529 = arith.constant 8 : index
    %c0_530 = arith.constant 0 : index
    %709 = vector.load %arg8[%c8_529, %c0_530] : memref<9x512xf32, #tpu.memory_space<vmem>>, vector<1x512xf32>
    %710 = vector.broadcast %709 : vector<1x512xf32> to vector<4x512xf32>
    %711 = arith.mulf %704, %710 : vector<4x512xf32>
    %712 = arith.addf %703, %711 : vector<4x512xf32>
    %c0_531 = arith.constant 0 : index
    %c0_532 = arith.constant 0 : index
    %713 = vector.load %arg13[%c0_531, %c0_532] : memref<1x512xf32, #tpu.memory_space<vmem>>, vector<1x512xf32>
    %714 = vector.broadcast %713 : vector<1x512xf32> to vector<4x512xf32>
    %715 = arith.mulf %712, %714 : vector<4x512xf32>
    %c3_533 = arith.constant 3 : index
    %716 = memref.load %arg0[%c3_533] : memref<8xf32, #tpu.memory_space<smem>>
    %717 = vector.broadcast %716 : f32 to vector<4x512xf32>
    %718 = arith.mulf %717, %0 : vector<4x512xf32>
    %c1_534 = arith.constant 1 : index
    %719 = memref.load %arg0[%c1_534] : memref<8xf32, #tpu.memory_space<smem>>
    %720 = vector.broadcast %719 : f32 to vector<4x512xf32>
    %721 = arith.mulf %720, %708 : vector<4x512xf32>
    %722 = arith.addf %718, %721 : vector<4x512xf32>
    %c2_535 = arith.constant 2 : index
    %723 = memref.load %arg0[%c2_535] : memref<8xf32, #tpu.memory_space<smem>>
    %724 = vector.broadcast %723 : f32 to vector<4x512xf32>
    %725 = arith.mulf %724, %715 : vector<4x512xf32>
    %726 = arith.addf %722, %725 : vector<4x512xf32>
    %c4_536 = arith.constant 4 : index
    %727 = memref.load %arg0[%c4_536] : memref<8xf32, #tpu.memory_space<smem>>
    %728 = vector.broadcast %727 : f32 to vector<4x512xf32>
    %729 = arith.mulf %728, %132 : vector<4x512xf32>
    %730 = arith.addf %726, %729 : vector<4x512xf32>
    %c5_537 = arith.constant 5 : index
    %731 = memref.load %arg0[%c5_537] : memref<8xf32, #tpu.memory_space<smem>>
    %732 = vector.broadcast %731 : f32 to vector<4x512xf32>
    %733 = arith.mulf %732, %422 : vector<4x512xf32>
    %734 = arith.addf %730, %733 : vector<4x512xf32>
    %c6_538 = arith.constant 6 : index
    %735 = memref.load %arg0[%c6_538] : memref<8xf32, #tpu.memory_space<smem>>
    %736 = vector.broadcast %735 : f32 to vector<4x512xf32>
    %737 = arith.mulf %736, %486 : vector<4x512xf32>
    %738 = arith.addf %734, %737 : vector<4x512xf32>
    %c7_539 = arith.constant 7 : index
    %739 = memref.load %arg0[%c7_539] : memref<8xf32, #tpu.memory_space<smem>>
    %740 = vector.broadcast %739 : f32 to vector<4x512xf32>
    %741 = arith.mulf %740, %630 : vector<4x512xf32>
    %742 = arith.addf %738, %741 : vector<4x512xf32>
    %c0_540 = arith.constant 0 : index
    %c0_541 = arith.constant 0 : index
    %743 = vector.load %arg14[%c0_540, %c0_541] : memref<4x512xf32, #tpu.memory_space<vmem>>, vector<4x512xf32>
    tpu.vector_store %arg14[%c0_540, %c0_541], %742 {strides = array<i32>} : memref<4x512xf32, #tpu.memory_space<vmem>>, vector<4x512xf32>,
    return
  }
}

</mosaic_0001>

<bundles_post_ra>
// kernel: mixed_op_forward.1
= control target key start
LH: loop header
LB: loop body
LE: loop exit
PB: predicated region body
PF: predicated region fallthrough
CT: control target
= control target key end

     0   :  { %19 = vsyncpa [#allocation4], 0  ;;  %s5832_s16 = smov [#allocation3]   ;;  %s10172_s0 = inlined_call_operand.vmem [shape: f32[8], index: 0, kind: input, shape index: {}]   ;;  %s10173_s1 = inlined_call_operand.vmem [shape: f32[4,512], index: 1, kind: input, shape index: {}]   ;;  %s10174_s2 = inlined_call_operand.vmem [shape: bf16[4,36], index: 2, kind: input, shape index: {}]   ;;  %s10175_s3 = inlined_call_operand.vmem [shape: bf16[4,36], index: 3, kind: input, shape index: {}]   ;;  %s10176_s4 = inlined_call_operand.vmem [shape: bf16[4,100], index: 4, kind: input, shape index: {}]   ;;  %s10177_s5 = inlined_call_operand.vmem [shape: bf16[4,100], index: 5, kind: input, shape index: {}]   ;;  %s10178_s6 = inlined_call_operand.vmem [shape: bf16[4,36], index: 6, kind: input, shape index: {}]   ;;  %s10179_s7 = inlined_call_operand.vmem [shape: bf16[4,100], index: 7, kind: input, shape index: {}]   ;;  %s10180_s8 = inlined_call_operand.vmem [shape: f32[9,512], index: 8, kind: input, shape index: {}]   ;;  %s10181_s9 = inlined_call_operand.vmem [shape: f32[25,512], index: 9, kind: input, shape index: {}]   ;;  %s10182_s10 = inlined_call_operand.vmem [shape: f32[9,512], index: 10, kind: input, shape index: {}]   ;;  %s10183_s11 = inlined_call_operand.vmem [shape: f32[25,512], index: 11, kind: input, shape index: {}]   ;;  %s10184_s12 = inlined_call_operand.vmem [shape: f32[9,512], index: 12, kind: input, shape index: {}]   ;;  %s10185_s13 = inlined_call_operand.vmem [shape: f32[1,512], index: 13, kind: input, shape index: {}]   ;;  %s10186_s14 = inlined_call_operand.vmem [shape: f32[4,512], index: 14, kind: output, shape index: {}]  }
   0x1   :  { %s25_s15 = sshll.u32 %s10172_s0, 4  ;;  %s26_s15 = int_to_ptr.vmem [resolvable:$true] %s25_s15 }
   0x2   :  { %28 = dma.vmem_to_smem %s26_s15, 16, %s5832_s16, [#allocation4]  }
   0x3   :  { %5830 = dma.done.wait [#allocation4], 16  }
   0x4   :  { %5831 = vsyncadd [#allocation4], 4294967280 }
   0x5   :  { %59 = sfence }
   0x6   :  { %v5949_v0 = vld [vmem:[%s10173_s1 + $0x8] sm:$0xff]  ;;  %v5957_v2 = vld [vmem:[%s10173_s1] sm:$0xff]  ;;  %s5833_s0 = smov 17   ;;  %s5834_s22 = smov 16   ;;  %vm10331_vm0 = vcmask 1043456   ;;  %vm10333_vm9 = vcmask 1041408  }
   0x7   :  { %10385 = vst [vmem:[#allocation6_spill] sm:$0xff] %v5949_v0  ;;  %v5952_v1 = vmax.f32 %v5949_v0, 0.0  ;;  %v5961_v3 = vmax.f32 %v5957_v2, 0.0  ;;  %v5626_v8 = vld [vmem:[%s10180_s8 + $0x4] ss:$8 sm:$0xf] }
   0x8   :  { %10386 = vst [vmem:[#allocation7_spill] sm:$0xff] %v5957_v2  ;;  %v270_v11 = vperm.slane %v5626_v8, 3  ;;  %v268_v14 = vperm.slane %v5626_v8, 1  ;;  %v269_v15 = vperm.slane %v5626_v8, 2  ;;  %v267_v17 = vperm.slane %v5626_v8, 0  ;;  %s10358_s23 = smov 15  }
   0x9   :  { %69 = vst [vmem:[#allocation1 + $0x10] ss:$2 sm:$0xff] %v5952_v1  ;;  %s10289_s24 = smov 1   ;;  %s10287_s25 = smov 127   ;;  %vm10330_vm10 = vcmask 293888  }
   0xa   :  { %67 = vst [vmem:[#allocation1] ss:$2 sm:$0xff] %v5961_v3  ;;  %v272_v16 = vrot.slane %v270_v11, 4  ;;  %v271_v18 = vrot.slane %v268_v14, 4  ;;  %s10281_s26 = smov 113   ;;  %s10197_s27 = smov 112  }
   0xb   :  { %s10195_s28 = smov 111   ;;  %s10187_s29 = smov 34  }
   0xc   :  { %v275_v23 = vsel %vm10331_vm0, %v269_v15, %v272_v16  ;;  %v274_v24 = vsel %vm10331_vm0, %v267_v17, %v271_v18  ;;  %s10189_s30 = smov 33   ;;  %s10193_s15 = smov 32  }
   0xd   :  { %v279_v25 = vmul.f32 %v275_v23, %v5952_v1  ;;  %v278_v26 = vmul.f32 %v274_v24, %v5961_v3  ;;  %s10191_s16 = smov 31   ;;  %s5845_s1 = smov 30  }
   0xe   :  { %s5846_s20 = smov 18   ;;  %s5847_s21 = smov 14  }
   0xf   :  { %s10283_s19 = smov 114   ;;  %s10279_s17 = smov 110  }
  0x10   :  { %v72_v4 = vld.sshfl [vmem:[#allocation1 + $0x10] sm:$0xff pattern:$0x75316420]  ;;  %v73_v5 = vld.sshfl [vmem:[#allocation1 + $0x18] sm:$0xff pattern:$0x75316420] }
  0x11   :  { %82 = vrot.lane.b32.xlu1 %v72_v4, %s5833_s0  ;;  %113 = vst [vmem:[#allocation1 + $0x10] ss:$2 sm:$0xff] %v5952_v1  ;;  %v70_v6 = vld.sshfl [vmem:[#allocation1] sm:$0xff pattern:$0x75316420]  ;;  %s10199_s18 = smov 94  }
  0x12   :  { %v71_v7 = vld.sshfl [vmem:[#allocation1 + $0x8] sm:$0xff pattern:$0x75316420]  ;;  %78 = vrot.lane.b32.xlu0 %v70_v6, %s5833_s0 }
  0x13   :  { %111 = vst [vmem:[#allocation1] ss:$2 sm:$0xff] %v5961_v3 }
  0x18   :  { %v117_v9 = vld.sshfl [vmem:[#allocation1 + $0x18] sm:$0xff pattern:$0x75316420]  ;;  %v116_v10 = vld.sshfl [vmem:[#allocation1 + $0x10] sm:$0xff pattern:$0x75316420] }
  0x19   :  { %84 = vrot.lane.b32.xlu1 %v73_v5, %s5833_s0  ;;  %168 = vst [vmem:[#allocation1 + $0x10] ss:$2 sm:$0xff] %v5952_v1  ;;  %v86_v5 = vlaneseq }
  0x1a   :  { %v114_v12 = vld.sshfl [vmem:[#allocation1] sm:$0xff pattern:$0x75316420]  ;;  %v115_v13 = vld.sshfl [vmem:[#allocation1 + $0x8] sm:$0xff pattern:$0x75316420]  ;;  %80 = vrot.lane.b32.xlu0 %v71_v7, %s5833_s0 }
  0x1b   :  { %122 = vrot.lane.b32.xlu2 %v114_v12, %s5834_s22  ;;  %166 = vst [vmem:[#allocation1] ss:$2 sm:$0xff] %v5961_v3 }
  0x20   :  { %v171_v19 = vld.sshfl [vmem:[#allocation1 + $0x10] sm:$0xff pattern:$0x75316420]  ;;  %v172_v20 = vld.sshfl [vmem:[#allocation1 + $0x18] sm:$0xff pattern:$0x75316420] }
  0x21   :  { %128 = vrot.lane.b32.xlu1 %v117_v9, %s5834_s22  ;;  %211 = vst [vmem:[#allocation1 + $0x10] ss:$2 sm:$0xff] %v5952_v1  ;;  %v6050_v9 = vand.u32 127, %v86_v5 }
  0x22   :  { %v170_v21 = vld.sshfl [vmem:[#allocation1 + $0x8] sm:$0xff pattern:$0x75316420]  ;;  %v169_v22 = vld.sshfl [vmem:[#allocation1] sm:$0xff pattern:$0x75316420]  ;;  %126 = vrot.lane.b32.xlu0 %v116_v10, %s5834_s22 }
  0x23   :  { %124 = vrot.lane.b32.xlu2 %v115_v13, %s5834_s22  ;;  %209 = vst [vmem:[#allocation1] ss:$2 sm:$0xff] %v5961_v3  ;;  %v6055_v10 = vld [vmem:[%s10180_s8 + $0x1] ss:$8 sm:$0xf]  ;;  %vm130_vm1 = vcmp.lt.s32.totalorder %v6050_v9, 16 }
  0x24   :  { %v139_v13 = vperm.slane %v6055_v10, 1  ;;  %vm88_vm2 = vcmp.lt.s32.totalorder %v6050_v9, 17  ;;  %vm10329_vm3 = vcmp.lt.s32.totalorder %v6050_v9, 15  ;;  %v138_v5 = vperm.slane %v6055_v10, 0 }
  0x25   :  { %vm228_vm4 = vcmp.lt.s32.totalorder %v6050_v9, 1  ;;  %vm316_vm5 = vcmp.lt.s32.totalorder %v6050_v9, 127  ;;  %vm371_vm6 = vcmp.lt.s32.totalorder %v6050_v9, 113  ;;  %vm414_vm7 = vcmp.lt.s32.totalorder %v6050_v9, 112 }
  0x26   :  { %vm469_vm8 = vcmp.lt.s32.totalorder %v6050_v9, 111  ;;  %vm10246_vm11 = vcmp.lt.s32.totalorder %v6050_v9, 2  ;;  %vm10263_vm12 = vcmp.lt.s32.totalorder %v6050_v9, 14  ;;  %vm10234_vm13 = vcmp.lt.s32.totalorder %v6050_v9, 126 }
  0x27   :  { %vm10228_vm14 = vcmp.lt.s32.totalorder %v6050_v9, 114  ;;  %vm10328_vm15 = vcmp.lt.s32.totalorder %v6050_v9, 110 }
  0x28   :  { %v214_v27 = vld.sshfl [vmem:[#allocation1 + $0x10] sm:$0xff pattern:$0x75316420]  ;;  %v5985_v28 = vld.sshfl [vmem:[#allocation1 + $0x18] sm:$0xff pattern:$0x75316420] }
  0x29   :  { %181 = vrot.lane.b32.xlu1 %v171_v19, %s10358_s23  ;;  %284 = vst [vmem:[#allocation1 + $0x10] ss:$2 sm:$0xff] %v279_v25 }
  0x2a   :  { %v213_v29 = vld.sshfl [vmem:[#allocation1 + $0x8] sm:$0xff pattern:$0x75316420]  ;;  %v212_v30 = vld.sshfl [vmem:[#allocation1] sm:$0xff pattern:$0x75316420]  ;;  %179 = vrot.lane.b32.xlu0 %v170_v21, %s10358_s23 }
  0x2b   :  { %177 = vrot.lane.b32.xlu2 %v169_v22, %s10358_s23  ;;  %282 = vst [vmem:[#allocation1] ss:$2 sm:$0xff] %v278_v26  ;;  %v5658_v22 = vld [vmem:[%s10181_s9 + $0x24] ss:$8 sm:$0xf] }
  0x30   :  { %v287_v31 = vld.sshfl [vmem:[#allocation1 + $0x10] sm:$0xff pattern:$0x75316420]  ;;  %v288_v32 = vld.sshfl [vmem:[#allocation1 + $0x18] sm:$0xff pattern:$0x75316420] }
  0x31   :  { %222 = vrot.lane.b32.xlu1 %v213_v29, %s10289_s24  ;;  %299 = vst [vmem:[#allocation1 + $0x10] ss:$2 sm:$0xff] %v5952_v1  ;;  %v1586_v29 = vperm.slane %v5658_v22, 1 }
  0x32   :  { %295 = vst [vmem:[#allocation2 + $0x90] sm:$0xf] %v287_v31  ;;  %v285_v33 = vld.sshfl [vmem:[#allocation1] sm:$0xff pattern:$0x75316420]  ;;  %220 = vrot.lane.b32.xlu0 %v212_v30, %s10289_s24  ;;  %v1588_v31 = vperm.slane %v5658_v22, 3 }
  0x33   :  { %183 = vrot.lane.b32.xlu2 %v172_v20, %s10358_s23  ;;  %296 = vst [vmem:[#allocation2 + $0x118] sm:$0xf] %v288_v32  ;;  %v286_v34 = vld.sshfl [vmem:[#allocation1 + $0x8] sm:$0xff pattern:$0x75316420] }
  0x34   :  { %297 = vst [vmem:[#allocation1] ss:$2 sm:$0xff] %v5961_v3  ;;  %v6097_v30 = vld [vmem:[%s10180_s8 + $0x2] ss:$8 sm:$0xf] }
  0x35   :  { %293 = vst [vmem:[#allocation2 + $0x108] sm:$0xf] %v285_v33 }
  0x36   :  { %294 = vst [vmem:[#allocation2 + $0x110] sm:$0xf] %v286_v34 }
  0x38   :  { %v303_v35 = vld.sshfl [vmem:[#allocation1 + $0x18] sm:$0xff pattern:$0x75316420]  ;;  %v302_v36 = vld.sshfl [vmem:[#allocation1 + $0x10] sm:$0xff pattern:$0x75316420] }
  0x39   :  { %354 = vst [vmem:[#allocation1 + $0x10] ss:$2 sm:$0xff] %v5952_v1 }
  0x3a   :  { %314 = vrot.lane.b32.xlu0 %v303_v35, %s10287_s25 }
  0x3b   :  { %224 = vrot.lane.b32.xlu2 %v214_v27, %s10289_s24  ;;  %v300_v37 = vld.sshfl [vmem:[#allocation1] sm:$0xff pattern:$0x75316420]  ;;  %v301_v38 = vld.sshfl [vmem:[#allocation1 + $0x8] sm:$0xff pattern:$0x75316420] }
  0x3c   :  { %308 = vrot.lane.b32.xlu1 %v300_v37, %s10287_s25  ;;  %352 = vst [vmem:[#allocation1] ss:$2 sm:$0xff] %v5961_v3 }
  0x40   :  { %v357_v39 = vld.sshfl [vmem:[#allocation1 + $0x10] sm:$0xff pattern:$0x75316420]  ;;  %v358_v40 = vld.sshfl [vmem:[#allocation1 + $0x18] sm:$0xff pattern:$0x75316420] }
  0x41   :  { %397 = vst [vmem:[#allocation1 + $0x10] ss:$2 sm:$0xff] %v5952_v1 }
  0x42   :  { %310 = vrot.lane.b32.xlu0 %v301_v38, %s10287_s25  ;;  %v1585_v38 = vperm.slane %v5658_v22, 0 }
  0x43   :  { %312 = vrot.lane.b32.xlu2 %v302_v36, %s10287_s25  ;;  %v355_v41 = vld.sshfl [vmem:[#allocation1] sm:$0xff pattern:$0x75316420]  ;;  %v356_v42 = vld.sshfl [vmem:[#allocation1 + $0x8] sm:$0xff pattern:$0x75316420] }
  0x44   :  { %363 = vrot.lane.b32.xlu1 %v355_v41, %s10281_s26  ;;  %395 = vst [vmem:[#allocation1] ss:$2 sm:$0xff] %v5961_v3  ;;  %v193_v41 = vperm.slane %v6097_v30, 0 }
  0x48   :  { %v400_v43 = vld.sshfl [vmem:[#allocation1 + $0x10] sm:$0xff pattern:$0x75316420]  ;;  %v401_v44 = vld.sshfl [vmem:[#allocation1 + $0x18] sm:$0xff pattern:$0x75316420] }
  0x49   :  { %452 = vst [vmem:[#allocation1 + $0x10] ss:$2 sm:$0xff] %v5952_v1 }
  0x4a   :  { %369 = vrot.lane.b32.xlu0 %v358_v40, %s10281_s26 }
  0x4b   :  { %367 = vrot.lane.b32.xlu2 %v357_v39, %s10281_s26  ;;  %v398_v45 = vld.sshfl [vmem:[#allocation1] sm:$0xff pattern:$0x75316420]  ;;  %v399_v46 = vld.sshfl [vmem:[#allocation1 + $0x8] sm:$0xff pattern:$0x75316420] }
  0x4c   :  { %410 = vrot.lane.b32.xlu1 %v400_v43, %s10197_s27  ;;  %450 = vst [vmem:[#allocation1] ss:$2 sm:$0xff] %v5961_v3  ;;  %v1589_v39 = vrot.slane %v1586_v29, 4  ;;  %v1590_v43 = vrot.slane %v1588_v31, 4 }
  0x4d   :  { %v5654_v31 = vld [vmem:[%s10181_s9 + $0x20] ss:$8 sm:$0xf] }
  0x50   :  { %v456_v47 = vld.sshfl [vmem:[#allocation1 + $0x18] sm:$0xff pattern:$0x75316420]  ;;  %v455_v48 = vld.sshfl [vmem:[#allocation1 + $0x10] sm:$0xff pattern:$0x75316420] }
  0x51   :  { %1093 = vst [vmem:[#allocation1 + $0x10] ss:$2 sm:$0xff] %v5952_v1 }
  0x52   :  { %467 = vrot.lane.b32.xlu0 %v456_v47, %s10195_s28 }
  0x53   :  { %412 = vrot.lane.b32.xlu2 %v401_v44, %s10197_s27  ;;  %v454_v49 = vld.sshfl [vmem:[#allocation1 + $0x8] sm:$0xff pattern:$0x75316420]  ;;  %v453_v50 = vld.sshfl [vmem:[#allocation1] sm:$0xff pattern:$0x75316420] }
  0x54   :  { %406 = vrot.lane.b32.xlu1 %v398_v45, %s10197_s27  ;;  %1091 = vst [vmem:[#allocation1] ss:$2 sm:$0xff] %v5961_v3 }
  0x58   :  { %v1096_v51 = vld.sshfl [vmem:[#allocation1 + $0x10] sm:$0xff pattern:$0x75316420]  ;;  %v1097_v52 = vld.sshfl [vmem:[#allocation1 + $0x18] sm:$0xff pattern:$0x75316420] }
  0x59   :  { %1135 = vst [vmem:[#allocation1 + $0x10] ss:$2 sm:$0xff] %v5952_v1 }
  0x5a   :  { %463 = vrot.lane.b32.xlu0 %v454_v49, %s10195_s28 }
  0x5b   :  { %408 = vrot.lane.b32.xlu2 %v399_v46, %s10197_s27  ;;  %v1094_v53 = vld.sshfl [vmem:[#allocation1] sm:$0xff pattern:$0x75316420]  ;;  %v1095_v54 = vld.sshfl [vmem:[#allocation1 + $0x8] sm:$0xff pattern:$0x75316420] }
  0x5c   :  { %461 = vrot.lane.b32.xlu1 %v453_v50, %s10195_s28  ;;  %1133 = vst [vmem:[#allocation1] ss:$2 sm:$0xff] %v5961_v3  ;;  %s10261_s27 = smov 98  }
  0x60   :  { %v6020_v55 = vld.sshfl [vmem:[#allocation1 + $0x10] sm:$0xff pattern:$0x75316420]  ;;  %v1139_v56 = vld.sshfl [vmem:[#allocation1 + $0x18] sm:$0xff pattern:$0x75316420] }
  0x61   :  { %1190 = vst [vmem:[#allocation1 + $0x10] ss:$2 sm:$0xff] %v5952_v1 }
  0x62   :  { %226 = vrot.lane.b32.xlu0 %v5985_v28, %s10289_s24  ;;  %v93_v28 = vld [vmem:[%s10180_s8] ss:$8 sm:$0xf] }
  0x63   :  { %465 = vrot.lane.b32.xlu2 %v455_v48, %s10195_s28  ;;  %v1137_v57 = vld.sshfl [vmem:[#allocation1 + $0x8] sm:$0xff pattern:$0x75316420]  ;;  %v6026_v58 = vld.sshfl [vmem:[#allocation1] sm:$0xff pattern:$0x75316420] }
  0x64   :  { %365 = vrot.lane.b32.xlu1 %v356_v42, %s10281_s26  ;;  %1188 = vst [vmem:[#allocation1] ss:$2 sm:$0xff] %v5961_v3  ;;  %v95_v34 = vperm.slane %v93_v28, 0  ;;  %v98_v35 = vperm.slane %v93_v28, 3  ;;  %v96_v36 = vperm.slane %v93_v28, 1  ;;  %v97_v37 = vperm.slane %v93_v28, 2 }
  0x65   :  { %v1587_v42 = vperm.slane %v5658_v22, 2  ;;  %s10243_s28 = smov 95  }
  0x68   :  { %v1193_v59 = vld.sshfl [vmem:[#allocation1 + $0x10] sm:$0xff pattern:$0x75316420]  ;;  %v6030_v60 = vld.sshfl [vmem:[#allocation1 + $0x18] sm:$0xff pattern:$0x75316420] }
  0x69   :  { %1233 = vst [vmem:[#allocation1 + $0x10] ss:$2 sm:$0xff] %v5952_v1 }
  0x6a   :  { %1146 = vrot.lane.b32.xlu0 %v1137_v57, %s10189_s30 }
  0x6b   :  { %1102 = vrot.lane.b32.xlu2 %v1094_v53, %s10187_s29  ;;  %v6035_v61 = vld.sshfl [vmem:[#allocation1] sm:$0xff pattern:$0x75316420]  ;;  %v6037_v62 = vld.sshfl [vmem:[#allocation1 + $0x8] sm:$0xff pattern:$0x75316420] }
  0x6c   :  { %1150 = vrot.lane.b32.xlu1 %v1139_v56, %s10189_s30  ;;  %1231 = vst [vmem:[#allocation1] ss:$2 sm:$0xff] %v5961_v3  ;;  %v1591_v56 = vsel %vm10331_vm0, %v1585_v38, %v1589_v39  ;;  %v195_v38 = vperm.slane %v6097_v30, 2  ;;  %v1438_v39 = vperm.slane %v5654_v31, 1 }
  0x70   :  { %v6041_v63 = vld.sshfl [vmem:[#allocation1 + $0x10] sm:$0xff pattern:$0x75316420]  ;;  %v1237_v4 = vld.sshfl [vmem:[#allocation1 + $0x18] sm:$0xff pattern:$0x75316420] }
  0x71   :  { %1288 = vst [vmem:[#allocation1 + $0x10] ss:$2 sm:$0xff] %v5952_v1 }
  0x72   :  { %1203 = vrot.lane.b32.xlu0 %v1193_v59, %s10193_s15  ;;  %v1592_v59 = vsel %vm10331_vm0, %v1587_v42, %v1590_v43 }
  0x73   :  { %1104 = vrot.lane.b32.xlu2 %v1095_v54, %s10187_s29  ;;  %v1235_v6 = vld.sshfl [vmem:[#allocation1 + $0x8] sm:$0xff pattern:$0x75316420]  ;;  %v1234_v7 = vld.sshfl [vmem:[#allocation1] sm:$0xff pattern:$0x75316420] }
  0x74   :  { %1242 = vrot.lane.b32.xlu1 %v1234_v7, %s10191_s16  ;;  %1286 = vst [vmem:[#allocation1] ss:$2 sm:$0xff] %v5961_v3  ;;  %v140_v7 = vperm.slane %v6055_v10, 2 }
  0x75   :  { %v6048_v8 = vpop.permute.xlu2 %122 }
  0x78   :  { %v1291_v11 = vld.sshfl [vmem:[#allocation1 + $0x10] sm:$0xff pattern:$0x75316420]  ;;  %v1292_v12 = vld.sshfl [vmem:[#allocation1 + $0x18] sm:$0xff pattern:$0x75316420] }
  0x79   :  { %1331 = vst [vmem:[#allocation1 + $0x10] ss:$2 sm:$0xff] %v5952_v1 }
  0x7a   :  { %1244 = vrot.lane.b32.xlu0 %v1235_v6, %s10191_s16  ;;  %v1595_v6 = vmul.f32 %v1591_v56, %v5961_v3 }
  0x7b   :  { %1106 = vrot.lane.b32.xlu2 %v1096_v51, %s10187_s29  ;;  %v1289_v14 = vld.sshfl [vmem:[#allocation1] sm:$0xff pattern:$0x75316420]  ;;  %v6062_v15 = vld.sshfl [vmem:[#allocation1 + $0x8] sm:$0xff pattern:$0x75316420] }
  0x7c   :  { %1248 = vrot.lane.b32.xlu1 %v1237_v4, %s10191_s16  ;;  %1329 = vst [vmem:[#allocation1] ss:$2 sm:$0xff] %v5961_v3 }
  0x7d   :  { %v6066_v16 = vpop.permute.xlu2 %124 }
  0x7e   :  { %v6072_v17 = vsel %vm130_vm1, %v6048_v8, %v6066_v16 }
  0x7f   :  { %10387 = vst [vmem:[#allocation8_spill] sm:$0xff] %v6072_v17  ;;  %v147_v18 = vmul.f32 %v139_v13, %v6072_v17 }
  0x80   :  { %v6075_v19 = vld.sshfl [vmem:[#allocation1 + $0x10] sm:$0xff pattern:$0x75316420]  ;;  %v6077_v20 = vld.sshfl [vmem:[#allocation1 + $0x18] sm:$0xff pattern:$0x75316420] }
  0x81   :  { %v155_v21 = vrot.slane %v147_v18, 4  ;;  %1455 = vst [vmem:[#allocation1 + $0x10] ss:$2 sm:$0xff] %v5952_v1 }
  0x82   :  { %1297 = vrot.lane.b32.xlu0 %v1289_v14, %s5845_s1  ;;  %v141_v14 = vperm.slane %v6055_v10, 3 }
  0x83   :  { %163 = vst [vmem:[#allocation2 + $0xd0] sm:$0xf0] %v155_v21  ;;  %1108 = vrot.lane.b32.xlu2 %v1097_v52, %s10187_s29  ;;  %v83_v23 = vpop.permute.xlu1 %82  ;;  %v1333_v24 = vld.sshfl [vmem:[#allocation1 + $0x8] sm:$0xff pattern:$0x75316420]  ;;  %s10291_s29 = smov 2  }
  0x84   :  { %1301 = vrot.lane.b32.xlu1 %v1291_v11, %s5845_s1  ;;  %v6086_v25 = vld.sshfl [vmem:[#allocation1] sm:$0xff pattern:$0x75316420]  ;;  %v79_v26 = vpop.permute.xlu0 %78 }
  0x85   :  { %v6088_v27 = vpop.permute.xlu2 %177  ;;  %1453 = vst [vmem:[#allocation1] ss:$2 sm:$0xff] %v5961_v3 }
  0x88   :  { %v6099_v32 = vld.sshfl [vmem:[#allocation1 + $0x10] sm:$0xff pattern:$0x75316420]  ;;  %v6101_v33 = vld.sshfl [vmem:[#allocation1 + $0x18] sm:$0xff pattern:$0x75316420] }
  0x89   :  { %1510 = vst [vmem:[#allocation1 + $0x10] ss:$2 sm:$0xff] %v5952_v1 }
  0x8a   :  { %1303 = vrot.lane.b32.xlu0 %v1292_v12, %s5845_s1  ;;  %v1596_v12 = vmul.f32 %v1592_v59, %v5952_v1 }
  0x8b   :  { %1144 = vrot.lane.b32.xlu2 %v6026_v58, %s10189_s30  ;;  %v85_v40 = vpop.permute.xlu1 %84 }
  0x8c   :  { %v6112_v44 = vsel %vm88_vm2, %v83_v23, %v85_v40  ;;  %v6116_v45 = vsel %vm88_vm2, %v85_v40, %v79_v26  ;;  %1342 = vrot.lane.b32.xlu1 %v1333_v24, %s5846_s20  ;;  %v1457_v46 = vld.sshfl [vmem:[#allocation1 + $0x8] sm:$0xff pattern:$0x75316420]  ;;  %v1456_v47 = vld.sshfl [vmem:[#allocation1] sm:$0xff pattern:$0x75316420]  ;;  %v81_v50 = vpop.permute.xlu0 %80 }
  0x8d   :  { %10388 = vst [vmem:[#allocation9_spill] sm:$0xff] %v6112_v44  ;;  %v103_v48 = vmul.f32 %v95_v34, %v6116_v45  ;;  %v106_v49 = vmul.f32 %v98_v35, %v6112_v44  ;;  %v184_v51 = vpop.permute.xlu2 %183  ;;  %v6124_v52 = vsel %vm88_vm2, %v81_v50, %v83_v23  ;;  %v6128_v53 = vsel %vm88_vm2, %v79_v26, %v81_v50 }
  0x8e   :  { %10389 = vst [vmem:[#allocation10_spill] sm:$0xff] %v6116_v45  ;;  %v6133_v54 = vsel %vm10329_vm3, %v184_v51, %v6088_v27  ;;  %v104_v57 = vmul.f32 %v96_v36, %v6128_v53  ;;  %v105_v58 = vmul.f32 %v97_v37, %v6124_v52  ;;  %v196_v36 = vperm.slane %v6097_v30, 3 }
  0x8f   :  { %1508 = vst [vmem:[#allocation1] ss:$2 sm:$0xff] %v5961_v3  ;;  %v201_v4 = vmul.f32 %v193_v41, %v6133_v54  ;;  %v194_v37 = vperm.slane %v6097_v30, 1  ;;  %v1439_v40 = vperm.slane %v5654_v31, 2 }
  0x90   :  { %10390 = vst [vmem:[#allocation11_spill] sm:$0xff] %v6124_v52  ;;  %v6143_v11 = vld.sshfl [vmem:[#allocation1 + $0x10] sm:$0xff pattern:$0x75316420] }
  0x91   :  { %10391 = vst [vmem:[#allocation12_spill] sm:$0xff] %v6128_v53  ;;  %v6151_v18 = vld.sshfl [vmem:[#allocation1 + $0x18] sm:$0xff pattern:$0x75316420] }
  0x92   :  { %10392 = vst [vmem:[#allocation13_spill] sm:$0xff] %v6133_v54  ;;  %1344 = vrot.lane.b32.xlu0 %v6075_v19, %s5846_s20 }
  0x93   :  { %107 = vst [vmem:[#allocation2 + $0xb0] sm:$0xf] %v103_v48  ;;  %1148 = vrot.lane.b32.xlu2 %v6020_v55, %s10189_s30  ;;  %v129_v13 = vpop.permute.xlu1 %128  ;;  %s10285_s30 = smov 126  }
  0x94   :  { %110 = vst [vmem:[#allocation2 + $0x48] sm:$0xf] %v106_v49  ;;  %v6156_v21 = vsel %vm130_vm1, %v129_v13, %v6048_v8  ;;  %1464 = vrot.lane.b32.xlu1 %v1456_v47, %s5847_s21  ;;  %v127_v24 = vpop.permute.xlu0 %126  ;;  %v6206_v49 = vld [vmem:[%s10181_s9 + $0x23] ss:$8 sm:$0xf] }
  0x95   :  { %108 = vst [vmem:[#allocation2 + $0xd0] sm:$0xf] %v104_v57  ;;  %v146_v55 = vmul.f32 %v138_v5, %v6156_v21  ;;  %v6162_v19 = vpop.permute.xlu2 %224  ;;  %v6166_v10 = vsel %vm130_vm1, %v127_v24, %v129_v13  ;;  %v6171_v8 = vsel %vm130_vm1, %v6066_v16, %v127_v24  ;;  %v1555_v5 = vperm.slane %v6206_v49, 1 }
  0x96   :  { %109 = vst [vmem:[#allocation2 + $0x10] sm:$0xf] %v105_v58  ;;  %v1511_v22 = vld.sshfl [vmem:[#allocation1] sm:$0xff pattern:$0x75316420]  ;;  %v148_v28 = vmul.f32 %v140_v7, %v6171_v8  ;;  %v149_v29 = vmul.f32 %v141_v14, %v6166_v10  ;;  %v1556_v58 = vperm.slane %v6206_v49, 2 }
  0x97   :  { %205 = vst [vmem:[#allocation2 + $0x160] sm:$0xf] %v201_v4  ;;  %v6159_v23 = vld.sshfl [vmem:[#allocation1 + $0x8] sm:$0xff pattern:$0x75316420]  ;;  %v154_v26 = vrot.slane %v146_v55, 4 }
  0x98   :  { %10393 = vst [vmem:[#allocation14_spill] sm:$0xff] %v6156_v21  ;;  %v156_v34 = vrot.slane %v148_v28, 4  ;;  %v157_v35 = vrot.slane %v149_v29, 4  ;;  %v6238_v28 = vld [vmem:[%s10180_s8 + $0x5] ss:$8 sm:$0xf] }
  0x99   :  { %1599 = vst [vmem:[#allocation1] ss:$2 sm:$0xff] %v1595_v6 }
  0x9a   :  { %10394 = vst [vmem:[#allocation15_spill] sm:$0xff] %v6166_v10  ;;  %1466 = vrot.lane.b32.xlu0 %v1457_v46, %s5847_s21 }
  0x9b   :  { %10395 = vst [vmem:[#allocation16_spill] sm:$0xff] %v6171_v8  ;;  %1199 = vrot.lane.b32.xlu2 %v6035_v61, %s10193_s15  ;;  %v182_v16 = vpop.permute.xlu1 %181  ;;  %v6193_v61 = vld [vmem:[%s10180_s8 + $0x3] ss:$8 sm:$0xf] }
  0x9c   :  { %1601 = vst [vmem:[#allocation1 + $0x10] ss:$2 sm:$0xff] %v1596_v12  ;;  %v6186_v41 = vsel %vm10329_vm3, %v182_v16, %v184_v51  ;;  %1470 = vrot.lane.b32.xlu1 %v6101_v33, %s5847_s21  ;;  %v180_v46 = vpop.permute.xlu0 %179  ;;  %v237_v4 = vperm.slane %v6193_v61, 1 }
  0x9d   :  { %162 = vst [vmem:[#allocation2 + $0xb0] sm:$0xf0] %v154_v26  ;;  %v204_v43 = vmul.f32 %v196_v36, %v6186_v41  ;;  %v6196_v30 = vpop.permute.xlu2 %312  ;;  %v187_v48 = vsel %vm10329_vm3, %v180_v46, %v182_v16  ;;  %v188_v33 = vsel %vm10329_vm3, %v6088_v27, %v180_v46  ;;  %v238_v27 = vperm.slane %v6193_v61, 2 }
  0x9e   :  { %164 = vst [vmem:[#allocation2 + $0x10] sm:$0xf0] %v156_v34  ;;  %v202_v50 = vmul.f32 %v194_v37, %v188_v33  ;;  %v203_v51 = vmul.f32 %v195_v38, %v187_v48  ;;  %v6209_v56 = vmul.f32 %v1438_v39, %v188_v33  ;;  %v6211_v57 = vmul.f32 %v1439_v40, %v187_v48 }
  0x9f   :  { %165 = vst [vmem:[#allocation2 + $0x48] sm:$0xf0] %v157_v35  ;;  %v5659_v35 = vld [vmem:[%s10181_s9 + $0x25] ss:$8 sm:$0xf]  ;;  %v326_v37 = vperm.slane %v6238_v28, 2 }
  0xa0   :  { %10396 = vst [vmem:[#allocation17_spill] sm:$0xff] %v6186_v41  ;;  %v1602_v42 = vld.sshfl [vmem:[#allocation1] sm:$0xff pattern:$0x75316420]  ;;  %v1619_v38 = vperm.slane %v5659_v35, 2  ;;  %v327_v39 = vperm.slane %v6238_v28, 3 }
  0xa1   :  { %v1603_v47 = vld.sshfl [vmem:[#allocation1 + $0x8] sm:$0xff pattern:$0x75316420]  ;;  %1610 = vst [vmem:[#allocation2 + $0xf0] sm:$0xf] %v1602_v42  ;;  %v1620_v40 = vperm.slane %v5659_v35, 3 }
  0xa2   :  { %1645 = vst [vmem:[#allocation1] ss:$2 sm:$0xff] %v5961_v3  ;;  %1519 = vrot.lane.b32.xlu0 %v1511_v22, %s10291_s29 }
  0xa3   :  { %208 = vst [vmem:[#allocation2 + $0x178] sm:$0xf] %v204_v43  ;;  %1201 = vrot.lane.b32.xlu2 %v6037_v62, %s10193_s15  ;;  %v223_v59 = vpop.permute.xlu1 %222  ;;  %v1604_v7 = vld.sshfl [vmem:[#allocation1 + $0x10] sm:$0xff pattern:$0x75316420] }
  0xa4   :  { %10397 = vst [vmem:[#allocation18_spill] sm:$0xff] %v6209_v56  ;;  %v230_v6 = vsel %vm228_vm4, %v223_v59, %v6162_v19  ;;  %1523 = vrot.lane.b32.xlu1 %v6143_v11, %s10291_s29  ;;  %v1605_v12 = vld.sshfl [vmem:[#allocation1 + $0x18] sm:$0xff pattern:$0x75316420]  ;;  %v6228_v55 = vpop.permute.xlu0 %220 }
  0xa5   :  { %10398 = vst [vmem:[#allocation19_spill] sm:$0xff] %v6211_v57  ;;  %v6226_v13 = vpop.permute.xlu2 %367  ;;  %v246_v62 = vmul.f32 %v238_v27, %v230_v6  ;;  %v1564_v14 = vmul.f32 %v1556_v58, %v230_v6  ;;  %v231_v26 = vsel %vm228_vm4, %v6228_v55, %v223_v59 }
  0xa6   :  { %1611 = vst [vmem:[#allocation2 + $0x188] sm:$0xf] %v1603_v47  ;;  %v245_v31 = vmul.f32 %v237_v4, %v231_v26  ;;  %v1563_v34 = vmul.f32 %v1555_v5, %v231_v26  ;;  %v1618_v26 = vperm.slane %v5659_v35, 1 }
  0xa7   :  { %206 = vst [vmem:[#allocation2 + $0x128] sm:$0xf] %v202_v50  ;;  %v254_v11 = vrot.slane %v246_v62, 4  ;;  %v1572_v29 = vrot.slane %v1564_v14, 4  ;;  %v324_v62 = vperm.slane %v6238_v28, 0  ;;  %v325_v14 = vperm.slane %v6238_v28, 1 }
  0xa8   :  { %207 = vst [vmem:[#allocation2 + $0x40] sm:$0xf] %v203_v51  ;;  %v253_v36 = vrot.slane %v245_v31, 4  ;;  %v1571_v16 = vrot.slane %v1563_v34, 4 }
  0xa9   :  { %v1649_v22 = vld.sshfl [vmem:[#allocation1 + $0x8] sm:$0xff pattern:$0x75316420]  ;;  %v6230_v24 = vld.sshfl [vmem:[#allocation1] sm:$0xff pattern:$0x75316420] }
  0xaa   :  { %1688 = vst [vmem:[#allocation1] ss:$2 sm:$0xff] %v5961_v3  ;;  %1525 = vrot.lane.b32.xlu0 %v6151_v18, %s10291_s29 }
  0xab   :  { %1647 = vst [vmem:[#allocation1 + $0x10] ss:$2 sm:$0xff] %v5952_v1  ;;  %1205 = vrot.lane.b32.xlu2 %v6030_v60, %s10193_s15  ;;  %s10229_s15 = smov 96  }
  0xac   :  { %1612 = vst [vmem:[#allocation2 + $0xa8] sm:$0xf] %v1604_v7  ;;  %1658 = vrot.lane.b32.xlu1 %v1649_v22, %s10285_s30  ;;  %v315_v43 = vpop.permute.xlu0 %314  ;;  %v1617_v22 = vperm.slane %v5659_v35, 0  ;;  %v6286_v35 = vld [vmem:[%s10180_s8 + $0x6] ss:$8 sm:$0xf] }
  0xad   :  { %262 = vst [vmem:[#allocation2 + $0x40] sm:$0xf0] %v254_v11  ;;  %v6253_v42 = vpop.permute.xlu2 %412  ;;  %v317_v18 = vsel %vm316_vm5, %v6196_v30, %v315_v43 }
  0xae   :  { %1580 = vst [vmem:[#allocation2 + $0x20] sm:$0xf0] %v1572_v29  ;;  %v309_v47 = vpop.permute.xlu1 %308  ;;  %v334_v33 = vmul.f32 %v326_v37, %v317_v18  ;;  %v1627_v50 = vmul.f32 %v1619_v38, %v317_v18 }
  0xaf   :  { %261 = vst [vmem:[#allocation2 + $0x128] sm:$0xf0] %v253_v36  ;;  %v320_v51 = vsel %vm316_vm5, %v315_v43, %v309_v47  ;;  %v6291_v36 = vld [vmem:[%s10181_s9 + $0x40] ss:$8 sm:$0xf] }
  0xb0   :  { %1579 = vst [vmem:[#allocation2] sm:$0xf0] %v1571_v16  ;;  %v335_v58 = vmul.f32 %v327_v39, %v320_v51  ;;  %v1628_v59 = vmul.f32 %v1620_v40, %v320_v51  ;;  %v342_v4 = vrot.slane %v334_v33, 4  ;;  %v1635_v5 = vrot.slane %v1627_v50, 4 }
  0xb1   :  { %v1691_v46 = vld.sshfl [vmem:[#allocation1] sm:$0xff pattern:$0x75316420]  ;;  %v1692_v60 = vld.sshfl [vmem:[#allocation1 + $0x8] sm:$0xff pattern:$0x75316420] }
  0xb2   :  { %1812 = vst [vmem:[#allocation1] ss:$2 sm:$0xff] %v5961_v3  ;;  %v1650_v48 = vld.sshfl [vmem:[#allocation1 + $0x10] sm:$0xff pattern:$0x75316420]  ;;  %v343_v6 = vrot.slane %v335_v58, 4 }
  0xb3   :  { %v6261_v27 = vld.sshfl [vmem:[#allocation1 + $0x18] sm:$0xff pattern:$0x75316420]  ;;  %1613 = vst [vmem:[#allocation2 + $0x88] sm:$0xf] %v1605_v12  ;;  %v1636_v7 = vrot.slane %v1628_v59, 4  ;;  %1246 = vrot.lane.b32.xlu2 %v6041_v63, %s10191_s16  ;;  %1660 = vrot.lane.b32.xlu0 %v1650_v48, %s10285_s30 }
  0xb4   :  { %1690 = vst [vmem:[#allocation1 + $0x10] ss:$2 sm:$0xff] %v5952_v1  ;;  %1699 = vrot.lane.b32.xlu1 %v1691_v46, %s10283_s19  ;;  %v311_v12 = vpop.permute.xlu0 %310  ;;  %v6297_v39 = vld [vmem:[%s10180_s8 + $0x7] ss:$8 sm:$0xf]  ;;  %v381_v50 = vperm.slane %v6286_v35, 2 }
  0xb5   :  { %350 = vst [vmem:[#allocation2 + $0x90] sm:$0xf0] %v342_v4  ;;  %v6270_v11 = vpop.permute.xlu2 %408  ;;  %v318_v63 = vsel %vm316_vm5, %v311_v12, %v6196_v30  ;;  %v319_v28 = vsel %vm316_vm5, %v309_v47, %v311_v12  ;;  %v6304_v43 = vld [vmem:[%s10181_s9 + $0x41] ss:$8 sm:$0xf]  ;;  %v382_v51 = vperm.slane %v6286_v35, 3 }
  0xb6   :  { %1643 = vst [vmem:[#allocation2 + $0xa8] sm:$0xf0] %v1635_v5  ;;  %v6279_v31 = vpop.permute.xlu1 %363  ;;  %v332_v16 = vmul.f32 %v324_v62, %v319_v28  ;;  %v333_v37 = vmul.f32 %v325_v14, %v318_v63  ;;  %v1625_v30 = vmul.f32 %v1617_v22, %v319_v28  ;;  %v1626_v38 = vmul.f32 %v1618_v26, %v318_v63  ;;  %s5862_s16 = smov 100  }
  0xb7   :  { %351 = vst [vmem:[#allocation2 + $0x118] sm:$0xf0] %v343_v6  ;;  %v1748_v58 = vperm.slane %v6291_v36, 2  ;;  %v1749_v59 = vperm.slane %v6291_v36, 3  ;;  %v423_v4 = vperm.slane %v6297_v39, 1  ;;  %v424_v5 = vperm.slane %v6297_v39, 2 }
  0xb8   :  { %1644 = vst [vmem:[#allocation2 + $0x88] sm:$0xf0] %v1636_v7  ;;  %v340_v18 = vrot.slane %v332_v16, 4  ;;  %v341_v47 = vrot.slane %v333_v37, 4  ;;  %v1633_v48 = vrot.slane %v1625_v30, 4  ;;  %v1634_v33 = vrot.slane %v1626_v38, 4 }
  0xb9   :  { %v6272_v29 = vld.sshfl [vmem:[#allocation1] sm:$0xff pattern:$0x75316420]  ;;  %v6281_v34 = vld.sshfl [vmem:[#allocation1 + $0x8] sm:$0xff pattern:$0x75316420] }
  0xba   :  { %1867 = vst [vmem:[#allocation1] ss:$2 sm:$0xff] %v5961_v3  ;;  %v1767_v6 = vperm.slane %v6304_v43, 2  ;;  %v1766_v7 = vperm.slane %v6304_v43, 1 }
  0xbb   :  { %v6299_v40 = vld.sshfl [vmem:[#allocation1 + $0x10] sm:$0xff pattern:$0x75316420]  ;;  %v1694_v46 = vld.sshfl [vmem:[#allocation1 + $0x18] sm:$0xff pattern:$0x75316420]  ;;  %1299 = vrot.lane.b32.xlu2 %v6062_v15, %s5845_s1  ;;  %1701 = vrot.lane.b32.xlu0 %v1692_v60, %s10283_s19 }
  0xbc   :  { %1814 = vst [vmem:[#allocation1 + $0x10] ss:$2 sm:$0xff] %v5952_v1  ;;  %1705 = vrot.lane.b32.xlu1 %v1694_v46, %s10283_s19  ;;  %v370_v15 = vpop.permute.xlu0 %369  ;;  %v6326_v60 = vld [vmem:[%s10180_s8 + $0x20] ss:$8 sm:$0xf] }
  0xbd   :  { %348 = vst [vmem:[#allocation2 + $0x108] sm:$0xf0] %v340_v18  ;;  %v6321_v62 = vpop.permute.xlu2 %465  ;;  %v372_v14 = vsel %vm371_vm6, %v6226_v13, %v370_v15  ;;  %v375_v22 = vsel %vm371_vm6, %v370_v15, %v6279_v31  ;;  %v479_v38 = vperm.slane %v6326_v60, 2  ;;  %v6345_v46 = vld [vmem:[%s10181_s9 + $0x42] ss:$8 sm:$0xf] }
  0xbe   :  { %349 = vst [vmem:[#allocation2 + $0x110] sm:$0xf0] %v341_v47  ;;  %v411_v26 = vpop.permute.xlu1 %410  ;;  %v389_v12 = vmul.f32 %v381_v50, %v372_v14  ;;  %v390_v63 = vmul.f32 %v382_v51, %v375_v22  ;;  %v1756_v28 = vmul.f32 %v1748_v58, %v372_v14  ;;  %v1757_v16 = vmul.f32 %v1749_v59, %v375_v22 }
  0xbf   :  { %1641 = vst [vmem:[#allocation2 + $0xf0] sm:$0xf0] %v1633_v48  ;;  %v415_v37 = vsel %vm414_vm7, %v411_v26, %v6253_v42  ;;  %v416_v30 = vsel %vm414_vm7, %v6270_v11, %v411_v26  ;;  %v422_v50 = vperm.slane %v6297_v39, 0  ;;  %v1798_v14 = vperm.slane %v6345_v46, 2 }
  0xc0   :  { %1642 = vst [vmem:[#allocation2 + $0x188] sm:$0xf0] %v1634_v33  ;;  %v431_v18 = vmul.f32 %v423_v4, %v416_v30  ;;  %v432_v47 = vmul.f32 %v424_v5, %v415_v37  ;;  %v1774_v48 = vmul.f32 %v1766_v7, %v416_v30  ;;  %v1775_v33 = vmul.f32 %v1767_v6, %v415_v37 }
  0xc1   :  { %393 = vst [vmem:[#allocation2 + $0x58] sm:$0xf] %v389_v12  ;;  %v425_v5 = vperm.slane %v6297_v39, 3  ;;  %v1765_v6 = vperm.slane %v6304_v43, 0  ;;  %v1768_v7 = vperm.slane %v6304_v43, 3 }
  0xc2   :  { %394 = vst [vmem:[#allocation2 + $0xd8] sm:$0xf] %v390_v63  ;;  %v439_v58 = vrot.slane %v431_v18, 4  ;;  %v440_v59 = vrot.slane %v432_v47, 4  ;;  %v1782_v15 = vrot.slane %v1774_v48, 4  ;;  %v1783_v4 = vrot.slane %v1775_v33, 4 }
  0xc3   :  { %v1817_v51 = vld.sshfl [vmem:[#allocation1 + $0x10] sm:$0xff pattern:$0x75316420]  ;;  %1760 = vst [vmem:[#allocation2 + $0x190] sm:$0xf] %v1756_v28  ;;  %1340 = vrot.lane.b32.xlu2 %v6086_v25, %s5846_s20  ;;  %1823 = vrot.lane.b32.xlu0 %v6272_v29, %s10279_s17 }
  0xc4   :  { %1761 = vst [vmem:[#allocation2 + $0x38] sm:$0xf] %v1757_v16  ;;  %1827 = vrot.lane.b32.xlu1 %v1817_v51, %s10279_s17  ;;  %v468_v22 = vpop.permute.xlu0 %467  ;;  %v6368_v18 = vld.sshfl [vmem:[#allocation1 + $0x18] sm:$0xff pattern:$0x75316420] }
  0xc5   :  { %447 = vst [vmem:[#allocation2 + $0x100] sm:$0xf0] %v439_v58  ;;  %v6357_v26 = vpop.permute.xlu2 %1102  ;;  %v470_v25 = vsel %vm469_vm8, %v6321_v62, %v468_v22  ;;  %v477_v58 = vperm.slane %v6326_v60, 0 }
  0xc6   :  { %10399 = vst [vmem:[#allocation20_spill] sm:$0xff] %v6357_v26  ;;  %v407_v29 = vpop.permute.xlu1 %406  ;;  %v487_v12 = vmul.f32 %v479_v38, %v470_v25  ;;  %v1806_v63 = vmul.f32 %v1798_v14, %v470_v25  ;;  %v480_v14 = vperm.slane %v6326_v60, 3  ;;  %v6920_v26 = vld [vmem:[%s10181_s9 + $0x44] ss:$8 sm:$0xf] }
  0xc7   :  { %448 = vst [vmem:[#allocation2 + $0x58] sm:$0xf0] %v440_v59  ;;  %v417_v39 = vsel %vm414_vm7, %v407_v29, %v6270_v11  ;;  %v418_v43 = vsel %vm414_vm7, %v6253_v42, %v407_v29  ;;  %v478_v42 = vperm.slane %v6326_v60, 1  ;;  %v1797_v11 = vperm.slane %v6345_v46, 1 }
  0xc8   :  { %1790 = vst [vmem:[#allocation2 + $0x168] sm:$0xf0] %v1782_v15  ;;  %v430_v28 = vmul.f32 %v422_v50, %v417_v39  ;;  %v433_v16 = vmul.f32 %v425_v5, %v418_v43  ;;  %v1773_v37 = vmul.f32 %v1765_v6, %v417_v39  ;;  %v1776_v30 = vmul.f32 %v1768_v7, %v418_v43  ;;  %v6375_v50 = vld.sshfl [vmem:[#allocation1] sm:$0xff pattern:$0x75316420] }
  0xc9   :  { %1791 = vst [vmem:[#allocation2 + $0x190] sm:$0xf0] %v1783_v4  ;;  %v6380_v15 = vld.sshfl [vmem:[#allocation1 + $0x8] sm:$0xff pattern:$0x75316420]  ;;  %v1796_v6 = vperm.slane %v6345_v46, 0 }
  0xca   :  { %491 = vst [vmem:[#allocation2 + $0x138] sm:$0xf] %v487_v12  ;;  %v438_v47 = vrot.slane %v430_v28, 4  ;;  %v441_v38 = vrot.slane %v433_v16, 4  ;;  %v1781_v48 = vrot.slane %v1773_v37, 4  ;;  %v1784_v33 = vrot.slane %v1776_v30, 4 }
  0xcb   :  { %1810 = vst [vmem:[#allocation2 + $0x158] sm:$0xf] %v1806_v63  ;;  %1346 = vrot.lane.b32.xlu2 %v6077_v20, %s5846_s20  ;;  %v1799_v12 = vperm.slane %v6345_v46, 3  ;;  %v236_v39 = vperm.slane %v6193_v61, 0  ;;  %v239_v43 = vperm.slane %v6193_v61, 3  ;;  %v1554_v30 = vperm.slane %v6206_v49, 0 }
  0xcc   :  { %1869 = vst [vmem:[#allocation1 + $0x10] ss:$2 sm:$0xff] %v5952_v1  ;;  %v464_v51 = vpop.permute.xlu0 %463 }
  0xcd   :  { %446 = vst [vmem:[#allocation2 + $0x148] sm:$0xf0] %v438_v47  ;;  %v6378_v59 = vpop.permute.xlu2 %1104  ;;  %v471_v20 = vsel %vm469_vm8, %v464_v51, %v6321_v62  ;;  %v1557_v47 = vperm.slane %v6206_v49, 3  ;;  %v379_v49 = vperm.slane %v6286_v35, 0 }
  0xce   :  { %449 = vst [vmem:[#allocation2 + $0xd8] sm:$0xf0] %v441_v38  ;;  %v462_v4 = vpop.permute.xlu1 %461  ;;  %v486_v5 = vmul.f32 %v478_v42, %v471_v20  ;;  %v1805_v29 = vmul.f32 %v1797_v11, %v471_v20  ;;  %v507_v38 = vld [vmem:[#allocation2 + $0x58] sm:$0xff]  ;;  %v503_v42 = vld [vmem:[#allocation2 + $0x90] sm:$0xff] }
  0xcf   :  { %10400 = vst [vmem:[#allocation21_spill] sm:$0xff] %v6378_v59  ;;  %v472_v7 = vsel %vm469_vm8, %v462_v4, %v464_v51  ;;  %v473_v25 = vsel %vm469_vm8, %v468_v22, %v462_v4 }
  0xd0   :  { %1789 = vst [vmem:[#allocation2 + $0x50] sm:$0xf0] %v1781_v48  ;;  %v485_v62 = vmul.f32 %v477_v58, %v472_v7  ;;  %v488_v37 = vmul.f32 %v480_v14, %v473_v25  ;;  %v1804_v22 = vmul.f32 %v1796_v6, %v472_v7  ;;  %v1807_v61 = vmul.f32 %v1799_v12, %v473_v25  ;;  %v499_v7 = vld [vmem:[#allocation2 + $0x40] sm:$0xff] }
  0xd1   :  { %1792 = vst [vmem:[#allocation2 + $0x38] sm:$0xf0] %v1784_v33  ;;  %v511_v63 = vld [vmem:[#allocation2 + $0x138] sm:$0xf]  ;;  %v519_v58 = vpack.c.bf16 %v507_v38, %v503_v42  ;;  %v380_v25 = vperm.slane %v6286_v35, 1 }
  0xd2   :  { %1910 = vst [vmem:[#allocation1] ss:$2 sm:$0xff] %v5961_v3  ;;  %v523_v60 = vpack.c.bf16 %v511_v63, %v511_v63 }
  0xd3   :  { %490 = vst [vmem:[#allocation2 + $0x130] sm:$0xf] %v486_v5  ;;  %v6395_v28 = vld.sshfl [vmem:[#allocation1 + $0x10] sm:$0xff pattern:$0x75316420]  ;;  %1468 = vrot.lane.b32.xlu2 %v6099_v32, %s5847_s21 }
  0xd4   :  { %v6397_v16 = vld.sshfl [vmem:[#allocation1 + $0x18] sm:$0xff pattern:$0x75316420]  ;;  %v538_v46 = vsel %vm10333_vm9, %v523_v60, 0  ;;  %1809 = vst [vmem:[#allocation2 + $0x18] sm:$0xf] %v1805_v29  ;;  %v227_v48 = vpop.permute.xlu0 %226 }
  0xd5   :  { %1912 = vst [vmem:[#allocation1 + $0x10] ss:$2 sm:$0xff] %v5952_v1  ;;  %574 = vmatpush.bf16.msra.mxu2 %v538_v46  ;;  %v6405_v33 = vpop.permute.xlu2 %1106  ;;  %v229_v32 = vsel %vm228_vm4, %v6162_v19, %v227_v48  ;;  %v232_v11 = vsel %vm228_vm4, %v227_v48, %v6228_v55 }
  0xd6   :  { %489 = vst [vmem:[#allocation2 + $0x180] sm:$0xf] %v485_v62  ;;  %v366_v51 = vpop.permute.xlu1 %365  ;;  %v244_v20 = vmul.f32 %v236_v39, %v232_v11  ;;  %v247_v14 = vmul.f32 %v239_v43, %v229_v32  ;;  %v1562_v4 = vmul.f32 %v1554_v30, %v232_v11  ;;  %v1565_v5 = vmul.f32 %v1557_v47, %v229_v32  ;;  %v495_v62 = vld [vmem:[#allocation2 + $0x10] sm:$0xff] }
  0xd7   :  { %10401 = vst [vmem:[#allocation22_spill] sm:$0xff] %v6405_v33  ;;  %v374_v63 = vsel %vm371_vm6, %v6279_v31, %v366_v51  ;;  %v373_v35 = vsel %vm371_vm6, %v366_v51, %v6226_v13  ;;  %v1746_v31 = vperm.slane %v6291_v36, 0  ;;  %v504_v51 = vld [vmem:[#allocation2 + $0x118] sm:$0xff] }
  0xd8   :  { %492 = vst [vmem:[#allocation2 + $0x78] sm:$0xf] %v488_v37  ;;  %v252_v29 = vrot.slane %v244_v20, 4  ;;  %v255_v12 = vrot.slane %v247_v14, 4  ;;  %v1570_v55 = vrot.slane %v1562_v4, 4  ;;  %v1573_v43 = vrot.slane %v1565_v5, 4 }
  0xd9   :  { %1808 = vst [vmem:[#allocation2 + $0x60] sm:$0xf] %v1804_v22  ;;  %v6414_v6 = vld.sshfl [vmem:[#allocation1] sm:$0xff pattern:$0x75316420]  ;;  %575 = vmatpush.bf16.msra.mxu2 %v519_v58  ;;  %v515_v37 = vpack.c.bf16 %v499_v7, %v495_v62  ;;  %v1747_v22 = vperm.slane %v6291_v36, 1  ;;  %v387_v46 = vmul.f32 %v379_v49, %v374_v63  ;;  %v388_v47 = vmul.f32 %v380_v25, %v373_v35 }
  0xda   :  { %1811 = vst [vmem:[#allocation2 + $0x120] sm:$0xf] %v1807_v61  ;;  %v6417_v19 = vld.sshfl [vmem:[#allocation1 + $0x8] sm:$0xff pattern:$0x75316420]  ;;  %v1754_v36 = vmul.f32 %v1746_v31, %v374_v63  ;;  %v508_v58 = vld [vmem:[#allocation2 + $0xd8] sm:$0xff] }
  0xdb   :  { %1965 = vst [vmem:[#allocation1] ss:$2 sm:$0xff] %v5961_v3  ;;  %1521 = vrot.lane.b32.xlu2 %v6159_v23, %s10291_s29  ;;  %v510_v42 = vld [vmem:[#allocation2 + $0x130] sm:$0xf]  ;;  %v1755_v20 = vmul.f32 %v1747_v22, %v373_v35  ;;  %s10570_s29 = smov 1  }
  0xdc   :  { %v6423_v60 = vld.sshfl [vmem:[#allocation1 + $0x10] sm:$0xff pattern:$0x75316420]  ;;  %v6425_v39 = vld.sshfl [vmem:[#allocation1 + $0x18] sm:$0xff pattern:$0x75316420]  ;;  %v6437_v13 = vpop.permute.xlu0 %1146  ;;  %v522_v11 = vpack.c.bf16 %v510_v42, %v510_v42 }
  0xdd   :  { %1967 = vst [vmem:[#allocation1 + $0x10] ss:$2 sm:$0xff] %v5952_v1  ;;  %v509_v30 = vld [vmem:[#allocation2 + $0x180] sm:$0xf]  ;;  %576 = vmatpush.bf16.msra.mxu2 %v515_v37  ;;  %v6435_v61 = vpop.permute.xlu2 %1108 }
  0xde   :  { %260 = vst [vmem:[#allocation2 + $0x160] sm:$0xf0] %v252_v29  ;;  %v521_v48 = vpack.c.bf16 %v509_v30, %v509_v30  ;;  %v6439_v32 = vpop.permute.xlu1 %1150  ;;  %v535_v29 = vsel %vm10333_vm9, %v522_v11, 0  ;;  %v5706_v37 = vld [vmem:[%s10182_s10 + $0x4] ss:$8 sm:$0xf] }
  0xdf   :  { %263 = vst [vmem:[#allocation2 + $0x178] sm:$0xf0] %v255_v12  ;;  %v512_v38 = vld [vmem:[#allocation2 + $0x78] sm:$0xf]  ;;  %v520_v12 = vpack.c.bf16 %v508_v58, %v504_v51  ;;  %561 = vmatpush.bf16.msra.mxu1 %v535_v29  ;;  %v3478_v11 = vperm.slane %v5706_v37, 1  ;;  %v493_v51 = vld [vmem:[#allocation2 + $0xb0] sm:$0xff] }
  0xe0   :  { %10402 = vst [vmem:[#allocation23_spill] sm:$0xff] %v6435_v61  ;;  %v524_v23 = vpack.c.bf16 %v512_v38, %v512_v38  ;;  %v532_v4 = vsel %vm10333_vm9, %v521_v48, 0  ;;  %v3480_v38 = vperm.slane %v5706_v37, 3 }
  0xe1   :  { %10403 = vst [vmem:[#allocation24_spill] sm:$0xff] %v6437_v13  ;;  %548 = vmatpush.bf16.msra.mxu0 %v532_v4  ;;  %v3479_v4 = vperm.slane %v5706_v37, 2 }
  0xe2   :  { %1578 = vst [vmem:[#allocation2 + $0xa0] sm:$0xf0] %v1570_v55  ;;  %v541_v49 = vsel %vm10333_vm9, %v524_v23, 0  ;;  %v6442_v14 = vld.sshfl [vmem:[#allocation1] sm:$0xff pattern:$0x75316420] }
  0xe3   :  { %10404 = vst [vmem:[#allocation25_spill] sm:$0xff] %v6439_v32  ;;  %587 = vmatpush.bf16.msra.mxu3 %v541_v49  ;;  %v6450_v25 = vld.sshfl [vmem:[#allocation1 + $0x8] sm:$0xff pattern:$0x75316420]  ;;  %1656 = vrot.lane.b32.xlu2 %v6230_v24, %s10285_s30  ;;  %v496_v55 = vld [vmem:[#allocation2 + $0x48] sm:$0xff]  ;;  %v3482_v29 = vrot.slane %v3480_v38, 4 }
  0xe4   :  { %1581 = vst [vmem:[#allocation2 + $0xe0] sm:$0xf0] %v1573_v43  ;;  %v6445_v5 = vld.sshfl [vmem:[#allocation1 + $0x10] sm:$0xff pattern:$0x75316420]  ;;  %v6455_v35 = vpop.permute.xlu0 %1203 }
  0xe5   :  { %391 = vst [vmem:[#allocation2 + $0x148] sm:$0xf] %v387_v46  ;;  %v6447_v7 = vld.sshfl [vmem:[#allocation1 + $0x18] sm:$0xff pattern:$0x75316420]  ;;  %v6457_v43 = vpop.permute.xlu2 %1144  ;;  %v501_v24 = vld [vmem:[#allocation2 + $0x108] sm:$0xff] }
  0xe6   :  { %392 = vst [vmem:[#allocation2 + $0x100] sm:$0xf] %v388_v47  ;;  %v500_v63 = vld [vmem:[#allocation2 + $0x178] sm:$0xff]  ;;  %v6463_v31 = vpop.permute.xlu1 %1242  ;;  %v502_v46 = vld [vmem:[#allocation2 + $0x110] sm:$0xff]  ;;  %v497_v42 = vld [vmem:[#allocation2 + $0x160] sm:$0xff] }
  0xe7   :  { %2010 = vst [vmem:[#allocation1 + $0x10] ss:$2 sm:$0xff] %v5952_v1  ;;  %588 = vmatpush.bf16.msra.mxu3 %v520_v12  ;;  %v516_v62 = vpack.c.bf16 %v500_v63, %v496_v55  ;;  %v498_v23 = vld [vmem:[#allocation2 + $0x128] sm:$0xff]  ;;  %v513_v58 = vpack.c.bf16 %v497_v42, %v493_v51 }
  0xe8   :  { %1758 = vst [vmem:[#allocation2 + $0x50] sm:$0xf] %v1754_v36 }
  0xe9   :  { %1759 = vst [vmem:[#allocation2 + $0x168] sm:$0xf] %v1755_v20  ;;  %v494_v20 = vld [vmem:[#allocation2 + $0xd0] sm:$0xff] }
  0xea   :  { %10405 = vst [vmem:[#allocation26_spill] sm:$0xff] %v6455_v35  ;;  %v514_v63 = vpack.c.bf16 %v498_v23, %v494_v20 }
  0xeb   :  { %10406 = vst [vmem:[#allocation27_spill] sm:$0xff] %v6457_v43  ;;  %589 = vmatpush.bf16.msra.mxu3 %v516_v62  ;;  %1662 = vrot.lane.b32.xlu2 %v6261_v27, %s10285_s30  ;;  %v525_v27 = vld [vmem:[%s10174_s2] sm:$0x3]  ;;  %s10254_s2 = smov 97   ;;  %s5866_s30 = smov 4  }
  0xec   :  { %2008 = vst [vmem:[#allocation1] ss:$2 sm:$0xff] %v5961_v3  ;;  %v505_v22 = vld [vmem:[#allocation2 + $0x148] sm:$0xff]  ;;  %5633 = vmatmul.msk.bf16.vlgmr.msra.gmra.mxu2 %vm10330_vm10, %v525_v27 }
  0xed   :  { %10407 = vst [vmem:[#allocation28_spill] sm:$0xff] %v6463_v31  ;;  %v506_v30 = vld [vmem:[#allocation2 + $0x100] sm:$0xff]  ;;  %v517_v47 = vpack.c.bf16 %v505_v22, %v501_v24  ;;  %v6473_v62 = vpop.permute.xlu2 %1148  ;;  %v6475_v24 = vpop.permute.xlu0 %1244 }
  0xee   :  { %v518_v48 = vpack.c.bf16 %v506_v30, %v502_v46  ;;  %v2013_v36 = vld.sshfl [vmem:[#allocation1 + $0x10] sm:$0xff pattern:$0x75316420]  ;;  %v2014_v49 = vld.sshfl [vmem:[#allocation1 + $0x18] sm:$0xff pattern:$0x75316420]  ;;  %v6478_v22 = vpop.permute.xlu1 %1248  ;;  %5634 = vmatmul.msk.bf16.vlgmr.msra.gmra.mxu3 %vm10330_vm10, %v525_v27 }
  0xef   :  { %549 = vmatpush.bf16.msra.mxu0 %v517_v47  ;;  %2023 = vrot.lane.b32.xlu1 %v2013_v36, %s10243_s28  ;;  %2065 = vst [vmem:[#allocation1 + $0x10] ss:$2 sm:$0xff] %v5952_v1  ;;  %v3477_v46 = vperm.slane %v5706_v37, 0  ;;  %v3481_v30 = vrot.slane %v3478_v11, 4  ;;  %v3484_v47 = vsel %vm10331_vm0, %v3479_v4, %v3482_v29 }
  0xf0   :  { %562 = vmatpush.bf16.msra.mxu1 %v518_v48  ;;  %10408 = vst [vmem:[#allocation29_spill] sm:$0xff] %v6473_v62  ;;  %v3488_v37 = vmul.f32 %v3484_v47, %v5952_v1  ;;  %v6849_v31 = vld [vmem:[%s10181_s9 + $0x45] ss:$8 sm:$0xf] }
  0xf1   :  { %10409 = vst [vmem:[#allocation30_spill] sm:$0xff] %v6475_v24  ;;  %v3483_v48 = vsel %vm10331_vm0, %v3477_v46, %v3481_v30 }
  0xf2   :  { %10410 = vst [vmem:[#allocation31_spill] sm:$0xff] %v6478_v22  ;;  %v3487_v36 = vmul.f32 %v3483_v48, %v5961_v3 }
  0xf3   :  { %v6469_v12 = vld.sshfl [vmem:[#allocation1] sm:$0xff pattern:$0x75316420]  ;;  %v6471_v55 = vld.sshfl [vmem:[#allocation1 + $0x8] sm:$0xff pattern:$0x75316420]  ;;  %550 = vmatpush.bf16.msra.mxu0 %v513_v58  ;;  %1703 = vrot.lane.b32.xlu2 %v6299_v40, %s10283_s19 }
  0xf4   :  { %2063 = vst [vmem:[#allocation1] ss:$2 sm:$0xff] %v5961_v3  ;;  %563 = vmatpush.bf16.msra.mxu1 %v514_v63  ;;  %s10630_s19 = smov 62  }
  0xf5   :  { %v6493_v23 = vpop.permute.xlu2 %1199  ;;  %v6495_v11 = vpop.permute.xlu0 %1297 }
  0xf6   :  { %v2068_v38 = vld.sshfl [vmem:[#allocation1 + $0x10] sm:$0xff pattern:$0x75316420]  ;;  %5631 = vmatmul.msk.bf16.vlgmr.msra.gmra.mxu0 %vm10330_vm10, %v525_v27  ;;  %10411 = vst [vmem:[#allocation32_spill] sm:$0xff] %v6493_v23  ;;  %v6499_v58 = vpop.permute.xlu1 %1301 }
  0xf7   :  { %5632 = vmatmul.msk.bf16.vlgmr.msra.gmra.mxu1 %vm10330_vm10, %v525_v27  ;;  %2078 = vrot.lane.b32.xlu0 %v2068_v38, %s10199_s18  ;;  %10412 = vst [vmem:[#allocation33_spill] sm:$0xff] %v6495_v11  ;;  %v2069_v51 = vld.sshfl [vmem:[#allocation1 + $0x18] sm:$0xff pattern:$0x75316420] }
  0xf8   :  { %3493 = vst [vmem:[#allocation1 + $0x10] ss:$2 sm:$0xff] %v3488_v37 }
  0xfb   :  { %v2066_v42 = vld.sshfl [vmem:[#allocation1] sm:$0xff pattern:$0x75316420]  ;;  %v2067_v20 = vld.sshfl [vmem:[#allocation1 + $0x8] sm:$0xff pattern:$0x75316420]  ;;  %1825 = vrot.lane.b32.xlu2 %v6281_v34, %s10279_s17 }
  0xfc   :  { %2074 = vrot.lane.b32.xlu1 %v2066_v42, %s10199_s18  ;;  %3491 = vst [vmem:[#allocation1] ss:$2 sm:$0xff] %v3487_v36 }
  0xfd   :  { %v6505_v40 = vpop.permute.xlu2 %1201  ;;  %v6507_v4 = vpop.permute.xlu0 %1303 }
  0xfe   :  { %10413 = vst [vmem:[#allocation34_spill] sm:$0xff] %v6505_v40  ;;  %v6520_v46 = vpop.permute.xlu1 %1342 }
  0xff   :  { %1925 = vrot.lane.b32.xlu0 %v6423_v60, %s10254_s2  ;;  %v6511_v29 = vld.sshfl [vmem:[#allocation1 + $0x10] sm:$0xff pattern:$0x75316420]  ;;  %v6513_v63 = vld.sshfl [vmem:[#allocation1 + $0x18] sm:$0xff pattern:$0x75316420] }
 0x100   :  { %10414 = vst [vmem:[#allocation35_spill] sm:$0xff] %v6511_v29 }
 0x101   :  { %10415 = vst [vmem:[#allocation36_spill] sm:$0xff] %v6513_v63 }
 0x102   :  { %3751 = vst [vmem:[#allocation1 + $0x10] ss:$2 sm:$0xff] %v5952_v1 }
 0x103   :  { %v6516_v27 = vld.sshfl [vmem:[#allocation1] sm:$0xff pattern:$0x75316420]  ;;  %v6518_v60 = vld.sshfl [vmem:[#allocation1 + $0x8] sm:$0xff pattern:$0x75316420]  ;;  %2080 = vrot.lane.b32.xlu2 %v2069_v51, %s10199_s18 }
 0x104   :  { %1882 = vrot.lane.b32.xlu1 %v6395_v28, %s10261_s27  ;;  %10416 = vst [vmem:[#allocation37_spill] sm:$0xff] %v6516_v27 }
 0x105   :  { %10417 = vst [vmem:[#allocation38_spill] sm:$0xff] %v6518_v60  ;;  %v6525_v34 = vpop.permute.xlu2 %1205  ;;  %v6527_v28 = vpop.permute.xlu0 %1344 }
 0x106   :  { %10418 = vst [vmem:[#allocation39_spill] sm:$0xff] %v6520_v46 }
 0x107   :  { %3749 = vst [vmem:[#allocation1] ss:$2 sm:$0xff] %v5961_v3  ;;  %2025 = vrot.lane.b32.xlu0 %v2014_v49, %s10243_s28  ;;  %v6543_v49 = vpop.permute.xlu1 %1464 }
 0x108   :  { %10419 = vst [vmem:[#allocation40_spill] sm:$0xff] %v6525_v34 }
 0x109   :  { %v6531_v30 = vld.sshfl [vmem:[#allocation1 + $0x10] sm:$0xff pattern:$0x75316420]  ;;  %v6533_v47 = vld.sshfl [vmem:[#allocation1 + $0x18] sm:$0xff pattern:$0x75316420] }
 0x10a   :  { %10420 = vst [vmem:[#allocation41_spill] sm:$0xff] %v6531_v30 }
 0x10b   :  { %10421 = vst [vmem:[#allocation42_spill] sm:$0xff] %v6533_v47  ;;  %1927 = vrot.lane.b32.xlu2 %v6425_v39, %s10254_s2 }
 0x10c   :  { %1980 = vrot.lane.b32.xlu1 %v6445_v5, %s10229_s15  ;;  %3793 = vst [vmem:[#allocation1 + $0x10] ss:$2 sm:$0xff] %v5952_v1 }
 0x10d   :  { %v6547_v5 = vpop.permute.xlu2 %1246  ;;  %v6549_v37 = vpop.permute.xlu0 %1466 }
 0x10e   :  { %v6536_v38 = vld.sshfl [vmem:[#allocation1] sm:$0xff pattern:$0x75316420]  ;;  %v6538_v48 = vld.sshfl [vmem:[#allocation1 + $0x8] sm:$0xff pattern:$0x75316420] }
 0x10f   :  { %10422 = vst [vmem:[#allocation43_spill] sm:$0xff] %v6536_v38  ;;  %1884 = vrot.lane.b32.xlu0 %v6397_v16, %s10261_s27 }
 0x110   :  { %10423 = vst [vmem:[#allocation44_spill] sm:$0xff] %v6538_v48 }
 0x111   :  { %3791 = vst [vmem:[#allocation1] ss:$2 sm:$0xff] %v5961_v3 }
 0x112   :  { %10424 = vst [vmem:[#allocation45_spill] sm:$0xff] %v6547_v5 }
 0x113   :  { %v6553_v42 = vld.sshfl [vmem:[#allocation1 + $0x10] sm:$0xff pattern:$0x75316420]  ;;  %v6555_v36 = vld.sshfl [vmem:[#allocation1 + $0x18] sm:$0xff pattern:$0x75316420]  ;;  %2076 = vrot.lane.b32.xlu2 %v2067_v20, %s10199_s18 }
 0x114   :  { %1829 = vrot.lane.b32.xlu1 %v6368_v18, %s10279_s17  ;;  %10425 = vst [vmem:[#allocation46_spill] sm:$0xff] %v6553_v42  ;;  %v6568_v18 = vpop.permute.xlu1 %1470  ;;  %s10273_s18 = smov 68   ;;  %s5865_s17 = smov 28  }
 0x115   :  { %10426 = vst [vmem:[#allocation47_spill] sm:$0xff] %v6555_v36  ;;  %v6566_v39 = vpop.permute.xlu2 %1299  ;;  %v6576_v42 = vpop.permute.xlu0 %1519 }
 0x116   :  { %3848 = vst [vmem:[#allocation1 + $0x10] ss:$2 sm:$0xff] %v5952_v1 }
 0x117   :  { %1982 = vrot.lane.b32.xlu0 %v6447_v7, %s10229_s15  ;;  %10429 = vst [vmem:[#allocation50_spill] sm:$0xff] %v6566_v39 }
 0x118   :  { %v6558_v51 = vld.sshfl [vmem:[#allocation1] sm:$0xff pattern:$0x75316420]  ;;  %v6560_v16 = vld.sshfl [vmem:[#allocation1 + $0x8] sm:$0xff pattern:$0x75316420] }
 0x119   :  { %10427 = vst [vmem:[#allocation48_spill] sm:$0xff] %v6558_v51 }
 0x11a   :  { %10428 = vst [vmem:[#allocation49_spill] sm:$0xff] %v6560_v16 }
 0x11b   :  { %3846 = vst [vmem:[#allocation1] ss:$2 sm:$0xff] %v5961_v3  ;;  %1921 = vrot.lane.b32.xlu2 %v6414_v6, %s10254_s2 }
 0x11c   :  { %1976 = vrot.lane.b32.xlu1 %v6442_v14, %s10229_s15  ;;  %v6591_v14 = vld [vmem:[%s10181_s9 + $0x22] ss:$8 sm:$0xf] }
 0x11d   :  { %v6570_v47 = vld.sshfl [vmem:[#allocation1 + $0x10] sm:$0xff pattern:$0x75316420]  ;;  %v6572_v30 = vld.sshfl [vmem:[#allocation1 + $0x18] sm:$0xff pattern:$0x75316420]  ;;  %v6593_v20 = vpop.permute.xlu2 %1340 }
 0x11e   :  { %10430 = vst [vmem:[#allocation51_spill] sm:$0xff] %v6570_v47  ;;  %v6595_v47 = vpop.permute.xlu1 %1523  ;;  %v1538_v6 = vperm.slane %v6591_v14, 3 }
 0x11f   :  { %10431 = vst [vmem:[#allocation52_spill] sm:$0xff] %v6572_v30  ;;  %1878 = vrot.lane.b32.xlu0 %v6375_v50, %s10261_s27  ;;  %v1526_v30 = vpop.permute.xlu0 %1525  ;;  %v1535_v50 = vperm.slane %v6591_v14, 0 }
 0x120   :  { %3891 = vst [vmem:[#allocation1 + $0x10] ss:$2 sm:$0xff] %v5952_v1  ;;  %v6610_v36 = vsel %vm10246_vm11, %v6595_v47, %v1526_v30 }
 0x121   :  { %10434 = vst [vmem:[#allocation55_spill] sm:$0xff] %v6593_v20  ;;  %v1546_v48 = vmul.f32 %v1538_v6, %v6610_v36 }
 0x122   :  { %v6579_v38 = vld.sshfl [vmem:[#allocation1] sm:$0xff pattern:$0x75316420]  ;;  %v6581_v7 = vld.sshfl [vmem:[#allocation1 + $0x8] sm:$0xff pattern:$0x75316420] }
 0x123   :  { %10432 = vst [vmem:[#allocation53_spill] sm:$0xff] %v6579_v38  ;;  %2019 = vrot.lane.b32.xlu2 %v6469_v12, %s10243_s28  ;;  %v5726_v12 = vld [vmem:[%s10183_s11 + $0x24] ss:$8 sm:$0xf] }
 0x124   :  { %10433 = vst [vmem:[#allocation54_spill] sm:$0xff] %v6581_v7  ;;  %1978 = vrot.lane.b32.xlu1 %v6450_v25, %s10229_s15  ;;  %v6615_v7 = vsel %vm10246_vm11, %v1526_v30, %v6576_v42  ;;  %v4245_v63 = vperm.slane %v5726_v12, 2  ;;  %v4244_v29 = vperm.slane %v5726_v12, 1  ;;  %s10277_s15 = smov 66  }
 0x125   :  { %3889 = vst [vmem:[#allocation1] ss:$2 sm:$0xff] %v5961_v3  ;;  %v1543_v25 = vmul.f32 %v1535_v50, %v6615_v7  ;;  %v6628_v30 = vpop.permute.xlu2 %1346 }
 0x126   :  { %10437 = vst [vmem:[#allocation58_spill] sm:$0xff] %v6610_v36  ;;  %v4247_v57 = vrot.slane %v4244_v29, 4  ;;  %v1536_v29 = vperm.slane %v6591_v14, 1 }
 0x127   :  { %v6598_v51 = vld.sshfl [vmem:[#allocation1 + $0x10] sm:$0xff pattern:$0x75316420]  ;;  %v6600_v38 = vld.sshfl [vmem:[#allocation1 + $0x18] sm:$0xff pattern:$0x75316420]  ;;  %2021 = vrot.lane.b32.xlu0 %v6471_v55, %s10243_s28 }
 0x128   :  { %10435 = vst [vmem:[#allocation56_spill] sm:$0xff] %v6598_v51  ;;  %s10271_s28 = smov 64  }
 0x129   :  { %10436 = vst [vmem:[#allocation57_spill] sm:$0xff] %v6600_v38 }
 0x12a   :  { %3946 = vst [vmem:[#allocation1 + $0x10] ss:$2 sm:$0xff] %v5952_v1 }
 0x12b   :  { %10438 = vst [vmem:[#allocation59_spill] sm:$0xff] %v6615_v7  ;;  %1923 = vrot.lane.b32.xlu2 %v6417_v19, %s10254_s2  ;;  %v4243_v7 = vperm.slane %v5726_v12, 0  ;;  %s10268_s2 = smov 62  }
 0x12c   :  { %v6617_v38 = vld.sshfl [vmem:[#allocation1] sm:$0xff pattern:$0x75316420]  ;;  %v6621_v51 = vld.sshfl [vmem:[#allocation1 + $0x8] sm:$0xff pattern:$0x75316420] }
 0x12d   :  { %10439 = vst [vmem:[#allocation60_spill] sm:$0xff] %v6617_v38  ;;  %v1469_v55 = vpop.permute.xlu2 %1468  ;;  %v4249_v45 = vsel %vm10331_vm0, %v4243_v7, %v4247_v57  ;;  %v6700_v57 = vpop.permute.xlu0 %1660 }
 0x12e   :  { %10440 = vst [vmem:[#allocation61_spill] sm:$0xff] %v6621_v51 }
 0x12f   :  { %3944 = vst [vmem:[#allocation1] ss:$2 sm:$0xff] %v5961_v3 }
 0x130   :  { %1547 = vst [vmem:[#allocation2 + $0xa0] sm:$0xf] %v1543_v25 }
 0x131   :  { %1550 = vst [vmem:[#allocation2 + $0xe0] sm:$0xf] %v1546_v48  ;;  %v6630_v16 = vld.sshfl [vmem:[#allocation1 + $0x10] sm:$0xff pattern:$0x75316420] }
 0x132   :  { %v6632_v38 = vld.sshfl [vmem:[#allocation1 + $0x18] sm:$0xff pattern:$0x75316420] }
 0x133   :  { %10441 = vst [vmem:[#allocation62_spill] sm:$0xff] %v6632_v38  ;;  %v4246_v38 = vperm.slane %v5726_v12, 3  ;;  %1880 = vrot.lane.b32.xlu2 %v6380_v15, %s10261_s27  ;;  %v1475_v15 = vsel %vm10263_vm12, %v6543_v49, %v6549_v37  ;;  %s5861_s27 = smov 92  }
 0x134   :  { %3989 = vst [vmem:[#allocation1 + $0x10] ss:$2 sm:$0xff] %v5952_v1 }
 0x135   :  { %v4248_v19 = vrot.slane %v4246_v38, 4  ;;  %v1522_v27 = vpop.permute.xlu2 %1521  ;;  %v5655_v38 = vld [vmem:[%s10181_s9 + $0x21] ss:$8 sm:$0xf] }
 0x136   :  { %v6635_v50 = vld.sshfl [vmem:[#allocation1] sm:$0xff pattern:$0x75316420]  ;;  %v6637_v6 = vld.sshfl [vmem:[#allocation1 + $0x8] sm:$0xff pattern:$0x75316420]  ;;  %v6688_v53 = vsel %vm10246_vm11, %v6576_v42, %v1522_v27  ;;  %v1473_v42 = vsel %vm10263_vm12, %v1469_v55, %v6568_v18 }
 0x137   :  { %10442 = vst [vmem:[#allocation63_spill] sm:$0xff] %v6635_v50  ;;  %v1481_v56 = vperm.slane %v5655_v38, 1  ;;  %v1482_v7 = vperm.slane %v5655_v38, 2 }
 0x138   :  { %10443 = vst [vmem:[#allocation64_spill] sm:$0xff] %v6637_v6  ;;  %v6884_v6 = vld [vmem:[%s10181_s9 + $0x47] ss:$8 sm:$0xf] }
 0x139   :  { %3987 = vst [vmem:[#allocation1] ss:$2 sm:$0xff] %v5961_v3  ;;  %v1489_v8 = vmul.f32 %v1481_v56, %v1475_v15 }
 0x13a   :  { %10448 = vst [vmem:[#allocation69_spill] sm:$0xff] %v6688_v53 }
 0x13b   :  { %v6645_v48 = vld.sshfl [vmem:[#allocation1 + $0x10] sm:$0xff pattern:$0x75316420]  ;;  %v6647_v25 = vld.sshfl [vmem:[#allocation1 + $0x18] sm:$0xff pattern:$0x75316420] }
 0x13c   :  { %10444 = vst [vmem:[#allocation65_spill] sm:$0xff] %v6645_v48  ;;  %v1497_v12 = vrot.slane %v1489_v8, 4  ;;  %v1474_v8 = vsel %vm10263_vm12, %v6549_v37, %v1469_v55 }
 0x13d   :  { %10445 = vst [vmem:[#allocation66_spill] sm:$0xff] %v6647_v25  ;;  %v6661_v25 = vpop.permute.xlu1 %1658  ;;  %v6690_v56 = vpop.permute.xlu2 %1656 }
 0x13e   :  { %4113 = vst [vmem:[#allocation1 + $0x10] ss:$2 sm:$0xff] %v5952_v1  ;;  %v6721_v55 = vsel %vm10234_vm13, %v6661_v25, %v6700_v57 }
 0x13f   :  { %1505 = vst [vmem:[#allocation2 + $0x130] sm:$0xf0] %v1497_v12  ;;  %v6713_v12 = vld [vmem:[%s10181_s9 + $0x26] ss:$8 sm:$0xf] }
 0x140   :  { %v6650_v50 = vld.sshfl [vmem:[#allocation1] sm:$0xff pattern:$0x75316420]  ;;  %v6652_v51 = vld.sshfl [vmem:[#allocation1 + $0x8] sm:$0xff pattern:$0x75316420] }
 0x141   :  { %10446 = vst [vmem:[#allocation67_spill] sm:$0xff] %v6650_v50  ;;  %v4250_v50 = vsel %vm10331_vm0, %v4245_v63, %v4248_v19  ;;  %v1480_v63 = vperm.slane %v5655_v38, 0  ;;  %v1476_v19 = vsel %vm10263_vm12, %v6568_v18, %v6543_v49  ;;  %v4253_v49 = vmul.f32 %v4249_v45, %v5961_v3 }
 0x142   :  { %10447 = vst [vmem:[#allocation68_spill] sm:$0xff] %v6652_v51  ;;  %v4254_v10 = vmul.f32 %v4250_v50, %v5952_v1  ;;  %v1673_v18 = vperm.slane %v6713_v12, 1  ;;  %v2037_v51 = vperm.slane %v6884_v6, 2  ;;  %vm10275_vm12 = vcmp.lt.s32.totalorder %v6050_v9, 96 }
 0x143   :  { %4111 = vst [vmem:[#allocation1] ss:$2 sm:$0xff] %v5961_v3  ;;  %v1488_v21 = vmul.f32 %v1480_v63, %v1476_v19  ;;  %v1544_v19 = vmul.f32 %v1536_v29, %v6688_v53 }
 0x144   :  { %10453 = vst [vmem:[#allocation74_spill] sm:$0xff] %v6721_v55 }
 0x145   :  { %v6657_v60 = vld.sshfl [vmem:[#allocation1 + $0x10] sm:$0xff pattern:$0x75316420]  ;;  %v6659_v36 = vld.sshfl [vmem:[#allocation1 + $0x18] sm:$0xff pattern:$0x75316420]  ;;  %v1700_v63 = vpop.permute.xlu1 %1699 }
 0x146   :  { %4168 = vst [vmem:[#allocation1 + $0x10] ss:$2 sm:$0xff] %v5952_v1  ;;  %v1496_v17 = vrot.slane %v1488_v21, 4  ;;  %v1490_v21 = vmul.f32 %v1482_v7, %v1474_v8  ;;  %v6731_v8 = vsel %vm10246_vm11, %v1522_v27, %v6595_v47  ;;  %v1663_v7 = vpop.permute.xlu2 %1662  ;;  %vm10270_vm11 = vcmp.lt.s32.totalorder %v6050_v9, 95 }
 0x147   :  { %1548 = vst [vmem:[#allocation2] sm:$0xf] %v1544_v19 }
 0x148   :  { %1504 = vst [vmem:[#allocation2 + $0x180] sm:$0xf0] %v1496_v17  ;;  %v1498_v46 = vrot.slane %v1490_v21, 4  ;;  %v1702_v21 = vpop.permute.xlu0 %1701 }
 0x149   :  { %10456 = vst [vmem:[#allocation77_spill] sm:$0xff] %v6731_v8 }
 0x14a   :  { %v6673_v44 = vld.sshfl [vmem:[#allocation1] sm:$0xff pattern:$0x75316420]  ;;  %v6675_v52 = vld.sshfl [vmem:[#allocation1 + $0x8] sm:$0xff pattern:$0x75316420] }
 0x14b   :  { %4166 = vst [vmem:[#allocation1] ss:$2 sm:$0xff] %v5961_v3 }
 0x14c   :  { %1506 = vst [vmem:[#allocation2 + $0x138] sm:$0xf0] %v1498_v46  ;;  %v5661_v46 = vld [vmem:[%s10181_s9 + $0x27] ss:$8 sm:$0xf] }
 0x14d   :  { %v6692_v50 = vld.sshfl [vmem:[#allocation1 + $0x10] sm:$0xff pattern:$0x75316420]  ;;  %v6694_v15 = vld.sshfl [vmem:[#allocation1 + $0x18] sm:$0xff pattern:$0x75316420] }
 0x14e   :  { %10449 = vst [vmem:[#allocation70_spill] sm:$0xff] %v6692_v50 }
 0x14f   :  { %10450 = vst [vmem:[#allocation71_spill] sm:$0xff] %v6694_v15 }
 0x150   :  { %4259 = vst [vmem:[#allocation1 + $0x10] ss:$2 sm:$0xff] %v4254_v10  ;;  %v1483_v10 = vperm.slane %v5655_v38, 3  ;;  %v1537_v38 = vperm.slane %v6591_v14, 2  ;;  %v1681_v14 = vmul.f32 %v1673_v18, %v6721_v55 }
 0x152   :  { %v6706_v39 = vld.sshfl [vmem:[#allocation1] sm:$0xff pattern:$0x75316420]  ;;  %v6708_v45 = vld.sshfl [vmem:[#allocation1 + $0x8] sm:$0xff pattern:$0x75316420]  ;;  %v1491_v37 = vmul.f32 %v1483_v10, %v1473_v42  ;;  %v1545_v10 = vmul.f32 %v1537_v38, %v6731_v8  ;;  %v1710_v38 = vsel %vm10228_vm14, %v1700_v63, %v1702_v21 }
 0x153   :  { %10451 = vst [vmem:[#allocation72_spill] sm:$0xff] %v6706_v39  ;;  %v5727_v42 = vld [vmem:[%s10183_s11 + $0x25] ss:$8 sm:$0xf] }
 0x154   :  { %10452 = vst [vmem:[#allocation73_spill] sm:$0xff] %v6708_v45  ;;  %v1499_v17 = vrot.slane %v1491_v37, 4  ;;  %v4276_v19 = vperm.slane %v5727_v42, 1 }
 0x155   :  { %4257 = vst [vmem:[#allocation1] ss:$2 sm:$0xff] %v4253_v49 }
 0x156   :  { %1507 = vst [vmem:[#allocation2 + $0x78] sm:$0xf0] %v1499_v17  ;;  %v6745_v47 = vmul.f32 %v4276_v19, %v6721_v55  ;;  %v1718_v17 = vperm.slane %v5661_v46, 3  ;;  %v6759_v19 = vsel %vm10234_vm13, %v6690_v56, %v6661_v25  ;;  %v1704_v55 = vpop.permute.xlu2 %1703 }
 0x157   :  { %v6724_v29 = vld.sshfl [vmem:[#allocation1 + $0x10] sm:$0xff pattern:$0x75316420]  ;;  %v6726_v49 = vld.sshfl [vmem:[#allocation1 + $0x18] sm:$0xff pattern:$0x75316420] }
 0x158   :  { %10454 = vst [vmem:[#allocation75_spill] sm:$0xff] %v6724_v29  ;;  %v1706_v29 = vpop.permute.xlu1 %1705 }
 0x159   :  { %10455 = vst [vmem:[#allocation76_spill] sm:$0xff] %v6726_v49  ;;  %v1711_v18 = vsel %vm10228_vm14, %v1706_v29, %v1700_v63 }
 0x15a   :  { %4305 = vst [vmem:[#allocation1 + $0x10] ss:$2 sm:$0xff] %v5952_v1 }
 0x15b   :  { %10459 = vst [vmem:[#allocation80_spill] sm:$0xff] %v6745_v47  ;;  %v4275_v47 = vperm.slane %v5727_v42, 0  ;;  %v1675_v42 = vperm.slane %v6713_v12, 3 }
 0x15c   :  { %v6740_v37 = vld.sshfl [vmem:[#allocation1] sm:$0xff pattern:$0x75316420]  ;;  %v6742_v27 = vld.sshfl [vmem:[#allocation1 + $0x8] sm:$0xff pattern:$0x75316420] }
 0x15d   :  { %10457 = vst [vmem:[#allocation78_spill] sm:$0xff] %v6740_v37  ;;  %v1672_v37 = vperm.slane %v6713_v12, 0  ;;  %v6769_v8 = vmul.f32 %v4275_v47, %v6759_v19  ;;  %v1716_v47 = vperm.slane %v5661_v46, 1 }
 0x15e   :  { %10458 = vst [vmem:[#allocation79_spill] sm:$0xff] %v6742_v27  ;;  %v1715_v27 = vperm.slane %v5661_v46, 0 }
 0x15f   :  { %4303 = vst [vmem:[#allocation1] ss:$2 sm:$0xff] %v5961_v3  ;;  %v1680_v53 = vmul.f32 %v1672_v37, %v6759_v19  ;;  %v6785_v37 = vsel %vm10234_vm13, %v1663_v7, %v6690_v56  ;;  %v6798_v56 = vld [vmem:[%s10181_s9 + $0x43] ss:$8 sm:$0xf] }
 0x160   :  { %1685 = vst [vmem:[#allocation2 + $0x170] sm:$0xf] %v1681_v14  ;;  %v1726_v14 = vmul.f32 %v1718_v17, %v1711_v18  ;;  %v1723_v63 = vmul.f32 %v1715_v27, %v1710_v38  ;;  %v6776_v18 = vsel %vm10234_vm13, %v6700_v57, %v1663_v7  ;;  %v1717_v38 = vperm.slane %v5661_v46, 2  ;;  %v1826_v46 = vpop.permute.xlu2 %1825 }
 0x161   :  { %10460 = vst [vmem:[#allocation81_spill] sm:$0xff] %v6759_v19  ;;  %v6762_v39 = vld.sshfl [vmem:[#allocation1 + $0x10] sm:$0xff pattern:$0x75316420]  ;;  %v1683_v7 = vmul.f32 %v1675_v42, %v6785_v37  ;;  %vm10276_vm13 = vcmp.lt.s32.totalorder %v6050_v9, 97 }
 0x162   :  { %1549 = vst [vmem:[#allocation2 + $0x20] sm:$0xf] %v1545_v10  ;;  %v6764_v49 = vld.sshfl [vmem:[#allocation1 + $0x18] sm:$0xff pattern:$0x75316420]  ;;  %v1734_v25 = vrot.slane %v1726_v14, 4  ;;  %v1709_v14 = vsel %vm10228_vm14, %v1702_v21, %v1704_v55 }
 0x163   :  { %4348 = vst [vmem:[#allocation1 + $0x10] ss:$2 sm:$0xff] %v5952_v1  ;;  %v1674_v10 = vperm.slane %v6713_v12, 2  ;;  %v1731_v34 = vrot.slane %v1723_v63, 4  ;;  %v6790_v12 = vpop.permute.xlu1 %1827  ;;  %v1724_v63 = vmul.f32 %v1716_v47, %v1709_v14  ;;  %v1839_v21 = vperm.slane %v6798_v56, 0 }
 0x164   :  { %10461 = vst [vmem:[#allocation82_spill] sm:$0xff] %v6769_v8  ;;  %v1833_v42 = vsel %vm10328_vm15, %v1826_v46, %v6790_v12 }
 0x165   :  { %1684 = vst [vmem:[#allocation2 + $0xb8] sm:$0xf] %v1680_v53  ;;  %v1708_v53 = vsel %vm10228_vm14, %v1704_v55, %v1706_v29  ;;  %v1682_v57 = vmul.f32 %v1674_v10, %v6776_v18  ;;  %v6807_v55 = vpop.permute.xlu0 %1823  ;;  %v1732_v8 = vrot.slane %v1724_v63, 4  ;;  %vm10258_vm14 = vcmp.lt.s32.totalorder %v6050_v9, 94 }
 0x166   :  { %10462 = vst [vmem:[#allocation83_spill] sm:$0xff] %v6776_v18  ;;  %v6778_v17 = vld.sshfl [vmem:[#allocation1] sm:$0xff pattern:$0x75316420]  ;;  %v1725_v10 = vmul.f32 %v1717_v38, %v1708_v53  ;;  %v1834_v47 = vsel %vm10328_vm15, %v6807_v55, %v1826_v46 }
 0x167   :  { %10463 = vst [vmem:[#allocation84_spill] sm:$0xff] %v6778_v17  ;;  %v6780_v27 = vld.sshfl [vmem:[#allocation1 + $0x8] sm:$0xff pattern:$0x75316420]  ;;  %v1847_v38 = vmul.f32 %v1839_v21, %v1834_v47 }
 0x168   :  { %10464 = vst [vmem:[#allocation85_spill] sm:$0xff] %v6785_v37  ;;  %v1733_v53 = vrot.slane %v1725_v10, 4  ;;  %v5670_v10 = vld [vmem:[%s10181_s9 + $0x60] ss:$8 sm:$0xf] }
 0x169   :  { %4346 = vst [vmem:[#allocation1] ss:$2 sm:$0xff] %v5961_v3  ;;  %v2090_v35 = vperm.slane %v5670_v10, 0 }
 0x16a   :  { %1742 = vst [vmem:[#allocation2 + $0x140] sm:$0xf0] %v1734_v25  ;;  %v6802_v29 = vld.sshfl [vmem:[#allocation1 + $0x10] sm:$0xff pattern:$0x75316420] }
 0x16b   :  { %1739 = vst [vmem:[#allocation2 + $0xb8] sm:$0xf0] %v1731_v34  ;;  %v6804_v25 = vld.sshfl [vmem:[#allocation1 + $0x18] sm:$0xff pattern:$0x75316420]  ;;  %v1840_v34 = vperm.slane %v6798_v56, 1  ;;  %v6822_v18 = vpop.permute.xlu1 %2023 }
 0x16c   :  { %4472 = vst [vmem:[#allocation1 + $0x10] ss:$2 sm:$0xff] %v5952_v1 }
 0x16d   :  { %1686 = vst [vmem:[#allocation2 + $0xc0] sm:$0xf] %v1682_v57  ;;  %v1848_v37 = vmul.f32 %v1840_v34, %v1833_v42  ;;  %v1855_v57 = vrot.slane %v1847_v38, 4  ;;  %v2079_v21 = vpop.permute.xlu0 %2078  ;;  %v2093_v34 = vperm.slane %v5670_v10, 3 }
 0x16e   :  { %1687 = vst [vmem:[#allocation2 + $0x140] sm:$0xf] %v1683_v7  ;;  %v2081_v7 = vpop.permute.xlu2 %2080 }
 0x16f   :  { %1740 = vst [vmem:[#allocation2 + $0x170] sm:$0xf0] %v1732_v8  ;;  %v1856_v63 = vrot.slane %v1848_v37, 4  ;;  %v2092_v37 = vperm.slane %v5670_v10, 2 }
 0x170   :  { %v6817_v14 = vld.sshfl [vmem:[#allocation1] sm:$0xff pattern:$0x75316420]  ;;  %v6819_v19 = vld.sshfl [vmem:[#allocation1 + $0x8] sm:$0xff pattern:$0x75316420] }
 0x171   :  { %4470 = vst [vmem:[#allocation1] ss:$2 sm:$0xff] %v5961_v3 }
 0x172   :  { %1741 = vst [vmem:[#allocation2 + $0xc0] sm:$0xf0] %v1733_v53  ;;  %v6840_v53 = vsel %vm10258_vm14, %v2079_v21, %v2081_v7 }
 0x173   :  { %v6824_v22 = vld.sshfl [vmem:[#allocation1 + $0x10] sm:$0xff pattern:$0x75316420]  ;;  %v6826_v23 = vld.sshfl [vmem:[#allocation1 + $0x18] sm:$0xff pattern:$0x75316420] }
 0x174   :  { %4527 = vst [vmem:[#allocation1 + $0x10] ss:$2 sm:$0xff] %v5952_v1  ;;  %v6877_v41 = vpop.f32.mrf.mxu1 }
 0x175   :  { %1863 = vst [vmem:[#allocation2 + $0x60] sm:$0xf0] %v1855_v57  ;;  %v2100_v57 = vmul.f32 %v2092_v37, %v6840_v53  ;;  %v1939_v37 = vperm.slane %v6849_v31, 2 }
 0x176   :  { %1864 = vst [vmem:[#allocation2 + $0x18] sm:$0xf0] %v1856_v63  ;;  %v1928_v38 = vpop.permute.xlu2 %1927  ;;  %v2075_v63 = vpop.permute.xlu1 %2074 }
 0x177   :  { %10465 = vst [vmem:[#allocation86_spill] sm:$0xff] %v6840_v53  ;;  %v6853_v54 = vsel %vm10258_vm14, %v2081_v7, %v2075_v63  ;;  %v6863_v53 = vpop.permute.xlu0 %1925 }
 0x178   :  { %v6832_v46 = vld.sshfl [vmem:[#allocation1] sm:$0xff pattern:$0x75316420]  ;;  %v6834_v8 = vld.sshfl [vmem:[#allocation1 + $0x8] sm:$0xff pattern:$0x75316420] }
 0x179   :  { %4525 = vst [vmem:[#allocation1] ss:$2 sm:$0xff] %v5961_v3 }
 0x17a   :  { %10466 = vst [vmem:[#allocation87_spill] sm:$0xff] %v6853_v54 }
 0x17b   :  { %v4530_v42 = vld.sshfl [vmem:[#allocation1 + $0x10] sm:$0xff pattern:$0x75316420]  ;;  %v4531_v47 = vld.sshfl [vmem:[#allocation1 + $0x18] sm:$0xff pattern:$0x75316420] }
 0x17c   :  { %4540 = vrot.lane.b32.xlu0 %v4530_v42, %s10273_s18  ;;  %4542 = vrot.lane.b32.xlu2 %v4531_v47, %s10273_s18  ;;  %4569 = vst [vmem:[#allocation1 + $0x10] ss:$2 sm:$0xff] %v5952_v1  ;;  %v2101_v47 = vmul.f32 %v2093_v34, %v6853_v54  ;;  %v6875_v54 = vpop.f32.mrf.mxu0 }
 0x17d   :  { %2104 = vst [vmem:[#allocation2 + $0xe8] sm:$0xf] %v2100_v57  ;;  %v1930_v57 = vsel %vm10276_vm13, %v6863_v53, %v1928_v38 }
 0x17e   :  { %2105 = vst [vmem:[#allocation2 + $0x70] sm:$0xf] %v2101_v47  ;;  %v2077_v5 = vpop.permute.xlu2 %2076  ;;  %v1947_v34 = vmul.f32 %v1939_v37, %v1930_v57  ;;  %v6879_v15 = vpop.permute.xlu1 %1882 }
 0x17f   :  { %v6873_v47 = vsel %vm10258_vm14, %v2075_v63, %v2077_v5 }
 0x180   :  { %v6855_v40 = vld.sshfl [vmem:[#allocation1] sm:$0xff pattern:$0x75316420]  ;;  %v6857_v42 = vld.sshfl [vmem:[#allocation1 + $0x8] sm:$0xff pattern:$0x75316420]  ;;  %v2098_v63 = vmul.f32 %v2090_v35, %v6873_v47 }
 0x181   :  { %4567 = vst [vmem:[#allocation1] ss:$2 sm:$0xff] %v5961_v3  ;;  %v1955_v33 = vrot.slane %v1947_v34, 4  ;;  %v6898_v34 = vpop.f32.mrf.mxu2 }
 0x182   :  { %10467 = vst [vmem:[#allocation88_spill] sm:$0xff] %v6873_v47 }
 0x183   :  { %v4572_v24 = vld.sshfl [vmem:[#allocation1 + $0x10] sm:$0xff pattern:$0x75316420]  ;;  %v4573_v7 = vld.sshfl [vmem:[#allocation1 + $0x18] sm:$0xff pattern:$0x75316420] }
 0x184   :  { %4584 = vrot.lane.b32.xlu1 %v4573_v7, %s10277_s15  ;;  %4623 = vst [vmem:[#allocation1 + $0x10] ss:$2 sm:$0xff] %v5952_v1  ;;  %4582 = vrot.lane.b32.xlu2 %v4572_v24, %s10277_s15  ;;  %v2091_v7 = vperm.slane %v5670_v10, 1  ;;  %v6888_v24 = vsel %vm10258_vm14, %v2077_v5, %v2079_v21  ;;  %v1940_v10 = vperm.slane %v6849_v31, 3  ;;  %v6900_v5 = vpop.f32.mrf.mxu3  ;;  %v2026_v21 = vpop.permute.xlu0 %2025  ;;  %vm10312_vm14 = vcmp.lt.s32.totalorder %v6050_v9, 98 }
 0x185   :  { %10468 = vst [vmem:[#allocation89_spill] sm:$0xff] %v6888_v24  ;;  %v2028_v62 = vsel %vm10270_vm11, %v6822_v18, %v2026_v21 }
 0x186   :  { %1963 = vst [vmem:[#allocation2 + $0x30] sm:$0xf0] %v1955_v33  ;;  %v2099_v48 = vmul.f32 %v2091_v7, %v6888_v24  ;;  %v6907_v59 = vpop.permute.xlu2 %1921  ;;  %v2045_v33 = vmul.f32 %v2037_v51, %v2028_v62  ;;  %v567_v24 = vpop.f32.mrf.mxu1  ;;  %v1896_v62 = vperm.slane %v6920_v26, 2 }
 0x187   :  { %2102 = vst [vmem:[#allocation2 + $0x98] sm:$0xf] %v2098_v63  ;;  %v1933_v7 = vsel %vm10276_vm13, %v1928_v38, %v6907_v59  ;;  %v554_v63 = vpop.f32.mrf.mxu0  ;;  %v6915_v61 = vpop.permute.xlu1 %1980  ;;  %v1841_v24 = vperm.slane %v6798_v56, 2 }
 0x188   :  { %v4570_v37 = vld.sshfl [vmem:[#allocation1] sm:$0xff pattern:$0x75316420]  ;;  %v6891_v57 = vld.sshfl [vmem:[#allocation1 + $0x8] sm:$0xff pattern:$0x75316420] }
 0x189   :  { %4621 = vst [vmem:[#allocation1] ss:$2 sm:$0xff] %v5961_v3  ;;  %v2053_v13 = vrot.slane %v2045_v33, 4  ;;  %v1842_v63 = vperm.slane %v6798_v56, 3  ;;  %v2038_v33 = vperm.slane %v6884_v6, 3 }
 0x18a   :  { %2103 = vst [vmem:[#allocation2 + $0x150] sm:$0xf] %v2099_v48  ;;  %v580_v48 = vpop.f32.mrf.mxu2 }
 0x18b   :  { %v4626_v35 = vld.sshfl [vmem:[#allocation1 + $0x10] sm:$0xff pattern:$0x75316420]  ;;  %v6902_v47 = vld.sshfl [vmem:[#allocation1 + $0x18] sm:$0xff pattern:$0x75316420] }
 0x18c   :  { %4636 = vrot.lane.b32.xlu0 %v4626_v35, %s10271_s28  ;;  %4665 = vst [vmem:[#allocation1 + $0x10] ss:$2 sm:$0xff] %v5952_v1  ;;  %4578 = vrot.lane.b32.xlu1 %v4570_v37, %s10277_s15  ;;  %v1948_v35 = vmul.f32 %v1940_v10, %v1933_v7  ;;  %v593_v38 = vpop.f32.mrf.mxu3  ;;  %v1885_v10 = vpop.permute.xlu0 %1884 }
 0x18d   :  { %2061 = vst [vmem:[#allocation2 + $0x8] sm:$0xf0] %v2053_v13  ;;  %v6935_v32 = vsel %vm10312_vm14, %v6879_v15, %v1885_v10 }
 0x18e   :  { %v1956_v51 = vrot.slane %v1948_v35, 4  ;;  %10469 = vst [vmem:[#allocation90_spill] sm:$0xff] %v6935_v32  ;;  %v6937_v43 = vpop.permute.xlu2 %2019  ;;  %v1904_v13 = vmul.f32 %v1896_v62, %v6935_v32  ;;  %v6946_v35 = vld [vmem:[%s10181_s9 + $0x46] ss:$8 sm:$0xf] }
 0x18f   :  { %v1830_v56 = vpop.permute.xlu1 %1829  ;;  %v1994_v32 = vperm.slane %v6946_v35, 2 }
 0x190   :  { %v6922_v45 = vld.sshfl [vmem:[#allocation1] sm:$0xff pattern:$0x75316420]  ;;  %v6924_v37 = vld.sshfl [vmem:[#allocation1 + $0x8] sm:$0xff pattern:$0x75316420]  ;;  %v1832_v48 = vsel %vm10328_vm15, %v6790_v12, %v1830_v56 }
 0x191   :  { %4663 = vst [vmem:[#allocation1] ss:$2 sm:$0xff] %v5961_v3  ;;  %v1849_v38 = vmul.f32 %v1841_v24, %v1832_v48  ;;  %v1937_v12 = vperm.slane %v6849_v31, 0  ;;  %v1995_v24 = vperm.slane %v6946_v35, 3 }
 0x192   :  { %1964 = vst [vmem:[#allocation2 + $0xc8] sm:$0xf0] %v1956_v51  ;;  %v2031_v51 = vsel %vm10270_vm11, %v2026_v21, %v6937_v43 }
 0x193   :  { %v4668_v7 = vld.sshfl [vmem:[#allocation1 + $0x10] sm:$0xff pattern:$0x75316420]  ;;  %v4669_v50 = vld.sshfl [vmem:[#allocation1 + $0x18] sm:$0xff pattern:$0x75316420] }
 0x194   :  { %4678 = vrot.lane.b32.xlu0 %v4668_v7, %s10268_s2  ;;  %4680 = vrot.lane.b32.xlu2 %v4669_v50, %s10268_s2  ;;  %4719 = vst [vmem:[#allocation1 + $0x10] ss:$2 sm:$0xff] %v5952_v1  ;;  %v1835_v1 = vsel %vm10328_vm15, %v1830_v56, %v6807_v55  ;;  %v2046_v50 = vmul.f32 %v2038_v33, %v2031_v51  ;;  %v1857_v11 = vrot.slane %v1849_v38, 4  ;;  %v1983_v17 = vpop.permute.xlu0 %1982  ;;  %vm1250_vm15 = vcmp.lt.s32.totalorder %v6050_v9, 31 }
 0x195   :  { %1908 = vst [vmem:[#allocation2 + $0x30] sm:$0xf] %v1904_v13  ;;  %v1850_v7 = vmul.f32 %v1842_v63, %v1835_v1  ;;  %v6964_v55 = vsel %vm10275_vm12, %v6915_v61, %v1983_v17  ;;  %v1938_v63 = vperm.slane %v6849_v31, 1 }
 0x196   :  { %v2054_v21 = vrot.slane %v2046_v50, 4  ;;  %1865 = vst [vmem:[#allocation2 + $0x158] sm:$0xf0] %v1857_v11  ;;  %v1924_v33 = vpop.permute.xlu2 %1923  ;;  %v2002_v13 = vmul.f32 %v1994_v32, %v6964_v55  ;;  %v1897_v32 = vperm.slane %v6920_v26, 3  ;;  %v1895_v50 = vperm.slane %v6920_v26, 1 }
 0x197   :  { %v1858_v20 = vrot.slane %v1850_v7, 4  ;;  %v1977_v56 = vpop.permute.xlu1 %1976  ;;  %v1931_v11 = vsel %vm10276_vm13, %v1924_v33, %v6863_v53  ;;  %v1932_v51 = vsel %vm10276_vm13, %v6907_v59, %v1924_v33  ;;  %v2036_v33 = vperm.slane %v6884_v6, 1 }
 0x198   :  { %v4666_v62 = vld.sshfl [vmem:[#allocation1] sm:$0xff pattern:$0x75316420]  ;;  %2062 = vst [vmem:[#allocation2 + $0x80] sm:$0xf0] %v2054_v21  ;;  %v6979_v31 = vsel %vm10275_vm12, %v1983_v17, %v1977_v56  ;;  %v1946_v1 = vmul.f32 %v1938_v63, %v1931_v11  ;;  %v1894_v17 = vperm.slane %v6920_v26, 0 }
 0x199   :  { %4674 = vrot.lane.b32.xlu1 %v4666_v62, %s10268_s2  ;;  %1866 = vst [vmem:[#allocation2 + $0x120] sm:$0xf0] %v1858_v20  ;;  %v1945_v20 = vmul.f32 %v1937_v12, %v1932_v51  ;;  %v4667_v48 = vld.sshfl [vmem:[#allocation1 + $0x8] sm:$0xff pattern:$0x75316420]  ;;  %v1992_v21 = vperm.slane %v6946_v35, 0 }
 0x19a   :  { %2006 = vst [vmem:[#allocation2 + $0x8] sm:$0xf] %v2002_v13  ;;  %v1954_v59 = vrot.slane %v1946_v1, 4  ;;  %v1993_v26 = vperm.slane %v6946_v35, 1  ;;  %v2035_v35 = vperm.slane %v6884_v6, 0 }
 0x19b   :  { %4717 = vst [vmem:[#allocation1] ss:$2 sm:$0xff] %v5961_v3  ;;  %v1953_v53 = vrot.slane %v1945_v20, 4 }
 0x19c   :  { %4485 = vrot.lane.b32.xlu0 %v6824_v22, %s5861_s27  ;;  %v2003_v22 = vmul.f32 %v1995_v24, %v6979_v31  ;;  %v1879_v62 = vpop.permute.xlu0 %1878  ;;  %1962 = vst [vmem:[#allocation2 + $0x68] sm:$0xf0] %v1954_v59 }
 0x19d   :  { %1961 = vst [vmem:[#allocation2 + $0x198] sm:$0xf0] %v1953_v53  ;;  %v6990_v38 = vsel %vm10312_vm14, %v1885_v10, %v1879_v62  ;;  %v600_v53 = vsel %vm10331_vm0, %v6900_v5, 0.0 }
 0x19e   :  { %2007 = vst [vmem:[#allocation2 + $0x80] sm:$0xf] %v2003_v22  ;;  %v1881_v3 = vpop.permute.xlu2 %1880  ;;  %v595_v22 = vsel %vm10331_vm0, %v6875_v54, 0.0 }
 0x19f   :  { %10470 = vst [vmem:[#allocation91_spill] sm:$0xff] %v6990_v38  ;;  %v6998_v7 = vsel %vm10312_vm14, %v1881_v3, %v6879_v15  ;;  %v7004_v10 = vsel %vm10312_vm14, %v1879_v62, %v1881_v3  ;;  %v1979_v24 = vpop.permute.xlu1 %1978  ;;  %vm1110_vm14 = vcmp.lt.s32.totalorder %v6050_v9, 34 }
 0x1a0   :  { %10471 = vst [vmem:[#allocation92_spill] sm:$0xff] %v7004_v10  ;;  %v1903_v12 = vmul.f32 %v1895_v50, %v6998_v7  ;;  %v7011_v15 = vsel %vm10275_vm12, %v1979_v24, %v6915_v61  ;;  %v7015_v63 = vsel %vm10275_vm12, %v1977_v56, %v1979_v24  ;;  %v4722_v50 = vld.sshfl [vmem:[#allocation1 + $0x10] sm:$0xff pattern:$0x75316420] }
 0x1a1   :  { %4536 = vrot.lane.b32.xlu1 %v6855_v40, %s10273_s18  ;;  %v1905_v40 = vmul.f32 %v1897_v32, %v6990_v38  ;;  %10472 = vst [vmem:[#allocation93_spill] sm:$0xff] %v7015_v63  ;;  %v2000_v13 = vmul.f32 %v1992_v21, %v7015_v63  ;;  %v2001_v11 = vmul.f32 %v1993_v26, %v7011_v15  ;;  %v10516_v38 = vld [vmem:[#allocation64_spill] sm:$0xff] }
 0x1a2   :  { %1907 = vst [vmem:[#allocation2 + $0x68] sm:$0xf] %v1903_v12  ;;  %v4720_v62 = vld.sshfl [vmem:[#allocation1] sm:$0xff pattern:$0x75316420] }
 0x1a3   :  { %1909 = vst [vmem:[#allocation2 + $0xc8] sm:$0xf] %v1905_v40 }
 0x1a4   :  { %4580 = vrot.lane.b32.xlu0 %v6891_v57, %s10277_s15  ;;  %v1902_v57 = vmul.f32 %v1894_v17, %v7004_v10  ;;  %v2022_v51 = vpop.permute.xlu0 %2021  ;;  %2004 = vst [vmem:[#allocation2 + $0xf8] sm:$0xf] %v2000_v13  ;;  %s5864_s15 = smov 124  }
 0x1a5   :  { %v2029_v61 = vsel %vm10270_vm11, %v2022_v51, %v6822_v18  ;;  %v2030_v56 = vsel %vm10270_vm11, %v6937_v43, %v2022_v51  ;;  %2005 = vst [vmem:[#allocation2 + $0x28] sm:$0xf] %v2001_v11  ;;  %v598_v43 = vsel %vm10331_vm0, %v6898_v34, 0.0 }
 0x1a6   :  { %1906 = vst [vmem:[#allocation2 + $0x198] sm:$0xf] %v1902_v57  ;;  %v2043_v20 = vmul.f32 %v2035_v35, %v2030_v56  ;;  %v2044_v6 = vmul.f32 %v2036_v33, %v2029_v61 }
 0x1a8   :  { %v2051_v1 = vrot.slane %v2043_v20, 4  ;;  %v2052_v32 = vrot.slane %v2044_v6, 4 }
 0x1a9   :  { %4676 = vrot.lane.b32.xlu1 %v4667_v48, %s10268_s2  ;;  %v596_v48 = vsel %vm10331_vm0, %v6877_v41, 0.0  ;;  %s5863_s2 = smov 60  }
 0x1aa   :  { %2059 = vst [vmem:[#allocation2 + $0xf8] sm:$0xf0] %v2051_v1  ;;  %v597_v18 = vadd.f32 %v596_v48, %v595_v22 }
 0x1ab   :  { %2060 = vst [vmem:[#allocation2 + $0x28] sm:$0xf0] %v2052_v32 }
 0x1ac   :  { %4481 = vrot.lane.b32.xlu0 %v6832_v46, %s5861_s27  ;;  %v599_v46 = vadd.f32 %v598_v43, %v597_v18 }
 0x1ae   :  { %v601_v59 = vadd.f32 %v600_v53, %v599_v46 }
 0x1b1   :  { %4634 = vrot.lane.b32.xlu1 %v6924_v37, %s10271_s28  ;;  %v4721_v37 = vld.sshfl [vmem:[#allocation1 + $0x8] sm:$0xff pattern:$0x75316420] }
 0x1b2   :  { %4952 = vst [vmem:[#allocation1] ss:$2 sm:$0xff] %v5957_v2 }
 0x1b4   :  { %4361 = vrot.lane.b32.xlu0 %v6802_v29, %s5862_s16  ;;  %v4723_v29 = vld.sshfl [vmem:[#allocation1 + $0x18] sm:$0xff pattern:$0x75316420] }
 0x1b5   :  { %4954 = vst [vmem:[#allocation1 + $0x10] ss:$2 sm:$0xff] %v5949_v0 }
 0x1b9   :  { %4734 = vrot.lane.b32.xlu1 %v4723_v29, %s5863_s2 }
 0x1bc   :  { %4728 = vrot.lane.b32.xlu0 %v4720_v62, %s5863_s2 }
 0x1bd   :  { %602 = vadd.xlane.f32.xlu2 %v601_v59 }
 0x1c1   :  { %4730 = vrot.lane.b32.xlu1 %v4721_v37, %s5863_s2  ;;  %v5638_v37 = vld [vmem:[%s10180_s8 + $0x4] ss:$8 sm:$0xf] }
 0x1d5   :  { %4732 = vrot.lane.b32.xlu2 %v4722_v50, %s5863_s2 }
 0x1dd   :  { %4638 = vrot.lane.b32.xlu2 %v6902_v47, %s10271_s28 }
 0x1e5   :  { %4487 = vrot.lane.b32.xlu2 %v6826_v23, %s5861_s27  ;;  %v7056_v23 = vpop.permute.xlu2 %4542 }
 0x1e6   :  { %10473 = vst [vmem:[#allocation94_spill] sm:$0xff] %v7056_v23  ;;  %v10506_v23 = vld [vmem:[#allocation24_spill] sm:$0xff] }
 0x1ed   :  { %4632 = vrot.lane.b32.xlu2 %v6922_v45, %s10271_s28  ;;  %v7058_v47 = vpop.permute.xlu2 %4582  ;;  %s10489_s28 = smov 111  }
 0x1ee   :  { %10474 = vst [vmem:[#allocation95_spill] sm:$0xff] %v7058_v47  ;;  %v10504_v47 = vld [vmem:[#allocation70_spill] sm:$0xff] }
 0x1f5   :  { %4538 = vrot.lane.b32.xlu2 %v6857_v42, %s10273_s18  ;;  %v7060_v45 = vpop.permute.xlu2 %4680  ;;  %s10486_s18 = smov 112  }
 0x1f6   :  { %10475 = vst [vmem:[#allocation96_spill] sm:$0xff] %v7060_v45 }
 0x230   :  { %v603_v17 = vpop.xlane.xlu2 %602 }
 0x231   :  { %v604_v3 = vmul.f32 0.001953125, %v603_v17  ;;  %v788_v17 = vperm.slane %v5638_v37, 0 }
 0x233   :  { %v605_v40 = vsub.f32 %v6875_v54, %v604_v3  ;;  %v606_v21 = vsub.f32 %v6877_v41, %v604_v3  ;;  %v607_v42 = vsub.f32 %v6898_v34, %v604_v3  ;;  %v608_v26 = vsub.f32 %v6900_v5, %v604_v3  ;;  %v7070_v41 = vpop.permute.xlu0 %4540 }
 0x234   :  { %10476 = vst [vmem:[#allocation97_spill] sm:$0xff] %v7070_v41  ;;  %v789_v3 = vperm.slane %v5638_v37, 1 }
 0x235   :  { %v609_v12 = vmul.f32 %v605_v40, %v605_v40  ;;  %v610_v24 = vmul.f32 %v606_v21, %v606_v21  ;;  %v611_v57 = vmul.f32 %v607_v42, %v607_v42  ;;  %v612_v35 = vmul.f32 %v608_v26, %v608_v26 }
 0x237   :  { %v613_v33 = vsel %vm10331_vm0, %v609_v12, 0.0  ;;  %v614_v13 = vsel %vm10331_vm0, %v610_v24, 0.0  ;;  %v616_v51 = vsel %vm10331_vm0, %v611_v57, 0.0  ;;  %v618_v54 = vsel %vm10331_vm0, %v612_v35, 0.0 }
 0x238   :  { %v615_v11 = vadd.f32 %v614_v13, %v613_v33  ;;  %v790_v12 = vperm.slane %v5638_v37, 2 }
 0x23a   :  { %v617_v61 = vadd.f32 %v616_v51, %v615_v11  ;;  %v791_v11 = vperm.slane %v5638_v37, 3 }
 0x23b   :  { %v7072_v34 = vpop.permute.xlu0 %4636 }
 0x23c   :  { %v619_v56 = vadd.f32 %v618_v54, %v617_v61  ;;  %10477 = vst [vmem:[#allocation98_spill] sm:$0xff] %v7072_v34  ;;  %v10499_v34 = vld [vmem:[#allocation84_spill] sm:$0xff] }
 0x23e   :  { %620 = vadd.xlane.f32.xlu0 %v619_v56 }
 0x243   :  { %v7074_v5 = vpop.permute.xlu0 %4678 }
 0x244   :  { %10478 = vst [vmem:[#allocation99_spill] sm:$0xff] %v7074_v5 }
 0x24b   :  { %v7076_v20 = vpop.permute.xlu0 %4485 }
 0x24c   :  { %10479 = vst [vmem:[#allocation100_spill] sm:$0xff] %v7076_v20 }
 0x253   :  { %v7078_v6 = vpop.permute.xlu0 %4580 }
 0x254   :  { %10480 = vst [vmem:[#allocation101_spill] sm:$0xff] %v7078_v6 }
 0x25b   :  { %v7080_v22 = vpop.permute.xlu0 %4481 }
 0x25c   :  { %10481 = vst [vmem:[#allocation102_spill] sm:$0xff] %v7080_v22 }
 0x263   :  { %v7082_v48 = vpop.permute.xlu0 %4361 }
 0x264   :  { %10482 = vst [vmem:[#allocation103_spill] sm:$0xff] %v7082_v48 }
 0x26b   :  { %v7084_v1 = vpop.permute.xlu0 %4728 }
 0x26c   :  { %10483 = vst [vmem:[#allocation104_spill] sm:$0xff] %v7084_v1 }
 0x2b1   :  { %v621_v32 = vpop.xlane.xlu0 %620 }
 0x2b2   :  { %v622_v18 = vmul.f32 0.001953125, %v621_v32 }
 0x2b4   :  { %v623_v43 = vadd.f32 1e-05, %v622_v18 }
 0x2b6   :  { %5802 = vrsqrt.f32 %v623_v43  ;;  %vm630_vm12 = vweird.f32 %v623_v43 }
 0x2bc   :  { %v5803_v46 = vpop.eup %5802 }
 0x2bd   :  { %v625_v53 = vmul.f32 %v5803_v46, %v623_v43  ;;  %vm631_vm11 = vweird.f32 %v5803_v46 }
 0x2be   :  { %vm632_vm13 = vmor %vm630_vm12, %vm631_vm11  ;;  %vm1348_vm11 = vcmp.lt.s32.totalorder %v6050_v9, 18  ;;  %vm1305_vm12 = vcmp.lt.s32.totalorder %v6050_v9, 30 }
 0x2bf   :  { %v626_v59 = vmul.f32 %v5803_v46, %v625_v53 }
 0x2c1   :  { %v627_v50 = vmul.f32 0.5, %v626_v59 }
 0x2c3   :  { %v628_v29 = vsub.f32 1.5, %v627_v50 }
 0x2c5   :  { %v629_v62 = vmul.f32 %v5803_v46, %v628_v29 }
 0x2c7   :  { %v633_v24 = vsel %vm632_vm13, %v5803_v46, %v629_v62  ;;  %vm1152_vm13 = vcmp.lt.s32.totalorder %v6050_v9, 33 }
 0x2c8   :  { %v634_v57 = vmul.f32 %v633_v24, %v605_v40  ;;  %v635_v35 = vmul.f32 %v633_v24, %v606_v21  ;;  %v636_v33 = vmul.f32 %v633_v24, %v607_v42  ;;  %v637_v13 = vmul.f32 %v633_v24, %v608_v26  ;;  %v7111_v40 = vpop.permute.xlu1 %4584  ;;  %v7117_v21 = vpop.permute.xlu2 %4732  ;;  %v7191_v24 = vld [vmem:[%s10180_s8 + $0x5] ss:$8 sm:$0xf] }
 0x2c9   :  { %10484 = vst [vmem:[#allocation105_spill] sm:$0xff] %v7111_v40 }
 0x2ca   :  { %v638_v51 = vmax.f32 %v634_v57, 0.0  ;;  %v639_v61 = vmax.f32 %v635_v35, 0.0  ;;  %v7089_v54 = vmax.f32 %v636_v33, 0.0  ;;  %v641_v56 = vmax.f32 %v637_v13, 0.0  ;;  %10485 = vst [vmem:[#allocation106_spill] sm:$0xff] %v7117_v21 }
 0x2cb   :  { %v821_v35 = vperm.slane %v7191_v24, 3 }
 0x2cc   :  { %v796_v32 = vmul.f32 %v788_v17, %v638_v51  ;;  %v797_v18 = vmul.f32 %v789_v3, %v639_v61  ;;  %v798_v53 = vmul.f32 %v790_v12, %v7089_v54  ;;  %678 = vrot.lane.b32.xlu0 %v641_v56, %s5834_s22  ;;  %v799_v43 = vmul.f32 %v791_v11, %v641_v56  ;;  %v7183_v12 = vld [vmem:[%s10180_s8 + $0x2] ss:$8 sm:$0xf] }
 0x2cd   :  { %674 = vrot.lane.b32.xlu2 %v639_v61, %s5834_s22  ;;  %642 = vrot.lane.b32.xlu1 %v638_v51, %s5833_s0 }
 0x2ce   :  { %800 = vst [vmem:[#allocation2 + $0x108] sm:$0xf] %v796_v32  ;;  %v7215_v32 = vld [vmem:[%s10180_s8 + $0x3] ss:$8 sm:$0xf] }
 0x2cf   :  { %801 = vst [vmem:[#allocation2 + $0x110] sm:$0xf] %v797_v18  ;;  %v7220_v18 = vld [vmem:[%s10181_s9 + $0x5] ss:$8 sm:$0xf] }
 0x2d0   :  { %802 = vst [vmem:[#allocation2 + $0x90] sm:$0xf] %v798_v53  ;;  %v7123_v42 = vpop.permute.xlu1 %4578  ;;  %v7125_v26 = vpop.permute.xlu2 %4638  ;;  %v1359_v53 = vperm.slane %v7220_v18, 3 }
 0x2d1   :  { %803 = vst [vmem:[#allocation2 + $0x118] sm:$0xf] %v799_v43 }
 0x2d2   :  { %10487 = vst [vmem:[#allocation107_spill] sm:$0xff] %v7123_v42 }
 0x2d3   :  { %10488 = vst [vmem:[#allocation108_spill] sm:$0xff] %v7125_v26 }
 0x2d4   :  { %720 = vrot.lane.b32.xlu0 %v641_v56, %s10358_s23 }
 0x2d5   :  { %718 = vrot.lane.b32.xlu2 %v7089_v54, %s10358_s23  ;;  %644 = vrot.lane.b32.xlu1 %v639_v61, %s5833_s0 }
 0x2d8   :  { %v7130_v46 = vpop.permute.xlu1 %4674  ;;  %v7132_v59 = vpop.permute.xlu2 %4487 }
 0x2d9   :  { %10490 = vst [vmem:[#allocation109_spill] sm:$0xff] %v7130_v46 }
 0x2da   :  { %10491 = vst [vmem:[#allocation110_spill] sm:$0xff] %v7132_v59 }
 0x2dc   :  { %748 = vrot.lane.b32.xlu0 %v7089_v54, %s10289_s24 }
 0x2dd   :  { %746 = vrot.lane.b32.xlu2 %v639_v61, %s10289_s24  ;;  %646 = vrot.lane.b32.xlu1 %v7089_v54, %s5833_s0 }
 0x2e0   :  { %v7138_v50 = vpop.permute.xlu1 %4536  ;;  %v7141_v29 = vpop.permute.xlu2 %4632 }
 0x2e1   :  { %10492 = vst [vmem:[#allocation111_spill] sm:$0xff] %v7138_v50 }
 0x2e2   :  { %10493 = vst [vmem:[#allocation112_spill] sm:$0xff] %v7141_v29 }
 0x2e4   :  { %806 = vrot.lane.b32.xlu0 %v639_v61, %s10287_s25 }
 0x2e5   :  { %804 = vrot.lane.b32.xlu2 %v638_v51, %s10287_s25  ;;  %648 = vrot.lane.b32.xlu1 %v641_v56, %s5833_s0 }
 0x2e8   :  { %v7146_v37 = vpop.permute.xlu1 %4676 }
 0x2e9   :  { %10494 = vst [vmem:[#allocation113_spill] sm:$0xff] %v7146_v37 }
 0x2ec   :  { %846 = vrot.lane.b32.xlu0 %v638_v51, %s10281_s26 }
 0x2ed   :  { %810 = vrot.lane.b32.xlu2 %v641_v56, %s10287_s25  ;;  %672 = vrot.lane.b32.xlu1 %v638_v51, %s5834_s22 }
 0x2f4   :  { %852 = vrot.lane.b32.xlu0 %v641_v56, %s10281_s26 }
 0x2f5   :  { %850 = vrot.lane.b32.xlu2 %v7089_v54, %s10281_s26  ;;  %676 = vrot.lane.b32.xlu1 %v7089_v54, %s5834_s22 }
 0x2fc   :  { %880 = vrot.lane.b32.xlu0 %v7089_v54, %s10486_s18 }
 0x2fd   :  { %878 = vrot.lane.b32.xlu2 %v639_v61, %s10486_s18  ;;  %714 = vrot.lane.b32.xlu1 %v638_v51, %s10358_s23 }
 0x304   :  { %920 = vrot.lane.b32.xlu0 %v639_v61, %s10489_s28 }
 0x305   :  { %918 = vrot.lane.b32.xlu2 %v638_v51, %s10489_s28  ;;  %716 = vrot.lane.b32.xlu1 %v639_v61, %s10358_s23 }
 0x30c   :  { %4318 = vrot.lane.b32.xlu0 %v6762_v39, %s5864_s15  ;;  %v7154_v39 = vpop.permute.xlu2 %4538 }
 0x30d   :  { %924 = vrot.lane.b32.xlu2 %v641_v56, %s10489_s28  ;;  %744 = vrot.lane.b32.xlu1 %v638_v51, %s10289_s24  ;;  %10495 = vst [vmem:[#allocation114_spill] sm:$0xff] %v7154_v39 }
 0x314   :  { %4124 = vrot.lane.b32.xlu0 %v6675_v52, %s5865_s17  ;;  %v7156_v52 = vpop.permute.xlu1 %4634 }
 0x315   :  { %4363 = vrot.lane.b32.xlu2 %v6804_v25, %s5862_s16  ;;  %750 = vrot.lane.b32.xlu1 %v641_v56, %s10289_s24  ;;  %10496 = vst [vmem:[#allocation115_spill] sm:$0xff] %v7156_v52  ;;  %s10562_s24 = smov 32  }
 0x31c   :  { %4359 = vrot.lane.b32.xlu0 %v6819_v19, %s5862_s16  ;;  %v7162_v62 = vpop.permute.xlu1 %4734 }
 0x31d   :  { %808 = vrot.lane.b32.xlu1 %v7089_v54, %s10287_s25  ;;  %4320 = vrot.lane.b32.xlu2 %v6764_v49, %s5864_s15  ;;  %10497 = vst [vmem:[#allocation116_spill] sm:$0xff] %v7162_v62  ;;  %s10563_s25 = smov 31  }
 0x324   :  { %v7171_v49 = vpop.permute.xlu1 %4730  ;;  %4181 = vrot.lane.b32.xlu0 %v10504_v47, %s5866_s30  ;;  %v7336_v47 = vld [vmem:[%s10181_s9] ss:$8 sm:$0xf] }
 0x325   :  { %848 = vrot.lane.b32.xlu1 %v639_v61, %s10281_s26  ;;  %4126 = vrot.lane.b32.xlu2 %v6657_v60, %s5865_s17  ;;  %10498 = vst [vmem:[#allocation117_spill] sm:$0xff] %v7171_v49  ;;  %s10568_s26 = smov 2  }
 0x327   :  { %v7160_v25 = vpop.permute.xlu2 %674 }
 0x32d   :  { %876 = vrot.lane.b32.xlu1 %v638_v51, %s10486_s18  ;;  %4128 = vrot.lane.b32.xlu2 %v6659_v36, %s5865_s17 }
 0x32f   :  { %v7166_v19 = vpop.permute.xlu2 %718 }
 0x335   :  { %882 = vrot.lane.b32.xlu1 %v641_v56, %s10486_s18  ;;  %4316 = vrot.lane.b32.xlu2 %v6780_v27, %s5864_s15  ;;  %v654_v27 = vld [vmem:[%s10180_s8] ss:$8 sm:$0xf] }
 0x336   :  { %v657_v57 = vperm.slane %v654_v27, 1 }
 0x337   :  { %v7173_v17 = vpop.permute.xlu2 %746 }
 0x33d   :  { %922 = vrot.lane.b32.xlu1 %v7089_v54, %s10489_s28  ;;  %4122 = vrot.lane.b32.xlu2 %v6673_v44, %s5865_s17  ;;  %v731_v44 = vperm.slane %v7183_v12, 3  ;;  %s10605_s17 = smov 95  }
 0x33e   :  { %v7178_v60 = vpop.permute.xlu0 %678 }
 0x33f   :  { %v643_v3 = vpop.permute.xlu1 %642  ;;  %v805_v36 = vpop.permute.xlu2 %804 }
 0x345   :  { %4483 = vrot.lane.b32.xlu1 %v6834_v8, %s5861_s27  ;;  %3959 = vrot.lane.b32.xlu2 %v6630_v16, %s5863_s2  ;;  %s10561_s27 = smov 34  }
 0x346   :  { %v7199_v33 = vpop.permute.xlu0 %720 }
 0x347   :  { %v722_v13 = vsel %vm10329_vm3, %v7166_v19, %v7199_v33  ;;  %v645_v11 = vpop.permute.xlu1 %644  ;;  %v7205_v51 = vpop.permute.xlu2 %810 }
 0x348   :  { %v739_v61 = vmul.f32 %v731_v44, %v722_v13  ;;  %v652_v8 = vsel %vm88_vm2, %v643_v3, %v645_v11  ;;  %v815_v54 = vsel %vm316_vm5, %v7205_v51, %v805_v36  ;;  %v1349_v44 = vsel %vm1348_vm11, %v6527_v28, %v6628_v30 }
 0x349   :  { %v665_v56 = vmul.f32 %v657_v57, %v652_v8  ;;  %v829_v16 = vmul.f32 %v821_v35, %v815_v54  ;;  %v760_v57 = vperm.slane %v7215_v32, 2  ;;  %v658_v35 = vperm.slane %v654_v27, 2 }
 0x34a   :  { %743 = vst [vmem:[#allocation2 + $0x178] sm:$0xf] %v739_v61  ;;  %v7236_v61 = vld [vmem:[%s10181_s9 + $0x4] ss:$8 sm:$0xf]  ;;  %v1367_v8 = vmul.f32 %v1359_v53, %v1349_v44  ;;  %v7252_v53 = vsel %vm1305_vm12, %v6499_v58, %v6507_v4 }
 0x34b   :  { %669 = vst [vmem:[#allocation2 + $0xd0] sm:$0xf] %v665_v56  ;;  %v837_v43 = vrot.slane %v829_v16, 4 }
 0x34c   :  { %v1375_v52 = vrot.slane %v1367_v8, 4 }
 0x34d   :  { %845 = vst [vmem:[#allocation2 + $0x118] sm:$0xf0] %v837_v43  ;;  %4357 = vrot.lane.b32.xlu1 %v6817_v14, %s5862_s16  ;;  %v1316_v14 = vperm.slane %v7236_v61, 3  ;;  %s5867_s16 = smov 36  }
 0x34e   :  { %v7231_v13 = vpop.permute.xlu0 %748 }
 0x34f   :  { %v753_v54 = vsel %vm228_vm4, %v7173_v17, %v7231_v13  ;;  %v647_v56 = vpop.permute.xlu1 %646  ;;  %v7242_v16 = vpop.permute.xlu2 %850  ;;  %v1324_v29 = vmul.f32 %v1316_v14, %v7252_v53 }
 0x350   :  { %v768_v43 = vmul.f32 %v760_v57, %v753_v54  ;;  %v651_v0 = vsel %vm88_vm2, %v645_v11, %v647_v56  ;;  %v818_v57 = vperm.slane %v7191_v24, 0  ;;  %v656_v54 = vperm.slane %v654_v27, 0 }
 0x351   :  { %v666_v44 = vmul.f32 %v658_v35, %v651_v0  ;;  %v659_v11 = vperm.slane %v654_v27, 3 }
 0x352   :  { %v776_v2 = vrot.slane %v768_v43, 4 }
 0x353   :  { %670 = vst [vmem:[#allocation2 + $0x10] sm:$0xf] %v666_v44  ;;  %v5635_v44 = vld [vmem:[%s10180_s8 + $0x1] ss:$8 sm:$0xf] }
 0x354   :  { %v7255_v37 = vld [vmem:[#allocation2 + $0x118] sm:$0xff]  ;;  %784 = vst [vmem:[#allocation2 + $0x40] sm:$0xf0] %v776_v2  ;;  %v689_v50 = vperm.slane %v5635_v44, 3 }
 0x355   :  { %1383 = vst [vmem:[#allocation2 + $0x118] sm:$0xf0] %v1375_v52  ;;  %4314 = vrot.lane.b32.xlu1 %v10499_v34, %s5864_s15  ;;  %v1356_v34 = vperm.slane %v7220_v18, 0  ;;  %s10560_s15 = smov 33  }
 0x356   :  { %1328 = vst [vmem:[#allocation2 + $0x118] sm:$0xf] %v1324_v29  ;;  %v7260_v26 = vpop.permute.xlu0 %806 }
 0x357   :  { %v814_v0 = vsel %vm316_vm5, %v805_v36, %v7260_v26  ;;  %v649_v35 = vpop.permute.xlu1 %648  ;;  %v7265_v8 = vpop.permute.xlu2 %878  ;;  %v10500_v36 = vld [vmem:[#allocation55_spill] sm:$0xff] }
 0x358   :  { %v826_v14 = vmul.f32 %v818_v57, %v814_v0  ;;  %v650_v2 = vsel %vm88_vm2, %v647_v56, %v649_v35  ;;  %v653_v52 = vsel %vm88_vm2, %v649_v35, %v643_v3  ;;  %v1352_v57 = vsel %vm1348_vm11, %v6628_v30, %v10500_v36 }
 0x359   :  { %v664_v27 = vmul.f32 %v656_v54, %v653_v52  ;;  %v667_v43 = vmul.f32 %v659_v11, %v650_v2  ;;  %v686_v56 = vperm.slane %v5635_v44, 0  ;;  %v687_v0 = vperm.slane %v5635_v44, 1  ;;  %v7287_v2 = vld [vmem:[%s10181_s9 + $0x1] ss:$8 sm:$0xf] }
 0x35a   :  { %v834_v29 = vrot.slane %v826_v14, 4  ;;  %v1364_v3 = vmul.f32 %v1356_v34, %v1352_v57  ;;  %v1313_v11 = vperm.slane %v7236_v61, 0  ;;  %v10501_v52 = vld [vmem:[#allocation33_spill] sm:$0xff]  ;;  %v1160_v5 = vperm.slane %v7287_v2, 0 }
 0x35b   :  { %668 = vst [vmem:[#allocation2 + $0xb0] sm:$0xf] %v664_v27  ;;  %v7293_v30 = vsel %vm1305_vm12, %v6507_v4, %v10501_v52  ;;  %v7305_v57 = vld [vmem:[%s10180_s8 + $0x6] ss:$8 sm:$0xf] }
 0x35c   :  { %842 = vst [vmem:[#allocation2 + $0x108] sm:$0xf0] %v834_v29  ;;  %v1372_v46 = vrot.slane %v1364_v3, 4  ;;  %v7310_v4 = vld [vmem:[%s10180_s8 + $0x20] ss:$8 sm:$0xf]  ;;  %v1321_v45 = vmul.f32 %v1313_v11, %v7293_v30 }
 0x35d   :  { %671 = vst [vmem:[#allocation2 + $0x48] sm:$0xf] %v667_v43  ;;  %v862_v3 = vperm.slane %v7305_v57, 2  ;;  %v863_v41 = vperm.slane %v7305_v57, 3  ;;  %v10505_v11 = vld [vmem:[#allocation73_spill] sm:$0xff]  ;;  %v935_v39 = vperm.slane %v7310_v4, 3 }
 0x35e   :  { %v7279_v54 = vpop.permute.xlu0 %846  ;;  %4179 = vrot.lane.b32.xlu1 %v10505_v11, %s5866_s30  ;;  %v932_v10 = vperm.slane %v7310_v4, 0 }
 0x35f   :  { %v673_v35 = vpop.permute.xlu1 %672  ;;  %v7282_v14 = vpop.permute.xlu2 %918 }
 0x360   :  { %v682_v27 = vsel %vm130_vm1, %v673_v35, %v7160_v25  ;;  %v683_v43 = vsel %vm130_vm1, %v7178_v60, %v673_v35 }
 0x361   :  { %v694_v34 = vmul.f32 %v686_v56, %v683_v43  ;;  %v695_v29 = vmul.f32 %v687_v0, %v682_v27  ;;  %v10502_v0 = vld [vmem:[#allocation27_spill] sm:$0xff]  ;;  %v10503_v27 = vld [vmem:[#allocation25_spill] sm:$0xff] }
 0x362   :  { %v1156_v43 = vsel %vm1152_vm13, %v10503_v27, %v10502_v0 }
 0x363   :  { %v7314_v35 = vld [vmem:[#allocation2 + $0x108] sm:$0xff]  ;;  %v702_v62 = vrot.slane %v694_v34, 4  ;;  %v703_v56 = vrot.slane %v695_v29, 4  ;;  %v1161_v34 = vperm.slane %v7287_v2, 1  ;;  %v688_v29 = vperm.slane %v5635_v44, 2 }
 0x364   :  { %1380 = vst [vmem:[#allocation2 + $0x108] sm:$0xf0] %v1372_v46  ;;  %v1155_v46 = vsel %vm1152_vm13, %v10502_v0, %v10506_v23  ;;  %v1168_v11 = vmul.f32 %v1160_v5, %v1156_v43 }
 0x365   :  { %1325 = vst [vmem:[#allocation2 + $0x108] sm:$0xf] %v1321_v45 }
 0x366   :  { %710 = vst [vmem:[#allocation2 + $0xb0] sm:$0xf0] %v702_v62  ;;  %v853_v40 = vpop.permute.xlu0 %852 }
 0x367   :  { %711 = vst [vmem:[#allocation2 + $0xd0] sm:$0xf0] %v703_v56  ;;  %v854_v45 = vsel %vm371_vm6, %v7242_v16, %v853_v40  ;;  %v857_v62 = vsel %vm371_vm6, %v853_v40, %v7279_v54  ;;  %v677_v44 = vpop.permute.xlu1 %676  ;;  %v7344_v0 = vpop.permute.xlu2 %924  ;;  %v1169_v56 = vmul.f32 %v1161_v34, %v1155_v46  ;;  %v10508_v34 = vld [vmem:[#allocation23_spill] sm:$0xff]  ;;  %v1162_v46 = vperm.slane %v7287_v2, 2 }
 0x368   :  { %v870_v42 = vmul.f32 %v862_v3, %v854_v45  ;;  %v871_v6 = vmul.f32 %v863_v41, %v857_v62  ;;  %v680_v21 = vsel %vm130_vm1, %v677_v44, %v7178_v60  ;;  %v681_v5 = vsel %vm130_vm1, %v7160_v25, %v677_v44  ;;  %v7359_v3 = vld [vmem:[%s10180_s8 + $0x7] ss:$8 sm:$0xf] }
 0x369   :  { %v696_v43 = vmul.f32 %v688_v29, %v681_v5  ;;  %v929_v40 = vsel %vm469_vm8, %v7344_v0, %v7282_v14  ;;  %v1117_v41 = vperm.slane %v7336_v47, 0  ;;  %v697_v60 = vmul.f32 %v689_v50, %v680_v21  ;;  %v10507_v25 = vld [vmem:[#allocation20_spill] sm:$0xff]  ;;  %v10510_v5 = vld [vmem:[#allocation21_spill] sm:$0xff] }
 0x36a   :  { %874 = vst [vmem:[#allocation2 + $0x58] sm:$0xf] %v870_v42  ;;  %v943_v45 = vmul.f32 %v935_v39, %v929_v40  ;;  %v1118_v62 = vperm.slane %v7336_v47, 1  ;;  %v7367_v29 = vsel %vm1110_vm14, %v10508_v34, %v10507_v25  ;;  %v7374_v1 = vsel %vm1110_vm14, %v10507_v25, %v10510_v5  ;;  %v10512_v42 = vld [vmem:[#allocation29_spill] sm:$0xff] }
 0x36b   :  { %10509 = vst [vmem:[#allocation84_spill] sm:$0xff] %v7367_v29  ;;  %v704_v44 = vrot.slane %v696_v43, 4  ;;  %v1176_v21 = vrot.slane %v1168_v11, 4  ;;  %v1154_v50 = vsel %vm1152_vm13, %v10506_v23, %v10512_v42  ;;  %v891_v39 = vperm.slane %v7359_v3, 1  ;;  %v10513_v40 = vld [vmem:[#allocation65_spill] sm:$0xff] }
 0x36c   :  { %875 = vst [vmem:[#allocation2 + $0xd8] sm:$0xf] %v871_v6  ;;  %4002 = vrot.lane.b32.xlu0 %v10513_v40, %s5867_s16  ;;  %v10514_v6 = vld [vmem:[#allocation68_spill] sm:$0xff]  ;;  %v1177_v43 = vrot.slane %v1169_v56, 4  ;;  %v728_v11 = vperm.slane %v7183_v12, 0  ;;  %v1125_v25 = vmul.f32 %v1117_v41, %v7367_v29  ;;  %v705_v23 = vrot.slane %v697_v60, 4 }
 0x36d   :  { %10511 = vst [vmem:[#allocation55_spill] sm:$0xff] %v7374_v1  ;;  %4000 = vrot.lane.b32.xlu1 %v10514_v6, %s5867_s16  ;;  %v7385_v49 = vld [vmem:[#allocation2 + $0xb0] sm:$0xff]  ;;  %v1126_v48 = vmul.f32 %v1118_v62, %v7374_v1  ;;  %v1119_v40 = vperm.slane %v7336_v47, 2  ;;  %v1170_v59 = vmul.f32 %v1162_v46, %v1154_v50  ;;  %v10515_v6 = vld [vmem:[#allocation22_spill] sm:$0xff]  ;;  %v1163_v60 = vperm.slane %v7287_v2, 3 }
 0x36e   :  { %947 = vst [vmem:[#allocation2 + $0x78] sm:$0xf] %v943_v45  ;;  %v7389_v20 = vld [vmem:[#allocation2 + $0xd0] sm:$0xff]  ;;  %v7391_v45 = vpop.permute.xlu0 %880  ;;  %v7403_v41 = vsel %vm1110_vm14, %v10510_v5, %v10515_v6 }
 0x36f   :  { %712 = vst [vmem:[#allocation2 + $0x10] sm:$0xf0] %v704_v44  ;;  %v885_v56 = vsel %vm414_vm7, %v7265_v8, %v7391_v45  ;;  %v715_v44 = vpop.permute.xlu1 %714 }
 0x370   :  { %1184 = vst [vmem:[#allocation2 + $0xb0] sm:$0xf0] %v1176_v21  ;;  %v899_v62 = vmul.f32 %v891_v39, %v885_v56  ;;  %v725_v46 = vsel %vm10329_vm3, %v7199_v33, %v715_v44  ;;  %v5814_v21 = vld [vmem:[%s10181_s9 + $0x20] ss:$8 sm:$0xf]  ;;  %v1127_v39 = vmul.f32 %v1119_v40, %v7403_v41 }
 0x371   :  { %1185 = vst [vmem:[#allocation2 + $0xd0] sm:$0xf0] %v1177_v43  ;;  %v1440_v50 = vperm.slane %v5814_v21, 3  ;;  %v1153_v43 = vsel %vm1152_vm13, %v10512_v42, %v10503_v27  ;;  %v736_v5 = vmul.f32 %v728_v11, %v725_v46  ;;  %v10518_v27 = vld [vmem:[#allocation17_spill] sm:$0xff]  ;;  %v1120_v11 = vperm.slane %v7336_v47, 3 }
 0x372   :  { %1129 = vst [vmem:[#allocation2 + $0xb0] sm:$0xf] %v1125_v25  ;;  %v907_v2 = vrot.slane %v899_v62, 4  ;;  %v1178_v25 = vrot.slane %v1170_v59, 4  ;;  %v1171_v33 = vmul.f32 %v1163_v60, %v1153_v43  ;;  %v729_v59 = vperm.slane %v7183_v12, 1 }
 0x373   :  { %1130 = vst [vmem:[#allocation2 + $0xd0] sm:$0xf] %v1126_v48  ;;  %v10517_v48 = vld [vmem:[#allocation71_spill] sm:$0xff]  ;;  %v1448_v42 = vmul.f32 %v1440_v50, %v10518_v27  ;;  %v730_v60 = vperm.slane %v7183_v12, 2  ;;  %v10522_v27 = vld [vmem:[#allocation26_spill] sm:$0xff] }
 0x374   :  { %713 = vst [vmem:[#allocation2 + $0x48] sm:$0xf0] %v705_v23  ;;  %3957 = vrot.lane.b32.xlu0 %v10516_v38, %s5863_s2  ;;  %v7431_v23 = vsel %vm1110_vm14, %v10515_v6, %v10508_v34  ;;  %v1179_v46 = vrot.slane %v1171_v33, 4 }
 0x375   :  { %740 = vst [vmem:[#allocation2 + $0x160] sm:$0xf] %v736_v5  ;;  %v967_v56 = vld [vmem:[#allocation2 + $0x78] sm:$0xf]  ;;  %4183 = vrot.lane.b32.xlu1 %v10517_v48, %s5866_s30  ;;  %v1128_v6 = vmul.f32 %v1120_v11, %v7431_v23 }
 0x376   :  { %v7417_v22 = vld [vmem:[#allocation2 + $0x10] sm:$0xff]  ;;  %915 = vst [vmem:[#allocation2 + $0x100] sm:$0xf0] %v907_v2  ;;  %v979_v63 = vpack.c.bf16 %v967_v56, %v967_v56  ;;  %v7434_v38 = vpop.permute.xlu0 %920  ;;  %v10520_v2 = vld [vmem:[#allocation45_spill] sm:$0xff] }
 0x377   :  { %1186 = vst [vmem:[#allocation2 + $0x10] sm:$0xf0] %v1178_v25  ;;  %v928_v47 = vsel %vm469_vm8, %v7282_v14, %v7434_v38  ;;  %v717_v62 = vpop.permute.xlu1 %716  ;;  %v7452_v5 = vld [vmem:[%s10181_s9 + $0x3] ss:$8 sm:$0xf] }
 0x378   :  { %10519 = vst [vmem:[#allocation33_spill] sm:$0xff] %v7431_v23  ;;  %v994_v40 = vsel %vm10333_vm9, %v979_v63, 0  ;;  %v940_v50 = vmul.f32 %v932_v10, %v928_v47  ;;  %v723_v34 = vsel %vm10329_vm3, %v717_v62, %v7166_v19  ;;  %v724_v63 = vsel %vm10329_vm3, %v715_v44, %v717_v62  ;;  %v7464_v56 = vld [vmem:[%s10181_s9 + $0x2] ss:$8 sm:$0xf] }
 0x379   :  { %1131 = vst [vmem:[#allocation2 + $0x10] sm:$0xf] %v1127_v39  ;;  %1040 = vmatpush.bf16.msrb.mxu3 %v994_v40  ;;  %v737_v43 = vmul.f32 %v729_v59, %v724_v63  ;;  %v738_v14 = vmul.f32 %v730_v60, %v723_v34  ;;  %v1260_v10 = vperm.slane %v7452_v5, 2  ;;  %v759_v19 = vperm.slane %v7215_v32, 1  ;;  %v10521_v39 = vld [vmem:[#allocation30_spill] sm:$0xff]  ;;  %v10524_v60 = vld [vmem:[#allocation13_spill] sm:$0xff] }
 0x37a   :  { %1452 = vst [vmem:[#allocation2 + $0x78] sm:$0xf] %v1448_v42  ;;  %v1437_v44 = vperm.slane %v5814_v21, 0  ;;  %v1252_v25 = vsel %vm1250_vm15, %v10521_v39, %v10520_v2  ;;  %vm1207_vm3 = vcmp.lt.s32.totalorder %v6050_v9, 32  ;;  %v1217_v48 = vperm.slane %v7464_v56, 2  ;;  %v10523_v42 = vld [vmem:[#allocation34_spill] sm:$0xff] }
 0x37b   :  { %v7447_v12 = vld [vmem:[#allocation2 + $0x48] sm:$0xff]  ;;  %944 = vst [vmem:[#allocation2 + $0x180] sm:$0xf] %v940_v50  ;;  %v7475_v11 = vsel %vm1207_vm3, %v10523_v42, %v10522_v27  ;;  %v1268_v59 = vmul.f32 %v1260_v10, %v1252_v25  ;;  %v1259_v62 = vperm.slane %v7452_v5, 1  ;;  %v10525_v34 = vld [vmem:[#allocation28_spill] sm:$0xff]  ;;  %v758_v10 = vperm.slane %v7215_v32, 0 }
 0x37c   :  { %1187 = vst [vmem:[#allocation2 + $0x48] sm:$0xf0] %v1179_v46  ;;  %v1445_v47 = vmul.f32 %v1437_v44, %v10524_v60  ;;  %v1253_v63 = vsel %vm1250_vm15, %v10525_v34, %v10521_v39  ;;  %v1216_v39 = vperm.slane %v7464_v56, 1 }
 0x37d   :  { %1132 = vst [vmem:[#allocation2 + $0x48] sm:$0xf] %v1128_v6  ;;  %v1267_v25 = vmul.f32 %v1259_v62, %v1253_v63  ;;  %v1258_v62 = vperm.slane %v7452_v5, 0 }
 0x37e   :  { %741 = vst [vmem:[#allocation2 + $0x128] sm:$0xf] %v737_v43  ;;  %v1276_v43 = vrot.slane %v1268_v59, 4 }
 0x37f   :  { %742 = vst [vmem:[#allocation2 + $0x40] sm:$0xf] %v738_v14  ;;  %v745_v33 = vpop.permute.xlu1 %744 }
 0x380   :  { %v754_v21 = vsel %vm228_vm4, %v745_v33, %v7173_v17  ;;  %v1225_v17 = vmul.f32 %v1217_v48, %v7475_v11 }
 0x381   :  { %v767_v40 = vmul.f32 %v759_v19, %v754_v21  ;;  %v761_v19 = vperm.slane %v7215_v32, 3 }
 0x382   :  { %v964_v50 = vld [vmem:[#allocation2 + $0x180] sm:$0xf] }
 0x383   :  { %v775_v46 = vrot.slane %v767_v40, 4  ;;  %v976_v6 = vpack.c.bf16 %v964_v50, %v964_v50  ;;  %1449 = vst [vmem:[#allocation2 + $0x180] sm:$0xf] %v1445_v47  ;;  %v10526_v40 = vld [vmem:[#allocation32_spill] sm:$0xff]  ;;  %v10528_v50 = vld [vmem:[#allocation31_spill] sm:$0xff] }
 0x384   :  { %v7499_v32 = vsel %vm1207_vm3, %v10526_v40, %v10523_v42  ;;  %v1254_v63 = vsel %vm1250_vm15, %v10528_v50, %v10525_v34  ;;  %v819_v42 = vperm.slane %v7191_v24, 1  ;;  %v1251_v34 = vsel %vm1250_vm15, %v10520_v2, %v10528_v50  ;;  %v10531_v50 = vld [vmem:[#allocation39_spill] sm:$0xff] }
 0x385   :  { %783 = vst [vmem:[#allocation2 + $0x128] sm:$0xf0] %v775_v46  ;;  %v985_v44 = vsel %vm10333_vm9, %v976_v6, 0  ;;  %v1275_v46 = vrot.slane %v1267_v25, 4 }
 0x386   :  { %v7484_v14 = vld [vmem:[#allocation2 + $0x40] sm:$0xff]  ;;  %1001 = vmatpush.bf16.msrb.mxu0 %v985_v44  ;;  %10527 = vst [vmem:[#allocation27_spill] sm:$0xff] %v7499_v32 }
 0x387   :  { %1229 = vst [vmem:[#allocation2 + $0x40] sm:$0xf] %v1225_v17  ;;  %v751_v21 = vpop.permute.xlu1 %750  ;;  %v1224_v17 = vmul.f32 %v1216_v39, %v7499_v32 }
 0x388   :  { %1284 = vst [vmem:[#allocation2 + $0x40] sm:$0xf0] %v1276_v43  ;;  %v752_v48 = vsel %vm228_vm4, %v7231_v13, %v751_v21  ;;  %v755_v59 = vsel %vm228_vm4, %v751_v21, %v745_v33  ;;  %v820_v43 = vperm.slane %v7191_v24, 2 }
 0x389   :  { %v766_v60 = vmul.f32 %v758_v10, %v755_v59  ;;  %v769_v47 = vmul.f32 %v761_v19, %v752_v48  ;;  %v1266_v10 = vmul.f32 %v1258_v62, %v1254_v63  ;;  %v1261_v19 = vperm.slane %v7452_v5, 3 }
 0x38a   :  { %v1215_v59 = vperm.slane %v7464_v56, 0  ;;  %v1218_v62 = vperm.slane %v7464_v56, 3  ;;  %v1351_v63 = vsel %vm1348_vm11, %v10500_v36, %v10531_v50  ;;  %v1350_v56 = vsel %vm1348_vm11, %v10531_v50, %v6527_v28  ;;  %v7553_v36 = vld [vmem:[%s10181_s9 + $0x7] ss:$8 sm:$0xf] }
 0x38b   :  { %v774_v13 = vrot.slane %v766_v60, 4  ;;  %v777_v6 = vrot.slane %v769_v47, 4  ;;  %v1274_v5 = vrot.slane %v1266_v10, 4  ;;  %v1269_v48 = vmul.f32 %v1261_v19, %v1251_v34 }
 0x38c   :  { %v7507_v33 = vld [vmem:[#allocation2 + $0x128] sm:$0xff]  ;;  %v1357_v60 = vperm.slane %v7220_v18, 1 }
 0x38d   :  { %1283 = vst [vmem:[#allocation2 + $0x128] sm:$0xf0] %v1275_v46  ;;  %v10529_v46 = vld [vmem:[#allocation40_spill] sm:$0xff] }
 0x38e   :  { %1228 = vst [vmem:[#allocation2 + $0x128] sm:$0xf] %v1224_v17  ;;  %v1277_v17 = vrot.slane %v1269_v48, 4 }
 0x38f   :  { %782 = vst [vmem:[#allocation2 + $0x160] sm:$0xf0] %v774_v13  ;;  %v809_v44 = vpop.permute.xlu1 %808  ;;  %v7540_v13 = vsel %vm1207_vm3, %v10522_v27, %v10529_v46 }
 0x390   :  { %785 = vst [vmem:[#allocation2 + $0x178] sm:$0xf0] %v777_v6  ;;  %v812_v25 = vsel %vm316_vm5, %v809_v44, %v7205_v51  ;;  %v813_v24 = vsel %vm316_vm5, %v7260_v26, %v809_v44  ;;  %v7529_v51 = vsel %vm1207_vm3, %v10529_v46, %v10526_v40  ;;  %v1358_v26 = vperm.slane %v7220_v18, 2 }
 0x391   :  { %v827_v21 = vmul.f32 %v819_v42, %v813_v24  ;;  %v828_v39 = vmul.f32 %v820_v43, %v812_v25  ;;  %10530 = vst [vmem:[#allocation25_spill] sm:$0xff] %v7529_v51  ;;  %v860_v40 = vperm.slane %v7305_v57, 0  ;;  %v861_v18 = vperm.slane %v7305_v57, 1 }
 0x392   :  { %10532 = vst [vmem:[#allocation70_spill] sm:$0xff] %v7540_v13  ;;  %v1223_v27 = vmul.f32 %v1215_v59, %v7529_v51  ;;  %v1365_v42 = vmul.f32 %v1357_v60, %v1351_v63  ;;  %v1226_v10 = vmul.f32 %v1218_v62, %v7540_v13  ;;  %v1366_v19 = vmul.f32 %v1358_v26, %v1350_v56 }
 0x393   :  { %v835_v2 = vrot.slane %v827_v21, 4  ;;  %v836_v47 = vrot.slane %v828_v39, 4  ;;  %v1314_v44 = vperm.slane %v7236_v61, 1  ;;  %v1407_v21 = vperm.slane %v7553_v36, 1 }
 0x394   :  { %v1315_v39 = vperm.slane %v7236_v61, 2  ;;  %v1373_v59 = vrot.slane %v1365_v42, 4  ;;  %v1374_v61 = vrot.slane %v1366_v19, 4  ;;  %v893_v19 = vperm.slane %v7359_v3, 3 }
 0x395   :  { %843 = vst [vmem:[#allocation2 + $0x110] sm:$0xf0] %v835_v2 }
 0x396   :  { %v7548_v6 = vld [vmem:[#allocation2 + $0x160] sm:$0xff]  ;;  %844 = vst [vmem:[#allocation2 + $0x90] sm:$0xf0] %v836_v47  ;;  %v890_v47 = vperm.slane %v7359_v3, 0 }
 0x397   :  { %v7556_v43 = vld [vmem:[#allocation2 + $0x178] sm:$0xff]  ;;  %1282 = vst [vmem:[#allocation2 + $0x160] sm:$0xf0] %v1274_v5  ;;  %v849_v28 = vpop.permute.xlu1 %848  ;;  %v10533_v5 = vld [vmem:[#allocation50_spill] sm:$0xff] }
 0x398   :  { %1285 = vst [vmem:[#allocation2 + $0x178] sm:$0xf0] %v1277_v17  ;;  %v855_v57 = vsel %vm371_vm6, %v849_v28, %v7242_v16  ;;  %v856_v34 = vsel %vm371_vm6, %v7279_v54, %v849_v28  ;;  %v7572_v48 = vsel %vm1305_vm12, %v10501_v52, %v10533_v5  ;;  %v7577_v16 = vld [vmem:[%s10181_s9 + $0x6] ss:$8 sm:$0xf]  ;;  %v7583_v54 = vsel %vm1305_vm12, %v10533_v5, %v6499_v58 }
 0x399   :  { %1227 = vst [vmem:[#allocation2 + $0x160] sm:$0xf] %v1223_v27  ;;  %v868_v25 = vmul.f32 %v860_v40, %v856_v34  ;;  %v869_v24 = vmul.f32 %v861_v18, %v855_v57  ;;  %v1322_v52 = vmul.f32 %v1314_v44, %v7572_v48  ;;  %v1388_v62 = vperm.slane %v7577_v16, 1  ;;  %v10536_v58 = vld [vmem:[#allocation8_spill] sm:$0xff]  ;;  %v10538_v34 = vld [vmem:[#allocation14_spill] sm:$0xff] }
 0x39a   :  { %10534 = vst [vmem:[#allocation73_spill] sm:$0xff] %v7572_v48  ;;  %v1323_v46 = vmul.f32 %v1315_v39, %v7583_v54  ;;  %v1415_v26 = vmul.f32 %v1407_v21, %v10536_v58  ;;  %v10537_v40 = vld [vmem:[#allocation12_spill] sm:$0xff]  ;;  %v1406_v28 = vperm.slane %v7553_v36, 0  ;;  %v1408_v5 = vperm.slane %v7553_v36, 2 }
 0x39b   :  { %1230 = vst [vmem:[#allocation2 + $0x178] sm:$0xf] %v1226_v10  ;;  %v1396_v18 = vmul.f32 %v1388_v62, %v10537_v40  ;;  %v892_v10 = vperm.slane %v7359_v3, 2  ;;  %v933_v58 = vperm.slane %v7310_v4, 1 }
 0x39c   :  { %10535 = vst [vmem:[#allocation24_spill] sm:$0xff] %v7583_v54  ;;  %v7585_v60 = vld [vmem:[#allocation2 + $0x110] sm:$0xff]  ;;  %v1423_v17 = vrot.slane %v1415_v26, 4  ;;  %v1414_v44 = vmul.f32 %v1406_v28, %v10538_v34  ;;  %v1409_v26 = vperm.slane %v7553_v36, 3 }
 0x39d   :  { %872 = vst [vmem:[#allocation2 + $0x148] sm:$0xf] %v868_v25  ;;  %v7588_v2 = vld [vmem:[#allocation2 + $0x90] sm:$0xff] }
 0x39e   :  { %873 = vst [vmem:[#allocation2 + $0x100] sm:$0xf] %v869_v24  ;;  %v1387_v24 = vperm.slane %v7577_v16, 0 }
 0x39f   :  { %1381 = vst [vmem:[#allocation2 + $0x110] sm:$0xf0] %v1373_v59  ;;  %v877_v50 = vpop.permute.xlu1 %876 }
 0x3a0   :  { %1382 = vst [vmem:[#allocation2 + $0x90] sm:$0xf0] %v1374_v61  ;;  %v886_v63 = vsel %vm414_vm7, %v877_v50, %v7265_v8  ;;  %v1422_v61 = vrot.slane %v1414_v44, 4  ;;  %v10542_v44 = vld [vmem:[#allocation11_spill] sm:$0xff] }
 0x3a1   :  { %1326 = vst [vmem:[#allocation2 + $0x110] sm:$0xf] %v1322_v52  ;;  %v898_v56 = vmul.f32 %v890_v47, %v886_v63  ;;  %v2154_v52 = vld [vmem:[#allocation2 + $0x98] sm:$0xf]  ;;  %v10539_v47 = vld [vmem:[#allocation10_spill] sm:$0xff]  ;;  %v10540_v63 = vld [vmem:[#allocation16_spill] sm:$0xff] }
 0x3a2   :  { %1327 = vst [vmem:[#allocation2 + $0x90] sm:$0xf] %v1323_v46  ;;  %v1395_v62 = vmul.f32 %v1387_v24, %v10539_v47  ;;  %v2182_v36 = vpack.c.bf16 %v2154_v52, %v2154_v52  ;;  %v2150_v24 = vld [vmem:[#allocation2 + $0xf8] sm:$0xff]  ;;  %v2138_v52 = vld [vmem:[#allocation2 + $0x50] sm:$0xff] }
 0x3a3   :  { %v906_v42 = vrot.slane %v898_v56, 4  ;;  %v1416_v56 = vmul.f32 %v1408_v5, %v10540_v63 }
 0x3a5   :  { %v7598_v27 = vld [vmem:[#allocation2 + $0x100] sm:$0xff]  ;;  %914 = vst [vmem:[#allocation2 + $0x148] sm:$0xf0] %v906_v42  ;;  %v1424_v34 = vrot.slane %v1416_v56, 4  ;;  %v10545_v56 = vld [vmem:[#allocation19_spill] sm:$0xff] }
 0x3a6   :  { %1400 = vst [vmem:[#allocation2 + $0x100] sm:$0xf] %v1396_v18  ;;  %v1389_v18 = vperm.slane %v7577_v16, 2 }
 0x3a7   :  { %1431 = vst [vmem:[#allocation2 + $0x100] sm:$0xf0] %v1423_v17  ;;  %v883_v57 = vpop.permute.xlu1 %882 }
 0x3a8   :  { %v884_v8 = vsel %vm414_vm7, %v7391_v45, %v883_v57  ;;  %v887_v25 = vsel %vm414_vm7, %v883_v57, %v877_v50  ;;  %v934_v45 = vperm.slane %v7310_v4, 2  ;;  %v1390_v57 = vperm.slane %v7577_v16, 3 }
 0x3a9   :  { %v900_v21 = vmul.f32 %v892_v10, %v884_v8  ;;  %v901_v39 = vmul.f32 %v893_v19, %v887_v25  ;;  %v968_v19 = vpack.c.bf16 %v7548_v6, %v7385_v49  ;;  %v1397_v8 = vmul.f32 %v1389_v18, %v10542_v44  ;;  %v2146_v25 = vld [vmem:[#allocation2 + $0x198] sm:$0xff]  ;;  %v2145_v44 = vld [vmem:[#allocation2 + $0x120] sm:$0xff] }
 0x3aa   :  { %v7633_v49 = vld [vmem:[%s10175_s3] sm:$0x3]  ;;  %v2178_v5 = vpack.c.bf16 %v2150_v24, %v2146_v25 }
 0x3ab   :  { %v908_v59 = vrot.slane %v900_v21, 4  ;;  %v909_v3 = vrot.slane %v901_v39, 4  ;;  %v10543_v6 = vld [vmem:[#allocation9_spill] sm:$0xff] }
 0x3ac   :  { %v960_v46 = vld [vmem:[#allocation2 + $0x148] sm:$0xff]  ;;  %v1398_v16 = vmul.f32 %v1390_v57, %v10543_v6  ;;  %v2141_v24 = vld [vmem:[#allocation2 + $0x38] sm:$0xff]  ;;  %v2137_v6 = vld [vmem:[#allocation2 + $0x140] sm:$0xff] }
 0x3ad   :  { %916 = vst [vmem:[#allocation2 + $0x58] sm:$0xf0] %v908_v59  ;;  %v972_v50 = vpack.c.bf16 %v960_v46, %v7314_v35  ;;  %v10541_v35 = vld [vmem:[#allocation15_spill] sm:$0xff]  ;;  %v2157_v59 = vld [vmem:[#allocation2 + $0x70] sm:$0xf] }
 0x3ae   :  { %1430 = vst [vmem:[#allocation2 + $0x148] sm:$0xf0] %v1422_v61  ;;  %v1417_v10 = vmul.f32 %v1409_v26, %v10541_v35  ;;  %v2185_v47 = vpack.c.bf16 %v2157_v59, %v2157_v59  ;;  %v2155_v35 = vld [vmem:[#allocation2 + $0x150] sm:$0xf] }
 0x3af   :  { %1399 = vst [vmem:[#allocation2 + $0x148] sm:$0xf] %v1395_v62  ;;  %v923_v40 = vpop.permute.xlu1 %922  ;;  %1002 = vmatpush.bf16.msrb.mxu0 %v972_v50  ;;  %v971_v50 = vpack.c.bf16 %v7556_v43, %v7447_v12  ;;  %v973_v12 = vpack.c.bf16 %v7598_v27, %v7585_v60  ;;  %v2122_v43 = vld [vmem:[#allocation2 + $0x180] sm:$0xff]  ;;  %v969_v60 = vpack.c.bf16 %v7507_v33, %v7389_v20  ;;  %v2152_v20 = vld [vmem:[#allocation2 + $0x8] sm:$0xff] }
 0x3b0   :  { %917 = vst [vmem:[#allocation2 + $0xd8] sm:$0xf0] %v909_v3  ;;  %v926_v17 = vsel %vm469_vm8, %v923_v40, %v7344_v0  ;;  %v927_v4 = vsel %vm469_vm8, %v7434_v38, %v923_v40  ;;  %v2192_v38 = vsel %vm10333_vm9, %v2182_v36, 0  ;;  %v1425_v21 = vrot.slane %v1417_v10, 4  ;;  %v2142_v3 = vld [vmem:[#allocation2 + $0x60] sm:$0xff]  ;;  %v2134_v40 = vld [vmem:[#allocation2 + $0xb8] sm:$0xff] }
 0x3b1   :  { %v941_v42 = vmul.f32 %v933_v58, %v927_v4  ;;  %v942_v28 = vmul.f32 %v934_v45, %v926_v17  ;;  %v2174_v46 = vpack.c.bf16 %v2142_v3, %v2138_v52  ;;  %v10544_v45 = vld [vmem:[#allocation18_spill] sm:$0xff]  ;;  %v2201_v18 = vsel %vm10333_vm9, %v2185_v47, 0  ;;  %v2130_v4 = vld [vmem:[#allocation2 + $0xf0] sm:$0xff]  ;;  %v2149_v36 = vld [vmem:[#allocation2 + $0xc8] sm:$0xff] }
 0x3b2   :  { %v2156_v10 = vld [vmem:[#allocation2 + $0xe8] sm:$0xf]  ;;  %v2110_v52 = vld [vmem:[#allocation2 + $0x160] sm:$0xff] }
 0x3b3   :  { %945 = vst [vmem:[#allocation2 + $0x130] sm:$0xf] %v941_v42  ;;  %1003 = vmatpush.bf16.msrb.mxu0 %v968_v19  ;;  %v2153_v42 = vld [vmem:[#allocation2 + $0x80] sm:$0xff]  ;;  %v2184_v25 = vpack.c.bf16 %v2156_v10, %v2156_v10  ;;  %v2151_v3 = vld [vmem:[#allocation2 + $0x28] sm:$0xff] }
 0x3b4   :  { %v962_v0 = vld [vmem:[#allocation2 + $0x58] sm:$0xff]  ;;  %946 = vst [vmem:[#allocation2 + $0x138] sm:$0xf] %v942_v28  ;;  %v2170_v28 = vpack.c.bf16 %v2134_v40, %v2130_v4  ;;  %v2181_v19 = vpack.c.bf16 %v2153_v42, %v2149_v36  ;;  %v2133_v33 = vld [vmem:[#allocation2 + $0x88] sm:$0xff]  ;;  %v2140_v40 = vld [vmem:[#allocation2 + $0x190] sm:$0xff] }
 0x3b5   :  { %1432 = vst [vmem:[#allocation2 + $0x58] sm:$0xf0] %v1424_v34  ;;  %v974_v57 = vpack.c.bf16 %v962_v0, %v7588_v2  ;;  %v2126_v34 = vld [vmem:[#allocation2 + $0xa0] sm:$0xff]  ;;  %v970_v2 = vpack.c.bf16 %v7484_v14, %v7417_v22  ;;  %v2114_v0 = vld [vmem:[#allocation2 + $0x108] sm:$0xff]  ;;  %v2173_v22 = vpack.c.bf16 %v2137_v6, %v2133_v33  ;;  %v2117_v36 = vld [vmem:[#allocation2 + $0x118] sm:$0xff] }
 0x3b6   :  { %1401 = vst [vmem:[#allocation2 + $0x58] sm:$0xf] %v1397_v8  ;;  %5643 = vmatmul.msk.bf16.vlgmr.msrb.gmra.mxu0 %vm10330_vm10, %v7633_v49  ;;  %v2166_v8 = vpack.c.bf16 %v2126_v34, %v2122_v43  ;;  %v2118_v27 = vld [vmem:[#allocation2 + $0x148] sm:$0xff]  ;;  %v2136_v4 = vld [vmem:[#allocation2 + $0xc0] sm:$0xff]  ;;  %v2186_v42 = vld [vmem:[%s10176_s4] sm:$0x3] }
 0x3b7   :  { %2204 = vmatpush.bf16.msra.mxu0 %v2192_v38  ;;  %v963_v39 = vld [vmem:[#allocation2 + $0xd8] sm:$0xff]  ;;  %v2183_v38 = vpack.c.bf16 %v2155_v35, %v2155_v35  ;;  %v2162_v59 = vpack.c.bf16 %v2118_v27, %v2114_v0  ;;  %v2132_v43 = vld [vmem:[#allocation2 + $0xa8] sm:$0xff]  ;;  %v2119_v27 = vld [vmem:[#allocation2 + $0x100] sm:$0xff] }
 0x3b8   :  { %1433 = vst [vmem:[#allocation2 + $0xd8] sm:$0xf0] %v1425_v21  ;;  %v975_v61 = vpack.c.bf16 %v963_v39, %v7255_v37  ;;  %v2177_v21 = vpack.c.bf16 %v2145_v44, %v2141_v24  ;;  %v2172_v10 = vpack.c.bf16 %v2136_v4, %v2132_v43  ;;  %v2109_v44 = vld [vmem:[#allocation2 + $0x48] sm:$0xff]  ;;  %v2116_v0 = vld [vmem:[#allocation2 + $0x90] sm:$0xff] }
 0x3b9   :  { %1402 = vst [vmem:[#allocation2 + $0xd8] sm:$0xf] %v1398_v16  ;;  %v2148_v16 = vld [vmem:[#allocation2 + $0x30] sm:$0xff]  ;;  %v2195_v39 = vsel %vm10333_vm9, %v2183_v38, 0  ;;  %v2127_v38 = vld [vmem:[#allocation2] sm:$0xff] }
 0x3ba   :  { %1041 = vmatpush.bf16.msrb.mxu3 %v975_v61  ;;  %v965_v62 = vld [vmem:[#allocation2 + $0x130] sm:$0xf]  ;;  %v2147_v61 = vld [vmem:[#allocation2 + $0x68] sm:$0xff]  ;;  %v2180_v47 = vpack.c.bf16 %v2152_v20, %v2148_v16 }
 0x3bb   :  { %2205 = vmatpush.bf16.msra.mxu0 %v2178_v5  ;;  %v977_v58 = vpack.c.bf16 %v965_v62, %v965_v62  ;;  %1450 = vst [vmem:[#allocation2 + $0x130] sm:$0xf] %v10544_v45  ;;  %v966_v26 = vld [vmem:[#allocation2 + $0x138] sm:$0xf]  ;;  %v2198_v5 = vsel %vm10333_vm9, %v2184_v25, 0  ;;  %v2179_v14 = vpack.c.bf16 %v2151_v3, %v2147_v61  ;;  %v2106_v62 = vld [vmem:[#allocation2 + $0xb0] sm:$0xff] }
 0x3bc   :  { %v978_v63 = vpack.c.bf16 %v966_v26, %v966_v26  ;;  %1451 = vst [vmem:[#allocation2 + $0x138] sm:$0xf] %v10545_v56  ;;  %v2143_v45 = vld [vmem:[#allocation2 + $0x18] sm:$0xff]  ;;  %v2139_v56 = vld [vmem:[#allocation2 + $0x168] sm:$0xff]  ;;  %v2128_v25 = vld [vmem:[#allocation2 + $0x20] sm:$0xff] }
 0x3bd   :  { %v988_v37 = vsel %vm10333_vm9, %v977_v58, 0  ;;  %v2158_v58 = vpack.c.bf16 %v2110_v52, %v2106_v62  ;;  %v2144_v26 = vld [vmem:[#allocation2 + $0x158] sm:$0xff]  ;;  %v2108_v61 = vld [vmem:[#allocation2 + $0x10] sm:$0xff] }
 0x3be   :  { %1042 = vmatpush.bf16.msrb.mxu3 %v971_v50  ;;  %1014 = vmatpush.bf16.msrb.mxu1 %v988_v37  ;;  %v991_v17 = vsel %vm10333_vm9, %v978_v63, 0  ;;  %v2129_v50 = vld [vmem:[#allocation2 + $0xe0] sm:$0xff]  ;;  %v2175_v37 = vpack.c.bf16 %v2143_v45, %v2139_v56 }
 0x3bf   :  { %2206 = vmatpush.bf16.msra.mxu0 %v2174_v46  ;;  %1027 = vmatpush.bf16.msrb.mxu2 %v991_v17  ;;  %v2125_v46 = vld [vmem:[#allocation2 + $0x78] sm:$0xff] }
 0x3c0   :  { %v2169_v63 = vpack.c.bf16 %v2129_v50, %v2125_v46  ;;  %v2121_v17 = vld [vmem:[#allocation2 + $0xd8] sm:$0xff] }
 0x3c1   :  { %5646 = vmatmul.msk.bf16.vlgmr.msrb.gmra.mxu3 %vm10330_vm10, %v7633_v49 }
 0x3c2   :  { %2243 = vmatpush.bf16.msra.mxu3 %v2201_v18  ;;  %1015 = vmatpush.bf16.msrb.mxu1 %v973_v12  ;;  %v2176_v18 = vpack.c.bf16 %v2144_v26, %v2140_v40  ;;  %v2131_v12 = vld [vmem:[#allocation2 + $0x188] sm:$0xff] }
 0x3c3   :  { %2207 = vmatpush.bf16.msra.mxu0 %v2170_v28  ;;  %1028 = vmatpush.bf16.msrb.mxu2 %v974_v57  ;;  %v2165_v28 = vpack.c.bf16 %v2121_v17, %v2117_v36  ;;  %v2123_v57 = vld [vmem:[#allocation2 + $0x130] sm:$0xff]  ;;  %v2124_v34 = vld [vmem:[#allocation2 + $0x138] sm:$0xff] }
 0x3c4   :  { %v2167_v24 = vpack.c.bf16 %v2127_v38, %v2123_v57 }
 0x3c6   :  { %2244 = vmatpush.bf16.msra.mxu3 %v2181_v19  ;;  %1016 = vmatpush.bf16.msrb.mxu1 %v969_v60  ;;  %v2113_v19 = vld [vmem:[#allocation2 + $0x178] sm:$0xff]  ;;  %v2168_v60 = vpack.c.bf16 %v2128_v25, %v2124_v34 }
 0x3c7   :  { %2208 = vmatpush.bf16.msra.mxu0 %v2166_v8  ;;  %1029 = vmatpush.bf16.msrb.mxu2 %v970_v2  ;;  %v2161_v8 = vpack.c.bf16 %v2113_v19, %v2109_v44  ;;  %v2115_v2 = vld [vmem:[#allocation2 + $0x110] sm:$0xff] }
 0x3c8   :  { %v2163_v6 = vpack.c.bf16 %v2119_v27, %v2115_v2 }
 0x3c9   :  { %5644 = vmatmul.msk.bf16.vlgmr.msrb.gmra.mxu1 %vm10330_vm10, %v7633_v49 }
 0x3ca   :  { %2245 = vmatpush.bf16.msra.mxu3 %v2177_v21  ;;  %2217 = vmatpush.bf16.msra.mxu1 %v2195_v39  ;;  %v2120_v21 = vld [vmem:[#allocation2 + $0x58] sm:$0xff]  ;;  %v2111_v39 = vld [vmem:[#allocation2 + $0x128] sm:$0xff] }
 0x3cb   :  { %2230 = vmatpush.bf16.msra.mxu2 %v2198_v5  ;;  %2209 = vmatpush.bf16.msra.mxu0 %v2162_v59  ;;  %v2164_v16 = vpack.c.bf16 %v2120_v21, %v2116_v0  ;;  %v2112_v5 = vld [vmem:[#allocation2 + $0x40] sm:$0xff]  ;;  %v2107_v59 = vld [vmem:[#allocation2 + $0xd0] sm:$0xff] }
 0x3cc   :  { %5645 = vmatmul.msk.bf16.vlgmr.msrb.gmra.mxu2 %vm10330_vm10, %v7633_v49  ;;  %v2135_v49 = vld [vmem:[#allocation2 + $0x170] sm:$0xff]  ;;  %vm10332_vm10 = vcmask 818176   ;;  %v2159_v3 = vpack.c.bf16 %v2111_v39, %v2107_v59  ;;  %v2160_v20 = vpack.c.bf16 %v2112_v5, %v2108_v61 }
 0x3cd   :  { %v2171_v35 = vpack.c.bf16 %v2135_v49, %v2131_v12 }
 0x3ce   :  { %2246 = vmatpush.bf16.msra.mxu3 %v2173_v22  ;;  %2218 = vmatpush.bf16.msra.mxu1 %v2179_v14 }
 0x3cf   :  { %2231 = vmatpush.bf16.msra.mxu2 %v2180_v47  ;;  %2210 = vmatpush.bf16.msra.mxu0 %v2158_v58 }
 0x3d2   :  { %2247 = vmatpush.bf16.msra.mxu3 %v2169_v63  ;;  %2219 = vmatpush.bf16.msra.mxu1 %v2175_v37 }
 0x3d3   :  { %2232 = vmatpush.bf16.msra.mxu2 %v2176_v18  ;;  %5671 = vmatmul.msk.bf16.vlgmr.msra.gmra.mxu0 %vm10332_vm10, %v2186_v42 }
 0x3d6   :  { %2248 = vmatpush.bf16.msra.mxu3 %v2165_v28  ;;  %2220 = vmatpush.bf16.msra.mxu1 %v2171_v35 }
 0x3d7   :  { %2233 = vmatpush.bf16.msra.mxu2 %v2172_v10 }
 0x3da   :  { %2249 = vmatpush.bf16.msra.mxu3 %v2161_v8  ;;  %2221 = vmatpush.bf16.msra.mxu1 %v2167_v24  ;;  %v7676_v8 = vpop.permute.xlu0 %4318 }
 0x3db   :  { %2234 = vmatpush.bf16.msra.mxu2 %v2168_v60  ;;  %10546 = vst [vmem:[#allocation20_spill] sm:$0xff] %v7676_v8 }
 0x3dd   :  { %5674 = vmatmul.msk.bf16.vlgmr.msra.gmra.mxu3 %vm10332_vm10, %v2186_v42 }
 0x3de   :  { %2222 = vmatpush.bf16.msra.mxu1 %v2163_v6 }
 0x3df   :  { %2235 = vmatpush.bf16.msra.mxu2 %v2164_v16 }
 0x3e2   :  { %2223 = vmatpush.bf16.msra.mxu1 %v2159_v3  ;;  %v7678_v38 = vpop.permute.xlu0 %4124 }
 0x3e3   :  { %2236 = vmatpush.bf16.msra.mxu2 %v2160_v20  ;;  %10547 = vst [vmem:[#allocation23_spill] sm:$0xff] %v7678_v38 }
 0x3e5   :  { %5672 = vmatmul.msk.bf16.vlgmr.msra.gmra.mxu1 %vm10332_vm10, %v2186_v42 }
 0x3e6   :  { %5673 = vmatmul.msk.bf16.vlgmr.msra.gmra.mxu2 %vm10332_vm10, %v2186_v42 }
 0x3ea   :  { %v7680_v25 = vpop.permute.xlu0 %4359 }
 0x3eb   :  { %10548 = vst [vmem:[#allocation21_spill] sm:$0xff] %v7680_v25 }
 0x3f2   :  { %v7682_v24 = vpop.permute.xlu0 %4181 }
 0x3f3   :  { %10549 = vst [vmem:[#allocation29_spill] sm:$0xff] %v7682_v24 }
 0x3fa   :  { %v7684_v60 = vpop.permute.xlu0 %4002 }
 0x3fb   :  { %10550 = vst [vmem:[#allocation65_spill] sm:$0xff] %v7684_v60 }
 0x402   :  { %v7686_v27 = vpop.permute.xlu0 %3957 }
 0x403   :  { %10551 = vst [vmem:[#allocation68_spill] sm:$0xff] %v7686_v27 }
 0x433   :  { %v1005_v33 = vpop.f32.mrf.mxu0 }
 0x434   :  { %v1048_v47 = vsel %vm10331_vm0, %v1005_v33, 0.0 }
 0x43b   :  { %v1007_v52 = vpop.f32.mrf.mxu0 }
 0x444   :  { %v1044_v22 = vpop.f32.mrf.mxu3 }
 0x445   :  { %v1053_v50 = vsel %vm10331_vm0, %v1044_v22, 0.0 }
 0x446   :  { %v1018_v14 = vpop.f32.mrf.mxu1 }
 0x447   :  { %v1049_v62 = vsel %vm10331_vm0, %v1018_v14, 0.0 }
 0x448   :  { %v1050_v46 = vadd.f32 %v1049_v62, %v1048_v47 }
 0x44c   :  { %v1046_v58 = vpop.f32.mrf.mxu3 }
 0x44e   :  { %v1020_v63 = vpop.f32.mrf.mxu1 }
 0x44f   :  { %v1031_v45 = vpop.f32.mrf.mxu2 }
 0x450   :  { %v1051_v26 = vsel %vm10331_vm0, %v1031_v45, 0.0  ;;  %v2212_v56 = vpop.f32.mrf.mxu0 }
 0x451   :  { %v1052_v40 = vadd.f32 %v1051_v26, %v1050_v46  ;;  %v2255_v36 = vsel %vm10331_vm0, %v2212_v56, 0.0 }
 0x453   :  { %v1054_v37 = vadd.f32 %v1053_v50, %v1052_v40 }
 0x455   :  { %1055 = vadd.xlane.f32.xlu0 %v1054_v37 }
 0x457   :  { %v1033_v18 = vpop.f32.mrf.mxu2 }
 0x458   :  { %v2214_v17 = vpop.f32.mrf.mxu0 }
 0x460   :  { %v2251_v49 = vpop.f32.mrf.mxu3 }
 0x461   :  { %v2260_v35 = vsel %vm10331_vm0, %v2251_v49, 0.0 }
 0x462   :  { %v2225_v4 = vpop.f32.mrf.mxu1 }
 0x463   :  { %v2256_v42 = vsel %vm10331_vm0, %v2225_v4, 0.0 }
 0x464   :  { %v2257_v28 = vadd.f32 %v2256_v42, %v2255_v36 }
 0x468   :  { %v2253_v12 = vpop.f32.mrf.mxu3 }
 0x469   :  { %v2238_v43 = vpop.f32.mrf.mxu2 }
 0x46a   :  { %v2258_v10 = vsel %vm10331_vm0, %v2238_v43, 0.0  ;;  %v2227_v57 = vpop.f32.mrf.mxu1 }
 0x46b   :  { %v2259_v19 = vadd.f32 %v2258_v10, %v2257_v28 }
 0x46d   :  { %v2261_v34 = vadd.f32 %v2260_v35, %v2259_v19 }
 0x46f   :  { %2262 = vadd.xlane.f32.xlu0 %v2261_v34 }
 0x471   :  { %v2240_v44 = vpop.f32.mrf.mxu2 }
 0x4c8   :  { %v1056_v21 = vpop.xlane.xlu0 %1055 }
 0x4c9   :  { %v1057_v2 = vmul.f32 0.001953125, %v1056_v21 }
 0x4cb   :  { %v7688_v0 = vsub.f32 %v1005_v33, %v1057_v2  ;;  %v7690_v6 = vsub.f32 %v1018_v14, %v1057_v2  ;;  %v7692_v16 = vsub.f32 %v1031_v45, %v1057_v2  ;;  %v7694_v39 = vsub.f32 %v1044_v22, %v1057_v2 }
 0x4cd   :  { %10552 = vst [vmem:[#allocation22_spill] sm:$0xff] %v7688_v0  ;;  %v1062_v5 = vmul.f32 %v7688_v0, %v7688_v0  ;;  %v1063_v59 = vmul.f32 %v7690_v6, %v7690_v6  ;;  %v1064_v61 = vmul.f32 %v7692_v16, %v7692_v16  ;;  %v1065_v3 = vmul.f32 %v7694_v39, %v7694_v39  ;;  %v7921_v0 = vld [vmem:[%s10182_s10] ss:$8 sm:$0xf] }
 0x4ce   :  { %10553 = vst [vmem:[#allocation64_spill] sm:$0xff] %v7690_v6 }
 0x4cf   :  { %10554 = vst [vmem:[#allocation71_spill] sm:$0xff] %v7692_v16  ;;  %v1066_v20 = vsel %vm10331_vm0, %v1062_v5, 0.0  ;;  %v1067_v33 = vsel %vm10331_vm0, %v1063_v59, 0.0  ;;  %v1069_v22 = vsel %vm10331_vm0, %v1064_v61, 0.0  ;;  %v1071_v47 = vsel %vm10331_vm0, %v1065_v3, 0.0 }
 0x4d0   :  { %10555 = vst [vmem:[#allocation17_spill] sm:$0xff] %v7694_v39  ;;  %v1068_v52 = vadd.f32 %v1067_v33, %v1066_v20 }
 0x4d2   :  { %v1070_v14 = vadd.f32 %v1069_v22, %v1068_v52  ;;  %v5686_v52 = vld [vmem:[%s10181_s9 + $0x24] ss:$8 sm:$0xf] }
 0x4d4   :  { %v1072_v62 = vadd.f32 %v1071_v47, %v1070_v14  ;;  %v2738_v47 = vperm.slane %v5686_v52, 2 }
 0x4d6   :  { %1073 = vadd.xlane.f32.xlu1 %v1072_v62  ;;  %v2739_v62 = vperm.slane %v5686_v52, 3 }
 0x4e2   :  { %v2263_v46 = vpop.xlane.xlu0 %2262 }
 0x4e3   :  { %v2264_v58 = vmul.f32 0.001953125, %v2263_v46  ;;  %v2737_v46 = vperm.slane %v5686_v52, 1 }
 0x4e5   :  { %v2265_v45 = vsub.f32 %v2212_v56, %v2264_v58  ;;  %v2266_v26 = vsub.f32 %v2225_v4, %v2264_v58  ;;  %v2267_v50 = vsub.f32 %v2238_v43, %v2264_v58  ;;  %v2268_v63 = vsub.f32 %v2251_v49, %v2264_v58  ;;  %v7712_v56 = vpop.permute.xlu2 %4363 }
 0x4e6   :  { %10556 = vst [vmem:[#allocation45_spill] sm:$0xff] %v7712_v56 }
 0x4e7   :  { %v2269_v40 = vmul.f32 %v2265_v45, %v2265_v45  ;;  %v2270_v37 = vmul.f32 %v2266_v26, %v2266_v26  ;;  %v2271_v18 = vmul.f32 %v2267_v50, %v2267_v50  ;;  %v2272_v17 = vmul.f32 %v2268_v63, %v2268_v63 }
 0x4e9   :  { %v2273_v36 = vsel %vm10331_vm0, %v2269_v40, 0.0  ;;  %v2274_v42 = vsel %vm10331_vm0, %v2270_v37, 0.0  ;;  %v2276_v12 = vsel %vm10331_vm0, %v2271_v18, 0.0  ;;  %v2278_v10 = vsel %vm10331_vm0, %v2272_v17, 0.0 }
 0x4ea   :  { %v2275_v28 = vadd.f32 %v2274_v42, %v2273_v36  ;;  %v2736_v17 = vperm.slane %v5686_v52, 0 }
 0x4ec   :  { %v2277_v35 = vadd.f32 %v2276_v12, %v2275_v28 }
 0x4ed   :  { %v7714_v4 = vpop.permute.xlu2 %4320 }
 0x4ee   :  { %v2279_v19 = vadd.f32 %v2278_v10, %v2277_v35  ;;  %10557 = vst [vmem:[#allocation30_spill] sm:$0xff] %v7714_v4  ;;  %v7783_v35 = vpop.permute.xlu1 %4483 }
 0x4ef   :  { %10564 = vst [vmem:[#allocation13_spill] sm:$0xff] %v7783_v35  ;;  %v3379_v35 = vperm.slane %v7921_v0, 2 }
 0x4f0   :  { %2280 = vadd.xlane.f32.xlu2 %v2279_v19 }
 0x4f5   :  { %v7716_v49 = vpop.permute.xlu2 %4126 }
 0x4f6   :  { %v7791_v10 = vpop.permute.xlu1 %4357 }
 0x4f7   :  { %10565 = vst [vmem:[#allocation28_spill] sm:$0xff] %v7791_v10 }
 0x4fd   :  { %v7718_v43 = vpop.permute.xlu2 %4128 }
 0x4fe   :  { %v7799_v19 = vpop.permute.xlu1 %4314 }
 0x4ff   :  { %10566 = vst [vmem:[#allocation32_spill] sm:$0xff] %v7799_v19 }
 0x505   :  { %v7720_v57 = vpop.permute.xlu2 %4316 }
 0x506   :  { %10558 = vst [vmem:[#allocation26_spill] sm:$0xff] %v7720_v57 }
 0x50d   :  { %v7722_v34 = vpop.permute.xlu2 %4122 }
 0x515   :  { %v7724_v44 = vpop.permute.xlu2 %3959 }
 0x516   :  { %10559 = vst [vmem:[#allocation34_spill] sm:$0xff] %v7724_v44 }
 0x563   :  { %v2281_v21 = vpop.xlane.xlu2 %2280 }
 0x564   :  { %v2282_v2 = vmul.f32 0.001953125, %v2281_v21  ;;  %v7807_v21 = vpop.permute.xlu1 %4179 }
 0x565   :  { %10567 = vst [vmem:[#allocation31_spill] sm:$0xff] %v7807_v21 }
 0x566   :  { %v2283_v5 = vadd.f32 1e-05, %v2282_v2 }
 0x568   :  { %5804 = vrsqrt.f32 %v2283_v5  ;;  %vm2290_vm10 = vweird.f32 %v2283_v5 }
 0x56c   :  { %v7819_v2 = vpop.permute.xlu1 %4000 }
 0x56d   :  { %10569 = vst [vmem:[#allocation40_spill] sm:$0xff] %v7819_v2 }
 0x56e   :  { %v5805_v59 = vpop.eup %5804 }
 0x56f   :  { %v2285_v61 = vmul.f32 %v5805_v59, %v2283_v5  ;;  %vm2291_vm0 = vweird.f32 %v5805_v59 }
 0x570   :  { %vm2292_vm9 = vmor %vm2290_vm10, %vm2291_vm0  ;;  %vm10582_vm0 = vcmp.lt.s32.totalorder %v6050_v9, 14  ;;  %vm4130_vm10 = vcmp.lt.s32.totalorder %v6050_v9, 28 }
 0x571   :  { %v2286_v3 = vmul.f32 %v5805_v59, %v2285_v61 }
 0x573   :  { %v2287_v20 = vmul.f32 0.5, %v2286_v3  ;;  %v7838_v3 = vld [vmem:[%s10181_s9 + $0x3] ss:$8 sm:$0xf] }
 0x574   :  { %v7833_v61 = vpop.permute.xlu1 %4183 }
 0x575   :  { %v2288_v33 = vsub.f32 1.5, %v2287_v20  ;;  %10571 = vst [vmem:[#allocation39_spill] sm:$0xff] %v7833_v61  ;;  %v2418_v20 = vperm.slane %v7838_v3, 0 }
 0x577   :  { %v2289_v22 = vmul.f32 %v5805_v59, %v2288_v33 }
 0x579   :  { %v2293_v14 = vsel %vm2292_vm9, %v5805_v59, %v2289_v22 }
 0x57a   :  { %v2294_v58 = vmul.f32 %v2293_v14, %v2265_v45  ;;  %v2295_v40 = vmul.f32 %v2293_v14, %v2266_v26  ;;  %v2296_v37 = vmul.f32 %v2293_v14, %v2267_v50  ;;  %v2297_v18 = vmul.f32 %v2293_v14, %v2268_v63 }
 0x57c   :  { %v7729_v36 = vmax.f32 %v2294_v58, 0.0  ;;  %v7731_v42 = vmax.f32 %v2295_v40, 0.0  ;;  %v7733_v28 = vmax.f32 %v2296_v37, 0.0  ;;  %v7735_v12 = vmax.f32 %v2297_v18, 0.0  ;;  %v7847_v52 = vpop.xlane.xlu1 %1073 }
 0x57d   :  { %10573 = vst [vmem:[#allocation50_spill] sm:$0xff] %v7847_v52 }
 0x57e   :  { %2336 = vrot.lane.b32.xlu2 %v7733_v28, %s10560_s15  ;;  %2334 = vrot.lane.b32.xlu0 %v7731_v42, %s10560_s15  ;;  %v2746_v45 = vmul.f32 %v2738_v47, %v7733_v28  ;;  %v2747_v26 = vmul.f32 %v2739_v62, %v7735_v12  ;;  %v2745_v50 = vmul.f32 %v2737_v46, %v7731_v42  ;;  %v7855_v47 = vld [vmem:[%s10181_s9 + $0x1] ss:$8 sm:$0xf] }
 0x57f   :  { %2302 = vrot.lane.b32.xlu1 %v7729_v36, %s10561_s27  ;;  %v2744_v63 = vmul.f32 %v2736_v17, %v7729_v36  ;;  %v2348_v46 = vperm.slane %v7855_v47, 2 }
 0x580   :  { %2750 = vst [vmem:[#allocation2 + $0xa8] sm:$0xf] %v2746_v45 }
 0x581   :  { %2751 = vst [vmem:[#allocation2 + $0x88] sm:$0xf] %v2747_v26  ;;  %v2314_v26 = vld [vmem:[%s10181_s9] ss:$8 sm:$0xf] }
 0x582   :  { %2749 = vst [vmem:[#allocation2 + $0x188] sm:$0xf] %v2745_v50  ;;  %v2317_v50 = vperm.slane %v2314_v26, 1  ;;  %v2319_v16 = vperm.slane %v2314_v26, 3 }
 0x583   :  { %2748 = vst [vmem:[#allocation2 + $0xf0] sm:$0xf] %v2744_v63 }
 0x586   :  { %2376 = vrot.lane.b32.xlu0 %v7731_v42, %s10562_s24  ;;  %2404 = vrot.lane.b32.xlu2 %v7729_v36, %s10563_s25 }
 0x587   :  { %2304 = vrot.lane.b32.xlu1 %v7731_v42, %s10561_s27 }
 0x58e   :  { %2380 = vrot.lane.b32.xlu0 %v7735_v12, %s10562_s24  ;;  %2410 = vrot.lane.b32.xlu2 %v7735_v12, %s10563_s25 }
 0x58f   :  { %2306 = vrot.lane.b32.xlu1 %v7733_v28, %s10561_s27 }
 0x596   :  { %2408 = vrot.lane.b32.xlu0 %v7733_v28, %s10563_s25  ;;  %2450 = vrot.lane.b32.xlu2 %v7733_v28, %s5845_s1 }
 0x597   :  { %2308 = vrot.lane.b32.xlu1 %v7735_v12, %s10561_s27  ;;  %s10574_s27 = smov 126  }
 0x59e   :  { %2448 = vrot.lane.b32.xlu0 %v7731_v42, %s5845_s1  ;;  %2478 = vrot.lane.b32.xlu2 %v7731_v42, %s5846_s20 }
 0x59f   :  { %2332 = vrot.lane.b32.xlu1 %v7729_v36, %s10560_s15 }
 0x5a6   :  { %2476 = vrot.lane.b32.xlu0 %v7729_v36, %s5846_s20  ;;  %2518 = vrot.lane.b32.xlu2 %v7729_v36, %s5833_s0 }
 0x5a7   :  { %2338 = vrot.lane.b32.xlu1 %v7735_v12, %s10560_s15  ;;  %s10587_s15 = smov 98  }
 0x5ae   :  { %2482 = vrot.lane.b32.xlu0 %v7735_v12, %s5846_s20  ;;  %2524 = vrot.lane.b32.xlu2 %v7735_v12, %s5833_s0 }
 0x5af   :  { %2374 = vrot.lane.b32.xlu1 %v7729_v36, %s10562_s24 }
 0x5b6   :  { %2522 = vrot.lane.b32.xlu0 %v7733_v28, %s5833_s0  ;;  %2552 = vrot.lane.b32.xlu2 %v7733_v28, %s5834_s22 }
 0x5b7   :  { %2378 = vrot.lane.b32.xlu1 %v7733_v28, %s10562_s24  ;;  %s10575_s24 = smov 114  }
 0x5be   :  { %2550 = vrot.lane.b32.xlu0 %v7731_v42, %s5834_s22  ;;  %2592 = vrot.lane.b32.xlu2 %v7731_v42, %s10358_s23 }
 0x5bf   :  { %2406 = vrot.lane.b32.xlu1 %v7731_v42, %s10563_s25  ;;  %s10600_s25 = smov 94  }
 0x5c6   :  { %2590 = vrot.lane.b32.xlu0 %v7729_v36, %s10358_s23  ;;  %2620 = vrot.lane.b32.xlu2 %v7729_v36, %s5847_s21 }
 0x5c7   :  { %2446 = vrot.lane.b32.xlu1 %v7729_v36, %s5845_s1 }
 0x5ce   :  { %2596 = vrot.lane.b32.xlu0 %v7735_v12, %s10358_s23  ;;  %2626 = vrot.lane.b32.xlu2 %v7735_v12, %s5847_s21 }
 0x5cf   :  { %2452 = vrot.lane.b32.xlu1 %v7735_v12, %s5845_s1  ;;  %s10593_s1 = smov 97  }
 0x5d6   :  { %2624 = vrot.lane.b32.xlu0 %v7733_v28, %s5847_s21  ;;  %2666 = vrot.lane.b32.xlu2 %v7733_v28, %s10568_s26 }
 0x5d7   :  { %2480 = vrot.lane.b32.xlu1 %v7733_v28, %s5846_s20  ;;  %s10572_s20 = smov 127  }
 0x5d8   :  { %v7823_v5 = vpop.permute.xlu2 %2336 }
 0x5de   :  { %2664 = vrot.lane.b32.xlu0 %v7731_v42, %s10568_s26  ;;  %2694 = vrot.lane.b32.xlu2 %v7731_v42, %s10570_s29 }
 0x5df   :  { %2520 = vrot.lane.b32.xlu1 %v7731_v42, %s5833_s0 }
 0x5e0   :  { %v7831_v59 = vpop.permute.xlu2 %2404 }
 0x5e6   :  { %2692 = vrot.lane.b32.xlu0 %v7729_v36, %s10570_s29  ;;  %2752 = vrot.lane.b32.xlu2 %v7729_v36, %s10572_s20 }
 0x5e7   :  { %2548 = vrot.lane.b32.xlu1 %v7729_v36, %s5834_s22 }
 0x5e8   :  { %v2411_v33 = vpop.permute.xlu2 %2410 }
 0x5e9   :  { %v2415_v22 = vsel %vm1250_vm15, %v2411_v33, %v7831_v59 }
 0x5ea   :  { %v2426_v14 = vmul.f32 %v2418_v20, %v2415_v22 }
 0x5ec   :  { %v2434_v62 = vrot.slane %v2426_v14, 4 }
 0x5ee   :  { %2442 = vst [vmem:[#allocation2 + $0x160] sm:$0xf0] %v2434_v62  ;;  %2698 = vrot.lane.b32.xlu0 %v7735_v12, %s10570_s29  ;;  %2758 = vrot.lane.b32.xlu2 %v7735_v12, %s10572_s20 }
 0x5ef   :  { %2554 = vrot.lane.b32.xlu1 %v7735_v12, %s5834_s22 }
 0x5f0   :  { %v7864_v58 = vpop.permute.xlu0 %2334  ;;  %v7866_v40 = vpop.permute.xlu2 %2450 }
 0x5f1   :  { %v2341_v37 = vsel %vm1152_vm13, %v7864_v58, %v7823_v5  ;;  %v2303_v18 = vpop.permute.xlu1 %2302 }
 0x5f2   :  { %v2356_v17 = vmul.f32 %v2348_v46, %v2341_v37  ;;  %v2318_v46 = vperm.slane %v2314_v26, 2 }
 0x5f4   :  { %v2364_v45 = vrot.slane %v2356_v17, 4 }
 0x5f6   :  { %2372 = vst [vmem:[#allocation2 + $0x10] sm:$0xf0] %v2364_v45  ;;  %2756 = vrot.lane.b32.xlu0 %v7733_v28, %s10572_s20  ;;  %2798 = vrot.lane.b32.xlu2 %v7733_v28, %s10574_s27 }
 0x5f7   :  { %2594 = vrot.lane.b32.xlu1 %v7733_v28, %s10358_s23 }
 0x5f8   :  { %v7881_v63 = vpop.permute.xlu0 %2376  ;;  %v7883_v20 = vpop.permute.xlu2 %2478 }
 0x5f9   :  { %v2305_v22 = vpop.permute.xlu1 %2304 }
 0x5fa   :  { %v2312_v14 = vsel %vm1110_vm14, %v2303_v18, %v2305_v22 }
 0x5fb   :  { %v2325_v62 = vmul.f32 %v2317_v50, %v2312_v14  ;;  %v7902_v14 = vld [vmem:[%s10181_s9 + $0x6] ss:$8 sm:$0xf] }
 0x5fd   :  { %2329 = vst [vmem:[#allocation2 + $0xd0] sm:$0xf] %v2325_v62  ;;  %v7907_v62 = vld [vmem:[%s10182_s10 + $0x1] ss:$8 sm:$0xf] }
 0x5fe   :  { %2796 = vrot.lane.b32.xlu0 %v7731_v42, %s10574_s27  ;;  %2826 = vrot.lane.b32.xlu2 %v7731_v42, %s10575_s24  ;;  %v3399_v38 = vperm.slane %v7907_v62, 3 }
 0x5ff   :  { %2622 = vrot.lane.b32.xlu1 %v7731_v42, %s5847_s21  ;;  %s10576_s21 = smov 113  }
 0x600   :  { %v7893_v37 = vpop.permute.xlu0 %2380  ;;  %v7895_v17 = vpop.permute.xlu2 %2518 }
 0x601   :  { %v2307_v45 = vpop.permute.xlu1 %2306 }
 0x602   :  { %v2311_v39 = vsel %vm1110_vm14, %v2305_v22, %v2307_v45  ;;  %v2421_v22 = vperm.slane %v7838_v3, 3 }
 0x603   :  { %v2326_v50 = vmul.f32 %v2318_v46, %v2311_v39  ;;  %v2532_v39 = vperm.slane %v7902_v14, 0  ;;  %v3398_v46 = vperm.slane %v7907_v62, 2 }
 0x605   :  { %2330 = vst [vmem:[#allocation2 + $0x10] sm:$0xf] %v2326_v50  ;;  %v2316_v50 = vperm.slane %v2314_v26, 0  ;;  %v3406_v25 = vmul.f32 %v3398_v46, %v7475_v11  ;;  %v3397_v46 = vperm.slane %v7907_v62, 1 }
 0x606   :  { %2824 = vrot.lane.b32.xlu0 %v7729_v36, %s10575_s24  ;;  %2866 = vrot.lane.b32.xlu2 %v7729_v36, %s10576_s21 }
 0x607   :  { %2662 = vrot.lane.b32.xlu1 %v7729_v36, %s10568_s26 }
 0x608   :  { %v7923_v6 = vpop.permute.xlu0 %2408  ;;  %v7925_v52 = vpop.permute.xlu2 %2524 }
 0x609   :  { %v2412_v8 = vsel %vm1250_vm15, %v7923_v6, %v2411_v33  ;;  %v2529_v26 = vsel %vm88_vm2, %v7925_v52, %v7895_v17  ;;  %v2309_v4 = vpop.permute.xlu1 %2308  ;;  %v7943_v33 = vld [vmem:[%s10181_s9 + $0x4] ss:$8 sm:$0xf] }
 0x60a   :  { %v2429_v56 = vmul.f32 %v2421_v22, %v2412_v8  ;;  %v2540_v19 = vmul.f32 %v2532_v39, %v2529_v26  ;;  %v2310_v57 = vsel %vm1110_vm14, %v2307_v45, %v2309_v4  ;;  %v2313_v10 = vsel %vm1110_vm14, %v2309_v4, %v2303_v18  ;;  %vm10602_vm14 = vmmov %vm10582_vm0 }
 0x60b   :  { %v2324_v61 = vmul.f32 %v2316_v50, %v2313_v10  ;;  %v2327_v21 = vmul.f32 %v2319_v16, %v2310_v57  ;;  %v3387_v22 = vmul.f32 %v3379_v35, %v7403_v41  ;;  %v2462_v16 = vperm.slane %v7943_v33, 2 }
 0x60c   :  { %v2437_v24 = vrot.slane %v2429_v56, 4  ;;  %2544 = vst [vmem:[#allocation2 + $0x148] sm:$0xf] %v2540_v19  ;;  %v7945_v8 = vld [vmem:[#allocation2 + $0x10] sm:$0xff]  ;;  %v3414_v4 = vrot.slane %v3406_v25, 4  ;;  %v2347_v56 = vperm.slane %v7855_v47, 1 }
 0x60d   :  { %2328 = vst [vmem:[#allocation2 + $0xb0] sm:$0xf] %v2324_v61  ;;  %v7970_v61 = vld [vmem:[%s10181_s9 + $0x5] ss:$8 sm:$0xf]  ;;  %v2349_v39 = vperm.slane %v7855_v47, 3 }
 0x60e   :  { %10577 = vst [vmem:[#allocation8_spill] sm:$0xff] %v7945_v8  ;;  %2830 = vrot.lane.b32.xlu0 %v7735_v12, %s10575_s24  ;;  %2872 = vrot.lane.b32.xlu2 %v7735_v12, %s10576_s21  ;;  %v2491_v45 = vperm.slane %v7970_v61, 1  ;;  %v7997_v8 = vld [vmem:[%s10181_s9 + $0x2] ss:$8 sm:$0xf] }
 0x60f   :  { %2445 = vst [vmem:[#allocation2 + $0x178] sm:$0xf0] %v2437_v24  ;;  %2668 = vrot.lane.b32.xlu1 %v7735_v12, %s10568_s26  ;;  %s10579_s26 = smov 110  }
 0x610   :  { %2331 = vst [vmem:[#allocation2 + $0x48] sm:$0xf] %v2327_v21  ;;  %v7956_v57 = vpop.permute.xlu0 %2448  ;;  %v7958_v10 = vpop.permute.xlu2 %2552 }
 0x611   :  { %3391 = vst [vmem:[#allocation2 + $0x10] sm:$0xf] %v3387_v22  ;;  %v2455_v24 = vsel %vm1305_vm12, %v7956_v57, %v7866_v40  ;;  %v2333_v35 = vpop.permute.xlu1 %2332 }
 0x612   :  { %3422 = vst [vmem:[#allocation2 + $0x10] sm:$0xf0] %v3414_v4  ;;  %v2470_v19 = vmul.f32 %v2462_v16, %v2455_v24  ;;  %v2342_v25 = vsel %vm1152_vm13, %v2333_v35, %v7864_v58  ;;  %v2346_v58 = vperm.slane %v7855_v47, 0  ;;  %v3378_v47 = vperm.slane %v7921_v0, 1 }
 0x613   :  { %v2355_v21 = vmul.f32 %v2347_v56, %v2342_v25 }
 0x614   :  { %2474 = vst [vmem:[#allocation2 + $0x90] sm:$0xf] %v2470_v19 }
 0x615   :  { %v2363_v18 = vrot.slane %v2355_v21, 4  ;;  %v3405_v21 = vmul.f32 %v3397_v46, %v7499_v32  ;;  %v2389_v46 = vperm.slane %v7997_v8, 1 }
 0x616   :  { %2870 = vrot.lane.b32.xlu0 %v7733_v28, %s10576_s21  ;;  %2900 = vrot.lane.b32.xlu2 %v7733_v28, %s10486_s18 }
 0x617   :  { %2371 = vst [vmem:[#allocation2 + $0xd0] sm:$0xf0] %v2363_v18  ;;  %2696 = vrot.lane.b32.xlu1 %v7733_v28, %s10570_s29 }
 0x618   :  { %v2477_v50 = vpop.permute.xlu0 %2476  ;;  %v7982_v26 = vpop.permute.xlu2 %2592 }
 0x619   :  { %v2486_v22 = vsel %vm1348_vm11, %v2477_v50, %v7883_v20  ;;  %v2339_v16 = vpop.permute.xlu1 %2338 }
 0x61a   :  { %v2499_v4 = vmul.f32 %v2491_v45, %v2486_v22  ;;  %v2340_v56 = vsel %vm1152_vm13, %v7823_v5, %v2339_v16  ;;  %v2343_v24 = vsel %vm1152_vm13, %v2339_v16, %v2333_v35  ;;  %v2490_v5 = vperm.slane %v7970_v61, 0 }
 0x61b   :  { %v2354_v19 = vmul.f32 %v2346_v58, %v2343_v24  ;;  %v2357_v25 = vmul.f32 %v2349_v39, %v2340_v56  ;;  %v3386_v58 = vmul.f32 %v3378_v47, %v7374_v1  ;;  %v2388_v39 = vperm.slane %v7997_v8, 0  ;;  %v8039_v1 = vld [vmem:[%s10182_s10 + $0x3] ss:$8 sm:$0xf] }
 0x61c   :  { %v2507_v18 = vrot.slane %v2499_v4, 4  ;;  %v3413_v16 = vrot.slane %v3405_v21, 4  ;;  %v3380_v24 = vperm.slane %v7921_v0, 3 }
 0x61d   :  { %v2362_v45 = vrot.slane %v2354_v19, 4  ;;  %v2365_v22 = vrot.slane %v2357_v25, 4  ;;  %v3396_v19 = vperm.slane %v7907_v62, 0 }
 0x61e   :  { %2515 = vst [vmem:[#allocation2 + $0x110] sm:$0xf0] %v2507_v18  ;;  %2898 = vrot.lane.b32.xlu0 %v7731_v42, %s10486_s18  ;;  %2940 = vrot.lane.b32.xlu2 %v7731_v42, %s10489_s28  ;;  %v8005_v35 = vld [vmem:[#allocation2 + $0xd0] sm:$0xff]  ;;  %v3407_v18 = vmul.f32 %v3399_v38, %v7540_v13 }
 0x61f   :  { %10578 = vst [vmem:[#allocation12_spill] sm:$0xff] %v8005_v35  ;;  %2754 = vrot.lane.b32.xlu1 %v7731_v42, %s10572_s20 }
 0x620   :  { %2370 = vst [vmem:[#allocation2 + $0xb0] sm:$0xf0] %v2362_v45  ;;  %v8012_v4 = vpop.permute.xlu0 %2482  ;;  %v8014_v56 = vpop.permute.xlu2 %2620 }
 0x621   :  { %2373 = vst [vmem:[#allocation2 + $0x48] sm:$0xf0] %v2365_v22  ;;  %v2487_v47 = vsel %vm1348_vm11, %v8012_v4, %v2477_v50  ;;  %v2375_v25 = vpop.permute.xlu1 %2374  ;;  %v8031_v50 = vld [vmem:[%s10181_s9 + $0x21] ss:$8 sm:$0xf] }
 0x622   :  { %3390 = vst [vmem:[#allocation2 + $0xd0] sm:$0xf] %v3386_v58  ;;  %v2498_v45 = vmul.f32 %v2490_v5, %v2487_v47  ;;  %v2384_v21 = vsel %vm1207_vm3, %v2375_v25, %v7881_v63  ;;  %v2385_v22 = vsel %vm1207_vm3, %v7893_v37, %v2375_v25  ;;  %v3377_v58 = vperm.slane %v7921_v0, 0 }
 0x623   :  { %3421 = vst [vmem:[#allocation2 + $0xd0] sm:$0xf0] %v3413_v16  ;;  %v2396_v35 = vmul.f32 %v2388_v39, %v2385_v22  ;;  %v2397_v62 = vmul.f32 %v2389_v46, %v2384_v21  ;;  %v3388_v5 = vmul.f32 %v3380_v24, %v7431_v23  ;;  %v3404_v47 = vmul.f32 %v3396_v19, %v7529_v51  ;;  %v10583_v51 = vld [vmem:[#allocation59_spill] sm:$0xff] }
 0x624   :  { %v2506_v38 = vrot.slane %v2498_v45, 4  ;;  %v3415_v39 = vrot.slane %v3407_v18, 4  ;;  %v3446_v46 = vperm.slane %v8039_v1, 0  ;;  %v2535_v0 = vperm.slane %v7902_v14, 3 }
 0x625   :  { %2400 = vst [vmem:[#allocation2 + $0x160] sm:$0xf] %v2396_v35  ;;  %v2634_v16 = vperm.slane %v8031_v50, 0  ;;  %v2390_v35 = vperm.slane %v7997_v8, 2  ;;  %v2391_v24 = vperm.slane %v7997_v8, 3  ;;  %v3385_v18 = vmul.f32 %v3377_v58, %v7367_v29 }
 0x626   :  { %2514 = vst [vmem:[#allocation2 + $0x108] sm:$0xf0] %v2506_v38  ;;  %2938 = vrot.lane.b32.xlu0 %v7729_v36, %s10489_s28  ;;  %2968 = vrot.lane.b32.xlu2 %v7729_v36, %s10579_s26  ;;  %v8060_v45 = vld [vmem:[%s10182_s10 + $0x2] ss:$8 sm:$0xf]  ;;  %v3412_v38 = vrot.slane %v3404_v47, 4 }
 0x627   :  { %2401 = vst [vmem:[#allocation2 + $0x128] sm:$0xf] %v2397_v62  ;;  %2794 = vrot.lane.b32.xlu1 %v7729_v36, %s10574_s27  ;;  %v8054_v25 = vld [vmem:[#allocation2 + $0xb0] sm:$0xff]  ;;  %v3427_v62 = vperm.slane %v8060_v45, 0 }
 0x628   :  { %v8052_v19 = vld [vmem:[#allocation2 + $0x48] sm:$0xff]  ;;  %10581 = vst [vmem:[#allocation10_spill] sm:$0xff] %v8054_v25  ;;  %v8062_v21 = vpop.permute.xlu0 %2522  ;;  %v8064_v22 = vpop.permute.xlu2 %2626 }
 0x629   :  { %10580 = vst [vmem:[#allocation14_spill] sm:$0xff] %v8052_v19  ;;  %v2526_v8 = vsel %vm88_vm2, %v8062_v21, %v7925_v52  ;;  %v2631_v58 = vsel %vm10582_vm0, %v8064_v22, %v8014_v56  ;;  %v2379_v25 = vpop.permute.xlu1 %2378  ;;  %v3454_v52 = vmul.f32 %v3446_v46, %v10583_v51  ;;  %v8085_v23 = vld [vmem:[%s10181_s9 + $0x7] ss:$8 sm:$0xf] }
 0x62a   :  { %3392 = vst [vmem:[#allocation2 + $0x48] sm:$0xf] %v3388_v5  ;;  %v2543_v19 = vmul.f32 %v2535_v0, %v2526_v8  ;;  %v2642_v29 = vmul.f32 %v2634_v16, %v2631_v58  ;;  %v2382_v5 = vsel %vm1207_vm3, %v2379_v25, %v7893_v37  ;;  %v2383_v47 = vsel %vm1207_vm3, %v7881_v63, %v2379_v25  ;;  %v8118_v58 = vld [vmem:[%s10181_s9 + $0x20] ss:$8 sm:$0xf] }
 0x62b   :  { %3423 = vst [vmem:[#allocation2 + $0x48] sm:$0xf0] %v3415_v39  ;;  %v2398_v32 = vmul.f32 %v2390_v35, %v2383_v47  ;;  %v2399_v13 = vmul.f32 %v2391_v24, %v2382_v5  ;;  %v3435_v37 = vmul.f32 %v3427_v62, %v7293_v30  ;;  %v2564_v63 = vperm.slane %v8085_v23, 2  ;;  %v10586_v5 = vld [vmem:[#allocation58_spill] sm:$0xff] }
 0x62c   :  { %3389 = vst [vmem:[#allocation2 + $0xb0] sm:$0xf] %v3385_v18  ;;  %v2650_v39 = vrot.slane %v2642_v29, 4  ;;  %v8087_v0 = vld [vmem:[#allocation2 + $0x160] sm:$0xff]  ;;  %v3462_v46 = vrot.slane %v3454_v52, 4  ;;  %v2419_v29 = vperm.slane %v7838_v3, 1 }
 0x62d   :  { %3420 = vst [vmem:[#allocation2 + $0xb0] sm:$0xf0] %v3412_v38  ;;  %v3449_v16 = vperm.slane %v8039_v1, 3  ;;  %v3430_v62 = vperm.slane %v8060_v45, 3  ;;  %vm10590_vm3 = vcmp.lt.s32.totalorder %v6050_v9, 15 }
 0x62e   :  { %2547 = vst [vmem:[#allocation2 + $0xd8] sm:$0xf] %v2543_v19  ;;  %2944 = vrot.lane.b32.xlu0 %v7735_v12, %s10489_s28  ;;  %2974 = vrot.lane.b32.xlu2 %v7735_v12, %s10579_s26  ;;  %vm10597_vm9 = vmmov %vm10590_vm3 }
 0x62f   :  { %2402 = vst [vmem:[#allocation2 + $0x40] sm:$0xf] %v2398_v32  ;;  %2800 = vrot.lane.b32.xlu1 %v7735_v12, %s10574_s27  ;;  %v2420_v32 = vperm.slane %v7838_v3, 2  ;;  %v3457_v47 = vmul.f32 %v3449_v16, %v10586_v5  ;;  %v3447_v16 = vperm.slane %v8039_v1, 1  ;;  %s10623_s27 = smov 66   ;;  %vm10627_vm13 = vmmov %vm10590_vm3 }
 0x630   :  { %10584 = vst [vmem:[#allocation16_spill] sm:$0xff] %v8087_v0  ;;  %v8100_v35 = vpop.permute.xlu0 %2550  ;;  %v8102_v24 = vpop.permute.xlu2 %2666  ;;  %vm10628_vm0 = vmmov %vm10590_vm3 }
 0x631   :  { %2658 = vst [vmem:[#allocation2 + $0x180] sm:$0xf0] %v2650_v39  ;;  %v2557_v19 = vsel %vm130_vm1, %v8100_v35, %v7958_v10 }
 0x632   :  { %2403 = vst [vmem:[#allocation2 + $0x178] sm:$0xf] %v2399_v13  ;;  %v2407_v13 = vpop.permute.xlu1 %2406  ;;  %v2572_v25 = vmul.f32 %v2564_v63, %v2557_v19  ;;  %v3438_v63 = vmul.f32 %v3430_v62, %v7252_v53  ;;  %v3429_v62 = vperm.slane %v8060_v45, 2 }
 0x633   :  { %10585 = vst [vmem:[#allocation15_spill] sm:$0xff] %v8102_v24  ;;  %v2413_v18 = vsel %vm1250_vm15, %v2407_v13, %v7923_v6  ;;  %v2414_v3 = vsel %vm1250_vm15, %v7831_v59, %v2407_v13  ;;  %v2605_v6 = vperm.slane %v8118_v58, 1  ;;  %vm10609_vm15 = vcmp.lt.s32.totalorder %v6050_v9, 2 }
 0x634   :  { %3439 = vst [vmem:[#allocation2 + $0x160] sm:$0xf] %v3435_v37  ;;  %v2427_v38 = vmul.f32 %v2419_v29, %v2414_v3  ;;  %v2428_v8 = vmul.f32 %v2420_v32, %v2413_v18  ;;  %v2580_v52 = vrot.slane %v2572_v25, 4  ;;  %v2461_v29 = vperm.slane %v7943_v33, 1 }
 0x635   :  { %3470 = vst [vmem:[#allocation2 + $0x160] sm:$0xf0] %v3462_v46  ;;  %v3448_v46 = vperm.slane %v8039_v1, 2  ;;  %v3465_v32 = vrot.slane %v3457_v47, 4  ;;  %v3428_v25 = vperm.slane %v8060_v45, 1  ;;  %v10591_v1 = vld [vmem:[#allocation77_spill] sm:$0xff]  ;;  %v3437_v45 = vmul.f32 %v3429_v62, %v7583_v54 }
 0x636   :  { %v2435_v39 = vrot.slane %v2427_v38, 4  ;;  %v2436_v37 = vrot.slane %v2428_v8, 4  ;;  %2588 = vst [vmem:[#allocation2 + $0x58] sm:$0xf0] %v2580_v52  ;;  %2972 = vrot.lane.b32.xlu0 %v7733_v28, %s10579_s26  ;;  %3014 = vrot.lane.b32.xlu2 %v7733_v28, %s10587_s15 }
 0x637   :  { %2828 = vrot.lane.b32.xlu1 %v7733_v28, %s10575_s24  ;;  %v3456_v47 = vmul.f32 %v3448_v46, %v10591_v1  ;;  %v3436_v0 = vmul.f32 %v3428_v25, %v7572_v48  ;;  %v8237_v48 = vld [vmem:[%s10181_s9 + $0x22] ss:$8 sm:$0xf]  ;;  %s10611_s24 = smov 96  }
 0x638   :  { %2443 = vst [vmem:[#allocation2 + $0x128] sm:$0xf0] %v2435_v39  ;;  %v2591_v19 = vpop.permute.xlu0 %2590  ;;  %v8134_v13 = vpop.permute.xlu2 %2694  ;;  %v10592_v39 = vld [vmem:[#allocation69_spill] sm:$0xff] }
 0x639   :  { %v8126_v59 = vld [vmem:[#allocation2 + $0x178] sm:$0xff]  ;;  %2444 = vst [vmem:[#allocation2 + $0x40] sm:$0xf0] %v2436_v37  ;;  %v2600_v18 = vsel %vm10590_vm3, %v2591_v19, %v7982_v26  ;;  %v3455_v37 = vmul.f32 %v3447_v16, %v10592_v39  ;;  %v2463_v16 = vperm.slane %v7943_v33, 3  ;;  %vm10635_vm3 = vcmp.lt.s32.totalorder %v6050_v9, 126 }
 0x63a   :  { %10588 = vst [vmem:[#allocation11_spill] sm:$0xff] %v8126_v59  ;;  %v2447_v3 = vpop.permute.xlu1 %2446  ;;  %v2613_v38 = vmul.f32 %v2605_v6, %v2600_v18 }
 0x63b   :  { %10589 = vst [vmem:[#allocation9_spill] sm:$0xff] %v8134_v13  ;;  %v2456_v8 = vsel %vm1305_vm12, %v2447_v3, %v7956_v57  ;;  %v2604_v57 = vperm.slane %v8118_v58, 0  ;;  %v3463_v18 = vrot.slane %v3455_v37, 4 }
 0x63c   :  { %3442 = vst [vmem:[#allocation2 + $0x178] sm:$0xf] %v3438_v63  ;;  %v2469_v52 = vmul.f32 %v2461_v29, %v2456_v8  ;;  %v8150_v63 = vld [vmem:[%s10182_s10 + $0x5] ss:$8 sm:$0xf]  ;;  %v3464_v29 = vrot.slane %v3456_v47, 4 }
 0x63d   :  { %3473 = vst [vmem:[#allocation2 + $0x178] sm:$0xf0] %v3465_v32  ;;  %v3510_v6 = vperm.slane %v8150_v63, 1  ;;  %v2460_v32 = vperm.slane %v7943_v33, 0 }
 0x63e   :  { %2617 = vst [vmem:[#allocation2 + $0x130] sm:$0xf] %v2613_v38  ;;  %3012 = vrot.lane.b32.xlu0 %v7731_v42, %s10587_s15  ;;  %3042 = vrot.lane.b32.xlu2 %v7731_v42, %s10593_s1 }
 0x63f   :  { %2473 = vst [vmem:[#allocation2 + $0x110] sm:$0xf] %v2469_v52  ;;  %v8159_v46 = vld [vmem:[#allocation2 + $0x128] sm:$0xff]  ;;  %2868 = vrot.lane.b32.xlu1 %v7731_v42, %s10576_s21  ;;  %v10598_v52 = vld [vmem:[#allocation74_spill] sm:$0xff] }
 0x640   :  { %10594 = vst [vmem:[#allocation18_spill] sm:$0xff] %v8159_v46  ;;  %v8165_v25 = vld [vmem:[#allocation2 + $0x40] sm:$0xff]  ;;  %v8167_v62 = vpop.permute.xlu0 %2596  ;;  %v8169_v38 = vpop.permute.xlu2 %2752  ;;  %v3518_v46 = vmul.f32 %v3510_v6, %v10598_v52 }
 0x641   :  { %10595 = vst [vmem:[#allocation19_spill] sm:$0xff] %v8165_v25  ;;  %v2601_v8 = vsel %vm10597_vm9, %v8167_v62, %v2591_v19  ;;  %v8188_v19 = vld [vmem:[%s10182_s10 + $0x20] ss:$8 sm:$0xf]  ;;  %vm10636_vm9 = vmmov %vm10602_vm14 }
 0x642   :  { %3440 = vst [vmem:[#allocation2 + $0x128] sm:$0xf] %v3436_v0  ;;  %v2453_v47 = vpop.permute.xlu1 %2452  ;;  %v2612_v59 = vmul.f32 %v2604_v57, %v2601_v8  ;;  %v2637_v57 = vperm.slane %v8031_v50, 3 }
 0x643   :  { %10596 = vst [vmem:[#allocation69_spill] sm:$0xff] %v8169_v38  ;;  %v2454_v33 = vsel %vm1305_vm12, %v7866_v40, %v2453_v47  ;;  %v2457_v0 = vsel %vm1305_vm12, %v2453_v47, %v2447_v3  ;;  %v8195_v40 = vld [vmem:[%s10183_s11 + $0x21] ss:$8 sm:$0xf]  ;;  %v3526_v3 = vrot.slane %v3518_v46, 4  ;;  %v2493_v46 = vperm.slane %v7970_v61, 3 }
 0x644   :  { %3441 = vst [vmem:[#allocation2 + $0x40] sm:$0xf] %v3437_v45  ;;  %v2468_v37 = vmul.f32 %v2460_v32, %v2457_v0  ;;  %v2471_v25 = vmul.f32 %v2463_v16, %v2454_v33  ;;  %v8183_v45 = vld [vmem:[%s10181_s9 + $0x25] ss:$8 sm:$0xf]  ;;  %v2492_v32 = vperm.slane %v7970_v61, 2  ;;  %v4134_v47 = vsel %vm4130_vm10, %v7718_v43, %v7722_v34 }
 0x645   :  { %3472 = vst [vmem:[#allocation2 + $0x40] sm:$0xf0] %v3464_v29  ;;  %v3590_v29 = vperm.slane %v8188_v19, 0  ;;  %v10601_v16 = vld [vmem:[#allocation38_spill] sm:$0xff]  ;;  %vm3963_vm12 = vcmp.lt.s32.totalorder %v6050_v9, 60 }
 0x646   :  { %3471 = vst [vmem:[#allocation2 + $0x128] sm:$0xf0] %v3463_v18  ;;  %v8190_v6 = vld [vmem:[#allocation2 + $0x110] sm:$0xff]  ;;  %3040 = vrot.lane.b32.xlu0 %v7729_v36, %s10593_s1  ;;  %3158 = vrot.lane.b32.xlu2 %v7733_v28, %s10600_s25 }
 0x647   :  { %2616 = vst [vmem:[#allocation2 + $0x180] sm:$0xf] %v2612_v59  ;;  %v2769_v59 = vperm.slane %v8183_v45, 3  ;;  %2896 = vrot.lane.b32.xlu1 %v7729_v36, %s10486_s18 }
 0x648   :  { %10599 = vst [vmem:[#allocation74_spill] sm:$0xff] %v8190_v6  ;;  %v8211_v18 = vpop.permute.xlu0 %2624  ;;  %v8213_v8 = vpop.permute.xlu2 %2758  ;;  %v10603_v6 = vld [vmem:[#allocation88_spill] sm:$0xff] }
 0x649   :  { %2472 = vst [vmem:[#allocation2 + $0x108] sm:$0xf] %v2468_v37  ;;  %v2628_v61 = vsel %vm10602_vm14, %v8211_v18, %v8064_v22  ;;  %v2763_v52 = vsel %vm316_vm5, %v8213_v8, %v8169_v38  ;;  %v3598_v5 = vmul.f32 %v3590_v29, %v10603_v6  ;;  %v8246_v29 = vld [vmem:[%s10183_s11 + $0x25] ss:$8 sm:$0xf]  ;;  %vm10637_vm14 = vmmov %vm10636_vm9 }
 0x64a   :  { %2475 = vst [vmem:[#allocation2 + $0x118] sm:$0xf] %v2471_v25  ;;  %v4138_v25 = vperm.slane %v8195_v40, 0  ;;  %v2481_v33 = vpop.permute.xlu1 %2480  ;;  %v2645_v0 = vmul.f32 %v2637_v57, %v2628_v61  ;;  %v2777_v37 = vmul.f32 %v2769_v59, %v2763_v52  ;;  %v3512_v52 = vperm.slane %v8150_v63, 3 }
 0x64b   :  { %3503 = vst [vmem:[#allocation2 + $0x110] sm:$0xf] %v10601_v16  ;;  %v2485_v16 = vsel %vm1348_vm11, %v7883_v20, %v2481_v33  ;;  %v8335_v6 = vld [vmem:[%s10183_s11 + $0x20] ss:$8 sm:$0xf] }
 0x64c   :  { %3534 = vst [vmem:[#allocation2 + $0x110] sm:$0xf0] %v3526_v3  ;;  %v2484_v3 = vsel %vm1348_vm11, %v2481_v33, %v8012_v4  ;;  %v2500_v1 = vmul.f32 %v2492_v32, %v2485_v16  ;;  %v4146_v57 = vmul.f32 %v4138_v25, %v4134_v47  ;;  %v2653_v59 = vrot.slane %v2645_v0, 4  ;;  %v10608_v16 = vld [vmem:[#allocation85_spill] sm:$0xff] }
 0x64d   :  { %v2501_v22 = vmul.f32 %v2493_v46, %v2484_v3  ;;  %v2785_v61 = vrot.slane %v2777_v37, 4  ;;  %v3511_v4 = vperm.slane %v8150_v63, 2  ;;  %v4278_v32 = vperm.slane %v8246_v29, 3  ;;  %v10607_v37 = vld [vmem:[#allocation83_spill] sm:$0xff] }
 0x64e   :  { %v8239_v38 = vld [vmem:[#allocation2 + $0x180] sm:$0xff]  ;;  %v2508_v51 = vrot.slane %v2500_v1, 4  ;;  %2661 = vst [vmem:[#allocation2 + $0x78] sm:$0xf0] %v2653_v59  ;;  %3046 = vrot.lane.b32.xlu0 %v7735_v12, %s10593_s1  ;;  %3116 = vrot.lane.b32.xlu2 %v7733_v28, %s10605_s17  ;;  %v2678_v46 = vperm.slane %v8237_v48, 2  ;;  %v2534_v1 = vperm.slane %v7902_v14, 2 }
 0x64f   :  { %10604 = vst [vmem:[#allocation38_spill] sm:$0xff] %v8239_v38  ;;  %v2509_v20 = vrot.slane %v2501_v22, 4  ;;  %2902 = vrot.lane.b32.xlu1 %v7735_v12, %s10486_s18  ;;  %v4154_v25 = vrot.slane %v4146_v57, 4  ;;  %v3519_v3 = vmul.f32 %v3511_v4, %v10607_v37  ;;  %v3520_v22 = vmul.f32 %v3512_v52, %v10608_v16  ;;  %v8281_v38 = vld [vmem:[%s10181_s9 + $0x23] ss:$8 sm:$0xf] }
 0x650   :  { %3602 = vst [vmem:[#allocation2 + $0x180] sm:$0xf] %v3598_v5  ;;  %v2533_v5 = vperm.slane %v7902_v14, 1  ;;  %v8258_v47 = vpop.permute.xlu0 %2664  ;;  %v8260_v33 = vpop.permute.xlu2 %2798  ;;  %v8262_v0 = vld [vmem:[#allocation2 + $0x108] sm:$0xff]  ;;  %v4286_v14 = vmul.f32 %v4278_v32, %v10608_v16  ;;  %v3509_v52 = vperm.slane %v8150_v63, 0  ;;  %v10610_v32 = vld [vmem:[#allocation37_spill] sm:$0xff] }
 0x651   :  { %2793 = vst [vmem:[#allocation2 + $0x88] sm:$0xf0] %v2785_v61  ;;  %v2671_v59 = vsel %vm10609_vm15, %v8258_v47, %v8102_v24  ;;  %v3528_v63 = vrot.slane %v3520_v22, 4  ;;  %v10613_v16 = vld [vmem:[#allocation81_spill] sm:$0xff]  ;;  %vm4006_vm11 = vcmp.lt.s32.totalorder %v6050_v9, 36  ;;  %v10614_v22 = vld [vmem:[#allocation76_spill] sm:$0xff] }
 0x652   :  { %2516 = vst [vmem:[#allocation2 + $0x90] sm:$0xf0] %v2508_v51  ;;  %v2521_v61 = vpop.permute.xlu1 %2520  ;;  %v2686_v51 = vmul.f32 %v2678_v46, %v2671_v59  ;;  %v3527_v46 = vrot.slane %v3519_v3, 4  ;;  %v3517_v3 = vmul.f32 %v3509_v52, %v10613_v16  ;;  %v10618_v24 = vld [vmem:[#allocation36_spill] sm:$0xff]  ;;  %vm10646_vm15 = vcmp.lt.s32.totalorder %v6050_v9, 114 }
 0x653   :  { %10606 = vst [vmem:[#allocation118_spill] sm:$0xff] %v8262_v0  ;;  %v2527_v57 = vsel %vm88_vm2, %v2521_v61, %v8062_v21  ;;  %v2528_v4 = vsel %vm88_vm2, %v7895_v17, %v2521_v61  ;;  %v8287_v21 = vld [vmem:[%s10182_s10 + $0x7] ss:$8 sm:$0xf] }
 0x654   :  { %2517 = vst [vmem:[#allocation2 + $0x118] sm:$0xf0] %v2509_v20  ;;  %v2541_v20 = vmul.f32 %v2533_v5, %v2528_v4  ;;  %v2542_v0 = vmul.f32 %v2534_v1, %v2527_v57  ;;  %v5719_v17 = vld [vmem:[%s10183_s11 + $0x5] ss:$8 sm:$0xf]  ;;  %v4294_v5 = vrot.slane %v4286_v14, 4 }
 0x655   :  { %4162 = vst [vmem:[#allocation2 + $0x180] sm:$0xf0] %v4154_v25  ;;  %v2707_v1 = vperm.slane %v8281_v38, 1  ;;  %v3561_v59 = vperm.slane %v8287_v21, 2  ;;  %v4016_v52 = vperm.slane %v5719_v17, 2 }
 0x656   :  { %3502 = vst [vmem:[#allocation2 + $0x108] sm:$0xf] %v10610_v32  ;;  %3154 = vrot.lane.b32.xlu0 %v7729_v36, %s10600_s25  ;;  %3086 = vrot.lane.b32.xlu2 %v7733_v28, %s10611_s24  ;;  %v8311_v14 = vld [vmem:[%s10182_s10 + $0x6] ss:$8 sm:$0xf]  ;;  %s10652_s10 = smov 64  }
 0x657   :  { %2690 = vst [vmem:[#allocation2 + $0x20] sm:$0xf] %v2686_v51  ;;  %2942 = vrot.lane.b32.xlu1 %v7733_v28, %s10489_s28 }
 0x658   :  { %2545 = vst [vmem:[#allocation2 + $0x100] sm:$0xf] %v2541_v20  ;;  %v8297_v25 = vld [vmem:[#allocation2 + $0x88] sm:$0xff]  ;;  %v2693_v51 = vpop.permute.xlu0 %2692  ;;  %v8313_v57 = vpop.permute.xlu2 %2826 }
 0x659   :  { %2546 = vst [vmem:[#allocation2 + $0x58] sm:$0xf] %v2542_v0  ;;  %v2563_v0 = vperm.slane %v8085_v23, 1  ;;  %v8306_v61 = vld [vmem:[#allocation2 + $0x90] sm:$0xff]  ;;  %v2702_v32 = vsel %vm228_vm4, %v2693_v51, %v8134_v13  ;;  %v3525_v13 = vrot.slane %v3517_v3, 4 }
 0x65a   :  { %10612 = vst [vmem:[#allocation83_spill] sm:$0xff] %v8297_v25  ;;  %v5718_v20 = vld [vmem:[%s10183_s11 + $0x4] ss:$8 sm:$0xf]  ;;  %v2549_v16 = vpop.permute.xlu1 %2548  ;;  %v3542_v25 = vperm.slane %v8311_v14, 2 }
 0x65b   :  { %4271 = vst [vmem:[#allocation2 + $0x88] sm:$0xf] %v10614_v22  ;;  %v8315_v4 = vld [vmem:[#allocation2 + $0x118] sm:$0xff]  ;;  %v10617_v22 = vld [vmem:[#allocation35_spill] sm:$0xff]  ;;  %v2558_v17 = vsel %vm130_vm1, %v2549_v16, %v8100_v35  ;;  %v3973_v35 = vperm.slane %v5718_v20, 2  ;;  %v10620_v20 = vld [vmem:[#allocation90_spill] sm:$0xff] }
 0x65c   :  { %10615 = vst [vmem:[#allocation85_spill] sm:$0xff] %v8306_v61  ;;  %v2571_v54 = vmul.f32 %v2563_v0, %v2558_v17  ;;  %v4095_v17 = vperm.slane %v8335_v6, 0 }
 0x65d   :  { %4302 = vst [vmem:[#allocation2 + $0x88] sm:$0xf0] %v4294_v5  ;;  %v4008_v5 = vsel %vm4006_vm11, %v7819_v2, %v7684_v60 }
 0x65e   :  { %10616 = vst [vmem:[#allocation37_spill] sm:$0xff] %v8315_v4  ;;  %v2715_v4 = vmul.f32 %v2707_v1, %v2702_v32  ;;  %v8342_v1 = vld [vmem:[%s10183_s11 + $0x7] ss:$8 sm:$0xf]  ;;  %v4024_v3 = vmul.f32 %v4016_v52, %v4008_v5  ;;  %3156 = vrot.lane.b32.xlu0 %v7731_v42, %s10600_s25  ;;  %3082 = vrot.lane.b32.xlu2 %v7729_v36, %s10611_s24 }
 0x65f   :  { %3504 = vst [vmem:[#allocation2 + $0x90] sm:$0xf] %v10617_v22  ;;  %v3569_v22 = vmul.f32 %v3561_v59, %v6964_v55  ;;  %v8348_v32 = vld [vmem:[%s10183_s11 + $0x6] ss:$8 sm:$0xf]  ;;  %v2579_v59 = vrot.slane %v2571_v54, 4  ;;  %2970 = vrot.lane.b32.xlu1 %v7731_v42, %s10579_s26 }
 0x660   :  { %3535 = vst [vmem:[#allocation2 + $0x90] sm:$0xf0] %v3527_v46  ;;  %v2723_v46 = vrot.slane %v2715_v4, 4  ;;  %v8354_v0 = vld [vmem:[#allocation2 + $0x58] sm:$0xff]  ;;  %v3550_v4 = vmul.f32 %v3542_v25, %v10620_v20  ;;  %v4066_v54 = vperm.slane %v8342_v1, 2  ;;  %v2565_v25 = vperm.slane %v8085_v23, 3  ;;  %v8371_v60 = vpop.permute.xlu0 %2698  ;;  %v8373_v2 = vpop.permute.xlu2 %2866 }
 0x661   :  { %3505 = vst [vmem:[#allocation2 + $0x118] sm:$0xf] %v10618_v24  ;;  %v3965_v24 = vsel %vm3963_vm12, %v7686_v27, %v7724_v44  ;;  %v3577_v5 = vrot.slane %v3569_v22, 4  ;;  %v4032_v52 = vrot.slane %v4024_v3, 4  ;;  %v2703_v22 = vsel %vm228_vm4, %v8371_v60, %v2693_v51  ;;  %s10639_s26 = smov 68  }
 0x662   :  { %3536 = vst [vmem:[#allocation2 + $0x118] sm:$0xf0] %v3528_v63  ;;  %v2706_v63 = vperm.slane %v8281_v38, 0  ;;  %v3981_v44 = vmul.f32 %v3973_v35, %v3965_v24  ;;  %v4074_v24 = vmul.f32 %v4066_v54, %v7475_v11  ;;  %v10624_v11 = vld [vmem:[#allocation49_spill] sm:$0xff]  ;;  %v2607_v54 = vperm.slane %v8118_v58, 3 }
 0x663   :  { %10619 = vst [vmem:[#allocation81_spill] sm:$0xff] %v8354_v0  ;;  %v8380_v0 = vld [vmem:[#allocation2 + $0x180] sm:$0xf] }
 0x664   :  { %3533 = vst [vmem:[#allocation2 + $0x108] sm:$0xf0] %v3525_v13  ;;  %v2562_v13 = vperm.slane %v8085_v23, 0  ;;  %v4103_v23 = vmul.f32 %v4095_v17, %v7293_v30  ;;  %v2714_v27 = vmul.f32 %v2706_v63, %v2703_v22  ;;  %v3541_v17 = vperm.slane %v8311_v14, 1 }
 0x665   :  { %2731 = vst [vmem:[#allocation2] sm:$0xf0] %v2723_v46  ;;  %v4047_v46 = vperm.slane %v8348_v32, 2 }
 0x666   :  { %2587 = vst [vmem:[#allocation2 + $0x100] sm:$0xf0] %v2579_v59  ;;  %v2555_v59 = vpop.permute.xlu1 %2554  ;;  %v2722_v30 = vrot.slane %v2714_v27, 4  ;;  %3112 = vrot.lane.b32.xlu0 %v7729_v36, %s10605_s17  ;;  %3804 = vrot.lane.b32.xlu2 %v10624_v11, %s10623_s27  ;;  %v3562_v27 = vperm.slane %v8287_v21, 3 }
 0x667   :  { %3554 = vst [vmem:[#allocation2 + $0x58] sm:$0xf] %v3550_v4  ;;  %v8378_v61 = vld [vmem:[#allocation2 + $0x90] sm:$0xff]  ;;  %v2556_v35 = vsel %vm130_vm1, %v7958_v10, %v2555_v59  ;;  %v2559_v3 = vsel %vm130_vm1, %v2555_v59, %v2549_v16  ;;  %v4055_v22 = vmul.f32 %v4047_v46, %v7403_v41  ;;  %3010 = vrot.lane.b32.xlu1 %v7729_v36, %s10587_s15  ;;  %v2606_v41 = vperm.slane %v8118_v58, 2 }
 0x668   :  { %3585 = vst [vmem:[#allocation2 + $0x58] sm:$0xf0] %v3577_v5  ;;  %v2570_v51 = vmul.f32 %v2562_v13, %v2559_v3  ;;  %v2573_v4 = vmul.f32 %v2565_v25, %v2556_v35  ;;  %v8392_v5 = vld [vmem:[%s10181_s9 + $0x40] ss:$8 sm:$0xf]  ;;  %v3543_v13 = vperm.slane %v8311_v14, 3  ;;  %v8409_v46 = vpop.permute.xlu0 %2756  ;;  %v8411_v59 = vpop.permute.xlu2 %2872  ;;  %v3549_v3 = vmul.f32 %v3541_v17, %v6998_v7 }
 0x669   :  { %10621 = vst [vmem:[#allocation76_spill] sm:$0xff] %v8378_v61  ;;  %v2883_v16 = vperm.slane %v8392_v5, 3  ;;  %v3560_v25 = vperm.slane %v8287_v21, 1  ;;  %v2760_v36 = vsel %vm316_vm5, %v8409_v46, %v8213_v8  ;;  %v2877_v58 = vsel %vm371_vm6, %v8411_v59, %v8373_v2 }
 0x66a   :  { %10622 = vst [vmem:[#allocation35_spill] sm:$0xff] %v8380_v0  ;;  %v2578_v63 = vrot.slane %v2570_v51, 4  ;;  %v2581_v10 = vrot.slane %v2573_v4, 4  ;;  %v8438_v51 = vld [vmem:[%s10181_s9 + $0x26] ss:$8 sm:$0xf] }
 0x66b   :  { %3985 = vst [vmem:[#allocation2 + $0x90] sm:$0xf] %v3981_v44  ;;  %v2768_v44 = vperm.slane %v8183_v45, 2 }
 0x66c   :  { %4040 = vst [vmem:[#allocation2 + $0x90] sm:$0xf0] %v4032_v52  ;;  %v4082_v52 = vrot.slane %v4074_v24, 4 }
 0x66d   :  { %4107 = vst [vmem:[#allocation2 + $0x180] sm:$0xf] %v4103_v23  ;;  %v8415_v35 = vld [vmem:[#allocation2 + $0x100] sm:$0xff]  ;;  %v2776_v4 = vmul.f32 %v2768_v44, %v2760_v36 }
 0x66e   :  { %2730 = vst [vmem:[#allocation2 + $0xa0] sm:$0xf0] %v2722_v30  ;;  %v2595_v24 = vpop.permute.xlu1 %2594  ;;  %v2891_v30 = vmul.f32 %v2883_v16, %v2877_v58  ;;  %v10629_v16 = vld [vmem:[#allocation91_spill] sm:$0xff]  ;;  %3084 = vrot.lane.b32.xlu0 %v7731_v42, %s10611_s24 }
 0x66f   :  { %2586 = vst [vmem:[#allocation2 + $0x148] sm:$0xf0] %v2578_v63  ;;  %v8413_v23 = vld [vmem:[#allocation2 + $0x58] sm:$0xff]  ;;  %v2598_v17 = vsel %vm10627_vm13, %v2595_v24, %v8167_v62  ;;  %v2599_v8 = vsel %vm10628_vm0, %v7982_v26, %v2595_v24  ;;  %v3570_v63 = vmul.f32 %v3562_v27, %v6979_v31  ;;  %v2784_v44 = vrot.slane %v2776_v4, 4  ;;  %v10631_v27 = vld [vmem:[#allocation56_spill] sm:$0xff]  ;;  %3016 = vrot.lane.b32.xlu1 %v7735_v12, %s10587_s15 }
 0x670   :  { %2589 = vst [vmem:[#allocation2 + $0xd8] sm:$0xf0] %v2581_v10  ;;  %v2614_v10 = vmul.f32 %v2606_v41, %v2599_v8  ;;  %v2615_v11 = vmul.f32 %v2607_v54, %v2598_v17  ;;  %v3540_v62 = vperm.slane %v8311_v14, 0  ;;  %v4277_v26 = vperm.slane %v8246_v29, 2  ;;  %3904 = vrot.lane.b32.xlu2 %v10631_v27, %s10630_s19  ;;  %v8457_v36 = vpop.permute.xlu2 %2900  ;;  %v10634_v24 = vld [vmem:[#allocation92_spill] sm:$0xff] }
 0x671   :  { %10625 = vst [vmem:[#allocation36_spill] sm:$0xff] %v8413_v23  ;;  %v2809_v41 = vperm.slane %v8438_v51, 1  ;;  %v3578_v54 = vrot.slane %v3570_v63, 4  ;;  %v2635_v14 = vperm.slane %v8031_v50, 1  ;;  %v2636_v29 = vperm.slane %v8031_v50, 2 }
 0x672   :  { %10626 = vst [vmem:[#allocation90_spill] sm:$0xff] %v8415_v35  ;;  %v3548_v4 = vmul.f32 %v3540_v62, %v10634_v24  ;;  %v4131_v8 = vsel %vm4130_vm10, %v7716_v49, %v7718_v43  ;;  %v4048_v43 = vperm.slane %v8348_v32, 3  ;;  %v3593_v27 = vperm.slane %v8188_v19, 3  ;;  %v10649_v35 = vld [vmem:[#allocation89_spill] sm:$0xff] }
 0x673   :  { %4059 = vst [vmem:[#allocation2 + $0x58] sm:$0xf] %v4055_v22  ;;  %v3568_v22 = vmul.f32 %v3560_v25, %v7011_v15  ;;  %vm10648_vm13 = vcmp.lt.s32.totalorder %v6050_v9, 2 }
 0x674   :  { %4090 = vst [vmem:[#allocation2 + $0x58] sm:$0xf0] %v4082_v52  ;;  %v3551_v52 = vmul.f32 %v3543_v13, %v10629_v16  ;;  %vm10659_vm0 = vmmov %vm10648_vm13 }
 0x675   :  { %3553 = vst [vmem:[#allocation2 + $0x100] sm:$0xf] %v3549_v3  ;;  %v3576_v13 = vrot.slane %v3568_v22, 4  ;;  %v8455_v3 = vpop.permute.xlu0 %2796  ;;  %v4285_v22 = vmul.f32 %v4277_v26, %v10607_v37  ;;  %v10638_v37 = vld [vmem:[#allocation72_spill] sm:$0xff] }
 0x676   :  { %2895 = vst [vmem:[#allocation2 + $0x38] sm:$0xf] %v2891_v30  ;;  %v8459_v58 = vld [vmem:[#allocation2 + $0x148] sm:$0xff]  ;;  %v4141_v30 = vperm.slane %v8195_v40, 3  ;;  %v2803_v17 = vsel %vm10635_vm3, %v8455_v3, %v8260_v33  ;;  %v2623_v50 = vpop.permute.xlu1 %2622  ;;  %4177 = vrot.lane.b32.xlu0 %v10638_v37, %s5866_s30  ;;  %v10640_v26 = vld [vmem:[#allocation44_spill] sm:$0xff]  ;;  %v4139_v37 = vperm.slane %v8195_v40, 1  ;;  %vm10660_vm3 = vmmov %vm10659_vm0 }
 0x677   :  { %2618 = vst [vmem:[#allocation2 + $0x138] sm:$0xf] %v2614_v10  ;;  %v8453_v25 = vld [vmem:[#allocation2 + $0xd8] sm:$0xff]  ;;  %v2817_v63 = vmul.f32 %v2809_v41, %v2803_v17  ;;  %v2629_v10 = vsel %vm10636_vm9, %v2623_v50, %v8211_v18  ;;  %3044 = vrot.lane.b32.xlu1 %v7733_v28, %s10593_s1  ;;  %vm10669_vm9 = vcmp.lt.s32.totalorder %v6050_v9, 110 }
 0x678   :  { %2792 = vst [vmem:[#allocation2 + $0xa8] sm:$0xf0] %v2784_v44  ;;  %v2644_v62 = vmul.f32 %v2636_v29, %v2629_v10  ;;  %v4149_v18 = vmul.f32 %v4141_v30, %v4131_v8  ;;  %3762 = vrot.lane.b32.xlu2 %v10640_v26, %s10639_s26  ;;  %v10641_v29 = vld [vmem:[#allocation75_spill] sm:$0xff]  ;;  %v2677_v30 = vperm.slane %v8237_v48, 1 }
 0x679   :  { %2619 = vst [vmem:[#allocation2 + $0x78] sm:$0xf] %v2615_v11  ;;  %v2630_v11 = vsel %vm10637_vm14, %v8014_v56, %v2623_v50  ;;  %v10643_v50 = vld [vmem:[#allocation33_spill] sm:$0xff]  ;;  %vm4185_vm14 = vcmp.lt.s32.totalorder %v6050_v9, 4 }
 0x67a   :  { %10632 = vst [vmem:[#allocation49_spill] sm:$0xff] %v8453_v25  ;;  %v2643_v44 = vmul.f32 %v2635_v14, %v2630_v11  ;;  %v4056_v8 = vmul.f32 %v4048_v43, %v10643_v50  ;;  %v10645_v11 = vld [vmem:[#allocation23_spill] sm:$0xff]  ;;  %v4157_v28 = vrot.slane %v4149_v18, 4 }
 0x67b   :  { %3555 = vst [vmem:[#allocation2 + $0xd8] sm:$0xf] %v3551_v52  ;;  %v8481_v52 = vld [vmem:[%s10181_s9 + $0x27] ss:$8 sm:$0xf] }
 0x67c   :  { %10633 = vst [vmem:[#allocation91_spill] sm:$0xff] %v8459_v58  ;;  %v2651_v41 = vrot.slane %v2643_v44, 4  ;;  %v2838_v14 = vperm.slane %v8481_v52, 0  ;;  %v4132_v44 = vsel %vm4130_vm10, %v10645_v11, %v7716_v49  ;;  %v4133_v49 = vsel %vm4130_vm10, %v7722_v34, %v10645_v11  ;;  %v8525_v18 = vld [vmem:[%s10183_s11 + $0x23] ss:$8 sm:$0xf]  ;;  %vm10656_vm10 = vmmov %vm10646_vm15 }
 0x67d   :  { %3586 = vst [vmem:[#allocation2 + $0xd8] sm:$0xf0] %v3578_v54  ;;  %v2652_v54 = vrot.slane %v2644_v62, 4  ;;  %v8505_v62 = vpop.permute.xlu2 %2940  ;;  %v4213_v11 = vperm.slane %v8525_v18, 1 }
 0x67e   :  { %3584 = vst [vmem:[#allocation2 + $0x100] sm:$0xf0] %v3576_v13  ;;  %v4293_v13 = vrot.slane %v4285_v22, 4  ;;  %v2825_v22 = vpop.permute.xlu0 %2824  ;;  %v2663_v26 = vpop.permute.xlu1 %2662 }
 0x67f   :  { %3552 = vst [vmem:[#allocation2 + $0x148] sm:$0xf] %v3548_v4  ;;  %v8485_v56 = vld [vmem:[#allocation2 + $0xa8] sm:$0xff]  ;;  %v4140_v4 = vperm.slane %v8195_v40, 2  ;;  %v2834_v43 = vsel %vm10646_vm15, %v2825_v22, %v8313_v57  ;;  %v2672_v40 = vsel %vm10648_vm13, %v2663_v26, %v8258_v47  ;;  %v10650_v47 = vld [vmem:[#allocation86_spill] sm:$0xff]  ;;  %3160 = vrot.lane.b32.xlu1 %v7735_v12, %s10600_s25  ;;  %vm10691_vm15 = vcmp.lt.s32.totalorder %v6050_v9, 126 }
 0x680   :  { %2821 = vst [vmem:[#allocation2 + $0x170] sm:$0xf] %v2817_v63  ;;  %v8497_v17 = vld [vmem:[#allocation2 + $0x78] sm:$0xff]  ;;  %v10644_v63 = vld [vmem:[#allocation87_spill] sm:$0xff]  ;;  %v2685_v50 = vmul.f32 %v2677_v30, %v2672_v40  ;;  %v2841_v30 = vperm.slane %v8481_v52, 3  ;;  %vm4365_vm13 = vcmp.lt.s32.totalorder %v6050_v9, 100 }
 0x681   :  { %4270 = vst [vmem:[#allocation2 + $0xa8] sm:$0xf] %v10641_v29  ;;  %v3601_v10 = vmul.f32 %v3593_v27, %v10644_v63  ;;  %v3592_v29 = vperm.slane %v8188_v19, 2 }
 0x682   :  { %2659 = vst [vmem:[#allocation2 + $0x130] sm:$0xf0] %v2651_v41  ;;  %v3591_v41 = vperm.slane %v8188_v19, 1  ;;  %v4098_v19 = vperm.slane %v8335_v6, 3 }
 0x683   :  { %10642 = vst [vmem:[#allocation56_spill] sm:$0xff] %v8497_v17 }
 0x684   :  { %2660 = vst [vmem:[#allocation2 + $0x138] sm:$0xf0] %v2652_v54  ;;  %v8512_v27 = vld [vmem:[#allocation2 + $0xd8] sm:$0xff]  ;;  %v2846_v54 = vmul.f32 %v2838_v14, %v2834_v43  ;;  %v3599_v34 = vmul.f32 %v3591_v41, %v10649_v35  ;;  %v4147_v14 = vmul.f32 %v4139_v37, %v4133_v49  ;;  %v2676_v41 = vperm.slane %v8237_v48, 0 }
 0x685   :  { %4301 = vst [vmem:[#allocation2 + $0xa8] sm:$0xf0] %v4293_v13  ;;  %v4148_v13 = vmul.f32 %v4140_v4, %v4132_v44  ;;  %v10651_v43 = vld [vmem:[#allocation61_spill] sm:$0xff]  ;;  %v10653_v4 = vld [vmem:[#allocation54_spill] sm:$0xff]  ;;  %v4097_v49 = vperm.slane %v8335_v6, 2  ;;  %v8549_v40 = vpop.permute.xlu2 %2968 }
 0x686   :  { %10647 = vst [vmem:[#allocation92_spill] sm:$0xff] %v8512_v27  ;;  %v2854_v0 = vrot.slane %v2846_v54, 4  ;;  %3902 = vrot.lane.b32.xlu0 %v10651_v43, %s10630_s19  ;;  %3859 = vrot.lane.b32.xlu2 %v10653_v4, %s10652_s10  ;;  %v8547_v54 = vpop.permute.xlu0 %2830  ;;  %v2669_v43 = vpop.permute.xlu1 %2668  ;;  %v10658_v4 = vld [vmem:[#allocation15_spill] sm:$0xff] }
 0x687   :  { %3605 = vst [vmem:[#allocation2 + $0x78] sm:$0xf] %v3601_v10  ;;  %v3600_v10 = vmul.f32 %v3592_v29, %v10650_v47  ;;  %v4067_v29 = vperm.slane %v8342_v1, 3  ;;  %v2670_v61 = vsel %vm10659_vm0, %v10658_v4, %v2669_v43  ;;  %v10663_v4 = vld [vmem:[#allocation24_spill] sm:$0xff]  ;;  %3118 = vrot.lane.b32.xlu1 %v7735_v12, %s10605_s17  ;;  %vm10704_vm0 = vmmov %vm10691_vm15 }
 0x688   :  { %4165 = vst [vmem:[#allocation2 + $0x78] sm:$0xf0] %v4157_v28  ;;  %v2679_v28 = vperm.slane %v8237_v48, 3  ;;  %v2835_v48 = vsel %vm10656_vm10, %v8547_v54, %v2825_v22  ;;  %v8567_v22 = vld [vmem:[%s10181_s9 + $0x43] ss:$8 sm:$0xf]  ;;  %v4105_v58 = vmul.f32 %v4097_v49, %v10663_v4 }
 0x689   :  { %4060 = vst [vmem:[#allocation2 + $0xd8] sm:$0xf] %v4056_v8  ;;  %v8536_v44 = vld [vmem:[#allocation2 + $0x130] sm:$0xff]  ;;  %v4156_v8 = vrot.slane %v4148_v13, 4  ;;  %v3559_v13 = vperm.slane %v8287_v21, 0  ;;  %v4212_v21 = vperm.slane %v8525_v18, 0 }
 0x68a   :  { %2689 = vst [vmem:[#allocation2] sm:$0xf] %v2685_v50  ;;  %v4155_v50 = vrot.slane %v4147_v14, 4  ;;  %v2687_v23 = vmul.f32 %v2679_v28, %v2670_v61  ;;  %v10665_v61 = vld [vmem:[#allocation63_spill] sm:$0xff]  ;;  %v2985_v28 = vperm.slane %v8567_v22, 3  ;;  %v2708_v49 = vperm.slane %v8281_v38, 2 }
 0x68b   :  { %2862 = vst [vmem:[#allocation2 + $0xb8] sm:$0xf0] %v2854_v0  ;;  %v8542_v37 = vld [vmem:[#allocation2 + $0x138] sm:$0xff]  ;;  %v4106_v0 = vmul.f32 %v4098_v19, %v7252_v53  ;;  %v4221_v53 = vmul.f32 %v4213_v11, %v10592_v39  ;;  %v2849_v19 = vmul.f32 %v2841_v30, %v2835_v48  ;;  %v10661_v39 = vld [vmem:[#allocation70_spill] sm:$0xff]  ;;  %vm4322_vm10 = vcmp.lt.s32.totalorder %v6050_v9, 124 }
 0x68c   :  { %10654 = vst [vmem:[#allocation72_spill] sm:$0xff] %v8536_v44  ;;  %v4075_v11 = vmul.f32 %v4067_v29, %v10661_v39  ;;  %v10667_v29 = vld [vmem:[#allocation59_spill] sm:$0xff] }
 0x68d   :  { %10655 = vst [vmem:[#allocation44_spill] sm:$0xff] %v8542_v37  ;;  %v2857_v30 = vrot.slane %v2849_v19, 4  ;;  %v4065_v19 = vperm.slane %v8342_v1, 1  ;;  %v8611_v27 = vld [vmem:[%s10181_s9 + $0x41] ss:$8 sm:$0xf] }
 0x68e   :  { %3603 = vst [vmem:[#allocation2 + $0x130] sm:$0xf] %v3599_v34  ;;  %v8555_v34 = vld [vmem:[#allocation2 + $0x78] sm:$0xf]  ;;  %3955 = vrot.lane.b32.xlu2 %v10665_v61, %s5863_s2  ;;  %v8589_v39 = vpop.permute.xlu0 %2870 }
 0x68f   :  { %3604 = vst [vmem:[#allocation2 + $0x138] sm:$0xf] %v3600_v10  ;;  %v2673_v10 = vsel %vm10660_vm3, %v2669_v43, %v2663_v26  ;;  %v4229_v26 = vrot.slane %v4221_v53, 4  ;;  %v4220_v43 = vmul.f32 %v4212_v21, %v10667_v29  ;;  %3088 = vrot.lane.b32.xlu1 %v7735_v12, %s10611_s24  ;;  %v10680_v12 = vld [vmem:[#allocation84_spill] sm:$0xff]  ;;  %vm10705_vm3 = vmmov %vm10704_vm0  ;;  %s10049_s24 = sld [smem:[#allocation3 + $0x6]] }
 0x690   :  { %4164 = vst [vmem:[#allocation2 + $0x138] sm:$0xf0] %v4156_v8  ;;  %v2684_v14 = vmul.f32 %v2676_v41, %v2673_v10  ;;  %v10662_v8 = vld [vmem:[#allocation93_spill] sm:$0xff]  ;;  %v2882_v41 = vperm.slane %v8392_v5, 2  ;;  %v4064_v10 = vperm.slane %v8342_v1, 0  ;;  %v2697_v1 = vpop.permute.xlu1 %2696 }
 0x691   :  { %10657 = vst [vmem:[#allocation75_spill] sm:$0xff] %v8555_v34  ;;  %v3567_v48 = vmul.f32 %v3559_v13, %v10662_v8  ;;  %v2709_v13 = vperm.slane %v8281_v38, 3  ;;  %v2874_v38 = vsel %vm371_vm6, %v8589_v39, %v8411_v59  ;;  %v4228_v61 = vrot.slane %v4220_v43, 4  ;;  %v8743_v44 = vld [vmem:[%s10183_s11 + $0x43] ss:$8 sm:$0xf] }
 0x692   :  { %4110 = vst [vmem:[#allocation2 + $0x78] sm:$0xf] %v4106_v0  ;;  %v10664_v0 = vld [vmem:[#allocation67_spill] sm:$0xff]  ;;  %v10703_v34 = vld [vmem:[#allocation32_spill] sm:$0xff] }
 0x693   :  { %4163 = vst [vmem:[#allocation2 + $0x130] sm:$0xf0] %v4155_v50  ;;  %3998 = vrot.lane.b32.xlu0 %v10664_v0, %s5867_s16  ;;  %v8578_v50 = vld [vmem:[#allocation2] sm:$0xff]  ;;  %v3575_v21 = vrot.slane %v3567_v48, 4 }
 0x694   :  { %2688 = vst [vmem:[#allocation2 + $0xa0] sm:$0xf] %v2684_v14  ;;  %v4083_v14 = vrot.slane %v4075_v11, 4  ;;  %v2890_v11 = vmul.f32 %v2882_v41, %v2874_v38  ;;  %v10672_v38 = vld [vmem:[#allocation27_spill] sm:$0xff] }
 0x695   :  { %2865 = vst [vmem:[#allocation2 + $0x140] sm:$0xf0] %v2857_v30  ;;  %v8591_v30 = vpop.permute.xlu2 %2974 }
 0x696   :  { %10666 = vst [vmem:[#allocation33_spill] sm:$0xff] %v8578_v50  ;;  %v8585_v53 = vld [vmem:[#allocation2 + $0x138] sm:$0xf]  ;;  %v2979_v4 = vsel %vm10669_vm9, %v8591_v30, %v8549_v40  ;;  %vm4489_vm9 = vcmp.lt.s32.totalorder %v6050_v9, 92 }
 0x697   :  { %2691 = vst [vmem:[#allocation2 + $0xe0] sm:$0xf] %v2687_v23  ;;  %v4096_v23 = vperm.slane %v8335_v6, 1  ;;  %v2993_v0 = vmul.f32 %v2985_v28, %v2979_v4  ;;  %v10670_v6 = vld [vmem:[#allocation9_spill] sm:$0xff]  ;;  %v4073_v4 = vmul.f32 %v4065_v19, %v10672_v38  ;;  %v2766_v19 = vperm.slane %v8183_v45, 0  ;;  %3114 = vrot.lane.b32.xlu1 %v7731_v42, %s10605_s17 }
 0x698   :  { %10668 = vst [vmem:[#allocation87_spill] sm:$0xff] %v8585_v53  ;;  %v2701_v48 = vsel %vm228_vm4, %v10670_v6, %v2697_v1  ;;  %v8631_v6 = vld [vmem:[#allocation2 + $0x100] sm:$0xff] }
 0x699   :  { %4109 = vst [vmem:[#allocation2 + $0x138] sm:$0xf] %v4105_v58  ;;  %v2700_v58 = vsel %vm228_vm4, %v2697_v1, %v8371_v60  ;;  %v2716_v59 = vmul.f32 %v2708_v49, %v2701_v48  ;;  %v3001_v41 = vrot.slane %v2993_v0, 4  ;;  %v4045_v60 = vperm.slane %v8348_v32, 0  ;;  %v10673_v49 = vld [vmem:[#allocation25_spill] sm:$0xff]  ;;  %v10674_v1 = vld [vmem:[#allocation47_spill] sm:$0xff] }
 0x69a   :  { %4237 = vst [vmem:[#allocation2] sm:$0xf0] %v4229_v26  ;;  %v2717_v29 = vmul.f32 %v2709_v13, %v2700_v58  ;;  %v4046_v26 = vperm.slane %v8348_v32, 1  ;;  %v4072_v13 = vmul.f32 %v4064_v10, %v10673_v49  ;;  %v8624_v0 = vld [vmem:[#allocation2 + $0x130] sm:$0xf]  ;;  %v10677_v58 = vld [vmem:[#allocation73_spill] sm:$0xff] }
 0x69b   :  { %4091 = vst [vmem:[#allocation2 + $0xd8] sm:$0xf0] %v4083_v14  ;;  %v8614_v28 = vld [vmem:[#allocation2 + $0xa0] sm:$0xff]  ;;  %v2724_v14 = vrot.slane %v2716_v59, 4  ;;  %3808 = vrot.lane.b32.xlu0 %v10674_v1, %s10623_s27  ;;  %v4104_v32 = vmul.f32 %v4096_v23, %v10677_v58  ;;  %v2767_v10 = vperm.slane %v8183_v45, 1  ;;  %v10679_v48 = vld [vmem:[#allocation55_spill] sm:$0xff]  ;;  %v8640_v23 = vpop.permute.xlu0 %2898  ;;  %v4053_v38 = vmul.f32 %v4045_v60, %v10680_v12 }
 0x69c   :  { %3583 = vst [vmem:[#allocation2 + $0x148] sm:$0xf0] %v3575_v21  ;;  %v2725_v43 = vrot.slane %v2717_v29, 4  ;;  %v2911_v21 = vperm.slane %v8611_v27, 1  ;;  %v4214_v59 = vperm.slane %v8525_v18, 2  ;;  %v2905_v45 = vsel %vm414_vm7, %v8640_v23, %v8457_v36 }
 0x69d   :  { %2894 = vst [vmem:[#allocation2 + $0x190] sm:$0xf] %v2890_v11  ;;  %v10675_v11 = vld [vmem:[#allocation52_spill] sm:$0xff]  ;;  %v4080_v49 = vrot.slane %v4072_v13, 4 }
 0x69e   :  { %10671 = vst [vmem:[#allocation23_spill] sm:$0xff] %v8614_v28  ;;  %3863 = vrot.lane.b32.xlu2 %v10675_v11, %s10652_s10  ;;  %v8638_v29 = vld [vmem:[%s10183_s11 + $0x22] ss:$8 sm:$0xf]  ;;  %v2919_v1 = vmul.f32 %v2911_v21, %v2905_v45  ;;  %v4215_v21 = vperm.slane %v8525_v18, 3 }
 0x69f   :  { %4236 = vst [vmem:[#allocation2 + $0xa0] sm:$0xf0] %v4228_v61  ;;  %v4054_v61 = vmul.f32 %v4046_v26, %v10679_v48  ;;  %v2755_v26 = vpop.permute.xlu1 %2754  ;;  %v10681_v11 = vld [vmem:[#allocation69_spill] sm:$0xff]  ;;  %v4195_v58 = vperm.slane %v8638_v29, 2  ;;  %v10702_v28 = vld [vmem:[#allocation26_spill] sm:$0xff] }
 0x6a0   :  { %3009 = vst [vmem:[#allocation2 + $0x120] sm:$0xf0] %v3001_v41  ;;  %v8642_v41 = vpop.permute.xlu2 %3014  ;;  %v2762_v60 = vsel %vm316_vm5, %v10681_v11, %v2755_v26  ;;  %v8662_v13 = vld [vmem:[%s10181_s9 + $0x42] ss:$8 sm:$0xf] }
 0x6a1   :  { %10676 = vst [vmem:[#allocation89_spill] sm:$0xff] %v8624_v0  ;;  %v2774_v48 = vmul.f32 %v2766_v19, %v2762_v60  ;;  %v10684_v45 = vld [vmem:[#allocation29_spill] sm:$0xff]  ;;  %v4196_v19 = vperm.slane %v8638_v29, 3  ;;  %v10686_v11 = vld [vmem:[#allocation39_spill] sm:$0xff] }
 0x6a2   :  { %2732 = vst [vmem:[#allocation2 + $0x20] sm:$0xf0] %v2724_v14  ;;  %v4081_v14 = vrot.slane %v4073_v4, 4  ;;  %v10687_v18 = vld [vmem:[#allocation57_spill] sm:$0xff] }
 0x6a3   :  { %10678 = vst [vmem:[#allocation86_spill] sm:$0xff] %v8631_v6  ;;  %v8656_v4 = vld [vmem:[#allocation2 + $0x148] sm:$0xff]  ;;  %3906 = vrot.lane.b32.xlu0 %v10687_v18, %s10630_s19  ;;  %v10688_v60 = vld [vmem:[#allocation53_spill] sm:$0xff]  ;;  %v2939_v18 = vpop.permute.xlu0 %2938 }
 0x6a4   :  { %2733 = vst [vmem:[#allocation2 + $0xe0] sm:$0xf0] %v2725_v43  ;;  %v2761_v43 = vsel %vm316_vm5, %v2755_v26, %v8409_v46  ;;  %v10683_v46 = vld [vmem:[#allocation77_spill] sm:$0xff]  ;;  %v10685_v6 = vld [vmem:[#allocation31_spill] sm:$0xff]  ;;  %v2948_v42 = vsel %vm469_vm8, %v2939_v18, %v8505_v62 }
 0x6a5   :  { %4108 = vst [vmem:[#allocation2 + $0x130] sm:$0xf] %v4104_v32  ;;  %v2775_v12 = vmul.f32 %v2767_v10, %v2761_v43  ;;  %v4222_v32 = vmul.f32 %v4214_v59, %v10683_v46  ;;  %v4187_v26 = vsel %vm4185_vm14, %v10685_v6, %v10684_v45  ;;  %v2782_v10 = vrot.slane %v2774_v48, 4  ;;  %v10690_v46 = vld [vmem:[#allocation58_spill] sm:$0xff] }
 0x6a6   :  { %10682 = vst [vmem:[#allocation61_spill] sm:$0xff] %v8656_v4  ;;  %v2952_v59 = vperm.slane %v8662_v13, 0  ;;  %3857 = vrot.lane.b32.xlu2 %v10688_v60, %s10652_s10  ;;  %v10700_v4 = vld [vmem:[#allocation82_spill] sm:$0xff] }
 0x6a7   :  { %4058 = vst [vmem:[#allocation2 + $0x100] sm:$0xf] %v4054_v61  ;;  %v2927_v61 = vrot.slane %v2919_v1, 4  ;;  %v2783_v43 = vrot.slane %v2775_v12, 4  ;;  %v4203_v1 = vmul.f32 %v4195_v58, %v4187_v26  ;;  %v10699_v58 = vld [vmem:[#allocation78_spill] sm:$0xff] }
 0x6a8   :  { %4057 = vst [vmem:[#allocation2 + $0x148] sm:$0xf] %v4053_v38  ;;  %v4186_v38 = vsel %vm4185_vm14, %v10684_v45, %v10686_v11  ;;  %v4223_v45 = vmul.f32 %v4215_v21, %v10690_v46  ;;  %v8690_v60 = vpop.permute.xlu2 %3042  ;;  %v2960_v48 = vmul.f32 %v2952_v59, %v2948_v42  ;;  %v8703_v46 = vld [vmem:[%s10183_s11 + $0x27] ss:$8 sm:$0xf]  ;;  %v2810_v42 = vperm.slane %v8438_v51, 2 }
 0x6a9   :  { %4088 = vst [vmem:[#allocation2 + $0x148] sm:$0xf0] %v4080_v49  ;;  %v8680_v49 = vld [vmem:[#allocation2 + $0x20] sm:$0xff]  ;;  %v4204_v26 = vmul.f32 %v4196_v19, %v4186_v38  ;;  %v4373_v19 = vperm.slane %v8703_v46, 0  ;;  %v10692_v38 = vld [vmem:[#allocation21_spill] sm:$0xff]  ;;  %v10693_v59 = vld [vmem:[#allocation28_spill] sm:$0xff] }
 0x6aa   :  { %4089 = vst [vmem:[#allocation2 + $0x100] sm:$0xf0] %v4081_v14  ;;  %v2808_v14 = vperm.slane %v8438_v51, 0 }
 0x6ab   :  { %2935 = vst [vmem:[#allocation2 + $0x168] sm:$0xf0] %v2927_v61  ;;  %v8687_v12 = vld [vmem:[#allocation2 + $0xe0] sm:$0xff]  ;;  %v4230_v61 = vrot.slane %v4222_v32, 4  ;;  %v8730_v0 = vpop.permute.xlu0 %2944 }
 0x6ac   :  { %2790 = vst [vmem:[#allocation2 + $0xf0] sm:$0xf0] %v2782_v10  ;;  %v2795_v10 = vpop.permute.xlu1 %2794 }
 0x6ad   :  { %10689 = vst [vmem:[#allocation54_spill] sm:$0xff] %v8687_v12  ;;  %v2804_v21 = vsel %vm10691_vm15, %v2795_v10, %v8455_v3  ;;  %v4368_v3 = vsel %vm4365_vm13, %v10693_v59, %v10692_v38  ;;  %vm10712_vm15 = vcmp.lt.s32.totalorder %v6050_v9, 110 }
 0x6ae   :  { %2791 = vst [vmem:[#allocation2 + $0x188] sm:$0xf0] %v2783_v43  ;;  %v2816_v32 = vmul.f32 %v2808_v14, %v2804_v21  ;;  %v4231_v43 = vrot.slane %v4223_v45, 4  ;;  %v2955_v14 = vperm.slane %v8662_v13, 3  ;;  %v2811_v21 = vperm.slane %v8438_v51, 3 }
 0x6af   :  { %4207 = vst [vmem:[#allocation2 + $0x20] sm:$0xf] %v4203_v1  ;;  %v10694_v1 = vld [vmem:[#allocation48_spill] sm:$0xff]  ;;  %v4381_v51 = vmul.f32 %v4373_v19, %v4368_v3 }
 0x6b0   :  { %4238 = vst [vmem:[#allocation2 + $0x20] sm:$0xf0] %v4230_v61  ;;  %3802 = vrot.lane.b32.xlu0 %v10694_v1, %s10623_s27  ;;  %v10696_v61 = vld [vmem:[#allocation80_spill] sm:$0xff]  ;;  %v4291_v1 = vrot.slane %v10700_v4, 4  ;;  %v2949_v4 = vsel %vm469_vm8, %v8730_v0, %v2939_v18 }
 0x6b1   :  { %4208 = vst [vmem:[#allocation2 + $0xe0] sm:$0xf] %v4204_v26  ;;  %v10697_v26 = vld [vmem:[#allocation66_spill] sm:$0xff]  ;;  %v2963_v53 = vmul.f32 %v2955_v14, %v2949_v4  ;;  %v4389_v37 = vrot.slane %v4381_v51, 4 }
 0x6b2   :  { %2964 = vst [vmem:[#allocation2 + $0x60] sm:$0xf] %v2960_v48  ;;  %v4292_v48 = vrot.slane %v10696_v61, 4  ;;  %4004 = vrot.lane.b32.xlu1 %v10697_v26, %s5867_s16  ;;  %v8732_v61 = vpop.permute.xlu2 %3158  ;;  %v10701_v26 = vld [vmem:[#allocation79_spill] sm:$0xff]  ;;  %v10706_v14 = vld [vmem:[#allocation102_spill] sm:$0xff] }
 0x6b3   :  { %2820 = vst [vmem:[#allocation2 + $0xb8] sm:$0xf] %v2816_v32  ;;  %v8714_v45 = vld [vmem:[#allocation2 + $0xf0] sm:$0xff]  ;;  %v10707_v4 = vld [vmem:[#allocation110_spill] sm:$0xff] }
 0x6b4   :  { %4239 = vst [vmem:[#allocation2 + $0xe0] sm:$0xf0] %v4231_v43  ;;  %v8728_v43 = vld [vmem:[%s10183_s11 + $0x26] ss:$8 sm:$0xf] }
 0x6b5   :  { %10695 = vst [vmem:[#allocation15_spill] sm:$0xff] %v8714_v45  ;;  %v8721_v32 = vld [vmem:[#allocation2 + $0x188] sm:$0xff]  ;;  %v4330_v50 = vperm.slane %v8728_v43, 0 }
 0x6b6   :  { %10698 = vst [vmem:[#allocation70_spill] sm:$0xff] %v8721_v32  ;;  %v8757_v3 = vld [vmem:[%s10183_s11 + $0x42] ss:$8 sm:$0xf]  ;;  %v4194_v32 = vperm.slane %v8638_v29, 1 }
 0x6b7   :  { %4268 = vst [vmem:[#allocation2 + $0xf0] sm:$0xf] %v10699_v58  ;;  %v2801_v58 = vpop.permute.xlu1 %2800 }
 0x6b8   :  { %4269 = vst [vmem:[#allocation2 + $0x188] sm:$0xf] %v10701_v26  ;;  %v4325_v26 = vsel %vm4322_vm10, %v10703_v34, %v10702_v28  ;;  %v2802_v19 = vsel %vm10704_vm0, %v8260_v33, %v2801_v58  ;;  %v2805_v18 = vsel %vm10705_vm3, %v2801_v58, %v2795_v10  ;;  %v4493_v33 = vsel %vm4489_vm9, %v10707_v4, %v10706_v14 }
 0x6b9   :  { %4300 = vst [vmem:[#allocation2 + $0x188] sm:$0xf0] %v4292_v48  ;;  %v4500_v48 = vperm.slane %v8743_v44, 3  ;;  %v2818_v25 = vmul.f32 %v2810_v42, %v2802_v19  ;;  %v2819_v17 = vmul.f32 %v2811_v21, %v2805_v18  ;;  %v4338_v10 = vmul.f32 %v4330_v50, %v4325_v26  ;;  %v10709_v42 = vld [vmem:[#allocation43_spill] sm:$0xff]  ;;  %v10710_v18 = vld [vmem:[#allocation46_spill] sm:$0xff]  ;;  %v8778_v26 = vpop.permute.xlu0 %2972 }
 0x6ba   :  { %4299 = vst [vmem:[#allocation2 + $0xf0] sm:$0xf0] %v4291_v1  ;;  %v8765_v12 = vld [vmem:[#allocation2 + $0xb8] sm:$0xff]  ;;  %v4457_v58 = vperm.slane %v8757_v3, 3  ;;  %3760 = vrot.lane.b32.xlu0 %v10709_v42, %s10639_s26  ;;  %v2984_v21 = vperm.slane %v8567_v22, 2  ;;  %3806 = vrot.lane.b32.xlu1 %v10710_v18, %s10623_s27  ;;  %v4376_v50 = vperm.slane %v8703_v46, 3  ;;  %v8780_v51 = vpop.permute.xlu2 %3116 }
 0x6bb   :  { %2967 = vst [vmem:[#allocation2 + $0x120] sm:$0xf] %v2963_v53  ;;  %v4508_v19 = vmul.f32 %v4500_v48, %v4493_v33  ;;  %v2839_v53 = vperm.slane %v8481_v52, 1  ;;  %v2976_v33 = vsel %vm10712_vm15, %v8778_v26, %v8591_v30  ;;  %vm10713_vm0 = vcmp.lt.s32.totalorder %v6050_v9, 114 }
 0x6bc   :  { %10708 = vst [vmem:[#allocation93_spill] sm:$0xff] %v8765_v12  ;;  %vm10714_vm3 = vmmov %vm10713_vm0  ;;  %v8801_v30 = vld [vmem:[%s10181_s9 + $0x44] ss:$8 sm:$0xf]  ;;  %vm10718_vm15 = vcmp.lt.s32.totalorder %v6050_v9, 98 }
 0x6bd   :  { %2822 = vst [vmem:[#allocation2 + $0xc0] sm:$0xf] %v2818_v25  ;;  %v2840_v25 = vperm.slane %v8481_v52, 2  ;;  %v4465_v52 = vmul.f32 %v4457_v58, %v10644_v63  ;;  %v4516_v1 = vrot.slane %v4508_v19, 4 }
 0x6be   :  { %2823 = vst [vmem:[#allocation2 + $0x140] sm:$0xf] %v2819_v17  ;;  %v10711_v17 = vld [vmem:[#allocation45_spill] sm:$0xff] }
 0x6bf   :  { %4342 = vst [vmem:[#allocation2 + $0xb8] sm:$0xf] %v4338_v10  ;;  %v4369_v48 = vsel %vm4365_vm13, %v10711_v17, %v10693_v59  ;;  %v2829_v42 = vpop.permute.xlu1 %2828  ;;  %v2992_v10 = vmul.f32 %v2984_v21, %v2976_v33  ;;  %v4333_v59 = vperm.slane %v8728_v43, 3  ;;  %v10715_v21 = vld [vmem:[#allocation30_spill] sm:$0xff] }
 0x6c0   :  { %4397 = vst [vmem:[#allocation2 + $0xb8] sm:$0xf0] %v4389_v37  ;;  %v2832_v18 = vsel %vm10713_vm0, %v2829_v42, %v8547_v54  ;;  %v2833_v37 = vsel %vm10714_vm3, %v8313_v57, %v2829_v42  ;;  %v4384_v58 = vmul.f32 %v4376_v50, %v4369_v48  ;;  %v4326_v54 = vsel %vm4322_vm10, %v10715_v21, %v10703_v34  ;;  %v10716_v50 = vld [vmem:[#allocation62_spill] sm:$0xff] }
 0x6c1   :  { %v2847_v45 = vmul.f32 %v2839_v53, %v2833_v37  ;;  %v2848_v12 = vmul.f32 %v2840_v25, %v2832_v18  ;;  %v3000_v33 = vrot.slane %v2992_v10, 4  ;;  %v3025_v53 = vperm.slane %v8801_v30, 1  ;;  %v8822_v10 = vpop.permute.xlu0 %3012 }
 0x6c2   :  { %v8803_v63 = vld [vmem:[#allocation2 + $0x120] sm:$0xff]  ;;  %v4375_v42 = vperm.slane %v8703_v46, 2  ;;  %v4341_v18 = vmul.f32 %v4333_v59, %v4326_v54  ;;  %3961 = vrot.lane.b32.xlu1 %v10716_v50, %s5863_s2  ;;  %v2880_v48 = vperm.slane %v8392_v5, 0  ;;  %v2881_v34 = vperm.slane %v8392_v5, 1  ;;  %v8824_v37 = vpop.permute.xlu2 %3086  ;;  %s5765_s2 = sld [smem:[#allocation3 + $0x7]] }
 0x6c3   :  { %4469 = vst [vmem:[#allocation2 + $0x120] sm:$0xf] %v4465_v52  ;;  %v2855_v57 = vrot.slane %v2847_v45, 4  ;;  %v2856_v19 = vrot.slane %v2848_v12, 4  ;;  %v10717_v45 = vld [vmem:[#allocation103_spill] sm:$0xff]  ;;  %v4392_v52 = vrot.slane %v4384_v58, 4 }
 0x6c4   :  { %4524 = vst [vmem:[#allocation2 + $0x120] sm:$0xf0] %v4516_v1  ;;  %v4366_v12 = vsel %vm4365_vm13, %v10717_v45, %v10711_v17  ;;  %v4374_v1 = vperm.slane %v8703_v46, 1  ;;  %v4367_v59 = vsel %vm4365_vm13, %v10692_v38, %v10717_v45  ;;  %v4332_v5 = vperm.slane %v8728_v43, 2  ;;  %v10719_v58 = vld [vmem:[#allocation20_spill] sm:$0xff] }
 0x6c5   :  { %3008 = vst [vmem:[#allocation2 + $0x158] sm:$0xf0] %v3000_v33  ;;  %v8810_v25 = vld [vmem:[#allocation2 + $0x140] sm:$0xff]  ;;  %v4331_v54 = vperm.slane %v8728_v43, 1  ;;  %v3019_v46 = vsel %vm10718_vm15, %v8822_v10, %v8642_v41  ;;  %v4324_v33 = vsel %vm4322_vm10, %v10702_v28, %v10719_v58  ;;  %vm10722_vm13 = vcmp.lt.s32.totalorder %v6050_v9, 97 }
 0x6c6   :  { %2863 = vst [vmem:[#allocation2 + $0x170] sm:$0xf0] %v2855_v57  ;;  %v3033_v57 = vmul.f32 %v3025_v53, %v3019_v46  ;;  %v8853_v28 = vld [vmem:[%s10181_s9 + $0x45] ss:$8 sm:$0xf]  ;;  %v4382_v53 = vmul.f32 %v4374_v1, %v4367_v59  ;;  %v2910_v59 = vperm.slane %v8611_v27, 0 }
 0x6c7   :  { %2864 = vst [vmem:[#allocation2 + $0xc0] sm:$0xf0] %v2856_v19  ;;  %v2869_v17 = vpop.permute.xlu1 %2868  ;;  %v4383_v19 = vmul.f32 %v4375_v42, %v4366_v12  ;;  %vm10728_vm0 = vcmp.lt.s32.totalorder %v6050_v9, 94  ;;  %vm10730_vm15 = vcmp.lt.s32.totalorder %v6050_v9, 110 }
 0x6c8   :  { %4345 = vst [vmem:[#allocation2 + $0x140] sm:$0xf] %v4341_v18  ;;  %v2875_v38 = vsel %vm371_vm6, %v2869_v17, %v8589_v39  ;;  %v2876_v43 = vsel %vm371_vm6, %v8373_v2, %v2869_v17  ;;  %v4323_v18 = vsel %vm4322_vm10, %v10719_v58, %v10715_v21  ;;  %v8858_v2 = vld [vmem:[%s10183_s11 + $0x40] ss:$8 sm:$0xf]  ;;  %v4339_v21 = vmul.f32 %v4331_v54, %v4324_v33  ;;  %vm10724_vm10 = vmmov %vm10722_vm13 }
 0x6c9   :  { %4400 = vst [vmem:[#allocation2 + $0x140] sm:$0xf0] %v4392_v52  ;;  %v2888_v50 = vmul.f32 %v2880_v48, %v2876_v43  ;;  %v2889_v45 = vmul.f32 %v2881_v34, %v2875_v38  ;;  %v8863_v39 = vld [vmem:[%s10183_s11 + $0x41] ss:$8 sm:$0xf]  ;;  %v4340_v42 = vmul.f32 %v4332_v5, %v4323_v18  ;;  %v3054_v48 = vperm.slane %v8853_v28, 0  ;;  %v3041_v17 = vpop.permute.xlu0 %3040  ;;  %vm10729_vm3 = vmmov %vm10728_vm0 }
 0x6ca   :  { %3037 = vst [vmem:[#allocation2 + $0x68] sm:$0xf] %v3033_v57  ;;  %v4424_v12 = vperm.slane %v8863_v39, 1  ;;  %v4391_v1 = vrot.slane %v4383_v19, 4  ;;  %v10721_v52 = vld [vmem:[#allocation41_spill] sm:$0xff]  ;;  %v4390_v5 = vrot.slane %v4382_v53, 4  ;;  %v8876_v58 = vpop.permute.xlu2 %3082  ;;  %v3050_v33 = vsel %vm10722_vm13, %v3041_v17, %v8690_v60  ;;  %vm10731_vm13 = vmmov %vm10730_vm15 }
 0x6cb   :  { %2892 = vst [vmem:[#allocation2 + $0x50] sm:$0xf] %v2888_v50  ;;  %3764 = vrot.lane.b32.xlu1 %v10721_v52, %s10639_s26  ;;  %v4405_v38 = vperm.slane %v8858_v2, 1  ;;  %v3062_v43 = vmul.f32 %v3054_v48, %v3050_v33  ;;  %v10723_v48 = vld [vmem:[#allocation51_spill] sm:$0xff] }
 0x6cc   :  { %2893 = vst [vmem:[#allocation2 + $0x168] sm:$0xf] %v2889_v45  ;;  %v4432_v18 = vmul.f32 %v4424_v12, %v7011_v15  ;;  %v4423_v15 = vperm.slane %v8863_v39, 0 }
 0x6cd   :  { %v8866_v34 = vld [vmem:[#allocation2 + $0x170] sm:$0xff]  ;;  %v3070_v45 = vrot.slane %v3062_v43, 4 }
 0x6ce   :  { %10720 = vst [vmem:[#allocation24_spill] sm:$0xff] %v8866_v34  ;;  %v8872_v46 = vld [vmem:[#allocation2 + $0xc0] sm:$0xff]  ;;  %v4440_v52 = vrot.slane %v4432_v18, 4 }
 0x6cf   :  { %4343 = vst [vmem:[#allocation2 + $0x170] sm:$0xf] %v4339_v21  ;;  %v2897_v57 = vpop.permute.xlu1 %2896 }
 0x6d0   :  { %4344 = vst [vmem:[#allocation2 + $0xc0] sm:$0xf] %v4340_v42  ;;  %v2906_v19 = vsel %vm414_vm7, %v2897_v57, %v8640_v23  ;;  %v4413_v42 = vmul.f32 %v4405_v38, %v6998_v7  ;;  %v2912_v23 = vperm.slane %v8611_v27, 2 }
 0x6d1   :  { %4399 = vst [vmem:[#allocation2 + $0xc0] sm:$0xf0] %v4391_v1  ;;  %v2918_v50 = vmul.f32 %v2910_v59, %v2906_v19  ;;  %v3057_v1 = vperm.slane %v8853_v28, 3  ;;  %v8895_v12 = vpop.permute.xlu0 %3046  ;;  %v4404_v19 = vperm.slane %v8858_v2, 0 }
 0x6d2   :  { %4398 = vst [vmem:[#allocation2 + $0x170] sm:$0xf0] %v4390_v5  ;;  %v2913_v5 = vperm.slane %v8611_v27, 3  ;;  %v8897_v59 = vpop.permute.xlu2 %3804  ;;  %v3051_v7 = vsel %vm10724_vm10, %v8895_v12, %v3041_v17  ;;  %v4425_v17 = vperm.slane %v8863_v39, 2  ;;  %vm10736_vm10 = vcmp.lt.s32.totalorder %v6050_v9, 98 }
 0x6d3   :  { %v2926_v53 = vrot.slane %v2918_v50, 4  ;;  %v8886_v21 = vld [vmem:[#allocation2 + $0x168] sm:$0xff]  ;;  %3078 = vst [vmem:[#allocation2 + $0x198] sm:$0xf0] %v3070_v45  ;;  %3861 = vrot.lane.b32.xlu1 %v10723_v48, %s10652_s10  ;;  %v3065_v38 = vmul.f32 %v3057_v1, %v3051_v7  ;;  %v4431_v45 = vmul.f32 %v4423_v15, %v10662_v8  ;;  %v4426_v8 = vperm.slane %v8863_v39, 3 }
 0x6d4   :  { %4417 = vst [vmem:[#allocation2 + $0x168] sm:$0xf] %v4413_v42  ;;  %v4407_v39 = vperm.slane %v8858_v2, 3 }
 0x6d5   :  { %2934 = vst [vmem:[#allocation2 + $0x50] sm:$0xf0] %v2926_v53  ;;  %v3073_v53 = vrot.slane %v3065_v38, 4 }
 0x6d6   :  { %4448 = vst [vmem:[#allocation2 + $0x168] sm:$0xf0] %v4440_v52  ;;  %v4412_v52 = vmul.f32 %v4404_v19, %v10634_v24  ;;  %v4433_v24 = vmul.f32 %v4425_v17, %v6964_v55  ;;  %v4434_v55 = vmul.f32 %v4426_v8, %v6979_v31  ;;  %v2982_v31 = vperm.slane %v8567_v22, 0 }
 0x6d7   :  { %v2903_v33 = vpop.permute.xlu1 %2902  ;;  %3081 = vst [vmem:[#allocation2 + $0xc8] sm:$0xf0] %v3073_v53 }
 0x6d8   :  { %v2904_v43 = vsel %vm414_vm7, %v8457_v36, %v2903_v33  ;;  %v2907_v27 = vsel %vm414_vm7, %v2903_v33, %v2897_v57  ;;  %v10725_v36 = vld [vmem:[#allocation42_spill] sm:$0xff]  ;;  %v2953_v57 = vperm.slane %v8662_v13, 1  ;;  %v4406_v33 = vperm.slane %v8858_v2, 2 }
 0x6d9   :  { %v2920_v18 = vmul.f32 %v2912_v23, %v2904_v43  ;;  %v2921_v50 = vmul.f32 %v2913_v5, %v2907_v27  ;;  %v2954_v23 = vperm.slane %v8662_v13, 2  ;;  %v4439_v5 = vrot.slane %v4431_v45, 4  ;;  %v8918_v15 = vpop.permute.xlu0 %3154 }
 0x6da   :  { %v8920_v7 = vpop.permute.xlu2 %3904  ;;  %v4415_v2 = vmul.f32 %v4407_v39, %v10629_v16 }
 0x6db   :  { %v2928_v42 = vrot.slane %v2920_v18, 4  ;;  %v2929_v48 = vrot.slane %v2921_v50, 4  ;;  %3766 = vrot.lane.b32.xlu1 %v10725_v36, %s10639_s26  ;;  %v8934_v18 = vld [vmem:[%s10181_s9 + $0x60] ss:$8 sm:$0xf]  ;;  %v4414_v50 = vmul.f32 %v4406_v33, %v10620_v20  ;;  %v2983_v20 = vperm.slane %v8567_v22, 1 }
 0x6dc   :  { %v8910_v1 = vld [vmem:[#allocation2 + $0x50] sm:$0xff]  ;;  %v3168_v45 = vperm.slane %v8934_v18, 0  ;;  %v4442_v36 = vrot.slane %v4434_v55, 4 }
 0x6dd   :  { %2936 = vst [vmem:[#allocation2 + $0x190] sm:$0xf0] %v2928_v42  ;;  %v4499_v42 = vperm.slane %v8743_v44, 2 }
 0x6de   :  { %2937 = vst [vmem:[#allocation2 + $0x38] sm:$0xf0] %v2929_v48  ;;  %v10726_v48 = vld [vmem:[#allocation60_spill] sm:$0xff] }
 0x6df   :  { %v2943_v38 = vpop.permute.xlu1 %2942  ;;  %4416 = vst [vmem:[#allocation2 + $0x50] sm:$0xf] %v4412_v52  ;;  %v4456_v52 = vperm.slane %v8757_v3, 2 }
 0x6e0   :  { %v2946_v43 = vsel %vm469_vm8, %v2943_v38, %v8730_v0  ;;  %v2947_v13 = vsel %vm469_vm8, %v8505_v62, %v2943_v38  ;;  %4447 = vst [vmem:[#allocation2 + $0x50] sm:$0xf0] %v4439_v5  ;;  %v4441_v0 = vrot.slane %v4433_v24, 4  ;;  %v3169_v62 = vperm.slane %v8934_v18, 1 }
 0x6e1   :  { %v2961_v27 = vmul.f32 %v2953_v57, %v2947_v13  ;;  %v2962_v19 = vmul.f32 %v2954_v23, %v2946_v43  ;;  %v10727_v57 = vld [vmem:[#allocation100_spill] sm:$0xff]  ;;  %v3157_v23 = vpop.permute.xlu0 %3156  ;;  %v4193_v5 = vperm.slane %v8638_v29, 0 }
 0x6e2   :  { %v4490_v16 = vsel %vm4489_vm9, %v10727_v57, %v10707_v4  ;;  %v8955_v8 = vpop.permute.xlu2 %3762  ;;  %v3163_v22 = vsel %vm10728_vm0, %v3157_v23, %v8732_v61  ;;  %v3164_v33 = vsel %vm10729_vm3, %v8918_v15, %v3157_v23  ;;  %v4498_v23 = vperm.slane %v8743_v44, 1 }
 0x6e3   :  { %2965 = vst [vmem:[#allocation2 + $0x18] sm:$0xf] %v2961_v27  ;;  %3900 = vrot.lane.b32.xlu1 %v10726_v48, %s10630_s19  ;;  %v3176_v24 = vmul.f32 %v3168_v45, %v3164_v33  ;;  %v3177_v43 = vmul.f32 %v3169_v62, %v3163_v22  ;;  %v4507_v39 = vmul.f32 %v4499_v42, %v4490_v16  ;;  %v8974_v27 = vld [vmem:[%s10183_s11 + $0x60] ss:$8 sm:$0xf]  ;;  %vm10740_vm0 = vcmask 1041408  }
 0x6e4   :  { %2966 = vst [vmem:[#allocation2 + $0x158] sm:$0xf] %v2962_v19  ;;  %v8940_v53 = vld [vmem:[#allocation2 + $0x190] sm:$0xff]  ;;  %v4744_v16 = vperm.slane %v8974_v27, 1  ;;  %v10735_v33 = vld [vmem:[#allocation106_spill] sm:$0xff]  ;;  %vm10741_vm3 = vmmov %vm10740_vm0 }
 0x6e5   :  { %4418 = vst [vmem:[#allocation2 + $0x190] sm:$0xf] %v4414_v50  ;;  %v8948_v17 = vld [vmem:[#allocation2 + $0x38] sm:$0xff]  ;;  %v4464_v50 = vmul.f32 %v4456_v52, %v10650_v47  ;;  %v4515_v48 = vrot.slane %v4507_v39, 4  ;;  %v3024_v52 = vperm.slane %v8801_v30, 0 }
 0x6e6   :  { %4449 = vst [vmem:[#allocation2 + $0x190] sm:$0xf0] %v4441_v0  ;;  %v4497_v0 = vperm.slane %v8743_v44, 0  ;;  %v9008_v44 = vld [vmem:[%s10183_s11 + $0x45] ss:$8 sm:$0xf] }
 0x6e7   :  { %v2971_v38 = vpop.permute.xlu1 %2970  ;;  %4419 = vst [vmem:[#allocation2 + $0x38] sm:$0xf] %v4415_v2  ;;  %v10732_v2 = vld [vmem:[#allocation13_spill] sm:$0xff] }
 0x6e8   :  { %v2977_v4 = vsel %vm10730_vm15, %v2971_v38, %v8778_v26  ;;  %v2978_v13 = vsel %vm10731_vm13, %v8549_v40, %v2971_v38  ;;  %4450 = vst [vmem:[#allocation2 + $0x38] sm:$0xf0] %v4442_v36  ;;  %v4743_v40 = vperm.slane %v8974_v27, 0  ;;  %v4492_v42 = vsel %vm4489_vm9, %v10706_v14, %v10732_v2 }
 0x6e9   :  { %v2990_v19 = vmul.f32 %v2982_v31, %v2978_v13  ;;  %v2991_v55 = vmul.f32 %v2983_v20, %v2977_v4  ;;  %3180 = vst [vmem:[#allocation2 + $0x98] sm:$0xf] %v3176_v24  ;;  %v10733_v31 = vld [vmem:[#allocation117_spill] sm:$0xff]  ;;  %v10734_v20 = vld [vmem:[#allocation104_spill] sm:$0xff]  ;;  %v4454_v36 = vperm.slane %v8757_v3, 0  ;;  %v8993_v22 = vpop.permute.xlu0 %3112  ;;  %v4491_v24 = vsel %vm4489_vm9, %v10732_v2, %v10727_v57 }
 0x6ea   :  { %3181 = vst [vmem:[#allocation2 + $0x150] sm:$0xf] %v3177_v43  ;;  %v4738_v47 = vsel %vm3963_vm12, %v10734_v20, %v10733_v31  ;;  %v8995_v14 = vpop.permute.xlu2 %3859  ;;  %v4737_v38 = vsel %vm3963_vm12, %v10733_v31, %v10735_v33  ;;  %v4505_v43 = vmul.f32 %v4497_v0, %v4492_v42  ;;  %v9017_v57 = vld [vmem:[%s10181_s9 + $0x46] ss:$8 sm:$0xf]  ;;  %v4506_v2 = vmul.f32 %v4498_v23, %v4491_v24 }
 0x6eb   :  { %v2998_v26 = vrot.slane %v2990_v19, 4  ;;  %v2999_v45 = vrot.slane %v2991_v55, 4  ;;  %v8978_v62 = vld [vmem:[#allocation2 + $0x158] sm:$0xff]  ;;  %v4751_v13 = vmul.f32 %v4743_v40, %v4738_v47  ;;  %v4455_v19 = vperm.slane %v8757_v3, 1  ;;  %v10737_v0 = vld [vmem:[#allocation88_spill] sm:$0xff] }
 0x6ec   :  { %4468 = vst [vmem:[#allocation2 + $0x158] sm:$0xf] %v4464_v50  ;;  %vm3810_vm9 = vcmp.lt.s32.totalorder %v6050_v9, 66  ;;  %v9025_v31 = vld [vmem:[%s10183_s11 + $0x44] ss:$8 sm:$0xf] }
 0x6ed   :  { %3006 = vst [vmem:[#allocation2 + $0x60] sm:$0xf0] %v2998_v26  ;;  %v4462_v26 = vmul.f32 %v4454_v36, %v10737_v0  ;;  %v10738_v47 = vld [vmem:[#allocation101_spill] sm:$0xff]  ;;  %v3096_v23 = vperm.slane %v9017_v57, 0  ;;  %vm3768_vm15 = vcmp.lt.s32.totalorder %v6050_v9, 68  ;;  %vm10743_vm13 = vcmp.lt.s32.totalorder %v6050_v9, 96 }
 0x6ee   :  { %3007 = vst [vmem:[#allocation2 + $0x18] sm:$0xf0] %v2999_v45  ;;  %v4752_v45 = vmul.f32 %v4744_v16, %v4737_v38  ;;  %v3097_v38 = vperm.slane %v9017_v57, 1 }
 0x6ef   :  { %v3011_v4 = vpop.permute.xlu1 %3010  ;;  %4523 = vst [vmem:[#allocation2 + $0x158] sm:$0xf0] %v4515_v48  ;;  %v4513_v48 = vrot.slane %v4505_v43, 4  ;;  %v4463_v43 = vmul.f32 %v4455_v19, %v10649_v35  ;;  %v4551_v35 = vperm.slane %v9025_v31, 0 }
 0x6f0   :  { %v3020_v39 = vsel %vm10736_vm10, %v3011_v4, %v8822_v10  ;;  %v3232_v50 = vld [vmem:[#allocation2 + $0x98] sm:$0xf]  ;;  %v4593_v10 = vperm.slane %v9008_v44, 0  ;;  %vm10744_vm10 = vmmov %vm10743_vm13 }
 0x6f1   :  { %v3032_v55 = vmul.f32 %v3024_v52, %v3020_v39  ;;  %v3260_v42 = vpack.c.bf16 %v3232_v50, %v3232_v50  ;;  %4755 = vst [vmem:[#allocation2 + $0x98] sm:$0xf] %v4751_v13  ;;  %v3233_v40 = vld [vmem:[#allocation2 + $0x150] sm:$0xf]  ;;  %v10739_v52 = vld [vmem:[#allocation107_spill] sm:$0xff]  ;;  %v3026_v39 = vperm.slane %v8801_v30, 2  ;;  %v3085_v0 = vpop.permute.xlu0 %3084 }
 0x6f2   :  { %v3261_v3 = vpack.c.bf16 %v3233_v40, %v3233_v40  ;;  %v4588_v36 = vsel %vm3810_vm9, %v10739_v52, %v10738_v47  ;;  %4756 = vst [vmem:[#allocation2 + $0x150] sm:$0xf] %v4752_v45  ;;  %v4514_v50 = vrot.slane %v4506_v2, 4  ;;  %v9042_v45 = vpop.permute.xlu2 %3955  ;;  %v3091_v19 = vsel %vm10743_vm13, %v3085_v0, %v8824_v37 }
 0x6f3   :  { %3036 = vst [vmem:[#allocation2 + $0x198] sm:$0xf] %v3032_v55  ;;  %v3269_v16 = vsel %vm10740_vm0, %v3260_v42, 0  ;;  %v3027_v42 = vperm.slane %v8801_v30, 3  ;;  %v4601_v40 = vmul.f32 %v4593_v10, %v4588_v36  ;;  %vm10745_vm0 = vcmp.lt.s32.totalorder %v6050_v9, 98  ;;  %v10746_v36 = vld [vmem:[#allocation114_spill] sm:$0xff] }
 0x6f4   :  { %v9034_v24 = vld [vmem:[#allocation2 + $0x60] sm:$0xff]  ;;  %3281 = vmatpush.bf16.msrb.mxu0 %v3269_v16  ;;  %v3272_v13 = vsel %vm10741_vm3, %v3261_v3, 0  ;;  %10742 = vst [vmem:[#allocation67_spill] sm:$0xff] %v9042_v45  ;;  %v3105_v16 = vmul.f32 %v3097_v38, %v3091_v19  ;;  %vm10749_vm3 = vmmov %vm10745_vm0  ;;  %vm10751_vm13 = vcmp.lt.s32.totalorder %v6050_v9, 97 }
 0x6f5   :  { %4466 = vst [vmem:[#allocation2 + $0x60] sm:$0xf] %v4462_v26  ;;  %v9039_v55 = vld [vmem:[#allocation2 + $0x18] sm:$0xff]  ;;  %3294 = vmatpush.bf16.msrb.mxu1 %v3272_v13  ;;  %v3092_v26 = vsel %vm10744_vm10, %v8876_v58, %v3085_v0  ;;  %v10747_v13 = vld [vmem:[#allocation111_spill] sm:$0xff]  ;;  %v4609_v34 = vrot.slane %v4601_v40, 4  ;;  %vm10752_vm10 = vmmov %vm10751_vm13 }
 0x6f6   :  { %4521 = vst [vmem:[#allocation2 + $0x60] sm:$0xf0] %v4513_v48  ;;  %v3104_v2 = vmul.f32 %v3096_v23, %v3092_v26  ;;  %v9055_v30 = vld [vmem:[%s10183_s11 + $0x4] ss:$8 sm:$0xf]  ;;  %v4546_v0 = vsel %vm3768_vm15, %v10747_v13, %v10746_v36 }
 0x6f7   :  { %v3017_v3 = vpop.permute.xlu1 %3016  ;;  %4467 = vst [vmem:[#allocation2 + $0x18] sm:$0xf] %v4463_v43  ;;  %v3972_v10 = vperm.slane %v9055_v30, 1  ;;  %v10748_v43 = vld [vmem:[#allocation68_spill] sm:$0xff] }
 0x6f8   :  { %v3018_v48 = vsel %vm10745_vm0, %v8642_v41, %v3017_v3  ;;  %4522 = vst [vmem:[#allocation2 + $0x18] sm:$0xf0] %v4514_v50  ;;  %v3966_v23 = vsel %vm3963_vm12, %v9042_v45, %v10748_v43  ;;  %v3021_v38 = vsel %vm10749_vm3, %v3017_v3, %v3011_v4  ;;  %v4559_v41 = vmul.f32 %v4551_v35, %v4546_v0 }
 0x6f9   :  { %v3034_v19 = vmul.f32 %v3026_v39, %v3018_v48  ;;  %3108 = vst [vmem:[#allocation2 + $0xf8] sm:$0xf] %v3104_v2  ;;  %v3035_v26 = vmul.f32 %v3027_v42, %v3021_v38  ;;  %v3980_v50 = vmul.f32 %v3972_v10, %v3966_v23  ;;  %v3055_v43 = vperm.slane %v8853_v28, 1  ;;  %v4178_v39 = vpop.permute.xlu0 %4177  ;;  %v10750_v42 = vld [vmem:[#allocation105_spill] sm:$0xff]  ;;  %v10754_v38 = vld [vmem:[#allocation95_spill] sm:$0xff] }
 0x6fa   :  { %3109 = vst [vmem:[#allocation2 + $0x28] sm:$0xf] %v3105_v16  ;;  %v9071_v54 = vld [vmem:[#allocation2 + $0x198] sm:$0xff]  ;;  %v3056_v45 = vperm.slane %v8853_v28, 2  ;;  %v4596_v4 = vperm.slane %v9008_v44, 3  ;;  %v4589_v35 = vsel %vm3810_vm9, %v10750_v42, %v10739_v52  ;;  %v4188_v3 = vsel %vm4185_vm14, %v4178_v39, %v10685_v6  ;;  %v9088_v28 = vld [vmem:[#allocation2 + $0x110] sm:$0xff] }
 0x6fb   :  { %3038 = vst [vmem:[#allocation2 + $0x30] sm:$0xf] %v3034_v19  ;;  %v4189_v29 = vsel %vm4185_vm14, %v10686_v11, %v4178_v39  ;;  %v4202_v16 = vmul.f32 %v4194_v32, %v4188_v3  ;;  %v4554_v6 = vperm.slane %v9025_v31, 3  ;;  %v9104_v32 = vld [vmem:[%s10183_s11 + $0x3] ss:$8 sm:$0xf] }
 0x6fc   :  { %3039 = vst [vmem:[#allocation2 + $0xc8] sm:$0xf] %v3035_v26  ;;  %v4201_v2 = vmul.f32 %v4193_v5, %v4189_v29  ;;  %v4604_v11 = vmul.f32 %v4596_v4, %v4589_v35  ;;  %vm3908_vm14 = vcmp.lt.s32.totalorder %v6050_v9, 62  ;;  %v4594_v4 = vperm.slane %v9008_v44, 1 }
 0x6fd   :  { %4563 = vst [vmem:[#allocation2 + $0x198] sm:$0xf] %v4559_v41  ;;  %v3170_v41 = vperm.slane %v8934_v18, 2  ;;  %v4587_v35 = vsel %vm3810_vm9, %v10738_v47, %v10754_v38  ;;  %v4552_v3 = vperm.slane %v9025_v31, 1  ;;  %vm10756_vm0 = vcmp.lt.s32.totalorder %v6050_v9, 94 }
 0x6fe   :  { %4617 = vst [vmem:[#allocation2 + $0x198] sm:$0xf0] %v4609_v34  ;;  %v10753_v34 = vld [vmem:[#allocation94_spill] sm:$0xff]  ;;  %vm10757_vm3 = vmmov %vm10756_vm0 }
 0x6ff   :  { %v3045_v40 = vpop.permute.xlu1 %3044  ;;  %3984 = vst [vmem:[#allocation2 + $0x110] sm:$0xf] %v3980_v50  ;;  %v4547_v5 = vsel %vm3768_vm15, %v10753_v34, %v10747_v13  ;;  %v3918_v13 = vperm.slane %v9104_v32, 2  ;;  %v3171_v50 = vperm.slane %v8934_v18, 3 }
 0x700   :  { %v3048_v10 = vsel %vm10751_vm13, %v3045_v40, %v8895_v12  ;;  %v3049_v52 = vsel %vm10752_vm10, %v8690_v60, %v3045_v40  ;;  %4205 = vst [vmem:[#allocation2 + $0xa0] sm:$0xf] %v4201_v2  ;;  %v4595_v60 = vperm.slane %v9008_v44, 2  ;;  %v4562_v26 = vmul.f32 %v4554_v6, %v4547_v5  ;;  %v10755_v40 = vld [vmem:[#allocation97_spill] sm:$0xff] }
 0x701   :  { %v3063_v48 = vmul.f32 %v3055_v43, %v3049_v52  ;;  %v3064_v0 = vmul.f32 %v3056_v45, %v3048_v10  ;;  %4206 = vst [vmem:[#allocation2] sm:$0xf] %v4202_v16  ;;  %v4586_v45 = vsel %vm3810_vm9, %v10754_v38, %v10750_v42  ;;  %v4612_v43 = vrot.slane %v4604_v11, 4  ;;  %v9118_v39 = vpop.permute.xlu0 %3902 }
 0x702   :  { %v4553_v42 = vperm.slane %v9025_v31, 2  ;;  %v3910_v18 = vsel %vm3908_vm14, %v9118_v39, %v8920_v7  ;;  %v4603_v44 = vmul.f32 %v4595_v60, %v4586_v45  ;;  %v4545_v2 = vsel %vm3768_vm15, %v10746_v36, %v10755_v40  ;;  %v9147_v36 = vld [vmem:[%s10181_s9 + $0x47] ss:$8 sm:$0xf] }
 0x703   :  { %v3071_v12 = vrot.slane %v3063_v48, 4  ;;  %v3072_v23 = vrot.slane %v3064_v0, 4  ;;  %v9111_v19 = vld [vmem:[#allocation2 + $0xc8] sm:$0xff]  ;;  %v4544_v47 = vsel %vm3768_vm15, %v10755_v40, %v10753_v34  ;;  %v3926_v10 = vmul.f32 %v3918_v13, %v3910_v18  ;;  %v10758_v13 = vld [vmem:[#allocation116_spill] sm:$0xff] }
 0x704   :  { %4566 = vst [vmem:[#allocation2 + $0xc8] sm:$0xf] %v4562_v26  ;;  %v4602_v48 = vmul.f32 %v4594_v4, %v4587_v35  ;;  %v4561_v0 = vmul.f32 %v4553_v42, %v4544_v47  ;;  %v4611_v11 = vrot.slane %v4603_v44, 4  ;;  %v9153_v34 = vld [vmem:[%s10183_s11 + $0x5] ss:$8 sm:$0xf]  ;;  %v4739_v4 = vsel %vm3963_vm12, %v10758_v13, %v10734_v20 }
 0x705   :  { %3079 = vst [vmem:[#allocation2 + $0x68] sm:$0xf0] %v3071_v12  ;;  %v4015_v5 = vperm.slane %v9153_v34, 1  ;;  %v3128_v60 = vperm.slane %v9147_v36, 2  ;;  %v3129_v38 = vperm.slane %v9147_v36, 3  ;;  %v10759_v42 = vld [vmem:[#allocation40_spill] sm:$0xff] }
 0x706   :  { %3080 = vst [vmem:[#allocation2 + $0x30] sm:$0xf0] %v3072_v23  ;;  %v3934_v23 = vrot.slane %v3926_v10, 4  ;;  %v4610_v26 = vrot.slane %v4602_v48, 4  ;;  %vm10760_vm13 = vcmp.lt.s32.totalorder %v6050_v9, 95 }
 0x707   :  { %v3161_v29 = vpop.permute.xlu1 %3160  ;;  %4620 = vst [vmem:[#allocation2 + $0xc8] sm:$0xf0] %v4612_v43  ;;  %vm10761_vm10 = vmmov %vm10760_vm13  ;;  %v9188_v48 = vld [vmem:[%s10183_s11 + $0x47] ss:$8 sm:$0xf] }
 0x708   :  { %v3162_v16 = vsel %vm10756_vm0, %v8732_v61, %v3161_v29  ;;  %v3165_v31 = vsel %vm10757_vm3, %v3161_v29, %v8918_v15  ;;  %v4560_v61 = vmul.f32 %v4552_v3, %v4545_v2  ;;  %v4745_v15 = vperm.slane %v8974_v27, 2  ;;  %v9183_v29 = vld [vmem:[#allocation2 + $0x40] sm:$0xff] }
 0x709   :  { %v3178_v52 = vmul.f32 %v3170_v41, %v3162_v16  ;;  %v3179_v6 = vmul.f32 %v3171_v50, %v3165_v31  ;;  %v4736_v41 = vsel %vm3963_vm12, %v10735_v33, %v10758_v13  ;;  %v4746_v50 = vperm.slane %v8974_v27, 3  ;;  %v9167_v43 = vpop.permute.xlu0 %3998  ;;  %3942 = vst [vmem:[#allocation2 + $0x40] sm:$0xf0] %v3934_v23  ;;  %v10764_v13 = vld [vmem:[#allocation96_spill] sm:$0xff] }
 0x70a   :  { %v4009_v35 = vsel %vm4006_vm11, %v9167_v43, %v10759_v42  ;;  %v4753_v20 = vmul.f32 %v4745_v15, %v4736_v41  ;;  %vm10762_vm0 = vcmask 1041408   ;;  %v3099_v15 = vperm.slane %v9017_v57, 3  ;;  %v10765_v41 = vld [vmem:[#allocation99_spill] sm:$0xff] }
 0x70b   :  { %3182 = vst [vmem:[#allocation2 + $0xe8] sm:$0xf] %v3178_v52  ;;  %v4023_v18 = vmul.f32 %v4015_v5, %v4009_v35  ;;  %v4754_v2 = vmul.f32 %v4746_v50, %v4739_v4  ;;  %vm10763_vm3 = vmmov %vm10762_vm0  ;;  %v4682_v50 = vsel %vm3908_vm14, %v10765_v41, %v10764_v13  ;;  %v10766_v4 = vld [vmem:[#allocation109_spill] sm:$0xff] }
 0x70c   :  { %3183 = vst [vmem:[#allocation2 + $0x70] sm:$0xf] %v3179_v6  ;;  %v9156_v12 = vld [vmem:[#allocation2 + $0x68] sm:$0xff] }
 0x70d   :  { %v9160_v45 = vld [vmem:[#allocation2 + $0x30] sm:$0xff]  ;;  %4564 = vst [vmem:[#allocation2 + $0x68] sm:$0xf] %v4560_v61  ;;  %v4031_v16 = vrot.slane %v4023_v18, 4 }
 0x70e   :  { %4565 = vst [vmem:[#allocation2 + $0x30] sm:$0xf] %v4561_v0 }
 0x70f   :  { %v3119_v3 = vpop.permute.xlu1 %3118  ;;  %4619 = vst [vmem:[#allocation2 + $0x30] sm:$0xf0] %v4611_v11  ;;  %v3098_v11 = vperm.slane %v9017_v57, 2  ;;  %v4685_v57 = vsel %vm3908_vm14, %v10764_v13, %v10766_v4 }
 0x710   :  { %v3120_v27 = vsel %vm10760_vm13, %v8780_v51, %v3119_v3  ;;  %v3123_v33 = vsel %vm10761_vm10, %v3119_v3, %v8993_v22  ;;  %4618 = vst [vmem:[#allocation2 + $0x68] sm:$0xf0] %v4610_v26  ;;  %vm10767_vm13 = vcmp.lt.s32.totalorder %v6050_v9, 96 }
 0x711   :  { %v3136_v44 = vmul.f32 %v3128_v60, %v3120_v27  ;;  %v3137_v40 = vmul.f32 %v3129_v38, %v3123_v33  ;;  %v9194_v23 = vpop.permute.xlu0 %3808  ;;  %v4691_v60 = vperm.slane %v9188_v48, 2  ;;  %v4692_v38 = vperm.slane %v9188_v48, 3  ;;  %4039 = vst [vmem:[#allocation2 + $0x110] sm:$0xf0] %v4031_v16  ;;  %vm10768_vm10 = vmmov %vm10767_vm13  ;;  %v9212_v27 = vpop.permute.xlu2 %3863  ;;  %v10769_v16 = vld [vmem:[#allocation108_spill] sm:$0xff] }
 0x712   :  { %v3234_v31 = vld [vmem:[#allocation2 + $0xe8] sm:$0xf]  ;;  %v9217_v33 = vld [vmem:[%s10183_s11 + $0x46] ss:$8 sm:$0xf] }
 0x713   :  { %v3144_v47 = vrot.slane %v3136_v44, 4  ;;  %v3145_v10 = vrot.slane %v3137_v40, 4  ;;  %v3262_v52 = vpack.c.bf16 %v3234_v31, %v3234_v31  ;;  %4757 = vst [vmem:[#allocation2 + $0xe8] sm:$0xf] %v4753_v20  ;;  %v3235_v6 = vld [vmem:[#allocation2 + $0x70] sm:$0xf]  ;;  %v4699_v20 = vmul.f32 %v4691_v60, %v4682_v50 }
 0x714   :  { %v3263_v61 = vpack.c.bf16 %v3235_v6, %v3235_v6  ;;  %4758 = vst [vmem:[#allocation2 + $0x70] sm:$0xf] %v4754_v2  ;;  %v4700_v44 = vmul.f32 %v4692_v38, %v4685_v57  ;;  %v3919_v40 = vperm.slane %v9104_v32, 3  ;;  %v3127_v2 = vperm.slane %v9147_v36, 1  ;;  %v10770_v31 = vld [vmem:[#allocation98_spill] sm:$0xff]  ;;  %v10773_v57 = vld [vmem:[#allocation113_spill] sm:$0xff] }
 0x715   :  { %3152 = vst [vmem:[#allocation2 + $0x8] sm:$0xf0] %v3144_v47  ;;  %v3275_v0 = vsel %vm10762_vm0, %v3262_v52, 0  ;;  %vm3865_vm0 = vcmp.lt.s32.totalorder %v6050_v9, 64  ;;  %v4707_v52 = vrot.slane %v4699_v20, 4 }
 0x716   :  { %3153 = vst [vmem:[#allocation2 + $0x80] sm:$0xf0] %v3145_v10  ;;  %3307 = vmatpush.bf16.msrb.mxu2 %v3275_v0  ;;  %v3278_v5 = vsel %vm10763_vm3, %v3263_v61, 0  ;;  %v4640_v47 = vsel %vm3865_vm0, %v10770_v31, %v10769_v16  ;;  %v4708_v6 = vrot.slane %v4700_v44, 4  ;;  %v4689_v61 = vperm.slane %v9188_v48, 0 }
 0x717   :  { %3320 = vmatpush.bf16.msrb.mxu3 %v3278_v5  ;;  %v3089_v26 = vpop.permute.xlu1 %3088  ;;  %vm10771_vm3 = vcmp.lt.s32.totalorder %v6050_v9, 95 }
 0x718   :  { %v3090_v42 = vsel %vm10767_vm13, %v8824_v37, %v3089_v26  ;;  %v3093_v35 = vsel %vm10768_vm10, %v3089_v26, %v8876_v58  ;;  %v4649_v37 = vperm.slane %v9217_v33, 2  ;;  %v3126_v58 = vperm.slane %v9147_v36, 0  ;;  %vm10772_vm13 = vmmov %vm10771_vm3 }
 0x719   :  { %v3106_v3 = vmul.f32 %v3098_v11, %v3090_v42  ;;  %v3107_v18 = vmul.f32 %v3099_v15, %v3093_v35  ;;  %v9228_v10 = vpop.permute.xlu0 %3906  ;;  %v4690_v15 = vperm.slane %v9188_v48, 1  ;;  %v4650_v36 = vperm.slane %v9217_v33, 3  ;;  %v3858_v48 = vpop.permute.xlu2 %3857 }
 0x71a   :  { %v3909_v0 = vsel %vm3908_vm14, %v8920_v7, %v9228_v10  ;;  %v4657_v38 = vmul.f32 %v4649_v37, %v4640_v47  ;;  %v9246_v7 = vld [vmem:[%s10183_s11 + $0x2] ss:$8 sm:$0xf]  ;;  %v4684_v42 = vsel %vm3908_vm14, %v10766_v4, %v10773_v57 }
 0x71b   :  { %3110 = vst [vmem:[#allocation2 + $0x8] sm:$0xf] %v3106_v3  ;;  %v3927_v26 = vmul.f32 %v3919_v40, %v3909_v0  ;;  %v9259_v3 = vld [vmem:[%s10183_s11 + $0x1] ss:$8 sm:$0xf]  ;;  %v3874_v20 = vperm.slane %v9246_v7, 1  ;;  %v4697_v0 = vmul.f32 %v4689_v61, %v4684_v42 }
 0x71c   :  { %3111 = vst [vmem:[#allocation2 + $0x80] sm:$0xf] %v3107_v18  ;;  %v3873_v18 = vperm.slane %v9246_v7, 0  ;;  %v3818_v47 = vperm.slane %v9259_v3, 0  ;;  %v10776_v42 = vld [vmem:[#allocation65_spill] sm:$0xff] }
 0x71f   :  { %v3115_v11 = vpop.permute.xlu1 %3114 }
 0x720   :  { %v3121_v5 = vsel %vm10771_vm3, %v3115_v11, %v8780_v51  ;;  %v3122_v60 = vsel %vm10772_vm13, %v8993_v22, %v3115_v11  ;;  %v10774_v51 = vld [vmem:[#allocation112_spill] sm:$0xff] }
 0x721   :  { %v3134_v13 = vmul.f32 %v3126_v58, %v3122_v60  ;;  %v3135_v50 = vmul.f32 %v3127_v2, %v3121_v5  ;;  %v4643_v22 = vsel %vm3865_vm0, %v10769_v16, %v10774_v51  ;;  %v3869_v58 = vsel %vm3865_vm0, %v9212_v27, %v3858_v48 }
 0x722   :  { %v3230_v35 = vld [vmem:[#allocation2 + $0x8] sm:$0xff]  ;;  %v4683_v2 = vsel %vm3908_vm14, %v10773_v57, %v10765_v41  ;;  %v4658_v11 = vmul.f32 %v4650_v36, %v4643_v22  ;;  %v3935_v5 = vrot.slane %v3927_v26, 4  ;;  %v4017_v60 = vperm.slane %v9153_v34, 3 }
 0x723   :  { %v3142_v44 = vrot.slane %v3134_v13, 4  ;;  %v3143_v37 = vrot.slane %v3135_v50, 4  ;;  %v3258_v40 = vpack.c.bf16 %v3230_v35, %v9160_v45  ;;  %4661 = vst [vmem:[#allocation2 + $0x8] sm:$0xf] %v4657_v38  ;;  %v3231_v4 = vld [vmem:[#allocation2 + $0x80] sm:$0xff]  ;;  %v3868_v45 = vsel %vm3865_vm0, %v3858_v48, %v8995_v14  ;;  %v10775_v50 = vld [vmem:[#allocation115_spill] sm:$0xff] }
 0x724   :  { %4715 = vst [vmem:[#allocation2 + $0x8] sm:$0xf0] %v4707_v52  ;;  %v3259_v16 = vpack.c.bf16 %v3231_v4, %v9111_v19  ;;  %v4647_v38 = vperm.slane %v9217_v33, 0  ;;  %v4648_v41 = vperm.slane %v9217_v33, 1  ;;  %v3803_v19 = vpop.permute.xlu0 %3802  ;;  %v4014_v52 = vperm.slane %v9153_v34, 0  ;;  %v9296_v35 = vld [vmem:[#allocation2 + $0x178] sm:$0xff] }
 0x725   :  { %3150 = vst [vmem:[#allocation2 + $0xf8] sm:$0xf0] %v3142_v44  ;;  %3308 = vmatpush.bf16.msrb.mxu2 %v3258_v40  ;;  %v3881_v13 = vmul.f32 %v3873_v18, %v3869_v58  ;;  %v4642_v61 = vsel %vm3865_vm0, %v10774_v51, %v10775_v50  ;;  %v3814_v36 = vsel %vm3810_vm9, %v9194_v23, %v3803_v19  ;;  %v3819_v57 = vperm.slane %v9259_v3, 1  ;;  %v9308_v18 = vld [vmem:[%s10183_s11] ss:$8 sm:$0xf] }
 0x726   :  { %3151 = vst [vmem:[#allocation2 + $0x28] sm:$0xf0] %v3143_v37  ;;  %3321 = vmatpush.bf16.msrb.mxu3 %v3259_v16  ;;  %v3254_v33 = vpack.c.bf16 %v8978_v62, %v8940_v53  ;;  %v3882_v48 = vmul.f32 %v3874_v20, %v3868_v45  ;;  %v3826_v34 = vmul.f32 %v3818_v47, %v3814_v36  ;;  %v9315_v40 = vld [vmem:[#allocation2 + $0x128] sm:$0xff]  ;;  %v4705_v4 = vrot.slane %v4697_v0, 4  ;;  %v9319_v47 = vld [vmem:[#allocation2 + $0xb0] sm:$0xff] }
 0x727   :  { %4662 = vst [vmem:[#allocation2 + $0x80] sm:$0xf] %v4658_v11  ;;  %v4005_v26 = vpop.permute.xlu1 %4004  ;;  %v4641_v53 = vsel %vm3865_vm0, %v10775_v50, %v10770_v31  ;;  %v3813_v62 = vsel %vm3810_vm9, %v3803_v19, %v8897_v59  ;;  %v4698_v20 = vmul.f32 %v4690_v15, %v4683_v2  ;;  %v10777_v31 = vpack.c.bf16 %v8803_v63, %v8948_v17  ;;  %v10778_v15 = vld [vmem:[#allocation83_spill] sm:$0xff] }
 0x728   :  { %4716 = vst [vmem:[#allocation2 + $0x80] sm:$0xf0] %v4708_v6  ;;  %v4007_v22 = vsel %vm4006_vm11, %v10776_v42, %v4005_v26  ;;  %v4010_v51 = vsel %vm4006_vm11, %v4005_v26, %v9167_v43  ;;  %v9310_v43 = vld [vmem:[#allocation2 + $0x160] sm:$0xff]  ;;  %v3834_v44 = vrot.slane %v3826_v34, 4  ;;  %v4655_v58 = vmul.f32 %v4647_v38, %v4642_v61  ;;  %v3617_v61 = vld [vmem:[#allocation2 + $0x118] sm:$0xff]  ;;  %v9345_v34 = vld [vmem:[#allocation2 + $0x108] sm:$0xff] }
 0x729   :  { %v4025_v6 = vmul.f32 %v4017_v60, %v4007_v22  ;;  %3309 = vmatpush.bf16.msrb.mxu2 %v3254_v33  ;;  %3943 = vst [vmem:[#allocation2 + $0x178] sm:$0xf0] %v3935_v5  ;;  %v4022_v37 = vmul.f32 %v4014_v52, %v4010_v51  ;;  %v3250_v16 = vpack.c.bf16 %v8872_v46, %v8485_v56  ;;  %v3776_v5 = vperm.slane %v9308_v18, 1  ;;  %v10779_v33 = vld [vmem:[#allocation44_spill] sm:$0xff]  ;;  %v10781_v42 = vld [vmem:[#allocation54_spill] sm:$0xff] }
 0x72a   :  { %3322 = vmatpush.bf16.msrb.mxu3 %v10777_v31  ;;  %3885 = vst [vmem:[#allocation2 + $0x160] sm:$0xf] %v3881_v13  ;;  %v4656_v45 = vmul.f32 %v4648_v41, %v4641_v53  ;;  %v3827_v11 = vmul.f32 %v3819_v57, %v3813_v62  ;;  %v3251_v2 = vpack.c.bf16 %v8810_v25, %v10778_v15  ;;  %v3820_v56 = vperm.slane %v9259_v3, 2  ;;  %v10782_v22 = vld [vmem:[#allocation56_spill] sm:$0xff]  ;;  %v10791_v15 = vld [vmem:[#allocation93_spill] sm:$0xff] }
 0x72b   :  { %3886 = vst [vmem:[#allocation2 + $0x128] sm:$0xf] %v3882_v48  ;;  %v4033_v17 = vrot.slane %v4025_v6, 4  ;;  %v3821_v46 = vperm.slane %v9259_v3, 3  ;;  %v4706_v38 = vrot.slane %v4698_v20, 4  ;;  %v4030_v41 = vrot.slane %v4022_v37, 4 }
 0x72c   :  { %v3228_v63 = vld [vmem:[#allocation2 + $0xf8] sm:$0xff]  ;;  %3842 = vst [vmem:[#allocation2 + $0xb0] sm:$0xf0] %v3834_v44  ;;  %v9327_v19 = vpop.permute.xlu0 %3760  ;;  %v3835_v13 = vrot.slane %v3827_v11, 4  ;;  %v10780_v48 = vpack.c.bf16 %v8680_v49, %v10779_v33  ;;  %v3252_v57 = vpack.c.bf16 %v9034_v24, %v8910_v1  ;;  %v9352_v51 = vld [vmem:[#allocation2 + $0xd0] sm:$0xff]  ;;  %v3971_v31 = vperm.slane %v9055_v30, 0 }
 0x72d   :  { %3310 = vmatpush.bf16.msrb.mxu2 %v3250_v16  ;;  %v3256_v0 = vpack.c.bf16 %v3228_v63, %v9071_v54  ;;  %4659 = vst [vmem:[#allocation2 + $0xf8] sm:$0xf] %v4655_v58  ;;  %v3229_v60 = vld [vmem:[#allocation2 + $0x28] sm:$0xff]  ;;  %v3771_v52 = vsel %vm3768_vm15, %v9327_v19, %v8955_v8  ;;  %v10784_v49 = vld [vmem:[#allocation37_spill] sm:$0xff]  ;;  %v3608_v6 = vld [vmem:[#allocation2 + $0x10] sm:$0xff]  ;;  %vm10803_vm11 = vcmask 1041408  }
 0x72e   :  { %3323 = vmatpush.bf16.msrb.mxu3 %v3251_v2  ;;  %4713 = vst [vmem:[#allocation2 + $0xf8] sm:$0xf0] %v4705_v4  ;;  %v3257_v25 = vpack.c.bf16 %v3229_v60, %v9156_v12  ;;  %v3784_v50 = vmul.f32 %v3776_v5, %v3771_v52  ;;  %v10785_v1 = vld [vmem:[#allocation49_spill] sm:$0xff]  ;;  %v3609_v58 = vld [vmem:[#allocation2 + $0x48] sm:$0xff]  ;;  %v10794_v63 = vld [vmem:[#allocation8_spill] sm:$0xff] }
 0x72f   :  { %3282 = vmatpush.bf16.msrb.mxu0 %v3256_v0  ;;  %4660 = vst [vmem:[#allocation2 + $0x28] sm:$0xf] %v4656_v45  ;;  %v3807_v54 = vpop.permute.xlu1 %3806  ;;  %v3243_v24 = vpack.c.bf16 %v10785_v1, %v10784_v49  ;;  %v10786_v20 = vld [vmem:[#allocation81_spill] sm:$0xff]  ;;  %v10790_v16 = vld [vmem:[#allocation75_spill] sm:$0xff]  ;;  %v10796_v60 = vld [vmem:[#allocation24_spill] sm:$0xff]  ;;  %v3777_v49 = vperm.slane %v9308_v18, 2 }
 0x730   :  { %3295 = vmatpush.bf16.msrb.mxu1 %v3257_v25  ;;  %4714 = vst [vmem:[#allocation2 + $0x28] sm:$0xf0] %v4706_v38  ;;  %v3811_v3 = vsel %vm3810_vm9, %v3807_v54, %v9194_v23  ;;  %v3812_v12 = vsel %vm3810_vm9, %v8897_v59, %v3807_v54  ;;  %v10783_v23 = vpack.c.bf16 %v10781_v42, %v10782_v22  ;;  %v10787_v44 = vld [vmem:[#allocation85_spill] sm:$0xff]  ;;  %v10792_v2 = vld [vmem:[#allocation15_spill] sm:$0xff]  ;;  %v10801_v52 = vld [vmem:[#allocation14_spill] sm:$0xff] }
 0x731   :  { %v3828_v36 = vmul.f32 %v3820_v56, %v3812_v12  ;;  %v3829_v26 = vmul.f32 %v3821_v46, %v3811_v3  ;;  %3311 = vmatpush.bf16.msrb.mxu2 %v10780_v48  ;;  %4041 = vst [vmem:[#allocation2 + $0x118] sm:$0xf0] %v4033_v17  ;;  %v3253_v59 = vpack.c.bf16 %v9039_v55, %v8886_v21  ;;  %v3974_v21 = vperm.slane %v9055_v30, 3  ;;  %v10789_v55 = vld [vmem:[#allocation87_spill] sm:$0xff]  ;;  %v10797_v30 = vld [vmem:[#allocation70_spill] sm:$0xff]  ;;  %vm10806_vm9 = vmmov %vm10803_vm11 }
 0x732   :  { %3324 = vmatpush.bf16.msrb.mxu3 %v10783_v23  ;;  %4038 = vst [vmem:[#allocation2 + $0x108] sm:$0xf0] %v4030_v41  ;;  %v10788_v37 = vpack.c.bf16 %v10786_v20, %v10787_v44  ;;  %v3636_v4 = vpack.c.bf16 %v10789_v55, %v10789_v55  ;;  %v3637_v45 = vpack.c.bf16 %v10790_v16, %v10790_v16  ;;  %v10795_v17 = vld [vmem:[#allocation19_spill] sm:$0xff]  ;;  %v10799_v46 = vld [vmem:[#allocation34_spill] sm:$0xff]  ;;  %v9387_v48 = vld [vmem:[%s10177_s5] sm:$0x3] }
 0x733   :  { %v3836_v53 = vrot.slane %v3828_v36, 4  ;;  %v3837_v62 = vrot.slane %v3829_v26, 4  ;;  %3283 = vmatpush.bf16.msrb.mxu0 %v3252_v57  ;;  %3788 = vst [vmem:[#allocation2 + $0xd0] sm:$0xf] %v3784_v50  ;;  %v10793_v5 = vpack.c.bf16 %v10791_v15, %v10792_v2  ;;  %v3238_v0 = vpack.c.bf16 %v10795_v17, %v10794_v63  ;;  %v10800_v41 = vld [vmem:[#allocation67_spill] sm:$0xff]  ;;  %v10804_v36 = vld [vmem:[#allocation38_spill] sm:$0xff]  ;;  %vm10826_vm3 = vmmov %vm10806_vm9 }
 0x734   :  { %3296 = vmatpush.bf16.msrb.mxu1 %v3253_v59  ;;  %3843 = vst [vmem:[#allocation2 + $0xd0] sm:$0xf0] %v3835_v13  ;;  %v10798_v56 = vpack.c.bf16 %v10796_v60, %v10797_v30  ;;  %v10802_v54 = vld [vmem:[#allocation11_spill] sm:$0xff]  ;;  %v3649_v12 = vsel %vm10803_vm11, %v3636_v4, 0  ;;  %v3652_v57 = vsel %vm10806_vm9, %v3637_v45, 0  ;;  %v10807_v42 = vld [vmem:[#allocation72_spill] sm:$0xff]  ;;  %vm10827_vm13 = vmmov %vm10826_vm3 }
 0x735   :  { %3312 = vmatpush.bf16.msrb.mxu2 %v10788_v37  ;;  %3844 = vst [vmem:[#allocation2 + $0x10] sm:$0xf0] %v3836_v53  ;;  %v3239_v13 = vpack.c.bf16 %v10802_v54, %v10801_v52  ;;  %v10805_v26 = vld [vmem:[#allocation23_spill] sm:$0xff]  ;;  %v10808_v22 = vld [vmem:[#allocation33_spill] sm:$0xff]  ;;  %v10810_v53 = vld [vmem:[#allocation92_spill] sm:$0xff] }
 0x736   :  { %3325 = vmatpush.bf16.msrb.mxu3 %v3243_v24  ;;  %3845 = vst [vmem:[#allocation2 + $0x48] sm:$0xf0] %v3837_v62  ;;  %v3244_v33 = vpack.c.bf16 %v10805_v26, %v10804_v36  ;;  %v3245_v23 = vpack.c.bf16 %v10808_v22, %v10807_v42  ;;  %v4809_v59 = vld [vmem:[#allocation2 + $0xe8] sm:$0xf]  ;;  %v3633_v62 = vpack.c.bf16 %v10810_v53, %v3617_v61  ;;  %v10811_v1 = vld [vmem:[#allocation118_spill] sm:$0xff]  ;;  %v10814_v37 = vld [vmem:[#allocation36_spill] sm:$0xff] }
 0x737   :  { %v3962_v11 = vpop.permute.xlu1 %3961  ;;  %3284 = vmatpush.bf16.msrb.mxu0 %v10793_v5  ;;  %v10812_v24 = vld [vmem:[#allocation91_spill] sm:$0xff]  ;;  %v4810_v44 = vld [vmem:[#allocation2 + $0x70] sm:$0xf]  ;;  %v10817_v55 = vld [vmem:[#allocation74_spill] sm:$0xff]  ;;  %v4837_v45 = vpack.c.bf16 %v4809_v59, %v4809_v59  ;;  %v3628_v61 = vpack.c.bf16 %v9183_v29, %v3608_v6  ;;  %v3629_v29 = vpack.c.bf16 %v9296_v35, %v3609_v58  ;;  %v3876_v42 = vperm.slane %v9246_v7, 3 }
 0x738   :  { %3297 = vmatpush.bf16.msrb.mxu1 %v10798_v56  ;;  %v3964_v38 = vsel %vm3963_vm12, %v10799_v46, %v3962_v11  ;;  %v3967_v25 = vsel %vm3963_vm12, %v3962_v11, %v10800_v41  ;;  %vm10809_vm12 = vcmask 818176   ;;  %v3240_v20 = vpack.c.bf16 %v10812_v24, %v10811_v1  ;;  %v10818_v4 = vld [vmem:[#allocation90_spill] sm:$0xff]  ;;  %v10820_v2 = vld [vmem:[#allocation16_spill] sm:$0xff]  ;;  %v4957_v63 = vld.sshfl [vmem:[#allocation1 + $0x10] sm:$0xff pattern:$0x75316420] }
 0x739   :  { %v3979_v50 = vmul.f32 %v3971_v31, %v3967_v25  ;;  %v3982_v3 = vmul.f32 %v3974_v21, %v3964_v38  ;;  %3313 = vmatpush.bf16.msrb.mxu2 %v3238_v0  ;;  %vm10813_vm10 = vmmov %vm10809_vm12  ;;  %v10815_v31 = vld [vmem:[#allocation76_spill] sm:$0xff]  ;;  %v3241_v16 = vpack.c.bf16 %v10818_v4, %v10817_v55  ;;  %v10819_v15 = vld [vmem:[#allocation10_spill] sm:$0xff]  ;;  %v4838_v60 = vpack.c.bf16 %v4810_v44, %v4810_v44 }
 0x73a   :  { %3326 = vmatpush.bf16.msrb.mxu3 %v3239_v13  ;;  %v10816_v21 = vpack.c.bf16 %v10814_v37, %v10815_v31  ;;  %v3236_v5 = vpack.c.bf16 %v10820_v2, %v10819_v15  ;;  %v4955_v17 = vld.sshfl [vmem:[#allocation1] sm:$0xff pattern:$0x75316420]  ;;  %v10821_v30 = vld [vmem:[#allocation35_spill] sm:$0xff]  ;;  %4967 = vrot.lane.b32.xlu0 %v4957_v63, %s5833_s0  ;;  %v10825_v52 = vld [vmem:[#allocation18_spill] sm:$0xff]  ;;  %v4850_v13 = vsel %vm10826_vm3, %v4837_v45, 0  ;;  %v3626_v63 = vpack.c.bf16 %v9310_v43, %v9319_v47 }
 0x73b   :  { %3285 = vmatpush.bf16.msrb.mxu0 %v3244_v33  ;;  %3986 = vst [vmem:[#allocation2 + $0x118] sm:$0xf] %v3982_v3  ;;  %v3634_v56 = vpack.c.bf16 %v10821_v30, %v10821_v30  ;;  %v4956_v46 = vld.sshfl [vmem:[#allocation1 + $0x8] sm:$0xff pattern:$0x75316420]  ;;  %v10822_v6 = vld [vmem:[#allocation89_spill] sm:$0xff]  ;;  %4963 = vrot.lane.b32.xlu1 %v4955_v17, %s5833_s0  ;;  %vm10828_vm11 = vmmov %vm10826_vm3  ;;  %v3627_v30 = vpack.c.bf16 %v9315_v40, %v9352_v51 }
 0x73c   :  { %3298 = vmatpush.bf16.msrb.mxu1 %v3245_v23  ;;  %5701 = vmatmul.msk.bf16.vlgmr.msrb.gmra.mxu2 %vm10809_vm12, %v9387_v48  ;;  %3983 = vst [vmem:[#allocation2 + $0x108] sm:$0xf] %v3979_v50  ;;  %v3635_v41 = vpack.c.bf16 %v10822_v6, %v10822_v6  ;;  %v10823_v25 = vld [vmem:[#allocation7_spill] sm:$0xff]  ;;  %v4958_v35 = vld.sshfl [vmem:[#allocation1 + $0x18] sm:$0xff pattern:$0x75316420]  ;;  %vm10830_vm9 = vmmov %vm10826_vm3 }
 0x73d   :  { %3685 = vmatpush.bf16.msra.mxu2 %v3649_v12  ;;  %5702 = vmatmul.msk.bf16.vlgmr.msrb.gmra.mxu3 %vm10813_vm10, %v9387_v48  ;;  %5007 = vst [vmem:[#allocation1] ss:$2 sm:$0xff] %v10823_v25  ;;  %v4805_v50 = vld [vmem:[#allocation2 + $0x8] sm:$0xff]  ;;  %v4853_v58 = vsel %vm10827_vm13, %v4838_v60, 0  ;;  %v3643_v3 = vsel %vm10828_vm11, %v3634_v56, 0  ;;  %v4806_v12 = vld [vmem:[#allocation2 + $0x80] sm:$0xff]  ;;  %vm10831_vm12 = vmmov %vm10813_vm10 }
 0x73e   :  { %3698 = vmatpush.bf16.msra.mxu3 %v3652_v57  ;;  %4965 = vrot.lane.b32.xlu2 %v4956_v46, %s5833_s0  ;;  %v10829_v36 = vld [vmem:[#allocation6_spill] sm:$0xff]  ;;  %v3646_v26 = vsel %vm10830_vm9, %v3635_v41, 0  ;;  %v4801_v33 = vld [vmem:[#allocation2 + $0x30] sm:$0xff]  ;;  %v3875_v57 = vperm.slane %v9246_v7, 2  ;;  %v4802_v59 = vld [vmem:[#allocation2 + $0xc8] sm:$0xff]  ;;  %v3775_v47 = vperm.slane %v9308_v18, 0 }
 0x73f   :  { %v9405_v11 = vpop.permute.xlu1 %3764  ;;  %3286 = vmatpush.bf16.msrb.mxu0 %v3240_v20  ;;  %5009 = vst [vmem:[#allocation1 + $0x10] ss:$2 sm:$0xff] %v10829_v36  ;;  %v9435_v22 = vld [vmem:[%s10184_s12 + $0x4] ss:$8 sm:$0xf]  ;;  %v4833_v23 = vpack.c.bf16 %v4805_v50, %v4801_v33  ;;  %vm10836_vm13 = vcmask 293888  }
 0x740   :  { %3299 = vmatpush.bf16.msrb.mxu1 %v3241_v16  ;;  %v3770_v0 = vsel %vm3768_vm15, %v8955_v8, %v9405_v11  ;;  %v10824_v8 = vld [vmem:[#allocation12_spill] sm:$0xff]  ;;  %v4807_v53 = vld [vmem:[#allocation2 + $0x98] sm:$0xf]  ;;  %v5191_v15 = vperm.slane %v9435_v22, 1  ;;  %v4798_v2 = vld [vmem:[#allocation2 + $0x120] sm:$0xff]  ;;  %v5190_v40 = vperm.slane %v9435_v22, 0 }
 0x741   :  { %3686 = vmatpush.bf16.msra.mxu2 %v10816_v21  ;;  %v3785_v38 = vmul.f32 %v3777_v49, %v3770_v0  ;;  %v3237_v54 = vpack.c.bf16 %v10825_v52, %v10824_v8  ;;  %v10832_v1 = vld [vmem:[#allocation61_spill] sm:$0xff]  ;;  %v4808_v44 = vld [vmem:[#allocation2 + $0x150] sm:$0xf]  ;;  %v10833_v21 = vld [vmem:[#allocation86_spill] sm:$0xff]  ;;  %v5193_v50 = vperm.slane %v9435_v22, 3  ;;  %vm10838_vm9 = vcmask 1043456  }
 0x742   :  { %3699 = vmatpush.bf16.msra.mxu3 %v3633_v62  ;;  %v4834_v62 = vpack.c.bf16 %v4806_v12, %v4802_v59  ;;  %v3630_v7 = vpack.c.bf16 %v10832_v1, %v9345_v34  ;;  %v4797_v24 = vld [vmem:[#allocation2 + $0x158] sm:$0xff]  ;;  %v4793_v45 = vld [vmem:[#allocation2 + $0x190] sm:$0xff]  ;;  %v4785_v17 = vld [vmem:[#allocation2 + $0xa8] sm:$0xff]  ;;  %v5194_v51 = vrot.slane %v5191_v15, 4  ;;  %v3916_v15 = vperm.slane %v9104_v32, 0 }
 0x743   :  { %3789 = vst [vmem:[#allocation2 + $0x10] sm:$0xf] %v3785_v38  ;;  %3287 = vmatpush.bf16.msrb.mxu0 %v3236_v5  ;;  %v4794_v20 = vld [vmem:[#allocation2 + $0x38] sm:$0xff]  ;;  %v4836_v5 = vpack.c.bf16 %v4808_v44, %v4808_v44  ;;  %v4789_v0 = vld [vmem:[#allocation2 + $0xc0] sm:$0xff]  ;;  %4969 = vrot.lane.b32.xlu1 %v4958_v35, %s5833_s0  ;;  %v4786_v52 = vld [vmem:[#allocation2 + $0x88] sm:$0xff]  ;;  %s10839_s0 = smov 15  }
 0x744   :  { %3300 = vmatpush.bf16.msrb.mxu1 %v3237_v54  ;;  %v5010_v55 = vld.sshfl [vmem:[#allocation1] sm:$0xff pattern:$0x75316420]  ;;  %v5011_v4 = vld.sshfl [vmem:[#allocation1 + $0x8] sm:$0xff pattern:$0x75316420]  ;;  %v4825_v8 = vpack.c.bf16 %v4789_v0, %v4785_v17  ;;  %vm10837_vm11 = vmmov %vm10836_vm13 }
 0x745   :  { %3687 = vmatpush.bf16.msra.mxu2 %v3628_v61  ;;  %v4835_v61 = vpack.c.bf16 %v4807_v53, %v4807_v53  ;;  %5067 = vst [vmem:[#allocation1] ss:$2 sm:$0xff] %v10823_v25  ;;  %5018 = vrot.lane.b32.xlu0 %v5010_v55, %s5834_s22  ;;  %v4790_v56 = vld [vmem:[#allocation2 + $0x140] sm:$0xff]  ;;  %v4803_v6 = vld [vmem:[#allocation2 + $0xf8] sm:$0xff]  ;;  %v4804_v54 = vld [vmem:[#allocation2 + $0x28] sm:$0xff] }
 0x746   :  { %3700 = vmatpush.bf16.msra.mxu3 %v3629_v29  ;;  %5699 = vmatmul.msk.bf16.vlgmr.msrb.gmra.mxu0 %vm10831_vm12, %v9387_v48  ;;  %v5013_v60 = vld.sshfl [vmem:[#allocation1 + $0x18] sm:$0xff pattern:$0x75316420]  ;;  %v5012_v46 = vld.sshfl [vmem:[#allocation1 + $0x10] sm:$0xff pattern:$0x75316420]  ;;  %vm10841_vm12 = vmmov %vm10837_vm11 }
 0x747   :  { %3659 = vmatpush.bf16.msra.mxu0 %v3643_v3  ;;  %5700 = vmatmul.msk.bf16.vlgmr.msrb.gmra.mxu1 %vm10813_vm10, %v9387_v48  ;;  %v3862_v49 = vpop.permute.xlu1 %3861  ;;  %v3631_v48 = vpack.c.bf16 %v10833_v21, %v9088_v28  ;;  %v4830_v28 = vpack.c.bf16 %v4798_v2, %v4794_v20  ;;  %v9468_v38 = vld [vmem:[%s10180_s8 + $0x4] ss:$8 sm:$0xf]  ;;  %v3778_v29 = vperm.slane %v9308_v18, 3  ;;  %5069 = vst [vmem:[#allocation1 + $0x10] ss:$2 sm:$0xff] %v10829_v36  ;;  %vm10842_vm10 = vmmov %vm10837_vm11 }
 0x748   :  { %3672 = vmatpush.bf16.msra.mxu1 %v3646_v26  ;;  %v3866_v37 = vsel %vm3865_vm0, %v3862_v49, %v9212_v27  ;;  %v3867_v31 = vsel %vm3865_vm0, %v8995_v14, %v3862_v49  ;;  %v4829_v27 = vpack.c.bf16 %v4797_v24, %v4793_v45  ;;  %v9456_v14 = vld [vmem:[%s10178_s6] sm:$0x3]  ;;  %5020 = vrot.lane.b32.xlu2 %v5011_v4, %s5834_s22  ;;  %vm10834_vm0 = vmmov %vm10826_vm3  ;;  %v4800_v3 = vld [vmem:[#allocation2 + $0x68] sm:$0xff] }
 0x749   :  { %4882 = vmatpush.bf16.msrb.mxu2 %v4850_v13  ;;  %v3883_v16 = vmul.f32 %v3875_v57, %v3867_v31  ;;  %v3884_v34 = vmul.f32 %v3876_v42, %v3866_v37  ;;  %v4844_v43 = vsel %vm10834_vm0, %v4835_v61, 0  ;;  %vm10835_vm3 = vmmov %vm10834_vm0  ;;  %v4781_v13 = vld [vmem:[#allocation2 + $0x20] sm:$0xff]  ;;  %v4826_v18 = vpack.c.bf16 %v4790_v56, %v4786_v52  ;;  %v4777_v49 = vld [vmem:[#allocation2 + $0x138] sm:$0xff] }
 0x74a   :  { %4895 = vmatpush.bf16.msrb.mxu3 %v4853_v58  ;;  %v4847_v41 = vsel %vm10835_vm3, %v4836_v5, 0  ;;  %v4799_v58 = vld [vmem:[#allocation2 + $0x198] sm:$0xff]  ;;  %v4782_v12 = vld [vmem:[#allocation2 + $0xe0] sm:$0xff]  ;;  %v4821_v24 = vpack.c.bf16 %v4781_v13, %v4777_v49  ;;  %v5195_v37 = vrot.slane %v5193_v50, 4  ;;  %v4791_v21 = vld [vmem:[#allocation2 + $0x50] sm:$0xff]  ;;  %v5224_v56 = vperm.slane %v9468_v38, 3 }
 0x74b   :  { %3660 = vmatpush.bf16.msra.mxu0 %v3630_v7  ;;  %3887 = vst [vmem:[#allocation2 + $0x40] sm:$0xf] %v3883_v16  ;;  %v4831_v57 = vpack.c.bf16 %v4803_v6, %v4799_v58  ;;  %v4795_v1 = vld [vmem:[#allocation2 + $0x60] sm:$0xff]  ;;  %v5196_v7 = vsel %vm10838_vm9, %v5190_v40, %v5194_v51  ;;  %v4778_v20 = vld [vmem:[#allocation2 + $0x78] sm:$0xff]  ;;  %v4769_v55 = vld [vmem:[#allocation2 + $0x90] sm:$0xff]  ;;  %5022 = vrot.lane.b32.xlu1 %v5012_v46, %s5834_s22 }
 0x74c   :  { %3673 = vmatpush.bf16.msra.mxu1 %v3631_v48  ;;  %3888 = vst [vmem:[#allocation2 + $0x178] sm:$0xf] %v3884_v34  ;;  %5713 = vmatmul.msk.bf16.vlgmr.msra.gmra.mxu2 %vm10836_vm13, %v9456_v14  ;;  %v5070_v42 = vld.sshfl [vmem:[#allocation1] sm:$0xff pattern:$0x75316420]  ;;  %v4822_v31 = vpack.c.bf16 %v4782_v12, %v4778_v20  ;;  %v4792_v48 = vld [vmem:[#allocation2 + $0x168] sm:$0xff]  ;;  %v5200_v45 = vadd.f32 %v5196_v7, %v10823_v25  ;;  %vm10843_vm0 = vmmov %vm10838_vm9 }
 0x74d   :  { %4883 = vmatpush.bf16.msrb.mxu2 %v4833_v23  ;;  %5714 = vmatmul.msk.bf16.vlgmr.msra.gmra.mxu3 %vm10837_vm11, %v9456_v14  ;;  %v9487_v23 = vld.sshfl [vmem:[#allocation1 + $0x8] sm:$0xff pattern:$0x75316420]  ;;  %v4796_v44 = vld [vmem:[#allocation2 + $0x18] sm:$0xff]  ;;  %v4761_v50 = vld [vmem:[#allocation2 + $0x10] sm:$0xff] }
 0x74e   :  { %4896 = vmatpush.bf16.msrb.mxu3 %v4834_v62  ;;  %v4832_v62 = vpack.c.bf16 %v4804_v54, %v4800_v3  ;;  %5127 = vst [vmem:[#allocation1] ss:$2 sm:$0xff] %v10823_v25  ;;  %5024 = vrot.lane.b32.xlu0 %v5013_v60, %s5834_s22  ;;  %v4773_v4 = vld [vmem:[#allocation2 + $0x58] sm:$0xff]  ;;  %v5072_v34 = vld.sshfl [vmem:[#allocation1 + $0x10] sm:$0xff pattern:$0x75316420]  ;;  %v4828_v61 = vpack.c.bf16 %v4796_v44, %v4792_v48  ;;  %vm10845_vm3 = vmmov %vm10843_vm0 }
 0x74f   :  { %3661 = vmatpush.bf16.msra.mxu0 %v3626_v63  ;;  %v3767_v35 = vpop.permute.xlu1 %3766  ;;  %v4770_v16 = vld [vmem:[#allocation2 + $0x118] sm:$0xff]  ;;  %v5073_v5 = vld.sshfl [vmem:[#allocation1 + $0x18] sm:$0xff pattern:$0x75316420]  ;;  %v4817_v17 = vpack.c.bf16 %v4773_v4, %v4769_v55  ;;  %v4780_v58 = vld [vmem:[#allocation2] sm:$0xff] }
 0x750   :  { %3674 = vmatpush.bf16.msra.mxu1 %v3627_v30  ;;  %v3769_v26 = vsel %vm3768_vm15, %v9405_v11, %v3767_v35  ;;  %v3772_v33 = vsel %vm3768_vm15, %v3767_v35, %v9327_v19  ;;  %v5192_v11 = vperm.slane %v9435_v22, 2  ;;  %v5222_v19 = vperm.slane %v9468_v38, 1  ;;  %5078 = vrot.lane.b32.xlu2 %v5070_v42, %s10839_s0  ;;  %v4787_v2 = vld [vmem:[#allocation2 + $0xb8] sm:$0xff]  ;;  %v4788_v60 = vld [vmem:[#allocation2 + $0x170] sm:$0xff]  ;;  %5129 = vst [vmem:[#allocation1 + $0x10] ss:$2 sm:$0xff] %v10829_v36  ;;  %vm10840_vm15 = vmmov %vm10838_vm9 }
 0x751   :  { %4884 = vmatpush.bf16.msrb.mxu2 %v4829_v27  ;;  %v3783_v59 = vmul.f32 %v3775_v47, %v3772_v33  ;;  %v3786_v53 = vmul.f32 %v3778_v29, %v3769_v26  ;;  %v4827_v22 = vpack.c.bf16 %v4795_v1, %v4791_v21  ;;  %v3917_v27 = vperm.slane %v9104_v32, 1  ;;  %v4774_v0 = vld [vmem:[#allocation2 + $0xd8] sm:$0xff]  ;;  %v4784_v47 = vld [vmem:[#allocation2 + $0x188] sm:$0xff]  ;;  %v4775_v12 = vld [vmem:[#allocation2 + $0x180] sm:$0xff] }
 0x752   :  { %4897 = vmatpush.bf16.msrb.mxu3 %v4830_v28  ;;  %v5221_v28 = vperm.slane %v9468_v38, 0  ;;  %v5225_v63 = vrot.slane %v5222_v19, 4  ;;  %v5197_v30 = vsel %vm10840_vm15, %v5192_v11, %v5195_v37  ;;  %v4818_v32 = vpack.c.bf16 %v4774_v0, %v4770_v16  ;;  %v4765_v29 = vld [vmem:[#allocation2 + $0x40] sm:$0xff]  ;;  %v4839_v49 = vld [vmem:[%s10179_s7] sm:$0x3]  ;;  %v4767_v7 = vld [vmem:[#allocation2 + $0x108] sm:$0xff] }
 0x753   :  { %4856 = vmatpush.bf16.msrb.mxu0 %v4844_v43  ;;  %3787 = vst [vmem:[#allocation2 + $0xb0] sm:$0xf] %v3783_v59  ;;  %v4783_v43 = vld [vmem:[#allocation2 + $0xf0] sm:$0xff]  ;;  %v4824_v13 = vpack.c.bf16 %v4788_v60, %v4784_v47  ;;  %v4813_v35 = vpack.c.bf16 %v4765_v29, %v4761_v50  ;;  %v4766_v33 = vld [vmem:[#allocation2 + $0x178] sm:$0xff]  ;;  %5080 = vrot.lane.b32.xlu1 %v9487_v23, %s10839_s0  ;;  %v5226_v42 = vrot.slane %v5224_v56, 4  ;;  %v4772_v20 = vld [vmem:[#allocation2 + $0x100] sm:$0xff] }
 0x754   :  { %4869 = vmatpush.bf16.msrb.mxu1 %v4847_v41  ;;  %3790 = vst [vmem:[#allocation2 + $0x48] sm:$0xf] %v3786_v53  ;;  %v4823_v51 = vpack.c.bf16 %v4787_v2, %v4783_v43  ;;  %v4776_v53 = vld [vmem:[#allocation2 + $0x130] sm:$0xff]  ;;  %vm10849_vm15 = vmmov %vm10843_vm0 }
 0x755   :  { %4885 = vmatpush.bf16.msrb.mxu2 %v4825_v8  ;;  %v5131_v41 = vld.sshfl [vmem:[#allocation1 + $0x8] sm:$0xff pattern:$0x75316420]  ;;  %v5130_v8 = vld.sshfl [vmem:[#allocation1] sm:$0xff pattern:$0x75316420]  ;;  %v4820_v11 = vpack.c.bf16 %v4780_v58, %v4776_v53 }
 0x756   :  { %4898 = vmatpush.bf16.msrb.mxu3 %v4826_v18  ;;  %5711 = vmatmul.msk.bf16.vlgmr.msra.gmra.mxu0 %vm10841_vm12, %v9456_v14  ;;  %v4779_v18 = vld [vmem:[#allocation2 + $0xa0] sm:$0xff]  ;;  %5204 = vst [vmem:[#allocation1] ss:$2 sm:$0xff] %v5200_v45  ;;  %vm10851_vm12 = vmmov %vm10843_vm0 }
 0x757   :  { %4857 = vmatpush.bf16.msrb.mxu0 %v4831_v57  ;;  %v3901_v46 = vpop.permute.xlu1 %3900  ;;  %5712 = vmatmul.msk.bf16.vlgmr.msra.gmra.mxu1 %vm10842_vm10, %v9456_v14  ;;  %v5227_v14 = vsel %vm10843_vm0, %v5221_v28, %v5225_v63  ;;  %v5223_v57 = vperm.slane %v9468_v38, 2  ;;  %v4819_v59 = vpack.c.bf16 %v4779_v18, %v4775_v12  ;;  %v5132_v19 = vld.sshfl [vmem:[#allocation1 + $0x10] sm:$0xff pattern:$0x75316420]  ;;  %v4768_v38 = vld [vmem:[#allocation2 + $0x110] sm:$0xff]  ;;  %vm10852_vm10 = vmmov %vm10843_vm0 }
 0x758   :  { %4870 = vmatpush.bf16.msrb.mxu1 %v4832_v62  ;;  %v3911_v6 = vsel %vm3908_vm14, %v3901_v46, %v9118_v39  ;;  %v3912_v40 = vsel %vm3908_vm14, %v9228_v10, %v3901_v46  ;;  %5082 = vrot.lane.b32.xlu0 %v5072_v34, %s10839_s0  ;;  %v5201_v39 = vadd.f32 %v5197_v30, %v10829_v36  ;;  %v5133_v23 = vld.sshfl [vmem:[#allocation1 + $0x18] sm:$0xff pattern:$0x75316420]  ;;  %vm10844_vm14 = vcmask 818176  }
 0x759   :  { %4886 = vmatpush.bf16.msrb.mxu2 %v4821_v24  ;;  %v3924_v52 = vmul.f32 %v3916_v15, %v3912_v40  ;;  %v3925_v54 = vmul.f32 %v3917_v27, %v3911_v6  ;;  %5084 = vrot.lane.b32.xlu2 %v5073_v5, %s10839_s0  ;;  %v5231_v1 = vmul.f32 %v5227_v14, %v10823_v25  ;;  %v4771_v24 = vld [vmem:[#allocation2 + $0x148] sm:$0xff]  ;;  %vm10846_vm13 = vmmov %vm10844_vm14  ;;  %v4760_v34 = vld [vmem:[#allocation2 + $0xd0] sm:$0xff] }
 0x75a   :  { %4899 = vmatpush.bf16.msrb.mxu3 %v4822_v31  ;;  %5206 = vst [vmem:[#allocation1 + $0x10] ss:$2 sm:$0xff] %v5201_v39  ;;  %v5228_v44 = vsel %vm10845_vm3, %v5223_v57, %v5226_v42  ;;  %v4815_v37 = vpack.c.bf16 %v4771_v24, %v4767_v7  ;;  %v4816_v48 = vpack.c.bf16 %v4772_v20, %v4768_v38  ;;  %v4759_v4 = vld [vmem:[#allocation2 + $0xb0] sm:$0xff]  ;;  %vm10847_vm11 = vmmov %vm10846_vm13 }
 0x75b   :  { %4858 = vmatpush.bf16.msrb.mxu0 %v4827_v22  ;;  %v3932_v10 = vrot.slane %v3924_v52, 4  ;;  %v3933_v3 = vrot.slane %v3925_v54, 4  ;;  %v4762_v26 = vld [vmem:[#allocation2 + $0x48] sm:$0xff]  ;;  %v5232_v55 = vmul.f32 %v5228_v44, %v10829_v36  ;;  %5138 = vrot.lane.b32.xlu1 %v5130_v8, %s10570_s29  ;;  %vm10848_vm9 = vmmov %vm10847_vm11 }
 0x75c   :  { %4871 = vmatpush.bf16.msrb.mxu1 %v4828_v61  ;;  %v4814_v62 = vpack.c.bf16 %v4766_v33, %v4762_v26  ;;  %v4975_v43 = vld [vmem:[%s10184_s12] ss:$8 sm:$0xf]  ;;  %v5743_v14 = vld [vmem:[%s10184_s12 + $0x1] ss:$8 sm:$0xf] }
 0x75d   :  { %4887 = vmatpush.bf16.msrb.mxu2 %v4817_v17  ;;  %3940 = vst [vmem:[#allocation2 + $0x160] sm:$0xf0] %v3932_v10  ;;  %v9526_v31 = vld.sshfl [vmem:[#allocation1] sm:$0xff pattern:$0x75316420]  ;;  %v4978_v40 = vperm.slane %v4975_v43, 1 }
 0x75e   :  { %4900 = vmatpush.bf16.msrb.mxu3 %v4818_v32  ;;  %3941 = vst [vmem:[#allocation2 + $0x128] sm:$0xf0] %v3933_v3  ;;  %v9528_v21 = vld.sshfl [vmem:[#allocation1 + $0x8] sm:$0xff pattern:$0x75316420]  ;;  %v4980_v50 = vperm.slane %v4975_v43, 3 }
 0x75f   :  { %4859 = vmatpush.bf16.msrb.mxu0 %v4823_v51  ;;  %5235 = vst [vmem:[#allocation1] ss:$2 sm:$0xff] %v5231_v1  ;;  %v4989_v47 = vld [vmem:[%s10180_s8] ss:$8 sm:$0xf]  ;;  %v4979_v51 = vperm.slane %v4975_v43, 2 }
 0x760   :  { %4872 = vmatpush.bf16.msrb.mxu1 %v4824_v13  ;;  %5140 = vrot.lane.b32.xlu0 %v5131_v41, %s10570_s29  ;;  %v4992_v41 = vperm.slane %v4989_v47, 1  ;;  %v4993_v8 = vperm.slane %v4989_v47, 2  ;;  %v4977_v13 = vperm.slane %v4975_v43, 0  ;;  %v4991_v58 = vperm.slane %v4989_v47, 0 }
 0x761   :  { %4888 = vmatpush.bf16.msrb.mxu2 %v4813_v35  ;;  %5142 = vrot.lane.b32.xlu2 %v5132_v19, %s10570_s29  ;;  %v9535_v15 = vld.sshfl [vmem:[#allocation1 + $0x10] sm:$0xff pattern:$0x75316420]  ;;  %v9537_v27 = vld.sshfl [vmem:[#allocation1 + $0x18] sm:$0xff pattern:$0x75316420] }
 0x762   :  { %4901 = vmatpush.bf16.msrb.mxu3 %v4814_v62  ;;  %5237 = vst [vmem:[#allocation1 + $0x10] ss:$2 sm:$0xff] %v5232_v55  ;;  %v4994_v39 = vperm.slane %v4989_v47, 3  ;;  %v5744_v12 = vld [vmem:[%s10180_s8 + $0x1] ss:$8 sm:$0xf] }
 0x763   :  { %4860 = vmatpush.bf16.msrb.mxu0 %v4819_v59  ;;  %5144 = vrot.lane.b32.xlu1 %v5133_v23, %s10570_s29  ;;  %v5033_v1 = vperm.slane %v5743_v14, 0  ;;  %v5051_v7 = vperm.slane %v5744_v12, 0  ;;  %v5034_v19 = vperm.slane %v5743_v14, 1  ;;  %v5052_v38 = vperm.slane %v5744_v12, 1  ;;  %s9944_s29 = sld [smem:[#allocation3 + $0x1]] }
 0x764   :  { %4873 = vmatpush.bf16.msrb.mxu1 %v4820_v11  ;;  %5741 = vmatmul.msk.bf16.vlgmr.msrb.gmra.mxu2 %vm10844_vm14, %v4839_v49  ;;  %v4763_v22 = vld [vmem:[#allocation2 + $0x160] sm:$0xff] }
 0x765   :  { %5742 = vmatmul.msk.bf16.vlgmr.msrb.gmra.mxu3 %vm10846_vm13, %v4839_v49  ;;  %v4811_v16 = vpack.c.bf16 %v4763_v22, %v4759_v4  ;;  %v4764_v45 = vld [vmem:[#allocation2 + $0x128] sm:$0xff] }
 0x766   :  { %v4812_v61 = vpack.c.bf16 %v4764_v45, %v4760_v34  ;;  %v9539_v2 = vld.sshfl [vmem:[#allocation1] sm:$0xff pattern:$0x75316420]  ;;  %v9541_v5 = vld.sshfl [vmem:[#allocation1 + $0x8] sm:$0xff pattern:$0x75316420] }
 0x767   :  { %4861 = vmatpush.bf16.msrb.mxu0 %v4815_v37  ;;  %5250 = vst [vmem:[#allocation1] ss:$2 sm:$0xff] %v10823_v25  ;;  %v5035_v37 = vperm.slane %v5743_v14, 2  ;;  %v5053_v34 = vperm.slane %v5744_v12, 2  ;;  %v5054_v45 = vperm.slane %v5744_v12, 3 }
 0x768   :  { %4874 = vmatpush.bf16.msrb.mxu1 %v4816_v48  ;;  %v5036_v48 = vperm.slane %v5743_v14, 3 }
 0x769   :  { %v9547_v28 = vld.sshfl [vmem:[#allocation1 + $0x10] sm:$0xff pattern:$0x75316420]  ;;  %v9549_v63 = vld.sshfl [vmem:[#allocation1 + $0x18] sm:$0xff pattern:$0x75316420] }
 0x76a   :  { %5252 = vst [vmem:[#allocation1 + $0x10] ss:$2 sm:$0xff] %v10829_v36 }
 0x76b   :  { %4862 = vmatpush.bf16.msrb.mxu0 %v4811_v16 }
 0x76c   :  { %4875 = vmatpush.bf16.msrb.mxu1 %v4812_v61 }
 0x76e   :  { %5739 = vmatmul.msk.bf16.vlgmr.msrb.gmra.mxu0 %vm10847_vm11, %v4839_v49  ;;  %v5253_v17 = vld.sshfl [vmem:[#allocation1] sm:$0xff pattern:$0x75316420]  ;;  %v5254_v0 = vld.sshfl [vmem:[#allocation1 + $0x8] sm:$0xff pattern:$0x75316420] }
 0x76f   :  { %5740 = vmatmul.msk.bf16.vlgmr.msrb.gmra.mxu1 %vm10848_vm9, %v4839_v49  ;;  %5261 = vrot.lane.b32.xlu0 %v5253_v17, %s10572_s20  ;;  %5310 = vst [vmem:[#allocation1] ss:$2 sm:$0xff] %v10823_v25 }
 0x770   :  { %5263 = vrot.lane.b32.xlu2 %v5254_v0, %s10572_s20 }
 0x771   :  { %v5256_v60 = vld.sshfl [vmem:[#allocation1 + $0x18] sm:$0xff pattern:$0x75316420]  ;;  %v5255_v30 = vld.sshfl [vmem:[#allocation1 + $0x10] sm:$0xff pattern:$0x75316420] }
 0x772   :  { %5265 = vrot.lane.b32.xlu1 %v5255_v30, %s10572_s20  ;;  %5312 = vst [vmem:[#allocation1 + $0x10] ss:$2 sm:$0xff] %v10829_v36 }
 0x776   :  { %v5313_v56 = vld.sshfl [vmem:[#allocation1] sm:$0xff pattern:$0x75316420] }
 0x777   :  { %5267 = vrot.lane.b32.xlu0 %v5256_v60, %s10572_s20  ;;  %s9951_s20 = sld [smem:[#allocation3 + $0x3]] }
 0x778   :  { %5321 = vrot.lane.b32.xlu2 %v5313_v56, %s10576_s21 }
 0x779   :  { %v5315_v56 = vld.sshfl [vmem:[#allocation1 + $0x10] sm:$0xff pattern:$0x75316420] }
 0x77f   :  { %5325 = vrot.lane.b32.xlu0 %v5315_v56, %s10576_s21 }
 0x798   :  { %v4966_v29 = vpop.permute.xlu2 %4965 }
 0x7a2   :  { %v5021_v44 = vpop.permute.xlu2 %5020 }
 0x7ac   :  { %v4968_v32 = vpop.permute.xlu0 %4967 }
 0x7ad   :  { %v4964_v46 = vpop.permute.xlu1 %4963  ;;  %v4972_v52 = vsel %vm88_vm2, %v4966_v29, %v4968_v32 }
 0x7ae   :  { %v4973_v54 = vsel %vm88_vm2, %v4964_v46, %v4966_v29  ;;  %v9585_v57 = vadd.f32 %v4979_v51, %v4972_v52  ;;  %v5001_v59 = vmul.f32 %v4993_v8, %v4972_v52 }
 0x7af   :  { %v9583_v33 = vadd.f32 %v4978_v40, %v4973_v54  ;;  %v5000_v42 = vmul.f32 %v4992_v41, %v4973_v54 }
 0x7b5   :  { %v4970_v18 = vpop.permute.xlu1 %4969 }
 0x7b6   :  { %v4971_v10 = vsel %vm88_vm2, %v4968_v32, %v4970_v18  ;;  %v4974_v3 = vsel %vm88_vm2, %v4970_v18, %v4964_v46  ;;  %vm10850_vm2 = vmmov %vm10843_vm0 }
 0x7b7   :  { %v5019_v6 = vpop.permute.xlu0 %5018  ;;  %v9589_v62 = vadd.f32 %v4977_v13, %v4974_v3  ;;  %v9591_v49 = vadd.f32 %v4980_v50, %v4971_v10  ;;  %v4999_v24 = vmul.f32 %v4991_v58, %v4974_v3  ;;  %v5002_v20 = vmul.f32 %v4994_v39, %v4971_v10  ;;  %vm10855_vm14 = vmmov %vm10850_vm2 }
 0x7b8   :  { %v5028_v16 = vsel %vm130_vm1, %v5019_v6, %v5021_v44  ;;  %vm10856_vm3 = vmmov %vm10850_vm2 }
 0x7b9   :  { %v5042_v0 = vadd.f32 %v5034_v19, %v5028_v16  ;;  %v5060_v60 = vmul.f32 %v5052_v38, %v5028_v16  ;;  %vm10857_vm13 = vmmov %vm10850_vm2 }
 0x7bb   :  { %v5046_v40 = vmax.f32 %v9583_v33, %v5042_v0  ;;  %v5064_v51 = vadd.f32 %v5060_v60, %v5000_v42  ;;  %v5748_v0 = vld [vmem:[%s10180_s8 + $0x3] ss:$8 sm:$0xf] }
 0x7bd   :  { %v5023_v30 = vpop.permute.xlu1 %5022 }
 0x7bf   :  { %v9572_v35 = vpop.f32.mrf.mxu2 }
 0x7c0   :  { %v9581_v26 = vpop.f32.mrf.mxu3  ;;  %v3335_v53 = vsel %vm10849_vm15, %v9572_v35, 0.0  ;;  %v5025_v22 = vpop.permute.xlu0 %5024  ;;  %vm10860_vm15 = vmmov %vm10850_vm2 }
 0x7c1   :  { %v3337_v11 = vsel %vm10850_vm2, %v9581_v26, 0.0  ;;  %v5029_v17 = vsel %vm130_vm1, %v5025_v22, %v5019_v6  ;;  %v5026_v47 = vsel %vm130_vm1, %v5023_v30, %v5025_v22  ;;  %v5027_v6 = vsel %vm130_vm1, %v5021_v44, %v5023_v30 }
 0x7c2   :  { %v9607_v46 = vadd.f32 %v5033_v1, %v5029_v17  ;;  %v5059_v43 = vmul.f32 %v5051_v7, %v5029_v17  ;;  %v9615_v41 = vadd.f32 %v5036_v48, %v5026_v47  ;;  %v5043_v50 = vadd.f32 %v5035_v37, %v5027_v6  ;;  %v5745_v1 = vld [vmem:[%s10184_s12 + $0x2] ss:$8 sm:$0xf]  ;;  %v5747_v17 = vld [vmem:[%s10184_s12 + $0x3] ss:$8 sm:$0xf] }
 0x7c3   :  { %v9595_v23 = vpop.f32.mrf.mxu0  ;;  %v5061_v14 = vmul.f32 %v5053_v34, %v5027_v6  ;;  %v5062_v58 = vmul.f32 %v5054_v45, %v5026_v47  ;;  %v5746_v7 = vld [vmem:[%s10180_s8 + $0x2] ss:$8 sm:$0xf]  ;;  %v5094_v19 = vperm.slane %v5745_v1, 1  ;;  %v5095_v38 = vperm.slane %v5745_v1, 2 }
 0x7c4   :  { %v3332_v55 = vsel %vm10851_vm12, %v9595_v23, 0.0  ;;  %v9599_v4 = vpop.f32.mrf.mxu1  ;;  %v5045_v54 = vmax.f32 %v9589_v62, %v9607_v46  ;;  %v9619_v13 = vadd.f32 %v5059_v43, %v4999_v24  ;;  %v5048_v18 = vmax.f32 %v9591_v49, %v9615_v41  ;;  %v5079_v49 = vpop.permute.xlu2 %5078  ;;  %vm10862_vm12 = vmmov %vm10850_vm2 }
 0x7c5   :  { %v3333_v61 = vsel %vm10852_vm10, %v9599_v4, 0.0  ;;  %v5047_v10 = vmax.f32 %v9585_v57, %v5043_v50  ;;  %v5065_v12 = vadd.f32 %v5061_v14, %v5001_v59  ;;  %v5066_v33 = vadd.f32 %v5062_v58, %v5002_v20  ;;  %v5081_v57 = vpop.permute.xlu1 %5080  ;;  %vm10863_vm10 = vmmov %vm10850_vm2 }
 0x7c6   :  { %v3334_v32 = vadd.f32 %v3333_v61, %v3332_v55  ;;  %v5113_v24 = vperm.slane %v5746_v7, 2  ;;  %vm10853_vm1 = vcmp.lt.s32.totalorder %v6050_v9, 15  ;;  %v5093_v30 = vperm.slane %v5745_v1, 0 }
 0x7c7   :  { %v3317_v29 = vpop.f32.mrf.mxu2  ;;  %vm10854_vm0 = vmmov %vm10853_vm1  ;;  %v5096_v56 = vperm.slane %v5745_v1, 3  ;;  %v5114_v47 = vperm.slane %v5746_v7, 3  ;;  %v5154_v41 = vperm.slane %v5747_v17, 1  ;;  %v5171_v62 = vperm.slane %v5748_v0, 0 }
 0x7c8   :  { %v3336_v8 = vadd.f32 %v3335_v53, %v3334_v32  ;;  %v3330_v52 = vpop.f32.mrf.mxu3  ;;  %v5088_v20 = vsel %vm10854_vm0, %v5079_v49, %v5081_v57  ;;  %v5111_v32 = vperm.slane %v5746_v7, 0  ;;  %v9652_v29 = vld.sshfl [vmem:[#allocation1 + $0x18] sm:$0xff pattern:$0x75316420]  ;;  %vm10858_vm11 = vmmov %vm10854_vm0  ;;  %v5174_v46 = vperm.slane %v5748_v0, 3 }
 0x7c9   :  { %v5102_v44 = vadd.f32 %v5094_v19, %v5088_v20  ;;  %5372 = vst [vmem:[#allocation1 + $0x10] ss:$2 sm:$0xff] %v10829_v36  ;;  %vm10859_vm9 = vmmov %vm10854_vm0 }
 0x7ca   :  { %v3338_v39 = vadd.f32 %v3337_v11, %v3336_v8  ;;  %v5083_v53 = vpop.permute.xlu0 %5082  ;;  %v5112_v11 = vperm.slane %v5746_v7, 1  ;;  %v5172_v8 = vperm.slane %v5748_v0, 1  ;;  %v9667_v7 = vld.sshfl [vmem:[#allocation1 + $0x8] sm:$0xff pattern:$0x75316420] }
 0x7cb   :  { %v3291_v3 = vpop.f32.mrf.mxu0  ;;  %v5087_v59 = vsel %vm10853_vm1, %v5081_v57, %v5083_v53  ;;  %v9634_v22 = vmax.f32 %v5046_v40, %v5102_v44  ;;  %5370 = vst [vmem:[#allocation1] ss:$2 sm:$0xff] %v10823_v25  ;;  %vm10865_vm1 = vmmov %vm10850_vm2 }
 0x7cc   :  { %v3304_v42 = vpop.f32.mrf.mxu1  ;;  %3339 = vadd.xlane.f32.xlu1 %v3338_v39  ;;  %v5103_v37 = vadd.f32 %v5095_v38, %v5087_v59  ;;  %v5120_v48 = vmul.f32 %v5112_v11, %v5088_v20  ;;  %v5121_v55 = vmul.f32 %v5113_v24, %v5087_v59  ;;  %v5085_v6 = vpop.permute.xlu2 %5084  ;;  %vm10866_vm0 = vmmov %vm10865_vm1 }
 0x7cd   :  { %v5086_v14 = vsel %vm10858_vm11, %v5083_v53, %v5085_v6  ;;  %v5089_v58 = vsel %vm10859_vm9, %v5085_v6, %v5079_v49  ;;  %v5139_v39 = vpop.permute.xlu1 %5138  ;;  %vm10872_vm11 = vmmov %vm10866_vm0 }
 0x7ce   :  { %v9636_v16 = vmax.f32 %v5047_v10, %v5103_v37  ;;  %v5124_v34 = vadd.f32 %v5120_v48, %v5064_v51  ;;  %v9638_v45 = vadd.f32 %v5121_v55, %v5065_v12  ;;  %v5101_v12 = vadd.f32 %v5093_v30, %v5089_v58  ;;  %vm10873_vm9 = vmmov %vm10866_vm0 }
 0x7cf   :  { %v9640_v61 = vpop.f32.mrf.mxu2  ;;  %v5104_v42 = vadd.f32 %v5096_v56, %v5086_v14  ;;  %v5119_v1 = vmul.f32 %v5111_v32, %v5089_v58  ;;  %v5122_v38 = vmul.f32 %v5114_v47, %v5086_v14  ;;  %v5155_v48 = vperm.slane %v5747_v17, 2 }
 0x7d0   :  { %v9648_v60 = vpop.f32.mrf.mxu3  ;;  %v3709_v52 = vsel %vm10856_vm3, %v9640_v61, 0.0  ;;  %v5105_v49 = vmax.f32 %v5045_v54, %v5101_v12  ;;  %v5173_v56 = vperm.slane %v5748_v0, 2  ;;  %v5153_v32 = vperm.slane %v5747_v17, 0  ;;  %vm10868_vm3 = vmmov %vm10866_vm0 }
 0x7d1   :  { %v3711_v19 = vsel %vm10860_vm15, %v9648_v60, 0.0  ;;  %v9677_v24 = vmax.f32 %v5048_v18, %v5104_v42  ;;  %v5123_v57 = vadd.f32 %v5119_v1, %v9619_v13  ;;  %v5126_v20 = vadd.f32 %v5122_v38, %v5066_v33  ;;  %v9710_v38 = vld [vmem:[%s10180_s8 + $0x5] ss:$8 sm:$0xf]  ;;  %vm10874_vm15 = vmmov %vm10866_vm0 }
 0x7d2   :  { %v5141_v3 = vpop.permute.xlu0 %5140  ;;  %v5156_v47 = vperm.slane %v5747_v17, 3 }
 0x7d3   :  { %v9650_v43 = vpop.f32.mrf.mxu0  ;;  %v5148_v11 = vsel %vm228_vm4, %v5139_v39, %v5141_v3 }
 0x7d4   :  { %v3706_v40 = vsel %vm10855_vm14, %v9650_v43, 0.0  ;;  %v9656_v51 = vpop.f32.mrf.mxu1  ;;  %v5162_v44 = vadd.f32 %v5154_v41, %v5148_v11  ;;  %v5180_v37 = vmul.f32 %v5172_v8, %v5148_v11  ;;  %v5143_v18 = vpop.permute.xlu2 %5142  ;;  %v5294_v11 = vperm.slane %v9710_v38, 0  ;;  %vm10867_vm14 = vmmov %vm10866_vm0 }
 0x7d5   :  { %v3707_v50 = vsel %vm10857_vm13, %v9656_v51, 0.0  ;;  %v5147_v13 = vsel %vm228_vm4, %v5141_v3, %v5143_v18  ;;  %v5145_v33 = vpop.permute.xlu1 %5144  ;;  %vm10871_vm13 = vmmov %vm10866_vm0 }
 0x7d6   :  { %v3708_v10 = vadd.f32 %v3707_v50, %v3706_v40  ;;  %v5166_v6 = vmax.f32 %v9634_v22, %v5162_v44  ;;  %v9683_v41 = vadd.f32 %v5155_v48, %v5147_v13  ;;  %v5181_v8 = vmul.f32 %v5173_v56, %v5147_v13 }
 0x7d7   :  { %v3691_v59 = vpop.f32.mrf.mxu2  ;;  %v5146_v50 = vsel %vm228_vm4, %v5143_v18, %v5145_v33  ;;  %v5149_v17 = vsel %vm228_vm4, %v5145_v33, %v5139_v39  ;;  %v9705_v39 = vld [vmem:[%s10184_s12 + $0x5] ss:$8 sm:$0xf]  ;;  %v5295_v56 = vperm.slane %v9710_v38, 1  ;;  %vm10861_vm4 = vmmov %vm10850_vm2 }
 0x7d8   :  { %v3710_v53 = vadd.f32 %v3709_v52, %v3708_v10  ;;  %v3704_v30 = vpop.f32.mrf.mxu3  ;;  %v5184_v52 = vadd.f32 %v5180_v37, %v5124_v34  ;;  %v5161_v22 = vadd.f32 %v5153_v32, %v5149_v17  ;;  %v9689_v34 = vadd.f32 %v5156_v47, %v5146_v50  ;;  %v5374_v18 = vld.sshfl [vmem:[#allocation1 + $0x8] sm:$0xff pattern:$0x75316420] }
 0x7d9   :  { %v5179_v0 = vmul.f32 %v5171_v62, %v5149_v17  ;;  %v5182_v14 = vmul.f32 %v5174_v46, %v5146_v50  ;;  %v9694_v10 = vadd.f32 %v5181_v8, %v9638_v45  ;;  %v5276_v45 = vperm.slane %v9705_v39, 0  ;;  %5383 = vrot.lane.b32.xlu0 %v5374_v18, %s10486_s18 }
 0x7da   :  { %v3712_v55 = vadd.f32 %v3711_v19, %v3710_v53  ;;  %v5165_v12 = vmax.f32 %v5105_v49, %v5161_v22  ;;  %v5168_v42 = vmax.f32 %v9677_v24, %v9689_v34  ;;  %v5277_v30 = vperm.slane %v9705_v39, 1 }
 0x7db   :  { %v3665_v40 = vpop.f32.mrf.mxu0  ;;  %v5183_v1 = vadd.f32 %v5179_v0, %v5123_v57  ;;  %v9700_v19 = vadd.f32 %v5182_v14, %v5126_v20  ;;  %v5247_v8 = vadd.f32 %v9541_v5, %v5184_v52 }
 0x7dc   :  { %v3678_v54 = vpop.f32.mrf.mxu1  ;;  %3713 = vadd.xlane.f32.xlu2 %v3712_v55  ;;  %v5264_v57 = vpop.permute.xlu2 %5263  ;;  %v9719_v59 = vmax.f32 %v5165_v12, %v9526_v31 }
 0x7dd   :  { %v5246_v20 = vadd.f32 %v9539_v2, %v5183_v1  ;;  %v9736_v2 = vmax.f32 %v5166_v6, %v9528_v21  ;;  %v5373_v6 = vld.sshfl [vmem:[#allocation1] sm:$0xff pattern:$0x75316420] }
 0x7de   :  { %5430 = vst [vmem:[#allocation1] ss:$2 sm:$0xff] %v10823_v25 }
 0x7e1   :  { %v9716_v49 = vpop.permute.xlu0 %5261 }
 0x7e2   :  { %v5271_v44 = vsel %vm316_vm5, %v9716_v49, %v5264_v57 }
 0x7e3   :  { %v9727_v48 = vadd.f32 %v5276_v45, %v5271_v44  ;;  %v5302_v55 = vmul.f32 %v5294_v11, %v5271_v44  ;;  %v5376_v11 = vld.sshfl [vmem:[#allocation1 + $0x18] sm:$0xff pattern:$0x75316420] }
 0x7e4   :  { %v9746_v54 = vpop.permute.xlu1 %5265 }
 0x7e5   :  { %v5288_v62 = vmax.f32 %v9719_v59, %v9727_v48  ;;  %v9744_v46 = vadd.f32 %v5302_v55, %v5246_v20  ;;  %v5270_v21 = vsel %vm316_vm5, %v5264_v57, %v9746_v54  ;;  %v5433_v57 = vld.sshfl [vmem:[#allocation1] sm:$0xff pattern:$0x75316420]  ;;  %v5375_v20 = vld.sshfl [vmem:[#allocation1 + $0x10] sm:$0xff pattern:$0x75316420] }
 0x7e6   :  { %v9755_v17 = vadd.f32 %v5277_v30, %v5270_v21  ;;  %v5303_v22 = vmul.f32 %v5295_v56, %v5270_v21  ;;  %5441 = vrot.lane.b32.xlu0 %v5433_v57, %s10489_s28  ;;  %5432 = vst [vmem:[#allocation1 + $0x10] ss:$2 sm:$0xff] %v10829_v36 }
 0x7e7   :  { %v9696_v3 = vpop.f32.mrf.mxu2 }
 0x7e8   :  { %v9714_v53 = vpop.f32.mrf.mxu3  ;;  %v4910_v47 = vsel %vm10850_vm2, %v9696_v3, 0.0  ;;  %v5289_v5 = vmax.f32 %v9736_v2, %v9755_v17  ;;  %v9760_v12 = vadd.f32 %v5303_v22, %v5247_v8  ;;  %v5279_v22 = vperm.slane %v9705_v39, 3  ;;  %vm10878_vm2 = vmmov %vm10866_vm0  ;;  %v9974_v17 = vld [vmem:[%s10185_s13] sm:$0xf]  ;;  %s10034_s13 = sld [smem:[#allocation3 + $0x5]] }
 0x7e9   :  { %v4912_v50 = vsel %vm10863_vm10, %v9714_v53, 0.0  ;;  %vm10880_vm10 = vmmov %vm10866_vm0 }
 0x7eb   :  { %v9725_v37 = vpop.f32.mrf.mxu0 }
 0x7ec   :  { %v4907_v32 = vsel %vm10861_vm4, %v9725_v37, 0.0  ;;  %v9733_v31 = vpop.f32.mrf.mxu1  ;;  %vm10877_vm4 = vmmov %vm10866_vm0 }
 0x7ed   :  { %v4908_v40 = vsel %vm10862_vm12, %v9733_v31, 0.0  ;;  %vm10879_vm12 = vmmov %vm10866_vm0 }
 0x7ee   :  { %v4909_v13 = vadd.f32 %v4908_v40, %v4907_v32 }
 0x7ef   :  { %v4892_v33 = vpop.f32.mrf.mxu2 }
 0x7f0   :  { %v4911_v0 = vadd.f32 %v4910_v47, %v4909_v13  ;;  %v4905_v14 = vpop.f32.mrf.mxu3  ;;  %v9793_v13 = vpop.permute.xlu2 %5321  ;;  %v5435_v33 = vld.sshfl [vmem:[#allocation1 + $0x10] sm:$0xff pattern:$0x75316420] }
 0x7f2   :  { %v4913_v52 = vadd.f32 %v4912_v50, %v4911_v0  ;;  %v9799_v0 = vpop.permute.xlu0 %5267 }
 0x7f3   :  { %v4866_v1 = vpop.f32.mrf.mxu0 }
 0x7f4   :  { %v4879_v45 = vpop.f32.mrf.mxu1  ;;  %4914 = vadd.xlane.f32.xlu1 %v4913_v52  ;;  %5327 = vrot.lane.b32.xlu2 %v9652_v29, %s10576_s21  ;;  %v5297_v52 = vperm.slane %v9710_v38, 3  ;;  %v5272_v1 = vsel %vm316_vm5, %v9799_v0, %v9716_v49 }
 0x7f5   :  { %v5287_v49 = vadd.f32 %v5279_v22, %v5272_v1 }
 0x7fc   :  { %5385 = vrot.lane.b32.xlu2 %v5375_v20, %s10486_s18  ;;  %v9818_v20 = vld [vmem:[%s10184_s12 + $0x6] ss:$8 sm:$0xf] }
 0x80d   :  { %5323 = vrot.lane.b32.xlu1 %v9667_v7, %s10576_s21 }
 0x815   :  { %5381 = vrot.lane.b32.xlu1 %v5373_v6, %s10486_s18 }
 0x81d   :  { %5387 = vrot.lane.b32.xlu1 %v5376_v11, %s10486_s18 }
 0x825   :  { %5445 = vrot.lane.b32.xlu1 %v5435_v33, %s10489_s28 }
 0x83f   :  { %v3340_v44 = vpop.xlane.xlu1 %3339 }
 0x840   :  { %v3341_v55 = vmul.f32 0.001953125, %v3340_v44  ;;  %v9823_v44 = vld [vmem:[%s10180_s8 + $0x6] ss:$8 sm:$0xf] }
 0x842   :  { %v9772_v29 = vsub.f32 %v9595_v23, %v3341_v55  ;;  %v9775_v30 = vsub.f32 %v9599_v4, %v3341_v55  ;;  %v9778_v56 = vsub.f32 %v9572_v35, %v3341_v55  ;;  %v9781_v32 = vsub.f32 %v9581_v26, %v3341_v55 }
 0x844   :  { %10864 = vst [vmem:[#allocation63_spill] sm:$0xff] %v9778_v56  ;;  %v3346_v7 = vmul.f32 %v9772_v29, %v9772_v29  ;;  %v3347_v47 = vmul.f32 %v9775_v30, %v9775_v30  ;;  %v3348_v40 = vmul.f32 %v9778_v56, %v9778_v56  ;;  %v3349_v23 = vmul.f32 %v9781_v32, %v9781_v32 }
 0x846   :  { %v3350_v4 = vsel %vm10865_vm1, %v3346_v7, 0.0  ;;  %v3351_v35 = vsel %vm10866_vm0, %v3347_v47, 0.0  ;;  %v3353_v26 = vsel %vm10867_vm14, %v3348_v40, 0.0  ;;  %v3355_v21 = vsel %vm10868_vm3, %v3349_v23, 0.0  ;;  %vm10885_vm3 = vmmov %vm10878_vm2 }
 0x847   :  { %v3352_v18 = vadd.f32 %v3351_v35, %v3350_v4  ;;  %v5305_v47 = vmul.f32 %v5297_v52, %v5272_v1  ;;  %v5339_v40 = vperm.slane %v9818_v20, 3  ;;  %v5357_v23 = vperm.slane %v9823_v44, 3 }
 0x849   :  { %v3354_v8 = vadd.f32 %v3353_v26, %v3352_v18 }
 0x84b   :  { %v3356_v6 = vadd.f32 %v3355_v21, %v3354_v8 }
 0x84d   :  { %3357 = vadd.xlane.f32.xlu0 %v3356_v6 }
 0x84f   :  { %v3714_v50 = vpop.xlane.xlu2 %3713 }
 0x850   :  { %v3715_v14 = vmul.f32 0.001953125, %v3714_v50 }
 0x852   :  { %v9807_v45 = vsub.f32 %v9650_v43, %v3715_v14  ;;  %v9810_v11 = vsub.f32 %v9656_v51, %v3715_v14  ;;  %v9813_v57 = vsub.f32 %v9640_v61, %v3715_v14  ;;  %v5218_v43 = vmax.f32 %v5168_v42, %v9537_v27 }
 0x853   :  { %v9830_v51 = vsub.f32 %v9648_v60, %v3715_v14  ;;  %v5249_v61 = vadd.f32 %v9549_v63, %v9700_v19 }
 0x854   :  { %10869 = vst [vmem:[#allocation59_spill] sm:$0xff] %v9813_v57  ;;  %v3720_v55 = vmul.f32 %v9807_v45, %v9807_v45  ;;  %v3721_v7 = vmul.f32 %v9810_v11, %v9810_v11  ;;  %v3722_v27 = vmul.f32 %v9813_v57, %v9813_v57  ;;  %v5291_v19 = vmax.f32 %v5218_v43, %v5287_v49 }
 0x855   :  { %10870 = vst [vmem:[#allocation9_spill] sm:$0xff] %v9830_v51  ;;  %v3723_v34 = vmul.f32 %v9830_v51, %v9830_v51  ;;  %v5309_v35 = vadd.f32 %v5305_v47, %v5249_v61 }
 0x856   :  { %v3724_v60 = vsel %vm10871_vm13, %v3720_v55, 0.0  ;;  %v3725_v24 = vsel %vm10872_vm11, %v3721_v7, 0.0  ;;  %v3727_v33 = vsel %vm10873_vm9, %v3722_v27, 0.0  ;;  %vm10886_vm13 = vmmov %vm10878_vm2 }
 0x857   :  { %v9844_v63 = vpop.permute.xlu2 %5327  ;;  %v3726_v42 = vadd.f32 %v3725_v24, %v3724_v60  ;;  %v3729_v50 = vsel %vm10874_vm15, %v3723_v34, 0.0  ;;  %v5434_v24 = vld.sshfl [vmem:[#allocation1 + $0x8] sm:$0xff pattern:$0x75316420]  ;;  %v5336_v34 = vperm.slane %v9818_v20, 0 }
 0x858   :  { %v5332_v4 = vsel %vm371_vm6, %v9844_v63, %v9793_v13 }
 0x859   :  { %v5347_v18 = vadd.f32 %v5339_v40, %v5332_v4  ;;  %v5365_v26 = vmul.f32 %v5357_v23, %v5332_v4  ;;  %v3728_v8 = vadd.f32 %v3727_v33, %v3726_v42  ;;  %v5354_v42 = vperm.slane %v9823_v44, 0 }
 0x85b   :  { %v9853_v21 = vmax.f32 %v5291_v19, %v5347_v18  ;;  %v9855_v6 = vadd.f32 %v5365_v26, %v5309_v35  ;;  %v3730_v22 = vadd.f32 %v3729_v50, %v3728_v8  ;;  %v5436_v8 = vld.sshfl [vmem:[#allocation1 + $0x18] sm:$0xff pattern:$0x75316420]  ;;  %v9895_v50 = vpop.permute.xlu0 %5325 }
 0x85d   :  { %3731 = vadd.xlane.f32.xlu2 %v3730_v22 }
 0x863   :  { %v5384_v22 = vpop.permute.xlu0 %5383 }
 0x867   :  { %v4915_v14 = vpop.xlane.xlu1 %4914 }
 0x868   :  { %v4916_v52 = vmul.f32 0.001953125, %v4915_v14  ;;  %v10881_v14 = vld [vmem:[#allocation50_spill] sm:$0xff] }
 0x86a   :  { %v9859_v1 = vsub.f32 %v9725_v37, %v4916_v52  ;;  %v9862_v43 = vsub.f32 %v9733_v31, %v4916_v52  ;;  %v9865_v61 = vsub.f32 %v9696_v3, %v4916_v52  ;;  %v9868_v49 = vsub.f32 %v9714_v53, %v4916_v52 }
 0x86b   :  { %v1075_v52 = vmul.f32 0.001953125, %v10881_v14 }
 0x86c   :  { %10875 = vst [vmem:[#allocation27_spill] sm:$0xff] %v9865_v61  ;;  %v4921_v55 = vmul.f32 %v9859_v1, %v9859_v1  ;;  %v4922_v7 = vmul.f32 %v9862_v43, %v9862_v43  ;;  %v4923_v47 = vmul.f32 %v9865_v61, %v9865_v61  ;;  %v4924_v37 = vmul.f32 %v9868_v49, %v9868_v49 }
 0x86d   :  { %10876 = vst [vmem:[#allocation25_spill] sm:$0xff] %v9868_v49  ;;  %v5493_v49 = vperm.slane %v9974_v17, 1 }
 0x86e   :  { %v4925_v31 = vsel %vm10877_vm4, %v4921_v55, 0.0  ;;  %v4926_v3 = vsel %vm10878_vm2, %v4922_v7, 0.0  ;;  %v4928_v53 = vsel %vm10879_vm12, %v4923_v47, 0.0  ;;  %v4930_v27 = vsel %vm10880_vm10, %v4924_v37, 0.0  ;;  %v9898_v55 = vpop.permute.xlu0 %5441  ;;  %v9911_v37 = vpop.permute.xlu2 %5385 }
 0x86f   :  { %v4927_v40 = vadd.f32 %v4926_v3, %v4925_v31  ;;  %v5337_v3 = vperm.slane %v9818_v20, 1 }
 0x871   :  { %v4929_v23 = vadd.f32 %v4928_v53, %v4927_v40  ;;  %v5355_v40 = vperm.slane %v9823_v44, 1 }
 0x873   :  { %v4931_v60 = vadd.f32 %v4930_v27, %v4929_v23  ;;  %v9923_v23 = vld [vmem:[%s10184_s12 + $0x7] ss:$8 sm:$0xf] }
 0x874   :  { %v9928_v27 = vld [vmem:[%s10180_s8 + $0x7] ss:$8 sm:$0xf] }
 0x875   :  { %4932 = vadd.xlane.f32.xlu0 %v4931_v60  ;;  %5443 = vrot.lane.b32.xlu2 %v5434_v24, %s10489_s28 }
 0x87f   :  { %v5324_v19 = vpop.permute.xlu1 %5323 }
 0x880   :  { %v5331_v4 = vsel %vm371_vm6, %v9793_v13, %v5324_v19  ;;  %v9900_v13 = vadd.f32 1e-05, %v1075_v52  ;;  %v5330_v53 = vsel %vm371_vm6, %v5324_v19, %v9895_v50  ;;  %v5390_v19 = vsel %vm414_vm7, %v5384_v22, %v9911_v37 }
 0x881   :  { %v5344_v35 = vadd.f32 %v5336_v34, %v5331_v4  ;;  %v5362_v18 = vmul.f32 %v5354_v42, %v5331_v4  ;;  %v5345_v34 = vadd.f32 %v5337_v3, %v5330_v53  ;;  %v5397_v42 = vperm.slane %v9923_v23, 1 }
 0x882   :  { %5806 = vrsqrt.f32 %v9900_v13  ;;  %v5415_v4 = vperm.slane %v9928_v27, 1  ;;  %vm1083_vm0 = vweird.f32 %v9900_v13 }
 0x883   :  { %v9891_v26 = vmax.f32 %v5288_v62, %v5344_v35  ;;  %v5366_v33 = vadd.f32 %v5362_v18, %v9744_v46  ;;  %v5363_v35 = vmul.f32 %v5355_v40, %v5330_v53  ;;  %v5396_v18 = vperm.slane %v9923_v23, 0 }
 0x884   :  { %v5349_v3 = vmax.f32 %v5289_v5, %v5345_v34  ;;  %v5405_v40 = vadd.f32 %v5397_v42, %v5390_v19  ;;  %v5423_v53 = vmul.f32 %v5415_v4, %v5390_v19 }
 0x886   :  { %v5409_v4 = vmax.f32 %v5349_v3, %v5405_v40  ;;  %v9996_v40 = vstv %s9944_s29 }
 0x887   :  { %v9905_v62 = vpop.permute.xlu1 %5381 }
 0x888   :  { %v9903_v59 = vpop.eup %5806 }
 0x889   :  { %5447 = vrot.lane.b32.xlu0 %v5436_v8, %s10489_s28  ;;  %v1078_v46 = vmul.f32 %v9903_v59, %v9900_v13  ;;  %v5414_v8 = vperm.slane %v9928_v27, 0  ;;  %vm1084_vm1 = vweird.f32 %v9903_v59 }
 0x88a   :  { %vm1085_vm14 = vmor %vm1083_vm0, %vm1084_vm1 }
 0x88b   :  { %v1079_v31 = vmul.f32 %v9903_v59, %v1078_v46  ;;  %vm10891_vm1 = vmmov %vm10885_vm3 }
 0x88c   :  { %vm10892_vm0 = vmmov %vm10891_vm1 }
 0x88d   :  { %v1080_v60 = vmul.f32 0.5, %v1079_v31  ;;  %v9949_v31 = vld [vmem:[%s10184_s12 + $0x20] ss:$8 sm:$0xf]  ;;  %s9967_s12 = sld [smem:[#allocation3 + $0x2]] }
 0x88e   :  { %v5456_v56 = vperm.slane %v9949_v31, 0  ;;  %v5457_v5 = vperm.slane %v9949_v31, 1 }
 0x88f   :  { %v9930_v24 = vpop.permute.xlu1 %5387  ;;  %v1081_v46 = vsub.f32 1.5, %v1080_v60  ;;  %v5367_v60 = vadd.f32 %v5363_v35, %v9760_v12 }
 0x891   :  { %v1082_v42 = vmul.f32 %v9903_v59, %v1081_v46  ;;  %v5427_v35 = vadd.f32 %v5423_v53, %v5367_v60 }
 0x897   :  { %v9978_v34 = vpop.permute.xlu1 %5445 }
 0x8c0   :  { %v3358_v7 = vpop.xlane.xlu0 %3357 }
 0x8c1   :  { %v3359_v48 = vmul.f32 0.001953125, %v3358_v7  ;;  %v5391_v7 = vsel %vm414_vm7, %v9905_v62, %v5384_v22  ;;  %v9961_v22 = vld [vmem:[%s10180_s8 + $0x20] ss:$8 sm:$0xf]  ;;  %s9984_s8 = sld [smem:[#allocation3 + $0x4]] }
 0x8c2   :  { %v5422_v61 = vmul.f32 %v5414_v8, %v5391_v7  ;;  %v5474_v2 = vperm.slane %v9961_v22, 0  ;;  %v5475_v12 = vperm.slane %v9961_v22, 1 }
 0x8c3   :  { %v9909_v47 = vadd.f32 1e-05, %v3359_v48 }
 0x8c5   :  { %5808 = vrsqrt.f32 %v9909_v47  ;;  %vm3367_vm9 = vweird.f32 %v9909_v47 }
 0x8cb   :  { %v9939_v52 = vpop.eup %5808 }
 0x8cc   :  { %v3362_v57 = vmul.f32 %v9939_v52, %v9909_v47  ;;  %vm3368_vm11 = vweird.f32 %v9939_v52  ;;  %v5416_v47 = vperm.slane %v9928_v27, 2 }
 0x8cd   :  { %vm3369_vm15 = vmor %vm3367_vm9, %vm3368_vm11 }
 0x8ce   :  { %v3363_v8 = vmul.f32 %v9939_v52, %v3362_v57  ;;  %vm10904_vm11 = vmmov %vm10892_vm0 }
 0x8cf   :  { %vm10906_vm9 = vmmov %vm10892_vm0 }
 0x8d0   :  { %v3732_v14 = vpop.xlane.xlu2 %3731 }
 0x8d1   :  { %v3733_v48 = vmul.f32 0.001953125, %v3732_v14  ;;  %v5404_v14 = vadd.f32 %v5396_v18, %v5391_v7  ;;  %v5426_v18 = vadd.f32 %v5422_v61, %v5366_v33 }
 0x8d3   :  { %v9956_v58 = vadd.f32 1e-05, %v3733_v48  ;;  %v5408_v19 = vmax.f32 %v9891_v26, %v5404_v14  ;;  %v5492_v48 = vperm.slane %v9974_v17, 0 }
 0x8d5   :  { %5810 = vrsqrt.f32 %v9956_v58  ;;  %vm3741_vm4 = vweird.f32 %v9956_v58 }
 0x8d8   :  { %v5444_v7 = vpop.permute.xlu2 %5443 }
 0x8d9   :  { %v5451_v46 = vsel %vm469_vm8, %v9898_v55, %v5444_v7  ;;  %v5450_v3 = vsel %vm469_vm8, %v5444_v7, %v9978_v34 }
 0x8da   :  { %v5464_v26 = vadd.f32 %v5456_v56, %v5451_v46  ;;  %v5482_v61 = vmul.f32 %v5474_v2, %v5451_v46  ;;  %v5465_v33 = vadd.f32 %v5457_v5, %v5450_v3  ;;  %v5483_v57 = vmul.f32 %v5475_v12, %v5450_v3 }
 0x8db   :  { %v9999_v60 = vpop.eup %5810  ;;  %v10004_v56 = vsel %vm1085_vm14, %v9903_v59, %v1082_v42  ;;  %v10009_v2 = vstv %s9967_s12  ;;  %v3364_v5 = vmul.f32 0.5, %v3363_v8  ;;  %v10884_v8 = vld [vmem:[#allocation22_spill] sm:$0xff]  ;;  %vm10899_vm14 = vmmov %vm10892_vm0 }
 0x8dc   :  { %v5468_v14 = vmax.f32 %v5408_v19, %v5464_v26  ;;  %v5486_v36 = vadd.f32 %v5482_v61, %v5426_v18  ;;  %v5469_v7 = vmax.f32 %v5409_v4, %v5465_v33  ;;  %v5487_v51 = vadd.f32 %v5483_v57, %v5427_v35  ;;  %v10883_v4 = vld [vmem:[#allocation64_spill] sm:$0xff] }
 0x8dd   :  { %v3736_v13 = vmul.f32 %v9999_v60, %v9956_v58  ;;  %v10882_v19 = vstv %s9951_s20  ;;  %v1088_v35 = vmul.f32 %v10004_v56, %v10883_v4  ;;  %v10021_v61 = vstv %s9984_s8 }
 0x8de   :  { %v5500_v12 = vmul.f32 %v5492_v48, %v5486_v36  ;;  %v5501_v46 = vmul.f32 %v5493_v49, %v5487_v51  ;;  %v5511_v3 = vmul.f32 %v9996_v40, %v5469_v7  ;;  %v5506_v18 = vmul.f32 %v10882_v19, %v10823_v25 }
 0x8df   :  { %v3737_v53 = vmul.f32 %v9999_v60, %v3736_v13  ;;  %v5510_v59 = vmul.f32 %v9996_v40, %v5468_v14  ;;  %v1087_v36 = vmul.f32 %v10004_v56, %v10884_v8  ;;  %v3365_v49 = vsub.f32 1.5, %v3364_v5 }
 0x8e0   :  { %v5518_v42 = vrot.slane %v5511_v3, 4  ;;  %v5529_v26 = vmul.f32 %v10009_v2, %v5501_v46  ;;  %v5528_v48 = vmul.f32 %v10009_v2, %v5500_v12  ;;  %v5278_v7 = vperm.slane %v9705_v39, 2 }
 0x8e1   :  { %v3738_v51 = vmul.f32 0.5, %v3737_v53  ;;  %v5547_v46 = vmul.f32 %v10021_v61, %v1088_v35  ;;  %v5296_v19 = vperm.slane %v9710_v38, 2  ;;  %v5269_v53 = vsel %vm316_vm5, %v9746_v54, %v9799_v0 }
 0x8e2   :  { %v5520_v33 = vsel %vm10885_vm3, %v5510_v59, %v5518_v42  ;;  %v5536_v25 = vrot.slane %v5529_v26, 4  ;;  %v10887_v39 = vmax.f32 %v9636_v16, %v9683_v41  ;;  %v5248_v38 = vadd.f32 %v9547_v28, %v9694_v10 }
 0x8e3   :  { %v3739_v13 = vsub.f32 1.5, %v3738_v51  ;;  %v5524_v14 = vadd.f32 %v5520_v33, %v5506_v18  ;;  %v3366_v54 = vmul.f32 %v9939_v52, %v3365_v49  ;;  %vm3742_vm5 = vweird.f32 %v9999_v60 }
 0x8e4   :  { %v5538_v5 = vsel %vm10886_vm13, %v5528_v48, %v5536_v25  ;;  %v5217_v12 = vmax.f32 %v10887_v39, %v9535_v15  ;;  %v5286_v35 = vadd.f32 %v5278_v7, %v5269_v53  ;;  %v5338_v15 = vperm.slane %v9818_v20, 2  ;;  %vm3743_vm2 = vmor %vm3741_vm4, %vm3742_vm5 }
 0x8e5   :  { %v10042_v18 = vadd.f32 %v5538_v5, %v5524_v14  ;;  %v3740_v0 = vmul.f32 %v9999_v60, %v3739_v13  ;;  %v5304_v16 = vmul.f32 %v5296_v19, %v5269_v53  ;;  %v5356_v41 = vperm.slane %v9823_v44, 2  ;;  %v10889_v13 = vld [vmem:[#allocation17_spill] sm:$0xff]  ;;  %vm10903_vm13 = vmmov %vm10892_vm0 }
 0x8e6   :  { %v5329_v28 = vsel %vm371_vm6, %v9895_v50, %v9844_v63  ;;  %v5398_v10 = vperm.slane %v9923_v23, 2  ;;  %v5399_v20 = vperm.slane %v9923_v23, 3  ;;  %v5417_v59 = vperm.slane %v9928_v27, 3  ;;  %vm10890_vm6 = vmmov %vm10885_vm3 }
 0x8e7   :  { %v5389_v44 = vsel %vm414_vm7, %v9911_v37, %v9930_v24  ;;  %v5392_v58 = vsel %vm414_vm7, %v9930_v24, %v9905_v62  ;;  %v10077_v63 = vsel %vm3369_vm15, %v9939_v52, %v3366_v54  ;;  %v10080_v50 = vsel %vm3743_vm2, %v9999_v60, %v3740_v0  ;;  %vm10901_vm3 = vmmov %vm10892_vm0 }
 0x8e8   :  { %v4933_v57 = vpop.xlane.xlu0 %4932  ;;  %v5546_v23 = vmul.f32 %v10021_v61, %v1087_v36  ;;  %v5554_v27 = vrot.slane %v5547_v46, 4  ;;  %v5346_v42 = vadd.f32 %v5338_v15, %v5329_v28  ;;  %v5290_v26 = vmax.f32 %v5217_v12, %v5286_v35  ;;  %vm10905_vm5 = vmmov %vm10892_vm0 }
 0x8e9   :  { %v4934_v3 = vmul.f32 0.001953125, %v4933_v57  ;;  %v5308_v8 = vadd.f32 %v5304_v16, %v5248_v38  ;;  %v5364_v51 = vmul.f32 %v5356_v41, %v5329_v28  ;;  %v10084_v37 = vstv %s10034_s13  ;;  %v10888_v57 = vld [vmem:[#allocation71_spill] sm:$0xff] }
 0x8ea   :  { %v5406_v48 = vadd.f32 %v5398_v10, %v5389_v44  ;;  %v5407_v62 = vadd.f32 %v5399_v20, %v5392_v58  ;;  %v3372_v24 = vmul.f32 %v10077_v63, %v9775_v30  ;;  %v3746_v52 = vmul.f32 %v10080_v50, %v9810_v11 }
 0x8eb   :  { %v10044_v4 = vadd.f32 1e-05, %v4934_v3  ;;  %v5424_v60 = vmul.f32 %v5416_v47, %v5389_v44  ;;  %v5425_v33 = vmul.f32 %v5417_v59, %v5392_v58  ;;  %v10091_v36 = vstv %s10049_s24 }
 0x8ec   :  { %v10096_v7 = vmul.f32 %v10004_v56, %v10888_v57  ;;  %v1090_v14 = vmul.f32 %v10004_v56, %v10889_v13  ;;  %v5350_v3 = vmax.f32 %v5290_v26, %v5346_v42  ;;  %v5368_v46 = vadd.f32 %v5364_v51, %v5308_v8 }
 0x8ed   :  { %5812 = vrsqrt.f32 %v10044_v4  ;;  %v3371_v30 = vmul.f32 %v10077_v63, %v9772_v29  ;;  %v5556_v11 = vsel %vm10890_vm6, %v5546_v23, %v5554_v27  ;;  %v5411_v5 = vmax.f32 %v9853_v21, %v5407_v62 }
 0x8ee   :  { %v5410_v53 = vmax.f32 %v5350_v3, %v5406_v48  ;;  %v5565_v39 = vmul.f32 %v10084_v37, %v3372_v24  ;;  %v5583_v12 = vmul.f32 %v10091_v36, %v3746_v52  ;;  %v5428_v38 = vadd.f32 %v5424_v60, %v5368_v46  ;;  %v10894_v46 = vld [vmem:[#allocation6_spill] sm:$0xff] }
 0x8ef   :  { %v5429_v54 = vadd.f32 %v5425_v33, %v9855_v6  ;;  %v3745_v56 = vmul.f32 %v10080_v50, %v9807_v45  ;;  %v5458_v35 = vperm.slane %v9949_v31, 2  ;;  %v5459_v29 = vperm.slane %v9949_v31, 3 }
 0x8f0   :  { %v5476_v15 = vperm.slane %v9961_v22, 2  ;;  %v5477_v16 = vperm.slane %v9961_v22, 3  ;;  %v5564_v21 = vmul.f32 %v10084_v37, %v3371_v30  ;;  %v10114_v41 = vstv %s5765_s2 }
 0x8f1   :  { %v5572_v10 = vrot.slane %v5565_v39, 4  ;;  %v5590_v6 = vrot.slane %v5583_v12, 4  ;;  %v5560_v20 = vadd.f32 %v5556_v11, %v10042_v18  ;;  %vm4942_vm12 = vweird.f32 %v10044_v4 }
 0x8f2   :  { %v5582_v47 = vmul.f32 %v10091_v36, %v3745_v56  ;;  %v3374_v18 = vmul.f32 %v10077_v63, %v9781_v32  ;;  %v5494_v42 = vperm.slane %v9974_v17, 2  ;;  %v5495_v26 = vperm.slane %v9974_v17, 3 }
 0x8f3   :  { %v5813_v49 = vpop.eup %5812  ;;  %v5574_v8 = vsel %vm10891_vm1, %v5564_v21, %v5572_v10  ;;  %v5549_v32 = vmul.f32 %v10021_v61, %v1090_v14  ;;  %v10895_v30 = vstv %s9951_s20  ;;  %v10896_v14 = vld [vmem:[#allocation25_spill] sm:$0xff]  ;;  %v10900_v10 = vld [vmem:[#allocation59_spill] sm:$0xff] }
 0x8f4   :  { %v4937_v25 = vmul.f32 %v5813_v49, %v10044_v4  ;;  %vm4943_vm7 = vweird.f32 %v5813_v49  ;;  %v5578_v60 = vadd.f32 %v5574_v8, %v5560_v20  ;;  %v5567_v33 = vmul.f32 %v10084_v37, %v3374_v18 }
 0x8f5   :  { %vm4944_vm10 = vmor %vm4942_vm12, %vm4943_vm7  ;;  %v5507_v11 = vmul.f32 %v10895_v30, %v10894_v46  ;;  %v5555_v12 = vrot.slane %v5549_v32, 4 }
 0x8f6   :  { %v4938_v19 = vmul.f32 %v5813_v49, %v4937_v25 }
 0x8f8   :  { %v4939_v0 = vmul.f32 0.5, %v4938_v19 }
 0x8fa   :  { %v4940_v28 = vsub.f32 1.5, %v4939_v0 }
 0x8fb   :  { %v5448_v45 = vpop.permute.xlu0 %5447 }
 0x8fc   :  { %v4941_v31 = vmul.f32 %v5813_v49, %v4940_v28  ;;  %v5449_v22 = vsel %vm469_vm8, %v9978_v34, %v5448_v45  ;;  %v5452_v59 = vsel %vm469_vm8, %v5448_v45, %v9898_v55  ;;  %v5592_v34 = vsel %vm10892_vm0, %v5582_v47, %v5590_v6  ;;  %vm10898_vm8 = vmmov %vm10892_vm0 }
 0x8fd   :  { %v5466_v44 = vadd.f32 %v5458_v35, %v5449_v22  ;;  %v5467_v58 = vadd.f32 %v5459_v29, %v5452_v59  ;;  %v5484_v23 = vmul.f32 %v5476_v15, %v5449_v22  ;;  %v5485_v27 = vmul.f32 %v5477_v16, %v5452_v59 }
 0x8fe   :  { %v4945_v4 = vsel %vm4944_vm10, %v5813_v49, %v4941_v31  ;;  %v10893_v49 = vld [vmem:[#allocation9_spill] sm:$0xff]  ;;  %v5573_v28 = vrot.slane %v5567_v33, 4  ;;  %v3747_v6 = vmul.f32 %v10080_v50, %v10900_v10  ;;  %v10902_v31 = vld [vmem:[#allocation27_spill] sm:$0xff] }
 0x8ff   :  { %v4946_v9 = vmul.f32 %v4945_v4, %v9859_v1  ;;  %v4947_v55 = vmul.f32 %v4945_v4, %v9862_v43  ;;  %v5470_v51 = vmax.f32 %v5410_v53, %v5466_v44  ;;  %v5471_v48 = vmax.f32 %v5411_v5, %v5467_v58 }
 0x900   :  { %v5488_v62 = vadd.f32 %v5484_v23, %v5428_v38  ;;  %v5489_v24 = vadd.f32 %v5485_v27, %v5429_v54  ;;  %v3748_v52 = vmul.f32 %v10080_v50, %v10893_v49  ;;  %v5596_v43 = vadd.f32 %v5592_v34, %v5578_v60  ;;  %v10897_v38 = vld [vmem:[#allocation63_spill] sm:$0xff] }
 0x901   :  { %v5601_v17 = vmul.f32 %v10114_v41, %v4947_v55  ;;  %v5513_v1 = vmul.f32 %v9996_v40, %v5471_v48  ;;  %v5600_v13 = vmul.f32 %v10114_v41, %v4946_v9  ;;  %v4949_v19 = vmul.f32 %v4945_v4, %v10896_v14 }
 0x902   :  { %v5502_v25 = vmul.f32 %v5494_v42, %v5488_v62  ;;  %v5503_v57 = vmul.f32 %v5495_v26, %v5489_v24  ;;  %v5512_v53 = vmul.f32 %v9996_v40, %v5470_v51  ;;  %v3373_v54 = vmul.f32 %v10077_v63, %v10897_v38 }
 0x903   :  { %v5608_v3 = vrot.slane %v5601_v17, 4  ;;  %v5519_v5 = vrot.slane %v5513_v1, 4  ;;  %v5585_v56 = vmul.f32 %v10091_v36, %v3748_v52  ;;  %v5548_v40 = vmul.f32 %v10021_v61, %v10096_v7 }
 0x904   :  { %v5531_v39 = vmul.f32 %v10009_v2, %v5503_v57  ;;  %v5530_v15 = vmul.f32 %v10009_v2, %v5502_v25  ;;  %v5603_v63 = vmul.f32 %v10114_v41, %v4949_v19  ;;  %v5566_v2 = vmul.f32 %v10084_v37, %v3373_v54 }
 0x905   :  { %v5610_v0 = vsel %vm10898_vm8, %v5600_v13, %v5608_v3  ;;  %v5521_v29 = vsel %vm10899_vm14, %v5512_v53, %v5519_v5  ;;  %v5591_v47 = vrot.slane %v5585_v56, 4  ;;  %v4948_v22 = vmul.f32 %v4945_v4, %v10902_v31 }
 0x906   :  { %v5614_v35 = vadd.f32 %v5610_v0, %v5596_v43  ;;  %v5537_v16 = vrot.slane %v5531_v39, 4  ;;  %v5525_v21 = vadd.f32 %v5521_v29, %v5507_v11  ;;  %v5557_v61 = vsel %vm10903_vm13, %v5548_v40, %v5555_v12 }
 0x907   :  { %v5584_v59 = vmul.f32 %v10091_v36, %v3747_v6  ;;  %v5609_v50 = vrot.slane %v5603_v63, 4  ;;  %v5575_v44 = vsel %vm10904_vm11, %v5566_v2, %v5573_v28  ;;  %v5602_v27 = vmul.f32 %v10114_v41, %v4948_v22 }
 0x908   :  { %5616 = vst [vmem:[%s10186_s14] sm:$0xff] %v5614_v35  ;;  %v5539_v20 = vsel %vm10901_vm3, %v5530_v15, %v5537_v16 }
 0x909   :  { %v5543_v45 = vadd.f32 %v5539_v20, %v5525_v21  ;;  %v5593_v23 = vsel %vm10905_vm5, %v5584_v59, %v5591_v47  ;;  %v5611_v42 = vsel %vm10906_vm9, %v5602_v27, %v5609_v50 }
 0x90b   :  { %v5561_v7 = vadd.f32 %v5557_v61, %v5543_v45 }
 0x90d   :  { %v5579_v58 = vadd.f32 %v5575_v44, %v5561_v7 }
 0x90f   :  { %v5597_v18 = vadd.f32 %v5593_v23, %v5579_v58 }
 0x911   :  { %v5615_v37 = vadd.f32 %v5611_v42, %v5597_v18 }
 0x913   :  { %5617 = vst [vmem:[%s10186_s14 + $0x8] sm:$0xff] %v5615_v37 }
 0x914   :  { %5622 = vsyncpa [#allocation4], 1 }

</bundles_post_ra>
